<compile_context>
chip_gen: v7x
topology: tpu7x:2x2x1
jax: 0.10.0
libtpu: 0.0.40
codegen_flags: <defaults>
</compile_context>

<pallas_src>
import functools

import jax
import jax.numpy as jnp
from jax.experimental import pallas as pl
from jax.experimental.pallas import tpu as pltpu

NEG_SLOPE = 0.2                 # GATConv default negative_slope
MASK_BIAS = -1e9                # additive mask for non-edges
VMEM_LIMIT = 32 * 1024 * 1024   # explicit scoped-VMEM limit (v5e default is 16 MiB)


# ---------------------------------------------------------------------------
# Projection kernel: xaug = x @ [W | W_src | W_dst]  ->  xp, s_src^T, s_dst
# ---------------------------------------------------------------------------

def _proj_kernel(x_ref, waug_ref, xp_ref, ssrcT_ref, sdst_ref, *, HC, H):
    # bf16 x bf16 MXU matmul, f32 accumulation
    r = jnp.dot(x_ref[...], waug_ref[...],
                preferred_element_type=jnp.float32)          # (TM, HC + 2H)
    xp_ref[...] = r[:, :HC].astype(xp_ref.dtype)             # bf16 value slab
    ssrcT_ref[...] = r[:, HC:HC + H].T                       # (H, TM) lane-major
    sdst_ref[...] = r[:, HC + H:HC + 2 * H]                  # (TM, H)


def _project(x, w_aug, *, H, C, row_tile):
    N, F = x.shape
    HC = H * C
    kernel = functools.partial(_proj_kernel, HC=HC, H=H)
    return pl.pallas_call(
        kernel,
        grid=(N // row_tile,),
        in_specs=[
            pl.BlockSpec((row_tile, F), lambda i: (i, 0)),
            pl.BlockSpec((F, HC + 2 * H), lambda i: (0, 0)),
        ],
        out_specs=[
            pl.BlockSpec((row_tile, HC), lambda i: (i, 0)),
            pl.BlockSpec((H, row_tile), lambda i: (0, i)),
            pl.BlockSpec((row_tile, H), lambda i: (i, 0)),
        ],
        out_shape=[
            jax.ShapeDtypeStruct((N, HC), jnp.bfloat16),     # xp (values, bf16)
            jax.ShapeDtypeStruct((H, N), jnp.float32),       # s_src^T (lane-major)
            jax.ShapeDtypeStruct((N, H), jnp.float32),       # s_dst
        ],
        compiler_params=pltpu.CompilerParams(
            dimension_semantics=("parallel",),
            vmem_limit_bytes=VMEM_LIMIT),
    )(x, w_aug)


# ---------------------------------------------------------------------------
# Flash-style attention kernel: grid = (q_tiles, k_tiles), online softmax
# ---------------------------------------------------------------------------

def _attn_kernel(sdst_ref, ssrcT_ref, xp_ref, adjb_ref, bias_ref, o_ref,
                 m_ref, l_ref, acc_ref, *, H, C, concat, log_softmax):
    ki = pl.program_id(1)

    @pl.when(ki == 0)
    def _():
        m_ref[...] = jnp.full_like(m_ref, -jnp.inf)
        l_ref[...] = jnp.zeros_like(l_ref)
        acc_ref[...] = jnp.zeros_like(acc_ref)

    sdst = sdst_ref[...]                  # (TQ, H)  f32
    ssrcT = ssrcT_ref[...]                # (H, TK)  f32, already lane-major
    adjb = adjb_ref[...]                  # (TQ, TK) bf16 mask (upcasts in the add)
    xp = xp_ref[...]                      # (TK, H*C) bf16 values

    for h in range(H):                    # heads unrolled (H is small)
        # e[i, j] = LeakyReLU(s_dst[i] + s_src[j]) + mask_bias[i, j]
        e = sdst[:, h:h + 1] + ssrcT[h:h + 1, :]             # (TQ, TK)
        e = jnp.where(e > 0, e, NEG_SLOPE * e)
        e = e + adjb                                         # bf16 -> f32 per vreg

        m_prev = m_ref[:, h:h + 1]
        m_new = jnp.maximum(m_prev, jnp.max(e, axis=-1, keepdims=True))
        scale = jnp.exp(m_prev - m_new)
        p = jnp.exp(e - m_new)                               # (TQ, TK)

        l_ref[:, h:h + 1] = (scale * l_ref[:, h:h + 1]
                             + jnp.sum(p, axis=-1, keepdims=True))
        acc_ref[:, h * C:(h + 1) * C] = (
            scale * acc_ref[:, h * C:(h + 1) * C]
            + jnp.dot(p.astype(jnp.bfloat16), xp[:, h * C:(h + 1) * C],
                      preferred_element_type=jnp.float32))
        m_ref[:, h:h + 1] = m_new

    @pl.when(ki == pl.num_programs(1) - 1)
    def _():
        outs = []
        for h in range(H):
            # exact divide in the epilogue (runs once per output tile)
            outs.append(acc_ref[:, h * C:(h + 1) * C] / l_ref[:, h:h + 1])
        if concat:
            out = jnp.concatenate(outs, axis=-1)             # (TQ, H*C)
        else:
            out = outs[0]
            for o in outs[1:]:
                out = out + o
            out = out * (1.0 / H)                            # mean over heads
        out = out + bias_ref[...]
        if log_softmax:                                      # over channel dim
            mx = jnp.max(out, axis=-1, keepdims=True)
            s = out - mx
            out = s - jnp.log(jnp.sum(jnp.exp(s), axis=-1, keepdims=True))
        o_ref[...] = out.astype(o_ref.dtype)


def _attention(sdst, ssrcT, xp, adj_bias, bias, *, H, C, concat, log_softmax,
               out_dtype, tq, tk):
    N = sdst.shape[0]
    HC = H * C
    out_dim = HC if concat else C
    kernel = functools.partial(_attn_kernel, H=H, C=C, concat=concat,
                               log_softmax=log_softmax)
    return pl.pallas_call(
        kernel,
        grid=(N // tq, N // tk),
        in_specs=[
            pl.BlockSpec((tq, H), lambda qi, ki: (qi, 0)),    # s_dst   (q tile)
            pl.BlockSpec((H, tk), lambda qi, ki: (0, ki)),    # s_src^T (k tile)
            pl.BlockSpec((tk, HC), lambda qi, ki: (ki, 0)),   # values  (k tile)
            pl.BlockSpec((tq, tk), lambda qi, ki: (qi, ki)),  # bf16 mask tile
            pl.BlockSpec((1, out_dim), lambda qi, ki: (0, 0)),
        ],
        out_specs=pl.BlockSpec((tq, out_dim), lambda qi, ki: (qi, 0)),
        out_shape=jax.ShapeDtypeStruct((N, out_dim), out_dtype),
        scratch_shapes=[
            pltpu.VMEM((tq, H), jnp.float32),    # running max  m
            pltpu.VMEM((tq, H), jnp.float32),    # running sum  l
            pltpu.VMEM((tq, HC), jnp.float32),   # accumulator
        ],
        compiler_params=pltpu.CompilerParams(
            dimension_semantics=("parallel", "arbitrary"),
            vmem_limit_bytes=VMEM_LIMIT),
    )(sdst, ssrcT, xp, adj_bias, bias)


# ---------------------------------------------------------------------------
# One GATConv layer (eval mode) = projection call + attention call
# ---------------------------------------------------------------------------

def gat_conv(x, adj_bias, w, a_src, a_dst, b, *, concat, log_softmax,
             out_dtype, tq, tk):
    H, C = a_src.shape
    F = w.shape[0]
    # Fold attention-vector contractions into the projection weight:
    #   s_src[n,h] = sum_c xp[n,h,c]*a_src[h,c] = x @ (W reshaped · a_src)
    w_r = w.reshape(F, H, C)
    w_src = jnp.einsum("fhc,hc->fh", w_r, a_src)
    w_dst = jnp.einsum("fhc,hc->fh", w_r, a_dst)
    w_aug = jnp.concatenate([w, w_src, w_dst], axis=1).astype(jnp.bfloat16)

    xp, ssrcT, sdst = _project(x, w_aug, H=H, C=C, row_tile=tq)
    bias = b.reshape(1, -1).astype(jnp.float32)
    return _attention(sdst, ssrcT, xp, adj_bias, bias, H=H, C=C,
                      concat=concat, log_softmax=log_softmax,
                      out_dtype=out_dtype, tq=tq, tk=tk)


def gat_forward(x, adj_bias, params1, params2):
    N = x.shape[0]
    tq = 128 if N % 128 == 0 else N
    tk = 128 if N % 128 == 0 else N
    assert N % tq == 0 and N % tk == 0

    w1, as1, ad1, b1 = params1
    w2, as2, ad2, b2 = params2

    x = x.astype(jnp.bfloat16)            # bf16 MXU operands; dropout = identity
    h1 = gat_conv(x, adj_bias, w1, as1, ad1, b1, concat=True,
                  log_softmax=False, out_dtype=jnp.bfloat16, tq=tq, tk=tk)
    out = gat_conv(h1, adj_bias, w2, as2, ad2, b2, concat=False,
                   log_softmax=True, out_dtype=jnp.float32, tq=tq, tk=tk)
    return out


# ---------------------------------------------------------------------------
# Main
# ---------------------------------------------------------------------------

if __name__ == "__main__":
    N = 256              # number of graph nodes (2x2 tile grid at TQ=TK=128)
    in_channels = 8
    hidden_channels = 8
    out_channels = 4
    heads = 4
    output_heads = 1
    E = 1024             # number of directed edges

    key = jax.random.PRNGKey(0)
    (k_x, k_src, k_dst, k_w1, k_as1, k_ad1, k_b1,
     k_w2, k_as2, k_ad2, k_b2) = jax.random.split(key, 11)

    # node features and edge_index (PyG convention: row0 = source, row1 = target)
    x = jax.random.normal(k_x, (N, in_channels), dtype=jnp.float32)
    src = jax.random.randint(k_src, (E,), 0, N)
    dst = jax.random.randint(k_dst, (E,), 0, N)
    edge_index = jnp.stack([src, dst], axis=0)          # (2, E)

    # dense adjacency [target, source] + self loops (GATConv add_self_loops=True),
    # precomputed once as an additive bias mask stored in bf16.
    adj = jnp.zeros((N, N), dtype=jnp.float32)
    adj = adj.at[edge_index[1], edge_index[0]].set(1.0)
    adj = adj.at[jnp.arange(N), jnp.arange(N)].set(1.0)
    adj_bias = jnp.where(adj > 0, 0.0, MASK_BIAS).astype(jnp.bfloat16)

    def glorot(k, shape):
        fan = sum(shape[-2:]) if len(shape) > 1 else shape[-1]
        return jax.random.normal(k, shape, dtype=jnp.float32) * jnp.sqrt(2.0 / fan)

    # layer 1: GATConv(in_channels, hidden_channels, heads=heads, concat=True)
    params1 = (
        glorot(k_w1, (in_channels, heads * hidden_channels)),   # lin weight
        glorot(k_as1, (heads, hidden_channels)),                # att_src
        glorot(k_ad1, (heads, hidden_channels)),                # att_dst
        0.01 * jax.random.normal(k_b1, (heads * hidden_channels,),
                                 dtype=jnp.float32),            # bias
    )
    # layer 2: GATConv(hidden*heads, out_channels, heads=1, concat=False)
    params2 = (
        glorot(k_w2, (heads * hidden_channels, output_heads * out_channels)),
        glorot(k_as2, (output_heads, out_channels)),
        glorot(k_ad2, (output_heads, out_channels)),
        0.01 * jax.random.normal(k_b2, (out_channels,), dtype=jnp.float32),
    )

    out = jax.jit(gat_forward)(x, adj_bias, params1, params2)
    out = jax.block_until_ready(out)
    assert out.shape == (N, out_channels)
    assert bool(jnp.all(jnp.isfinite(out)))
    print("KERNEL_OK")
</pallas_src>

<mosaic_0001>
module attributes {stable_mosaic.version = 11 : i64} {
  func.func @_proj_kernel(%arg0: i32, %arg1: memref<128x8xbf16, #tpu.memory_space<vmem>>, %arg2: memref<8x40xbf16, #tpu.memory_space<vmem>>, %arg3: memref<128x32xbf16, #tpu.memory_space<vmem>>, %arg4: memref<4x128xf32, #tpu.memory_space<vmem>>, %arg5: memref<128x4xf32, #tpu.memory_space<vmem>>) attributes {dimension_semantics = [#tpu.dimension_semantics<parallel>], iteration_bounds = array<i64: 2>, scalar_prefetch = 0 : i64, scratch_operands = 0 : i64, tpu.core_type = #tpu.core_type<tc>, window_params = [{transform_indices = @transform_0, window_bounds = array<i64: 128, 8>}, {pipeline_mode = #tpu.pipeline_mode<synchronous>, transform_indices = @transform_1, window_bounds = array<i64: 8, 40>}, {transform_indices = @transform_2, window_bounds = array<i64: 128, 32>}, {transform_indices = @transform_3, window_bounds = array<i64: 4, 128>}, {transform_indices = @transform_4, window_bounds = array<i64: 128, 4>}]} {
    %c0 = arith.constant 0 : index
    %c0_0 = arith.constant 0 : index
    %0 = vector.load %arg1[%c0, %c0_0] : memref<128x8xbf16, #tpu.memory_space<vmem>>, vector<128x8xbf16>
    %c0_1 = arith.constant 0 : index
    %c0_2 = arith.constant 0 : index
    %1 = vector.load %arg2[%c0_1, %c0_2] : memref<8x40xbf16, #tpu.memory_space<vmem>>, vector<8x40xbf16>
    %cst = arith.constant dense<0.000000e+00> : vector<128x40xf32>
    %2 = tpu.matmul %0, %1, %cst {dimension_numbers = #tpu.dot_dimension_numbers<[1], [0], [0], [1], [0, 0, 1, 1], [], []>} : vector<128x8xbf16>, vector<8x40xbf16>, vector<128x40xf32> -> vector<128x40xf32>
    %3 = vector.extract_strided_slice %2 {offsets = [0, 0], sizes = [128, 32], strides = [1, 1]} : vector<128x40xf32> to vector<128x32xf32>
    %4 = arith.truncf %3 : vector<128x32xf32> to vector<128x32xbf16>
    %c0_3 = arith.constant 0 : index
    %c0_4 = arith.constant 0 : index
    %5 = vector.load %arg3[%c0_3, %c0_4] : memref<128x32xbf16, #tpu.memory_space<vmem>>, vector<128x32xbf16>
    tpu.vector_store %arg3[%c0_3, %c0_4], %4 {strides = array<i32>} : memref<128x32xbf16, #tpu.memory_space<vmem>>, vector<128x32xbf16>,
    %6 = vector.extract_strided_slice %2 {offsets = [0, 32], sizes = [128, 4], strides = [1, 1]} : vector<128x40xf32> to vector<128x4xf32>
    %7 = tpu.transpose %6, [1, 0] : vector<128x4xf32> -> vector<4x128xf32>
    %c0_5 = arith.constant 0 : index
    %c0_6 = arith.constant 0 : index
    %8 = vector.load %arg4[%c0_5, %c0_6] : memref<4x128xf32, #tpu.memory_space<vmem>>, vector<4x128xf32>
    tpu.vector_store %arg4[%c0_5, %c0_6], %7 {strides = array<i32>} : memref<4x128xf32, #tpu.memory_space<vmem>>, vector<4x128xf32>,
    %9 = vector.extract_strided_slice %2 {offsets = [0, 36], sizes = [128, 4], strides = [1, 1]} : vector<128x40xf32> to vector<128x4xf32>
    %c0_7 = arith.constant 0 : index
    %c0_8 = arith.constant 0 : index
    %10 = vector.load %arg5[%c0_7, %c0_8] : memref<128x4xf32, #tpu.memory_space<vmem>>, vector<128x4xf32>
    tpu.vector_store %arg5[%c0_7, %c0_8], %9 {strides = array<i32>} : memref<128x4xf32, #tpu.memory_space<vmem>>, vector<128x4xf32>,
    return
  }
  func.func @transform_0(%arg0: i32) -> (i32, i32) {
    %c0_i32 = arith.constant 0 : i32
    %c0_i32_0 = arith.constant 0 : i32
    return %arg0, %c0_i32 : i32, i32
  }
  func.func @transform_1(%arg0: i32) -> (i32, i32) {
    %c0_i32 = arith.constant 0 : i32
    %c0_i32_0 = arith.constant 0 : i32
    %c0_i32_1 = arith.constant 0 : i32
    return %c0_i32, %c0_i32_0 : i32, i32
  }
  func.func @transform_2(%arg0: i32) -> (i32, i32) {
    %c0_i32 = arith.constant 0 : i32
    %c0_i32_0 = arith.constant 0 : i32
    return %arg0, %c0_i32 : i32, i32
  }
  func.func @transform_3(%arg0: i32) -> (i32, i32) {
    %c0_i32 = arith.constant 0 : i32
    %c0_i32_0 = arith.constant 0 : i32
    return %c0_i32, %arg0 : i32, i32
  }
  func.func @transform_4(%arg0: i32) -> (i32, i32) {
    %c0_i32 = arith.constant 0 : i32
    %c0_i32_0 = arith.constant 0 : i32
    return %arg0, %c0_i32 : i32, i32
  }
}

module attributes {stable_mosaic.version = 11 : i64} {
  func.func @_proj_kernel(%arg0: i32, %arg1: memref<128x32xbf16, #tpu.memory_space<vmem>>, %arg2: memref<32x6xbf16, #tpu.memory_space<vmem>>, %arg3: memref<128x4xbf16, #tpu.memory_space<vmem>>, %arg4: memref<1x128xf32, #tpu.memory_space<vmem>>, %arg5: memref<128x1xf32, #tpu.memory_space<vmem>>) attributes {dimension_semantics = [#tpu.dimension_semantics<parallel>], iteration_bounds = array<i64: 2>, scalar_prefetch = 0 : i64, scratch_operands = 0 : i64, tpu.core_type = #tpu.core_type<tc>, window_params = [{transform_indices = @transform_0, window_bounds = array<i64: 128, 32>}, {pipeline_mode = #tpu.pipeline_mode<synchronous>, transform_indices = @transform_1, window_bounds = array<i64: 32, 6>}, {transform_indices = @transform_2, window_bounds = array<i64: 128, 4>}, {transform_indices = @transform_3, window_bounds = array<i64: 1, 128>}, {transform_indices = @transform_4, window_bounds = array<i64: 128, 1>}]} {
    %c0 = arith.constant 0 : index
    %c0_0 = arith.constant 0 : index
    %0 = vector.load %arg1[%c0, %c0_0] : memref<128x32xbf16, #tpu.memory_space<vmem>>, vector<128x32xbf16>
    %c0_1 = arith.constant 0 : index
    %c0_2 = arith.constant 0 : index
    %1 = vector.load %arg2[%c0_1, %c0_2] : memref<32x6xbf16, #tpu.memory_space<vmem>>, vector<32x6xbf16>
    %cst = arith.constant dense<0.000000e+00> : vector<128x6xf32>
    %2 = tpu.matmul %0, %1, %cst {dimension_numbers = #tpu.dot_dimension_numbers<[1], [0], [0], [1], [0, 0, 1, 1], [], []>} : vector<128x32xbf16>, vector<32x6xbf16>, vector<128x6xf32> -> vector<128x6xf32>
    %3 = vector.extract_strided_slice %2 {offsets = [0, 0], sizes = [128, 4], strides = [1, 1]} : vector<128x6xf32> to vector<128x4xf32>
    %4 = arith.truncf %3 : vector<128x4xf32> to vector<128x4xbf16>
    %c0_3 = arith.constant 0 : index
    %c0_4 = arith.constant 0 : index
    %5 = vector.load %arg3[%c0_3, %c0_4] : memref<128x4xbf16, #tpu.memory_space<vmem>>, vector<128x4xbf16>
    tpu.vector_store %arg3[%c0_3, %c0_4], %4 {strides = array<i32>} : memref<128x4xbf16, #tpu.memory_space<vmem>>, vector<128x4xbf16>,
    %6 = vector.extract_strided_slice %2 {offsets = [0, 4], sizes = [128, 1], strides = [1, 1]} : vector<128x6xf32> to vector<128x1xf32>
    %7 = tpu.transpose %6, [1, 0] : vector<128x1xf32> -> vector<1x128xf32>
    %c0_5 = arith.constant 0 : index
    %c0_6 = arith.constant 0 : index
    %8 = vector.load %arg4[%c0_5, %c0_6] : memref<1x128xf32, #tpu.memory_space<vmem>>, vector<1x128xf32>
    tpu.vector_store %arg4[%c0_5, %c0_6], %7 {strides = array<i32>} : memref<1x128xf32, #tpu.memory_space<vmem>>, vector<1x128xf32>,
    %9 = vector.extract_strided_slice %2 {offsets = [0, 5], sizes = [128, 1], strides = [1, 1]} : vector<128x6xf32> to vector<128x1xf32>
    %c0_7 = arith.constant 0 : index
    %c0_8 = arith.constant 0 : index
    %10 = vector.load %arg5[%c0_7, %c0_8] : memref<128x1xf32, #tpu.memory_space<vmem>>, vector<128x1xf32>
    tpu.vector_store %arg5[%c0_7, %c0_8], %9 {strides = array<i32>} : memref<128x1xf32, #tpu.memory_space<vmem>>, vector<128x1xf32>,
    return
  }
  func.func @transform_0(%arg0: i32) -> (i32, i32) {
    %c0_i32 = arith.constant 0 : i32
    %c0_i32_0 = arith.constant 0 : i32
    return %arg0, %c0_i32 : i32, i32
  }
  func.func @transform_1(%arg0: i32) -> (i32, i32) {
    %c0_i32 = arith.constant 0 : i32
    %c0_i32_0 = arith.constant 0 : i32
    %c0_i32_1 = arith.constant 0 : i32
    return %c0_i32, %c0_i32_0 : i32, i32
  }
  func.func @transform_2(%arg0: i32) -> (i32, i32) {
    %c0_i32 = arith.constant 0 : i32
    %c0_i32_0 = arith.constant 0 : i32
    return %arg0, %c0_i32 : i32, i32
  }
  func.func @transform_3(%arg0: i32) -> (i32, i32) {
    %c0_i32 = arith.constant 0 : i32
    %c0_i32_0 = arith.constant 0 : i32
    return %c0_i32, %arg0 : i32, i32
  }
  func.func @transform_4(%arg0: i32) -> (i32, i32) {
    %c0_i32 = arith.constant 0 : i32
    %c0_i32_0 = arith.constant 0 : i32
    return %arg0, %c0_i32 : i32, i32
  }
}

module attributes {stable_mosaic.version = 11 : i64} {
  func.func @_attn_kernel(%arg0: i32, %arg1: i32, %arg2: memref<128x1xf32, #tpu.memory_space<vmem>>, %arg3: memref<1x128xf32, #tpu.memory_space<vmem>>, %arg4: memref<128x4xbf16, #tpu.memory_space<vmem>>, %arg5: memref<128x128xbf16, #tpu.memory_space<vmem>>, %arg6: memref<1x4xf32, #tpu.memory_space<vmem>>, %arg7: memref<128x4xf32, #tpu.memory_space<vmem>>, %arg8: memref<128x1xf32, #tpu.memory_space<vmem>>, %arg9: memref<128x1xf32, #tpu.memory_space<vmem>>, %arg10: memref<128x4xf32, #tpu.memory_space<vmem>>) attributes {dimension_semantics = [#tpu.dimension_semantics<parallel>, #tpu.dimension_semantics<arbitrary>], iteration_bounds = array<i64: 2, 2>, scalar_prefetch = 0 : i64, scratch_operands = 3 : i64, tpu.core_type = #tpu.core_type<tc>, window_params = [{transform_indices = @transform_0, window_bounds = array<i64: 128, 1>}, {transform_indices = @transform_1, window_bounds = array<i64: 1, 128>}, {transform_indices = @transform_2, window_bounds = array<i64: 128, 4>}, {transform_indices = @transform_3, window_bounds = array<i64: 128, 128>}, {pipeline_mode = #tpu.pipeline_mode<synchronous>, transform_indices = @transform_4, window_bounds = array<i64: 1, 4>}, {transform_indices = @transform_5, window_bounds = array<i64: 128, 4>}]} {
    %c0_i32 = arith.constant 0 : i32
    %0 = arith.cmpi eq, %arg1, %c0_i32 : i32
    %1 = arith.extui %0 : i1 to i32
    %c0_i32_0 = arith.constant 0 : i32
    %2 = arith.cmpi ne, %1, %c0_i32_0 : i32
    scf.if %2 {
      %cst_25 = arith.constant 0xFF800000 : f32
      %43 = vector.broadcast %cst_25 : f32 to vector<128x1xf32>
      %c0_26 = arith.constant 0 : index
      %c0_27 = arith.constant 0 : index
      %44 = vector.load %arg8[%c0_26, %c0_27] : memref<128x1xf32, #tpu.memory_space<vmem>>, vector<128x1xf32>
      tpu.vector_store %arg8[%c0_26, %c0_27], %43 {strides = array<i32>} : memref<128x1xf32, #tpu.memory_space<vmem>>, vector<128x1xf32>,
      %cst_28 = arith.constant 0.000000e+00 : f32
      %45 = vector.broadcast %cst_28 : f32 to vector<128x1xf32>
      %c0_29 = arith.constant 0 : index
      %c0_30 = arith.constant 0 : index
      %46 = vector.load %arg9[%c0_29, %c0_30] : memref<128x1xf32, #tpu.memory_space<vmem>>, vector<128x1xf32>
      tpu.vector_store %arg9[%c0_29, %c0_30], %45 {strides = array<i32>} : memref<128x1xf32, #tpu.memory_space<vmem>>, vector<128x1xf32>,
      %cst_31 = arith.constant 0.000000e+00 : f32
      %47 = vector.broadcast %cst_31 : f32 to vector<128x4xf32>
      %c0_32 = arith.constant 0 : index
      %c0_33 = arith.constant 0 : index
      %48 = vector.load %arg10[%c0_32, %c0_33] : memref<128x4xf32, #tpu.memory_space<vmem>>, vector<128x4xf32>
      tpu.vector_store %arg10[%c0_32, %c0_33], %47 {strides = array<i32>} : memref<128x4xf32, #tpu.memory_space<vmem>>, vector<128x4xf32>,
    } else {
    }
    %c0 = arith.constant 0 : index
    %c0_1 = arith.constant 0 : index
    %3 = vector.load %arg2[%c0, %c0_1] : memref<128x1xf32, #tpu.memory_space<vmem>>, vector<128x1xf32>
    %c0_2 = arith.constant 0 : index
    %c0_3 = arith.constant 0 : index
    %4 = vector.load %arg3[%c0_2, %c0_3] : memref<1x128xf32, #tpu.memory_space<vmem>>, vector<1x128xf32>
    %c0_4 = arith.constant 0 : index
    %c0_5 = arith.constant 0 : index
    %5 = vector.load %arg5[%c0_4, %c0_5] : memref<128x128xbf16, #tpu.memory_space<vmem>>, vector<128x128xbf16>
    %c0_6 = arith.constant 0 : index
    %c0_7 = arith.constant 0 : index
    %6 = vector.load %arg4[%c0_6, %c0_7] : memref<128x4xbf16, #tpu.memory_space<vmem>>, vector<128x4xbf16>
    %7 = vector.broadcast %3 : vector<128x1xf32> to vector<128x128xf32>
    %8 = vector.broadcast %4 : vector<1x128xf32> to vector<128x128xf32>
    %9 = arith.addf %7, %8 : vector<128x128xf32>
    %cst = arith.constant 0.000000e+00 : f32
    %10 = vector.broadcast %cst : f32 to vector<128x128xf32>
    %11 = arith.cmpf ogt, %9, %10 : vector<128x128xf32>
    %cst_8 = arith.constant 2.000000e-01 : f32
    %12 = vector.broadcast %cst_8 : f32 to vector<128x128xf32>
    %13 = arith.mulf %12, %9 : vector<128x128xf32>
    %14 = arith.select %11, %9, %13 : vector<128x128xi1>, vector<128x128xf32>
    %15 = arith.extf %5 : vector<128x128xbf16> to vector<128x128xf32>
    %16 = arith.addf %14, %15 : vector<128x128xf32>
    %c0_9 = arith.constant 0 : index
    %c0_10 = arith.constant 0 : index
    %17 = vector.load %arg8[%c0_9, %c0_10] : memref<128x1xf32, #tpu.memory_space<vmem>>, vector<128x1xf32>
    %cst_11 = arith.constant dense<0xFF800000> : vector<128xf32>
    %18 = vector.multi_reduction <maximumf>, %16, %cst_11 [1] : vector<128x128xf32> to vector<128xf32>
    %19 = vector.shape_cast %18 : vector<128xf32> to vector<128x1xf32>
    %20 = arith.maximumf %17, %19 : vector<128x1xf32>
    %21 = arith.subf %17, %20 : vector<128x1xf32>
    %22 = math.exp %21 : vector<128x1xf32>
    %23 = vector.broadcast %20 : vector<128x1xf32> to vector<128x128xf32>
    %24 = arith.subf %16, %23 : vector<128x128xf32>
    %25 = math.exp %24 : vector<128x128xf32>
    %c0_12 = arith.constant 0 : index
    %c0_13 = arith.constant 0 : index
    %26 = vector.load %arg9[%c0_12, %c0_13] : memref<128x1xf32, #tpu.memory_space<vmem>>, vector<128x1xf32>
    %27 = arith.mulf %22, %26 : vector<128x1xf32>
    %cst_14 = arith.constant dense<0.000000e+00> : vector<128xf32>
    %28 = vector.multi_reduction <add>, %25, %cst_14 [1] : vector<128x128xf32> to vector<128xf32>
    %29 = vector.shape_cast %28 : vector<128xf32> to vector<128x1xf32>
    %30 = arith.addf %27, %29 : vector<128x1xf32>
    %c0_15 = arith.constant 0 : index
    %c0_16 = arith.constant 0 : index
    %31 = vector.load %arg9[%c0_15, %c0_16] : memref<128x1xf32, #tpu.memory_space<vmem>>, vector<128x1xf32>
    tpu.vector_store %arg9[%c0_15, %c0_16], %30 {strides = array<i32>} : memref<128x1xf32, #tpu.memory_space<vmem>>, vector<128x1xf32>,
    %c0_17 = arith.constant 0 : index
    %c0_18 = arith.constant 0 : index
    %32 = vector.load %arg10[%c0_17, %c0_18] : memref<128x4xf32, #tpu.memory_space<vmem>>, vector<128x4xf32>
    %33 = vector.broadcast %22 : vector<128x1xf32> to vector<128x4xf32>
    %34 = arith.mulf %33, %32 : vector<128x4xf32>
    %35 = arith.truncf %25 : vector<128x128xf32> to vector<128x128xbf16>
    %cst_19 = arith.constant dense<0.000000e+00> : vector<128x4xf32>
    %36 = tpu.matmul %35, %6, %cst_19 {dimension_numbers = #tpu.dot_dimension_numbers<[1], [0], [0], [1], [0, 0, 1, 1], [], []>} : vector<128x128xbf16>, vector<128x4xbf16>, vector<128x4xf32> -> vector<128x4xf32>
    %37 = arith.addf %34, %36 : vector<128x4xf32>
    %c0_20 = arith.constant 0 : index
    %c0_21 = arith.constant 0 : index
    %38 = vector.load %arg10[%c0_20, %c0_21] : memref<128x4xf32, #tpu.memory_space<vmem>>, vector<128x4xf32>
    tpu.vector_store %arg10[%c0_20, %c0_21], %37 {strides = array<i32>} : memref<128x4xf32, #tpu.memory_space<vmem>>, vector<128x4xf32>,
    %c0_22 = arith.constant 0 : index
    %c0_23 = arith.constant 0 : index
    %39 = vector.load %arg8[%c0_22, %c0_23] : memref<128x1xf32, #tpu.memory_space<vmem>>, vector<128x1xf32>
    tpu.vector_store %arg8[%c0_22, %c0_23], %20 {strides = array<i32>} : memref<128x1xf32, #tpu.memory_space<vmem>>, vector<128x1xf32>,
    %c1_i32 = arith.constant 1 : i32
    %40 = arith.cmpi eq, %arg1, %c1_i32 : i32
    %41 = arith.extui %40 : i1 to i32
    %c0_i32_24 = arith.constant 0 : i32
    %42 = arith.cmpi ne, %41, %c0_i32_24 : i32
    scf.if %42 {
      %c0_25 = arith.constant 0 : index
      %c0_26 = arith.constant 0 : index
      %43 = vector.load %arg10[%c0_25, %c0_26] : memref<128x4xf32, #tpu.memory_space<vmem>>, vector<128x4xf32>
      %c0_27 = arith.constant 0 : index
      %c0_28 = arith.constant 0 : index
      %44 = vector.load %arg9[%c0_27, %c0_28] : memref<128x1xf32, #tpu.memory_space<vmem>>, vector<128x1xf32>
      %45 = vector.broadcast %44 : vector<128x1xf32> to vector<128x4xf32>
      %46 = arith.divf %43, %45 : vector<128x4xf32>
      %cst_29 = arith.constant 1.000000e+00 : f32
      %47 = vector.broadcast %cst_29 : f32 to vector<128x4xf32>
      %48 = arith.mulf %46, %47 : vector<128x4xf32>
      %c0_30 = arith.constant 0 : index
      %c0_31 = arith.constant 0 : index
      %49 = vector.load %arg6[%c0_30, %c0_31] : memref<1x4xf32, #tpu.memory_space<vmem>>, vector<1x4xf32>
      %50 = vector.broadcast %49 : vector<1x4xf32> to vector<128x4xf32>
      %51 = arith.addf %48, %50 : vector<128x4xf32>
      %cst_32 = arith.constant dense<0xFF800000> : vector<128xf32>
      %52 = vector.multi_reduction <maximumf>, %51, %cst_32 [1] : vector<128x4xf32> to vector<128xf32>
      %53 = vector.shape_cast %52 : vector<128xf32> to vector<128x1xf32>
      %54 = vector.broadcast %53 : vector<128x1xf32> to vector<128x4xf32>
      %55 = arith.subf %51, %54 : vector<128x4xf32>
      %56 = math.exp %55 : vector<128x4xf32>
      %cst_33 = arith.constant dense<0.000000e+00> : vector<128xf32>
      %57 = vector.multi_reduction <add>, %56, %cst_33 [1] : vector<128x4xf32> to vector<128xf32>
      %58 = vector.shape_cast %57 : vector<128xf32> to vector<128x1xf32>
      %59 = math.log %58 : vector<128x1xf32>
      %60 = vector.broadcast %59 : vector<128x1xf32> to vector<128x4xf32>
      %61 = arith.subf %55, %60 : vector<128x4xf32>
      %c0_34 = arith.constant 0 : index
      %c0_35 = arith.constant 0 : index
      %62 = vector.load %arg7[%c0_34, %c0_35] : memref<128x4xf32, #tpu.memory_space<vmem>>, vector<128x4xf32>
      tpu.vector_store %arg7[%c0_34, %c0_35], %61 {strides = array<i32>} : memref<128x4xf32, #tpu.memory_space<vmem>>, vector<128x4xf32>,
    } else {
    }
    return
  }
  func.func @transform_0(%arg0: i32, %arg1: i32) -> (i32, i32) {
    %c0_i32 = arith.constant 0 : i32
    %c0_i32_0 = arith.constant 0 : i32
    return %arg0, %c0_i32 : i32, i32
  }
  func.func @transform_1(%arg0: i32, %arg1: i32) -> (i32, i32) {
    %c0_i32 = arith.constant 0 : i32
    %c0_i32_0 = arith.constant 0 : i32
    return %c0_i32, %arg1 : i32, i32
  }
  func.func @transform_2(%arg0: i32, %arg1: i32) -> (i32, i32) {
    %c0_i32 = arith.constant 0 : i32
    %c0_i32_0 = arith.constant 0 : i32
    return %arg1, %c0_i32 : i32, i32
  }
  func.func @transform_3(%arg0: i32, %arg1: i32) -> (i32, i32) {
    %c0_i32 = arith.constant 0 : i32
    return %arg0, %arg1 : i32, i32
  }
  func.func @transform_4(%arg0: i32, %arg1: i32) -> (i32, i32) {
    %c0_i32 = arith.constant 0 : i32
    %c0_i32_0 = arith.constant 0 : i32
    %c0_i32_1 = arith.constant 0 : i32
    return %c0_i32, %c0_i32_0 : i32, i32
  }
  func.func @transform_5(%arg0: i32, %arg1: i32) -> (i32, i32) {
    %c0_i32 = arith.constant 0 : i32
    %c0_i32_0 = arith.constant 0 : i32
    return %arg0, %c0_i32 : i32, i32
  }
}

module attributes {stable_mosaic.version = 11 : i64} {
  func.func @_attn_kernel(%arg0: i32, %arg1: i32, %arg2: memref<128x4xf32, #tpu.memory_space<vmem>>, %arg3: memref<4x128xf32, #tpu.memory_space<vmem>>, %arg4: memref<128x32xbf16, #tpu.memory_space<vmem>>, %arg5: memref<128x128xbf16, #tpu.memory_space<vmem>>, %arg6: memref<1x32xf32, #tpu.memory_space<vmem>>, %arg7: memref<128x32xbf16, #tpu.memory_space<vmem>>, %arg8: memref<128x4xf32, #tpu.memory_space<vmem>>, %arg9: memref<128x4xf32, #tpu.memory_space<vmem>>, %arg10: memref<128x32xf32, #tpu.memory_space<vmem>>) attributes {dimension_semantics = [#tpu.dimension_semantics<parallel>, #tpu.dimension_semantics<arbitrary>], iteration_bounds = array<i64: 2, 2>, scalar_prefetch = 0 : i64, scratch_operands = 3 : i64, tpu.core_type = #tpu.core_type<tc>, window_params = [{transform_indices = @transform_0, window_bounds = array<i64: 128, 4>}, {transform_indices = @transform_1, window_bounds = array<i64: 4, 128>}, {transform_indices = @transform_2, window_bounds = array<i64: 128, 32>}, {transform_indices = @transform_3, window_bounds = array<i64: 128, 128>}, {pipeline_mode = #tpu.pipeline_mode<synchronous>, transform_indices = @transform_4, window_bounds = array<i64: 1, 32>}, {transform_indices = @transform_5, window_bounds = array<i64: 128, 32>}]} {
    %c0_i32 = arith.constant 0 : i32
    %0 = arith.cmpi eq, %arg1, %c0_i32 : i32
    %1 = arith.extui %0 : i1 to i32
    %c0_i32_0 = arith.constant 0 : i32
    %2 = arith.cmpi ne, %1, %c0_i32_0 : i32
    scf.if %2 {
      %cst_70 = arith.constant 0xFF800000 : f32
      %154 = vector.broadcast %cst_70 : f32 to vector<128x4xf32>
      %c0_71 = arith.constant 0 : index
      %c0_72 = arith.constant 0 : index
      %155 = vector.load %arg8[%c0_71, %c0_72] : memref<128x4xf32, #tpu.memory_space<vmem>>, vector<128x4xf32>
      tpu.vector_store %arg8[%c0_71, %c0_72], %154 {strides = array<i32>} : memref<128x4xf32, #tpu.memory_space<vmem>>, vector<128x4xf32>,
      %cst_73 = arith.constant 0.000000e+00 : f32
      %156 = vector.broadcast %cst_73 : f32 to vector<128x4xf32>
      %c0_74 = arith.constant 0 : index
      %c0_75 = arith.constant 0 : index
      %157 = vector.load %arg9[%c0_74, %c0_75] : memref<128x4xf32, #tpu.memory_space<vmem>>, vector<128x4xf32>
      tpu.vector_store %arg9[%c0_74, %c0_75], %156 {strides = array<i32>} : memref<128x4xf32, #tpu.memory_space<vmem>>, vector<128x4xf32>,
      %cst_76 = arith.constant 0.000000e+00 : f32
      %158 = vector.broadcast %cst_76 : f32 to vector<128x32xf32>
      %c0_77 = arith.constant 0 : index
      %c0_78 = arith.constant 0 : index
      %159 = vector.load %arg10[%c0_77, %c0_78] : memref<128x32xf32, #tpu.memory_space<vmem>>, vector<128x32xf32>
      tpu.vector_store %arg10[%c0_77, %c0_78], %158 {strides = array<i32>} : memref<128x32xf32, #tpu.memory_space<vmem>>, vector<128x32xf32>,
    } else {
    }
    %c0 = arith.constant 0 : index
    %c0_1 = arith.constant 0 : index
    %3 = vector.load %arg2[%c0, %c0_1] : memref<128x4xf32, #tpu.memory_space<vmem>>, vector<128x4xf32>
    %c0_2 = arith.constant 0 : index
    %c0_3 = arith.constant 0 : index
    %4 = vector.load %arg3[%c0_2, %c0_3] : memref<4x128xf32, #tpu.memory_space<vmem>>, vector<4x128xf32>
    %c0_4 = arith.constant 0 : index
    %c0_5 = arith.constant 0 : index
    %5 = vector.load %arg5[%c0_4, %c0_5] : memref<128x128xbf16, #tpu.memory_space<vmem>>, vector<128x128xbf16>
    %c0_6 = arith.constant 0 : index
    %c0_7 = arith.constant 0 : index
    %6 = vector.load %arg4[%c0_6, %c0_7] : memref<128x32xbf16, #tpu.memory_space<vmem>>, vector<128x32xbf16>
    %7 = vector.extract_strided_slice %3 {offsets = [0, 0], sizes = [128, 1], strides = [1, 1]} : vector<128x4xf32> to vector<128x1xf32>
    %8 = vector.extract_strided_slice %4 {offsets = [0, 0], sizes = [1, 128], strides = [1, 1]} : vector<4x128xf32> to vector<1x128xf32>
    %9 = vector.broadcast %7 : vector<128x1xf32> to vector<128x128xf32>
    %10 = vector.broadcast %8 : vector<1x128xf32> to vector<128x128xf32>
    %11 = arith.addf %9, %10 : vector<128x128xf32>
    %cst = arith.constant 0.000000e+00 : f32
    %12 = vector.broadcast %cst : f32 to vector<128x128xf32>
    %13 = arith.cmpf ogt, %11, %12 : vector<128x128xf32>
    %cst_8 = arith.constant 2.000000e-01 : f32
    %14 = vector.broadcast %cst_8 : f32 to vector<128x128xf32>
    %15 = arith.mulf %14, %11 : vector<128x128xf32>
    %16 = arith.select %13, %11, %15 : vector<128x128xi1>, vector<128x128xf32>
    %17 = arith.extf %5 : vector<128x128xbf16> to vector<128x128xf32>
    %18 = arith.addf %16, %17 : vector<128x128xf32>
    %c0_9 = arith.constant 0 : index
    %c0_10 = arith.constant 0 : index
    %19 = vector.load %arg8[%c0_9, %c0_10] : memref<128x4xf32, #tpu.memory_space<vmem>>, vector<128x1xf32>
    %cst_11 = arith.constant dense<0xFF800000> : vector<128xf32>
    %20 = vector.multi_reduction <maximumf>, %18, %cst_11 [1] : vector<128x128xf32> to vector<128xf32>
    %21 = vector.shape_cast %20 : vector<128xf32> to vector<128x1xf32>
    %22 = arith.maximumf %19, %21 : vector<128x1xf32>
    %23 = arith.subf %19, %22 : vector<128x1xf32>
    %24 = math.exp %23 : vector<128x1xf32>
    %25 = vector.broadcast %22 : vector<128x1xf32> to vector<128x128xf32>
    %26 = arith.subf %18, %25 : vector<128x128xf32>
    %27 = math.exp %26 : vector<128x128xf32>
    %c0_12 = arith.constant 0 : index
    %c0_13 = arith.constant 0 : index
    %28 = vector.load %arg9[%c0_12, %c0_13] : memref<128x4xf32, #tpu.memory_space<vmem>>, vector<128x1xf32>
    %29 = arith.mulf %24, %28 : vector<128x1xf32>
    %cst_14 = arith.constant dense<0.000000e+00> : vector<128xf32>
    %30 = vector.multi_reduction <add>, %27, %cst_14 [1] : vector<128x128xf32> to vector<128xf32>
    %31 = vector.shape_cast %30 : vector<128xf32> to vector<128x1xf32>
    %32 = arith.addf %29, %31 : vector<128x1xf32>
    %c0_15 = arith.constant 0 : index
    %c0_16 = arith.constant 0 : index
    %33 = vector.load %arg9[%c0_15, %c0_16] : memref<128x4xf32, #tpu.memory_space<vmem>>, vector<128x1xf32>
    tpu.vector_store %arg9[%c0_15, %c0_16], %32 {strides = array<i32>} : memref<128x4xf32, #tpu.memory_space<vmem>>, vector<128x1xf32>,
    %c0_17 = arith.constant 0 : index
    %c0_18 = arith.constant 0 : index
    %34 = vector.load %arg10[%c0_17, %c0_18] : memref<128x32xf32, #tpu.memory_space<vmem>>, vector<128x8xf32>
    %35 = vector.broadcast %24 : vector<128x1xf32> to vector<128x8xf32>
    %36 = arith.mulf %35, %34 : vector<128x8xf32>
    %37 = arith.truncf %27 : vector<128x128xf32> to vector<128x128xbf16>
    %38 = vector.extract_strided_slice %6 {offsets = [0, 0], sizes = [128, 8], strides = [1, 1]} : vector<128x32xbf16> to vector<128x8xbf16>
    %cst_19 = arith.constant dense<0.000000e+00> : vector<128x8xf32>
    %39 = tpu.matmul %37, %38, %cst_19 {dimension_numbers = #tpu.dot_dimension_numbers<[1], [0], [0], [1], [0, 0, 1, 1], [], []>} : vector<128x128xbf16>, vector<128x8xbf16>, vector<128x8xf32> -> vector<128x8xf32>
    %40 = arith.addf %36, %39 : vector<128x8xf32>
    %c0_20 = arith.constant 0 : index
    %c0_21 = arith.constant 0 : index
    %41 = vector.load %arg10[%c0_20, %c0_21] : memref<128x32xf32, #tpu.memory_space<vmem>>, vector<128x8xf32>
    tpu.vector_store %arg10[%c0_20, %c0_21], %40 {strides = array<i32>} : memref<128x32xf32, #tpu.memory_space<vmem>>, vector<128x8xf32>,
    %c0_22 = arith.constant 0 : index
    %c0_23 = arith.constant 0 : index
    %42 = vector.load %arg8[%c0_22, %c0_23] : memref<128x4xf32, #tpu.memory_space<vmem>>, vector<128x1xf32>
    tpu.vector_store %arg8[%c0_22, %c0_23], %22 {strides = array<i32>} : memref<128x4xf32, #tpu.memory_space<vmem>>, vector<128x1xf32>,
    %43 = vector.extract_strided_slice %3 {offsets = [0, 1], sizes = [128, 1], strides = [1, 1]} : vector<128x4xf32> to vector<128x1xf32>
    %44 = vector.extract_strided_slice %4 {offsets = [1, 0], sizes = [1, 128], strides = [1, 1]} : vector<4x128xf32> to vector<1x128xf32>
    %45 = vector.broadcast %43 : vector<128x1xf32> to vector<128x128xf32>
    %46 = vector.broadcast %44 : vector<1x128xf32> to vector<128x128xf32>
    %47 = arith.addf %45, %46 : vector<128x128xf32>
    %cst_24 = arith.constant 0.000000e+00 : f32
    %48 = vector.broadcast %cst_24 : f32 to vector<128x128xf32>
    %49 = arith.cmpf ogt, %47, %48 : vector<128x128xf32>
    %cst_25 = arith.constant 2.000000e-01 : f32
    %50 = vector.broadcast %cst_25 : f32 to vector<128x128xf32>
    %51 = arith.mulf %50, %47 : vector<128x128xf32>
    %52 = arith.select %49, %47, %51 : vector<128x128xi1>, vector<128x128xf32>
    %53 = arith.extf %5 : vector<128x128xbf16> to vector<128x128xf32>
    %54 = arith.addf %52, %53 : vector<128x128xf32>
    %c0_26 = arith.constant 0 : index
    %c1 = arith.constant 1 : index
    %55 = vector.load %arg8[%c0_26, %c1] : memref<128x4xf32, #tpu.memory_space<vmem>>, vector<128x1xf32>
    %cst_27 = arith.constant dense<0xFF800000> : vector<128xf32>
    %56 = vector.multi_reduction <maximumf>, %54, %cst_27 [1] : vector<128x128xf32> to vector<128xf32>
    %57 = vector.shape_cast %56 : vector<128xf32> to vector<128x1xf32>
    %58 = arith.maximumf %55, %57 : vector<128x1xf32>
    %59 = arith.subf %55, %58 : vector<128x1xf32>
    %60 = math.exp %59 : vector<128x1xf32>
    %61 = vector.broadcast %58 : vector<128x1xf32> to vector<128x128xf32>
    %62 = arith.subf %54, %61 : vector<128x128xf32>
    %63 = math.exp %62 : vector<128x128xf32>
    %c0_28 = arith.constant 0 : index
    %c1_29 = arith.constant 1 : index
    %64 = vector.load %arg9[%c0_28, %c1_29] : memref<128x4xf32, #tpu.memory_space<vmem>>, vector<128x1xf32>
    %65 = arith.mulf %60, %64 : vector<128x1xf32>
    %cst_30 = arith.constant dense<0.000000e+00> : vector<128xf32>
    %66 = vector.multi_reduction <add>, %63, %cst_30 [1] : vector<128x128xf32> to vector<128xf32>
    %67 = vector.shape_cast %66 : vector<128xf32> to vector<128x1xf32>
    %68 = arith.addf %65, %67 : vector<128x1xf32>
    %c0_31 = arith.constant 0 : index
    %c1_32 = arith.constant 1 : index
    %69 = vector.load %arg9[%c0_31, %c1_32] : memref<128x4xf32, #tpu.memory_space<vmem>>, vector<128x1xf32>
    tpu.vector_store %arg9[%c0_31, %c1_32], %68 {strides = array<i32>} : memref<128x4xf32, #tpu.memory_space<vmem>>, vector<128x1xf32>,
    %c0_33 = arith.constant 0 : index
    %c8 = arith.constant 8 : index
    %70 = vector.load %arg10[%c0_33, %c8] : memref<128x32xf32, #tpu.memory_space<vmem>>, vector<128x8xf32>
    %71 = vector.broadcast %60 : vector<128x1xf32> to vector<128x8xf32>
    %72 = arith.mulf %71, %70 : vector<128x8xf32>
    %73 = arith.truncf %63 : vector<128x128xf32> to vector<128x128xbf16>
    %74 = vector.extract_strided_slice %6 {offsets = [0, 8], sizes = [128, 8], strides = [1, 1]} : vector<128x32xbf16> to vector<128x8xbf16>
    %cst_34 = arith.constant dense<0.000000e+00> : vector<128x8xf32>
    %75 = tpu.matmul %73, %74, %cst_34 {dimension_numbers = #tpu.dot_dimension_numbers<[1], [0], [0], [1], [0, 0, 1, 1], [], []>} : vector<128x128xbf16>, vector<128x8xbf16>, vector<128x8xf32> -> vector<128x8xf32>
    %76 = arith.addf %72, %75 : vector<128x8xf32>
    %c0_35 = arith.constant 0 : index
    %c8_36 = arith.constant 8 : index
    %77 = vector.load %arg10[%c0_35, %c8_36] : memref<128x32xf32, #tpu.memory_space<vmem>>, vector<128x8xf32>
    tpu.vector_store %arg10[%c0_35, %c8_36], %76 {strides = array<i32>} : memref<128x32xf32, #tpu.memory_space<vmem>>, vector<128x8xf32>,
    %c0_37 = arith.constant 0 : index
    %c1_38 = arith.constant 1 : index
    %78 = vector.load %arg8[%c0_37, %c1_38] : memref<128x4xf32, #tpu.memory_space<vmem>>, vector<128x1xf32>
    tpu.vector_store %arg8[%c0_37, %c1_38], %58 {strides = array<i32>} : memref<128x4xf32, #tpu.memory_space<vmem>>, vector<128x1xf32>,
    %79 = vector.extract_strided_slice %3 {offsets = [0, 2], sizes = [128, 1], strides = [1, 1]} : vector<128x4xf32> to vector<128x1xf32>
    %80 = vector.extract_strided_slice %4 {offsets = [2, 0], sizes = [1, 128], strides = [1, 1]} : vector<4x128xf32> to vector<1x128xf32>
    %81 = vector.broadcast %79 : vector<128x1xf32> to vector<128x128xf32>
    %82 = vector.broadcast %80 : vector<1x128xf32> to vector<128x128xf32>
    %83 = arith.addf %81, %82 : vector<128x128xf32>
    %cst_39 = arith.constant 0.000000e+00 : f32
    %84 = vector.broadcast %cst_39 : f32 to vector<128x128xf32>
    %85 = arith.cmpf ogt, %83, %84 : vector<128x128xf32>
    %cst_40 = arith.constant 2.000000e-01 : f32
    %86 = vector.broadcast %cst_40 : f32 to vector<128x128xf32>
    %87 = arith.mulf %86, %83 : vector<128x128xf32>
    %88 = arith.select %85, %83, %87 : vector<128x128xi1>, vector<128x128xf32>
    %89 = arith.extf %5 : vector<128x128xbf16> to vector<128x128xf32>
    %90 = arith.addf %88, %89 : vector<128x128xf32>
    %c0_41 = arith.constant 0 : index
    %c2 = arith.constant 2 : index
    %91 = vector.load %arg8[%c0_41, %c2] : memref<128x4xf32, #tpu.memory_space<vmem>>, vector<128x1xf32>
    %cst_42 = arith.constant dense<0xFF800000> : vector<128xf32>
    %92 = vector.multi_reduction <maximumf>, %90, %cst_42 [1] : vector<128x128xf32> to vector<128xf32>
    %93 = vector.shape_cast %92 : vector<128xf32> to vector<128x1xf32>
    %94 = arith.maximumf %91, %93 : vector<128x1xf32>
    %95 = arith.subf %91, %94 : vector<128x1xf32>
    %96 = math.exp %95 : vector<128x1xf32>
    %97 = vector.broadcast %94 : vector<128x1xf32> to vector<128x128xf32>
    %98 = arith.subf %90, %97 : vector<128x128xf32>
    %99 = math.exp %98 : vector<128x128xf32>
    %c0_43 = arith.constant 0 : index
    %c2_44 = arith.constant 2 : index
    %100 = vector.load %arg9[%c0_43, %c2_44] : memref<128x4xf32, #tpu.memory_space<vmem>>, vector<128x1xf32>
    %101 = arith.mulf %96, %100 : vector<128x1xf32>
    %cst_45 = arith.constant dense<0.000000e+00> : vector<128xf32>
    %102 = vector.multi_reduction <add>, %99, %cst_45 [1] : vector<128x128xf32> to vector<128xf32>
    %103 = vector.shape_cast %102 : vector<128xf32> to vector<128x1xf32>
    %104 = arith.addf %101, %103 : vector<128x1xf32>
    %c0_46 = arith.constant 0 : index
    %c2_47 = arith.constant 2 : index
    %105 = vector.load %arg9[%c0_46, %c2_47] : memref<128x4xf32, #tpu.memory_space<vmem>>, vector<128x1xf32>
    tpu.vector_store %arg9[%c0_46, %c2_47], %104 {strides = array<i32>} : memref<128x4xf32, #tpu.memory_space<vmem>>, vector<128x1xf32>,
    %c0_48 = arith.constant 0 : index
    %c16 = arith.constant 16 : index
    %106 = vector.load %arg10[%c0_48, %c16] : memref<128x32xf32, #tpu.memory_space<vmem>>, vector<128x8xf32>
    %107 = vector.broadcast %96 : vector<128x1xf32> to vector<128x8xf32>
    %108 = arith.mulf %107, %106 : vector<128x8xf32>
    %109 = arith.truncf %99 : vector<128x128xf32> to vector<128x128xbf16>
    %110 = vector.extract_strided_slice %6 {offsets = [0, 16], sizes = [128, 8], strides = [1, 1]} : vector<128x32xbf16> to vector<128x8xbf16>
    %cst_49 = arith.constant dense<0.000000e+00> : vector<128x8xf32>
    %111 = tpu.matmul %109, %110, %cst_49 {dimension_numbers = #tpu.dot_dimension_numbers<[1], [0], [0], [1], [0, 0, 1, 1], [], []>} : vector<128x128xbf16>, vector<128x8xbf16>, vector<128x8xf32> -> vector<128x8xf32>
    %112 = arith.addf %108, %111 : vector<128x8xf32>
    %c0_50 = arith.constant 0 : index
    %c16_51 = arith.constant 16 : index
    %113 = vector.load %arg10[%c0_50, %c16_51] : memref<128x32xf32, #tpu.memory_space<vmem>>, vector<128x8xf32>
    tpu.vector_store %arg10[%c0_50, %c16_51], %112 {strides = array<i32>} : memref<128x32xf32, #tpu.memory_space<vmem>>, vector<128x8xf32>,
    %c0_52 = arith.constant 0 : index
    %c2_53 = arith.constant 2 : index
    %114 = vector.load %arg8[%c0_52, %c2_53] : memref<128x4xf32, #tpu.memory_space<vmem>>, vector<128x1xf32>
    tpu.vector_store %arg8[%c0_52, %c2_53], %94 {strides = array<i32>} : memref<128x4xf32, #tpu.memory_space<vmem>>, vector<128x1xf32>,
    %115 = vector.extract_strided_slice %3 {offsets = [0, 3], sizes = [128, 1], strides = [1, 1]} : vector<128x4xf32> to vector<128x1xf32>
    %116 = vector.extract_strided_slice %4 {offsets = [3, 0], sizes = [1, 128], strides = [1, 1]} : vector<4x128xf32> to vector<1x128xf32>
    %117 = vector.broadcast %115 : vector<128x1xf32> to vector<128x128xf32>
    %118 = vector.broadcast %116 : vector<1x128xf32> to vector<128x128xf32>
    %119 = arith.addf %117, %118 : vector<128x128xf32>
    %cst_54 = arith.constant 0.000000e+00 : f32
    %120 = vector.broadcast %cst_54 : f32 to vector<128x128xf32>
    %121 = arith.cmpf ogt, %119, %120 : vector<128x128xf32>
    %cst_55 = arith.constant 2.000000e-01 : f32
    %122 = vector.broadcast %cst_55 : f32 to vector<128x128xf32>
    %123 = arith.mulf %122, %119 : vector<128x128xf32>
    %124 = arith.select %121, %119, %123 : vector<128x128xi1>, vector<128x128xf32>
    %125 = arith.extf %5 : vector<128x128xbf16> to vector<128x128xf32>
    %126 = arith.addf %124, %125 : vector<128x128xf32>
    %c0_56 = arith.constant 0 : index
    %c3 = arith.constant 3 : index
    %127 = vector.load %arg8[%c0_56, %c3] : memref<128x4xf32, #tpu.memory_space<vmem>>, vector<128x1xf32>
    %cst_57 = arith.constant dense<0xFF800000> : vector<128xf32>
    %128 = vector.multi_reduction <maximumf>, %126, %cst_57 [1] : vector<128x128xf32> to vector<128xf32>
    %129 = vector.shape_cast %128 : vector<128xf32> to vector<128x1xf32>
    %130 = arith.maximumf %127, %129 : vector<128x1xf32>
    %131 = arith.subf %127, %130 : vector<128x1xf32>
    %132 = math.exp %131 : vector<128x1xf32>
    %133 = vector.broadcast %130 : vector<128x1xf32> to vector<128x128xf32>
    %134 = arith.subf %126, %133 : vector<128x128xf32>
    %135 = math.exp %134 : vector<128x128xf32>
    %c0_58 = arith.constant 0 : index
    %c3_59 = arith.constant 3 : index
    %136 = vector.load %arg9[%c0_58, %c3_59] : memref<128x4xf32, #tpu.memory_space<vmem>>, vector<128x1xf32>
    %137 = arith.mulf %132, %136 : vector<128x1xf32>
    %cst_60 = arith.constant dense<0.000000e+00> : vector<128xf32>
    %138 = vector.multi_reduction <add>, %135, %cst_60 [1] : vector<128x128xf32> to vector<128xf32>
    %139 = vector.shape_cast %138 : vector<128xf32> to vector<128x1xf32>
    %140 = arith.addf %137, %139 : vector<128x1xf32>
    %c0_61 = arith.constant 0 : index
    %c3_62 = arith.constant 3 : index
    %141 = vector.load %arg9[%c0_61, %c3_62] : memref<128x4xf32, #tpu.memory_space<vmem>>, vector<128x1xf32>
    tpu.vector_store %arg9[%c0_61, %c3_62], %140 {strides = array<i32>} : memref<128x4xf32, #tpu.memory_space<vmem>>, vector<128x1xf32>,
    %c0_63 = arith.constant 0 : index
    %c24 = arith.constant 24 : index
    %142 = vector.load %arg10[%c0_63, %c24] : memref<128x32xf32, #tpu.memory_space<vmem>>, vector<128x8xf32>
    %143 = vector.broadcast %132 : vector<128x1xf32> to vector<128x8xf32>
    %144 = arith.mulf %143, %142 : vector<128x8xf32>
    %145 = arith.truncf %135 : vector<128x128xf32> to vector<128x128xbf16>
    %146 = vector.extract_strided_slice %6 {offsets = [0, 24], sizes = [128, 8], strides = [1, 1]} : vector<128x32xbf16> to vector<128x8xbf16>
    %cst_64 = arith.constant dense<0.000000e+00> : vector<128x8xf32>
    %147 = tpu.matmul %145, %146, %cst_64 {dimension_numbers = #tpu.dot_dimension_numbers<[1], [0], [0], [1], [0, 0, 1, 1], [], []>} : vector<128x128xbf16>, vector<128x8xbf16>, vector<128x8xf32> -> vector<128x8xf32>
    %148 = arith.addf %144, %147 : vector<128x8xf32>
    %c0_65 = arith.constant 0 : index
    %c24_66 = arith.constant 24 : index
    %149 = vector.load %arg10[%c0_65, %c24_66] : memref<128x32xf32, #tpu.memory_space<vmem>>, vector<128x8xf32>
    tpu.vector_store %arg10[%c0_65, %c24_66], %148 {strides = array<i32>} : memref<128x32xf32, #tpu.memory_space<vmem>>, vector<128x8xf32>,
    %c0_67 = arith.constant 0 : index
    %c3_68 = arith.constant 3 : index
    %150 = vector.load %arg8[%c0_67, %c3_68] : memref<128x4xf32, #tpu.memory_space<vmem>>, vector<128x1xf32>
    tpu.vector_store %arg8[%c0_67, %c3_68], %130 {strides = array<i32>} : memref<128x4xf32, #tpu.memory_space<vmem>>, vector<128x1xf32>,
    %c1_i32 = arith.constant 1 : i32
    %151 = arith.cmpi eq, %arg1, %c1_i32 : i32
    %152 = arith.extui %151 : i1 to i32
    %c0_i32_69 = arith.constant 0 : i32
    %153 = arith.cmpi ne, %152, %c0_i32_69 : i32
    scf.if %153 {
      %c0_70 = arith.constant 0 : index
      %c0_71 = arith.constant 0 : index
      %154 = vector.load %arg10[%c0_70, %c0_71] : memref<128x32xf32, #tpu.memory_space<vmem>>, vector<128x8xf32>
      %c0_72 = arith.constant 0 : index
      %c0_73 = arith.constant 0 : index
      %155 = vector.load %arg9[%c0_72, %c0_73] : memref<128x4xf32, #tpu.memory_space<vmem>>, vector<128x1xf32>
      %156 = vector.broadcast %155 : vector<128x1xf32> to vector<128x8xf32>
      %157 = arith.divf %154, %156 : vector<128x8xf32>
      %c0_74 = arith.constant 0 : index
      %c8_75 = arith.constant 8 : index
      %158 = vector.load %arg10[%c0_74, %c8_75] : memref<128x32xf32, #tpu.memory_space<vmem>>, vector<128x8xf32>
      %c0_76 = arith.constant 0 : index
      %c1_77 = arith.constant 1 : index
      %159 = vector.load %arg9[%c0_76, %c1_77] : memref<128x4xf32, #tpu.memory_space<vmem>>, vector<128x1xf32>
      %160 = vector.broadcast %159 : vector<128x1xf32> to vector<128x8xf32>
      %161 = arith.divf %158, %160 : vector<128x8xf32>
      %c0_78 = arith.constant 0 : index
      %c16_79 = arith.constant 16 : index
      %162 = vector.load %arg10[%c0_78, %c16_79] : memref<128x32xf32, #tpu.memory_space<vmem>>, vector<128x8xf32>
      %c0_80 = arith.constant 0 : index
      %c2_81 = arith.constant 2 : index
      %163 = vector.load %arg9[%c0_80, %c2_81] : memref<128x4xf32, #tpu.memory_space<vmem>>, vector<128x1xf32>
      %164 = vector.broadcast %163 : vector<128x1xf32> to vector<128x8xf32>
      %165 = arith.divf %162, %164 : vector<128x8xf32>
      %c0_82 = arith.constant 0 : index
      %c24_83 = arith.constant 24 : index
      %166 = vector.load %arg10[%c0_82, %c24_83] : memref<128x32xf32, #tpu.memory_space<vmem>>, vector<128x8xf32>
      %c0_84 = arith.constant 0 : index
      %c3_85 = arith.constant 3 : index
      %167 = vector.load %arg9[%c0_84, %c3_85] : memref<128x4xf32, #tpu.memory_space<vmem>>, vector<128x1xf32>
      %168 = vector.broadcast %167 : vector<128x1xf32> to vector<128x8xf32>
      %169 = arith.divf %166, %168 : vector<128x8xf32>
      %170 = tpu.concatenate %157, %161, %165, %169 in 1 : vector<128x8xf32>, vector<128x8xf32>, vector<128x8xf32>, vector<128x8xf32> -> vector<128x32xf32>
      %c0_86 = arith.constant 0 : index
      %c0_87 = arith.constant 0 : index
      %171 = vector.load %arg6[%c0_86, %c0_87] : memref<1x32xf32, #tpu.memory_space<vmem>>, vector<1x32xf32>
      %172 = vector.broadcast %171 : vector<1x32xf32> to vector<128x32xf32>
      %173 = arith.addf %170, %172 : vector<128x32xf32>
      %174 = arith.truncf %173 : vector<128x32xf32> to vector<128x32xbf16>
      %c0_88 = arith.constant 0 : index
      %c0_89 = arith.constant 0 : index
      %175 = vector.load %arg7[%c0_88, %c0_89] : memref<128x32xbf16, #tpu.memory_space<vmem>>, vector<128x32xbf16>
      tpu.vector_store %arg7[%c0_88, %c0_89], %174 {strides = array<i32>} : memref<128x32xbf16, #tpu.memory_space<vmem>>, vector<128x32xbf16>,
    } else {
    }
    return
  }
  func.func @transform_0(%arg0: i32, %arg1: i32) -> (i32, i32) {
    %c0_i32 = arith.constant 0 : i32
    %c0_i32_0 = arith.constant 0 : i32
    return %arg0, %c0_i32 : i32, i32
  }
  func.func @transform_1(%arg0: i32, %arg1: i32) -> (i32, i32) {
    %c0_i32 = arith.constant 0 : i32
    %c0_i32_0 = arith.constant 0 : i32
    return %c0_i32, %arg1 : i32, i32
  }
  func.func @transform_2(%arg0: i32, %arg1: i32) -> (i32, i32) {
    %c0_i32 = arith.constant 0 : i32
    %c0_i32_0 = arith.constant 0 : i32
    return %arg1, %c0_i32 : i32, i32
  }
  func.func @transform_3(%arg0: i32, %arg1: i32) -> (i32, i32) {
    %c0_i32 = arith.constant 0 : i32
    return %arg0, %arg1 : i32, i32
  }
  func.func @transform_4(%arg0: i32, %arg1: i32) -> (i32, i32) {
    %c0_i32 = arith.constant 0 : i32
    %c0_i32_0 = arith.constant 0 : i32
    %c0_i32_1 = arith.constant 0 : i32
    return %c0_i32, %c0_i32_0 : i32, i32
  }
  func.func @transform_5(%arg0: i32, %arg1: i32) -> (i32, i32) {
    %c0_i32 = arith.constant 0 : i32
    %c0_i32_0 = arith.constant 0 : i32
    return %arg0, %c0_i32 : i32, i32
  }
}

</mosaic_0001>

<bundles_post_ra>
// kernel: gat_forward.4
= control target key start
LH: loop header
LB: loop body
LE: loop exit
PB: predicated region body
PF: predicated region fallthrough
CT: control target
= control target key end

     0   :  { %s919_s15 = smov 0   ;;  %s1068_s0 = inlined_call_operand.vmem [shape: bf16[256,8], index: 0, kind: input, shape index: {}]   ;;  %s1069_s1 = inlined_call_operand.vmem [shape: bf16[8,40], index: 1, kind: input, shape index: {}]   ;;  %s1070_s2 = inlined_call_operand.vmem [shape: bf16[256,32], index: 2, kind: output, shape index: {0}]   ;;  %s1071_s3 = inlined_call_operand.vmem [shape: f32[4,256], index: 3, kind: output, shape index: {1}]   ;;  %s1072_s4 = inlined_call_operand.vmem [shape: f32[256,4], index: 4, kind: output, shape index: {2}]  }
   0x1 LB: > { %s925_s16 = sadd.s32 4294967295, %s890_s15   ;;  %p777_p0 = scmp.ge.s32.totalorder %s890_s15, 1  ;;  %s890_s15 = sphi %s919_s15, %s15_s15  }
   0x2   : > { %p168_p1 = scmp.lt.s32.totalorder %s890_s15, 3 }
   0x4   : > { %p169_p2 = pnand %p777_p0, %p168_p1 }
   0x5   : > { %v242_v0 = vld [vmem:[%s1069_s1] sm:$0xf] (!%p169_p2)  ;;  %vm308_vm0 = vcmask (!%p169_p2), 1043456   ;;  %s778_s19 = sshll.u32 (!%p169_p2), %s925_s16, 4  ;;  %vm283_vm1 = vcmask (!%p169_p2), 64512   ;;  %vm473_vm2 = vcmask (!%p169_p2), 257024  }
   0x6   : > { %172 = sbr.rel (%p169_p2) target bundleno = 491 (0x1eb), region = 28  ;;  %864 = vmatprep.subr.msk.bf16.mxu0 (!%p169_p2), %vm308_vm0, %v242_v0  ;;  %865 = vmatprep.subr.msk.bf16.mxu1 (!%p169_p2), %vm308_vm0, %v242_v0  ;;  %v310_v1 = vsel (!%p169_p2), %vm308_vm0, %v242_v0, 0  ;;  %p204_p3 = scmp.lt.s32.totalorder (!%p169_p2), %s778_s19, 31  ;;  %vm635_vm3 = vcmask (!%p169_p2), 31744  }
   0x7   : > { %845 = vmatpush3.bf16.msra.mxu0 (!%p169_p2), %v310_v1  ;;  %863 = vmatpush3.bf16.msra.mxu1 (!%p169_p2), %v310_v1  ;;  %s892_s27 = smov (!%p169_p2), 96   ;;  %s893_s28 = smov (!%p169_p2), 92  }
   0x8   : > { %p215_p4 = scmp.lt.s32.totalorder (!%p169_p2), %s925_s16, 1 }
   0xd   : > { %s1074_s19 = smov (!%p204_p3, %s778_s19), 31  ;;  %s1076_s16 = smov (!%p215_p4, %s925_s16), 1 }
   0xe   : > { %s779_s20 = sshll.u32 %s1074_s19, 2  ;;  %s784_s29 = sshll.u32 %s1074_s19, 3 }
   0xf   : > { %s207_s23 = scalar_lea.vmem %s1068_s0, %s779_s20  ;;  %s950_s26 = scalar_lea.vmem %s1070_s2, %s779_s20 }
  0x10   : > { %v876_v2 = vld [vmem:[%s207_s23] sm:$0xff]   ;;  %v878_v4 = vld [vmem:[%s207_s23 + $0x8] sm:$0xff]   ;;  %v880_v6 = vld [vmem:[%s207_s23 + $0x10] sm:$0xff]   ;;  %s1026_s6 = scalar_lea.vmem %s1072_s4, %s784_s29  ;;  %s782_s7 = sshll.u32 %s1076_s16, 2 }
  0x11   : > { %v877_v3 = vld [vmem:[%s207_s23 + $0x20] sm:$0xff]   ;;  %846 = vmatprep.mubr.msk.bf16.mxu0 %vm283_vm1, %v876_v2  ;;  %v879_v5 = vld [vmem:[%s207_s23 + $0x28] sm:$0xff]   ;;  %v882_v7 = vld [vmem:[%s207_s23 + $0x30] sm:$0xff]   ;;  %s218_s10 = scalar_lea.vmem %s1071_s3, %s782_s7 }
  0x12   : > { %854 = vmatprep.mubr.msk.bf16.mxu1 %vm283_vm1, %v877_v3  ;;  %847 = vmatmul.mubr.msk.bf16.vlgmr.msra.gmra.mrb[0].mxu0 %vm283_vm1, %v878_v4  ;;  %v881_v8 = vld [vmem:[%s207_s23 + $0x18] sm:$0xff]  }
  0x13   : > { %855 = vmatmul.mubr.msk.bf16.vlgmr.msra.gmra.mrb[0].mxu1 %vm283_vm1, %v879_v5  ;;  %850 = vmatprep.mubr.msk.bf16.mxu0 %vm283_vm1, %v880_v6  ;;  %v883_v9 = vld [vmem:[%s207_s23 + $0x38] sm:$0xff]  }
  0x14   : > { %858 = vmatprep.mubr.msk.bf16.mxu1 %vm283_vm1, %v882_v7 }
  0x1a   : > { %851 = vmatmul.mubr.msk.bf16.gmra.mrb[4].mxu0 %vm283_vm1, %v881_v8 }
  0x1b   : > { %859 = vmatmul.mubr.msk.bf16.gmra.mrb[4].mxu1 %vm283_vm1, %v883_v9 }
  0xe5   : > { %v848_v10 = vpop.f32.mrb[0].mxu0 }
  0xe6   : > { %v821_v11 = vpack.c.bf16 %v848_v10, %v848_v10  ;;  %v952_v12 = vpop.f32.mrb[0].mxu1  ;;  %510 = vrot.lane.b32.xlu1 %v848_v10, %s892_s27  ;;  %v346_v13 = vpop.f32.mrb[1].mxu0 }
  0xe7   : > { %v829_v14 = vpack.c.bf16 %v952_v12, %v952_v12  ;;  %526 = vrot.lane.b32.xlu0 %v952_v12, %s892_s27  ;;  %v819_v15 = vpack.c.bf16 %v346_v13, %v346_v13  ;;  %v849_v16 = vpop.f32.mrb[2].mxu0  ;;  %v378_v17 = vpop.f32.mrb[1].mxu1 }
  0xe8   : > { %476 = vst.msk [vmem:[%s950_s26 + $0x8] sm:$0xf] %vm473_vm2, %v821_v11  ;;  %v822_v18 = vpack.c.bf16 %v849_v16, %v849_v16  ;;  %v349_v19 = vpop.f32.mrb[3].mxu0  ;;  %v827_v20 = vpack.c.bf16 %v378_v17, %v378_v17  ;;  %v857_v21 = vpop.f32.mrb[2].mxu1 }
  0xe9   : > { %484 = vst.msk [vmem:[%s950_s26 + $0x28] sm:$0xf] %vm473_vm2, %v829_v14  ;;  %474 = vst.msk [vmem:[%s950_s26] sm:$0xf] %vm473_vm2, %v819_v15  ;;  %v820_v22 = vpack.c.bf16 %v349_v19, %v349_v19  ;;  %v830_v23 = vpack.c.bf16 %v857_v21, %v857_v21  ;;  %v381_v24 = vpop.f32.mrb[3].mxu1 }
  0xea   : > { %477 = vst.msk [vmem:[%s950_s26 + $0xc] sm:$0xf] %vm473_vm2, %v822_v18  ;;  %591 = vrot.lane.b32.xlu1 %v848_v10, %s893_s28  ;;  %482 = vst.msk [vmem:[%s950_s26 + $0x20] sm:$0xf] %vm473_vm2, %v827_v20  ;;  %v828_v25 = vpack.c.bf16 %v381_v24, %v381_v24 }
  0xeb   : > { %475 = vst.msk [vmem:[%s950_s26 + $0x4] sm:$0xf] %vm473_vm2, %v820_v22  ;;  %506 = vrot.lane.b32.xlu0 %v346_v13, %s892_s27  ;;  %485 = vst.msk [vmem:[%s950_s26 + $0x2c] sm:$0xf] %vm473_vm2, %v830_v23 }
  0xec   : > { %483 = vst.msk [vmem:[%s950_s26 + $0x24] sm:$0xf] %vm473_vm2, %v828_v25 }
  0xed   : > { %v852_v26 = vpop.f32.mrb[4].mxu0 }
  0xee   : > { %587 = vrot.lane.b32.xlu1 %v346_v13, %s893_s28  ;;  %v825_v27 = vpack.c.bf16 %v852_v26, %v852_v26  ;;  %v860_v28 = vpop.f32.mrb[4].mxu1  ;;  %v362_v29 = vpop.f32.mrb[5].mxu0 }
  0xef   : > { %522 = vrot.lane.b32.xlu0 %v378_v17, %s892_s27  ;;  %v833_v30 = vpack.c.bf16 %v860_v28, %v860_v28  ;;  %v823_v31 = vpack.c.bf16 %v362_v29, %v362_v29  ;;  %v853_v32 = vpop.f32.mrb[6].mxu0  ;;  %v394_v33 = vpop.f32.mrb[5].mxu1 }
  0xf0   : > { %480 = vst.msk [vmem:[%s950_s26 + $0x18] sm:$0xf] %vm473_vm2, %v825_v27  ;;  %v826_v34 = vpack.c.bf16 %v853_v32, %v853_v32  ;;  %v365_v35 = vpop.f32.mrb[7].mxu0  ;;  %v831_v36 = vpack.c.bf16 %v394_v33, %v394_v33  ;;  %v861_v37 = vpop.f32.mrb[6].mxu1 }
  0xf1   : > { %488 = vst.msk [vmem:[%s950_s26 + $0x38] sm:$0xf] %vm473_vm2, %v833_v30  ;;  %478 = vst.msk [vmem:[%s950_s26 + $0x10] sm:$0xf] %vm473_vm2, %v823_v31  ;;  %v824_v38 = vpack.c.bf16 %v365_v35, %v365_v35  ;;  %v834_v39 = vpack.c.bf16 %v861_v37, %v861_v37  ;;  %v397_v40 = vpop.f32.mrb[7].mxu1 }
  0xf2   : > { %512 = vrot.lane.b32.xlu1 %v849_v16, %s892_s27  ;;  %481 = vst.msk [vmem:[%s950_s26 + $0x1c] sm:$0xf] %vm473_vm2, %v826_v34  ;;  %486 = vst.msk [vmem:[%s950_s26 + $0x30] sm:$0xf] %vm473_vm2, %v831_v36  ;;  %v832_v41 = vpack.c.bf16 %v397_v40, %v397_v40 }
  0xf3   : > { %508 = vrot.lane.b32.xlu0 %v349_v19, %s892_s27  ;;  %479 = vst.msk [vmem:[%s950_s26 + $0x14] sm:$0xf] %vm473_vm2, %v824_v38  ;;  %489 = vst.msk [vmem:[%s950_s26 + $0x3c] sm:$0xf] %vm473_vm2, %v834_v39 }
  0xf4   : > { %487 = vst.msk [vmem:[%s950_s26 + $0x34] sm:$0xf] %vm473_vm2, %v832_v41 }
  0xf6   : > { %528 = vrot.lane.b32.xlu1 %v857_v21, %s892_s27 }
  0xf7   : > { %518 = vrot.lane.b32.xlu0 %v852_v26, %s892_s27 }
  0xfa   : > { %524 = vrot.lane.b32.xlu1 %v381_v24, %s892_s27 }
  0xfb   : > { %534 = vrot.lane.b32.xlu0 %v860_v28, %s892_s27 }
  0xfe   : > { %589 = vrot.lane.b32.xlu1 %v349_v19, %s893_s28 }
  0xff   : > { %514 = vrot.lane.b32.xlu0 %v362_v29, %s892_s27 }
 0x102   : > { %520 = vrot.lane.b32.xlu1 %v853_v32, %s892_s27 }
 0x103   : > { %530 = vrot.lane.b32.xlu0 %v394_v33, %s892_s27 }
 0x106   : > { %536 = vrot.lane.b32.xlu1 %v861_v37, %s892_s27 }
 0x10a   : > { %516 = vrot.lane.b32.xlu1 %v365_v35, %s892_s27 }
 0x10e   : > { %593 = vrot.lane.b32.xlu1 %v849_v16, %s893_s28 }
 0x112   : > { %595 = vrot.lane.b32.xlu1 %v362_v29, %s893_s28 }
 0x116   : > { %599 = vrot.lane.b32.xlu1 %v852_v26, %s893_s28 }
 0x11a   : > { %532 = vrot.lane.b32.xlu1 %v397_v40, %s892_s27 }
 0x11e   : > { %601 = vrot.lane.b32.xlu1 %v853_v32, %s893_s28 }
 0x122   : > { %603 = vrot.lane.b32.xlu1 %v378_v17, %s893_s28 }
 0x126   : > { %605 = vrot.lane.b32.xlu1 %v381_v24, %s893_s28 }
 0x12a   : > { %607 = vrot.lane.b32.xlu1 %v952_v12, %s893_s28 }
 0x12e   : > { %609 = vrot.lane.b32.xlu1 %v857_v21, %s893_s28 }
 0x132   : > { %611 = vrot.lane.b32.xlu1 %v394_v33, %s893_s28 }
 0x136   : > { %615 = vrot.lane.b32.xlu1 %v860_v28, %s893_s28 }
 0x13a   : > { %597 = vrot.lane.b32.xlu1 %v365_v35, %s893_s28 }
 0x13e   : > { %613 = vrot.lane.b32.xlu1 %v397_v40, %s893_s28 }
 0x142   : > { %617 = vrot.lane.b32.xlu1 %v861_v37, %s893_s28 }
 0x158   : > { %v511_v42 = vpop.permute.xlu1 %510 }
 0x159   : > { %v527_v43 = vpop.permute.xlu0 %526 }
 0x15c   : > { %v592_v44 = vpop.permute.xlu1 %591 }
 0x15d   : > { %638 = vst.msk [vmem:[%s1026_s6 + $0x10] sm:$0xff] %vm635_vm3, %v592_v44  ;;  %v507_v45 = vpop.permute.xlu0 %506 }
 0x15e   : > { %554 = vxpose.xlu0.b32.start [1/16] (narrow) %v507_v45, 8 }
 0x160   : > { %v588_v46 = vpop.permute.xlu1 %587 }
 0x161   : > { %636 = vst.msk [vmem:[%s1026_s6] sm:$0xff] %vm635_vm3, %v588_v46  ;;  %v523_v47 = vpop.permute.xlu0 %522 }
 0x164   : > { %v513_v48 = vpop.permute.xlu1 %512 }
 0x165   : > { %v509_v49 = vpop.permute.xlu0 %508 }
 0x166   : > { %555 = vxpose.xlu0.b32.cont [2/16] (narrow) %v509_v49, 8 }
 0x168   : > { %v529_v50 = vpop.permute.xlu1 %528 }
 0x169   : > { %v519_v51 = vpop.permute.xlu0 %518 }
 0x16a   : > { %556 = vxpose.xlu0.b32.cont [3/16] (narrow) %v511_v42, 8 }
 0x16c   : > { %v525_v52 = vpop.permute.xlu1 %524 }
 0x16d   : > { %v535_v53 = vpop.permute.xlu0 %534 }
 0x16e   : > { %557 = vxpose.xlu0.b32.cont [4/16] (narrow) %v513_v48, 8 }
 0x170   : > { %v590_v54 = vpop.permute.xlu1 %589 }
 0x171   : > { %637 = vst.msk [vmem:[%s1026_s6 + $0x8] sm:$0xff] %vm635_vm3, %v590_v54  ;;  %v515_v55 = vpop.permute.xlu0 %514 }
 0x172   : > { %558 = vxpose.xlu0.b32.cont [5/16] (narrow) %v515_v55, 8 }
 0x174   : > { %v521_v56 = vpop.permute.xlu1 %520 }
 0x175   : > { %v531_v1 = vpop.permute.xlu0 %530 }
 0x178   : > { %v537_v57 = vpop.permute.xlu1 %536 }
 0x17c   : > { %v517_v58 = vpop.permute.xlu1 %516 }
 0x17d   : > { %559 = vxpose.xlu0.b32.cont [6/16] (narrow) %v517_v58, 8 }
 0x180   : > { %v594_v59 = vpop.permute.xlu1 %593 }
 0x181   : > { %639 = vst.msk [vmem:[%s1026_s6 + $0x18] sm:$0xff] %vm635_vm3, %v594_v59  ;;  %560 = vxpose.xlu0.b32.cont [7/16] (narrow) %v519_v51, 8 }
 0x184   : > { %v596_v60 = vpop.permute.xlu1 %595 }
 0x185   : > { %640 = vst.msk [vmem:[%s1026_s6 + $0x20] sm:$0xff] %vm635_vm3, %v596_v60  ;;  %561 = vxpose.xlu0.b32.cont [8/16] (narrow) %v521_v56, 8 }
 0x188   : > { %v600_v61 = vpop.permute.xlu1 %599 }
 0x189   : > { %642 = vst.msk [vmem:[%s1026_s6 + $0x30] sm:$0xff] %vm635_vm3, %v600_v61  ;;  %562 = vxpose.xlu0.b32.cont [9/16] (narrow) %v523_v47, 8 }
 0x18c   : > { %v533_v62 = vpop.permute.xlu1 %532 }
 0x18d   : > { %563 = vxpose.xlu0.b32.cont [10/16] (narrow) %v525_v52, 8 }
 0x190   : > { %v602_v63 = vpop.permute.xlu1 %601 }
 0x191   : > { %643 = vst.msk [vmem:[%s1026_s6 + $0x38] sm:$0xff] %vm635_vm3, %v602_v63  ;;  %564 = vxpose.xlu0.b32.cont [11/16] (narrow) %v527_v43, 8 }
 0x194   : > { %v604_v0 = vpop.permute.xlu1 %603 }
 0x195   : > { %644 = vst.msk [vmem:[%s1026_s6 + $0x40] sm:$0xff] %vm635_vm3, %v604_v0  ;;  %565 = vxpose.xlu0.b32.cont [12/16] (narrow) %v529_v50, 8 }
 0x198   : > { %v606_v2 = vpop.permute.xlu1 %605 }
 0x199   : > { %645 = vst.msk [vmem:[%s1026_s6 + $0x48] sm:$0xff] %vm635_vm3, %v606_v2  ;;  %566 = vxpose.xlu0.b32.cont [13/16] (narrow) %v531_v1, 8 }
 0x19c   : > { %v608_v3 = vpop.permute.xlu1 %607 }
 0x19d   : > { %646 = vst.msk [vmem:[%s1026_s6 + $0x50] sm:$0xff] %vm635_vm3, %v608_v3  ;;  %567 = vxpose.xlu0.b32.cont [14/16] (narrow) %v533_v62, 8 }
 0x1a0   : > { %v610_v4 = vpop.permute.xlu1 %609 }
 0x1a1   : > { %647 = vst.msk [vmem:[%s1026_s6 + $0x58] sm:$0xff] %vm635_vm3, %v610_v4  ;;  %568 = vxpose.xlu0.b32.cont [15/16] (narrow) %v535_v53, 8 }
 0x1a4   : > { %v612_v5 = vpop.permute.xlu1 %611 }
 0x1a5   : > { %648 = vst.msk [vmem:[%s1026_s6 + $0x60] sm:$0xff] %vm635_vm3, %v612_v5  ;;  %569 = vxpose.xlu0.b32.end [16/16] (narrow) %v537_v57, 8 }
 0x1a8   : > { %v616_v6 = vpop.permute.xlu1 %615 }
 0x1a9   : > { %650 = vst.msk [vmem:[%s1026_s6 + $0x70] sm:$0xff] %vm635_vm3, %v616_v6 }
 0x1ac   : > { %v598_v7 = vpop.permute.xlu1 %597 }
 0x1ad   : > { %641 = vst.msk [vmem:[%s1026_s6 + $0x28] sm:$0xff] %vm635_vm3, %v598_v7 }
 0x1b0   : > { %v614_v8 = vpop.permute.xlu1 %613 }
 0x1b1   : > { %649 = vst.msk [vmem:[%s1026_s6 + $0x68] sm:$0xff] %vm635_vm3, %v614_v8 }
 0x1b4   : > { %v618_v9 = vpop.permute.xlu1 %617 }
 0x1b5   : > { %651 = vst.msk [vmem:[%s1026_s6 + $0x78] sm:$0xff] %vm635_vm3, %v618_v9 }
 0x1e9   : > { %v570_v10 = vpop.trf.xlu0 }
 0x1ea   : > { %586 = vst [vmem:[%s218_s10] sm:$0xf] %v570_v10 }
 0x1eb PF: > { %s15_s15 = sadd.s32 1, %s890_s15  }
 0x1ec   : > { %p12_p5 = scmp.ge.s32.totalorder %s15_s15, 4  }
 0x1ee   :  { %14 = sbr.rel (!%p12_p5) target bundleno = 1 (0x1), region = 82 }

// kernel: gat_forward.6
= control target key start
LH: loop header
LB: loop body
LE: loop exit
PB: predicated region body
PF: predicated region fallthrough
CT: control target
= control target key end

     0   :  { %s928_s15 = smov 0   ;;  %s1080_s0 = inlined_call_operand.vmem [shape: bf16[256,32], index: 0, kind: input, shape index: {}]   ;;  %s1081_s1 = inlined_call_operand.vmem [shape: bf16[32,6], index: 1, kind: input, shape index: {}]   ;;  %s1082_s2 = inlined_call_operand.vmem [shape: bf16[256,4], index: 2, kind: output, shape index: {0}]   ;;  %s1083_s3 = inlined_call_operand.vmem [shape: f32[1,256], index: 3, kind: output, shape index: {1}]   ;;  %s1084_s4 = inlined_call_operand.vmem [shape: f32[256,1], index: 4, kind: output, shape index: {2}]  }
   0x1 LB: > { %s934_s16 = sadd.s32 4294967295, %s899_s15   ;;  %p780_p0 = scmp.ge.s32.totalorder %s899_s15, 1  ;;  %s899_s15 = sphi %s928_s15, %s15_s15  }
   0x2   : > { %p168_p1 = scmp.lt.s32.totalorder %s899_s15, 3 }
   0x4   : > { %p169_p2 = pnand %p780_p0, %p168_p1 }
   0x5   : > { %v883_v0 = vld [vmem:[%s1081_s1] sm:$0xff] (!%p169_p2)   ;;  %s781_s19 = sshll.u32 (!%p169_p2), %s934_s16, 4  ;;  %v884_v1 = vld [vmem:[%s1081_s1 + $0x8] sm:$0xff] (!%p169_p2)   ;;  %vm296_vm0 = vcmask (!%p169_p2), 261120   ;;  %vm482_vm1 = vcmask (!%p169_p2), 27648   ;;  %s901_s29 = smov (!%p169_p2), 124  }
   0x6   : > { %172 = sbr.rel (%p169_p2) target bundleno = 491 (0x1eb), region = 28  ;;  %p203_p3 = scmp.lt.s32.totalorder (!%p169_p2), %s781_s19, 31  ;;  %849 = vmatprep.subr.bf16.mxu0 (!%p169_p2), %v883_v0  ;;  %869 = vmatprep.subr.bf16.mxu1 (!%p169_p2), %v883_v0  ;;  %vm644_vm2 = vcmask (!%p169_p2), 7168  }
   0x7   : > { %850 = vmatpush3.bf16.msra.mxu0 (!%p169_p2), %v883_v0  ;;  %871 = vmatpush3.bf16.msra.mxu1 (!%p169_p2), %v883_v0  ;;  %s902_s30 = smov (!%p169_p2), 123   ;;  %p214_p4 = scmp.lt.s32.totalorder (!%p169_p2), %s934_s16, 1 }
   0x8   : > { %851 = vmatprep.subr.bf16.mxu0 (!%p169_p2), %v884_v1  ;;  %870 = vmatprep.subr.bf16.mxu1 (!%p169_p2), %v884_v1 }
   0xb   : > { %852 = vmatpush3.bf16.msra.mxu0 (!%p169_p2), %v884_v1  ;;  %872 = vmatpush3.bf16.msra.mxu1 (!%p169_p2), %v884_v1 }
   0xd   : > { %s1086_s19 = smov (!%p203_p3, %s781_s19), 31  ;;  %s1088_s16 = smov (!%p214_p4, %s934_s16), 1 }
   0xe   : > { %s782_s22 = sshll.u32 %s1086_s19, 2  ;;  %s786_s5 = sshll.u32 %s1086_s19, 3 }
   0xf   : > { %s206_s25 = scalar_lea.vmem %s1080_s0, %s782_s22  ;;  %s962_s28 = scalar_lea.vmem %s1082_s2, %s782_s22 }
  0x10   : > { %v885_v2 = vld [vmem:[%s206_s25] sm:$0xff]   ;;  %v887_v4 = vld [vmem:[%s206_s25 + $0x8] sm:$0xff]   ;;  %v889_v6 = vld [vmem:[%s206_s25 + $0x10] sm:$0xff]   ;;  %s1038_s8 = scalar_lea.vmem %s1084_s4, %s786_s5  ;;  %s216_s11 = scalar_lea.vmem %s1083_s3, %s1088_s16 }
  0x11   : > { %v886_v3 = vld [vmem:[%s206_s25 + $0x20] sm:$0xff]   ;;  %853 = vmatprep.mubr.msk.bf16.mxu0 %vm296_vm0, %v885_v2  ;;  %v888_v5 = vld [vmem:[%s206_s25 + $0x28] sm:$0xff]   ;;  %v891_v7 = vld [vmem:[%s206_s25 + $0x30] sm:$0xff]  }
  0x12   : > { %861 = vmatprep.mubr.msk.bf16.mxu1 %vm296_vm0, %v886_v3  ;;  %854 = vmatmul.mubr.msk.bf16.vlgmr.msra.gmra.mrb[0].mxu0 %vm296_vm0, %v887_v4  ;;  %v890_v8 = vld [vmem:[%s206_s25 + $0x18] sm:$0xff]  }
  0x13   : > { %862 = vmatmul.mubr.msk.bf16.vlgmr.msra.gmra.mrb[0].mxu1 %vm296_vm0, %v888_v5  ;;  %857 = vmatprep.mubr.msk.bf16.mxu0 %vm296_vm0, %v889_v6  ;;  %v892_v9 = vld [vmem:[%s206_s25 + $0x38] sm:$0xff]  }
  0x14   : > { %865 = vmatprep.mubr.msk.bf16.mxu1 %vm296_vm0, %v891_v7 }
  0x1a   : > { %858 = vmatmul.mubr.msk.bf16.gmra.mrb[4].mxu0 %vm296_vm0, %v890_v8 }
  0x1b   : > { %866 = vmatmul.mubr.msk.bf16.gmra.mrb[4].mxu1 %vm296_vm0, %v892_v9 }
  0xe5   : > { %v855_v10 = vpop.f32.mrb[0].mxu0 }
  0xe6   : > { %v825_v11 = vpack.c.bf16 %v855_v10, %v855_v10  ;;  %v964_v12 = vpop.f32.mrb[0].mxu1  ;;  %519 = vrot.lane.b32.xlu1 %v855_v10, %s901_s29  ;;  %v355_v13 = vpop.f32.mrb[1].mxu0 }
  0xe7   : > { %v833_v14 = vpack.c.bf16 %v964_v12, %v964_v12  ;;  %535 = vrot.lane.b32.xlu0 %v964_v12, %s901_s29  ;;  %v823_v15 = vpack.c.bf16 %v355_v13, %v355_v13  ;;  %v856_v16 = vpop.f32.mrb[2].mxu0  ;;  %v387_v17 = vpop.f32.mrb[1].mxu1 }
  0xe8   : > { %485 = vst.msk [vmem:[%s962_s28 + $0x8] sm:$0xf] %vm482_vm1, %v825_v11  ;;  %v826_v18 = vpack.c.bf16 %v856_v16, %v856_v16  ;;  %v358_v19 = vpop.f32.mrb[3].mxu0  ;;  %v831_v20 = vpack.c.bf16 %v387_v17, %v387_v17  ;;  %v864_v21 = vpop.f32.mrb[2].mxu1 }
  0xe9   : > { %493 = vst.msk [vmem:[%s962_s28 + $0x28] sm:$0xf] %vm482_vm1, %v833_v14  ;;  %483 = vst.msk [vmem:[%s962_s28] sm:$0xf] %vm482_vm1, %v823_v15  ;;  %v824_v22 = vpack.c.bf16 %v358_v19, %v358_v19  ;;  %v834_v23 = vpack.c.bf16 %v864_v21, %v864_v21  ;;  %v390_v24 = vpop.f32.mrb[3].mxu1 }
  0xea   : > { %486 = vst.msk [vmem:[%s962_s28 + $0xc] sm:$0xf] %vm482_vm1, %v826_v18  ;;  %600 = vrot.lane.b32.xlu1 %v855_v10, %s902_s30  ;;  %491 = vst.msk [vmem:[%s962_s28 + $0x20] sm:$0xf] %vm482_vm1, %v831_v20  ;;  %v832_v25 = vpack.c.bf16 %v390_v24, %v390_v24 }
  0xeb   : > { %484 = vst.msk [vmem:[%s962_s28 + $0x4] sm:$0xf] %vm482_vm1, %v824_v22  ;;  %515 = vrot.lane.b32.xlu0 %v355_v13, %s901_s29  ;;  %494 = vst.msk [vmem:[%s962_s28 + $0x2c] sm:$0xf] %vm482_vm1, %v834_v23 }
  0xec   : > { %492 = vst.msk [vmem:[%s962_s28 + $0x24] sm:$0xf] %vm482_vm1, %v832_v25 }
  0xed   : > { %v859_v26 = vpop.f32.mrb[4].mxu0 }
  0xee   : > { %596 = vrot.lane.b32.xlu1 %v355_v13, %s902_s30  ;;  %v829_v27 = vpack.c.bf16 %v859_v26, %v859_v26  ;;  %v867_v28 = vpop.f32.mrb[4].mxu1  ;;  %v371_v29 = vpop.f32.mrb[5].mxu0 }
  0xef   : > { %531 = vrot.lane.b32.xlu0 %v387_v17, %s901_s29  ;;  %v837_v30 = vpack.c.bf16 %v867_v28, %v867_v28  ;;  %v827_v31 = vpack.c.bf16 %v371_v29, %v371_v29  ;;  %v860_v32 = vpop.f32.mrb[6].mxu0  ;;  %v403_v33 = vpop.f32.mrb[5].mxu1 }
  0xf0   : > { %489 = vst.msk [vmem:[%s962_s28 + $0x18] sm:$0xf] %vm482_vm1, %v829_v27  ;;  %v830_v34 = vpack.c.bf16 %v860_v32, %v860_v32  ;;  %v374_v35 = vpop.f32.mrb[7].mxu0  ;;  %v835_v36 = vpack.c.bf16 %v403_v33, %v403_v33  ;;  %v868_v37 = vpop.f32.mrb[6].mxu1 }
  0xf1   : > { %497 = vst.msk [vmem:[%s962_s28 + $0x38] sm:$0xf] %vm482_vm1, %v837_v30  ;;  %487 = vst.msk [vmem:[%s962_s28 + $0x10] sm:$0xf] %vm482_vm1, %v827_v31  ;;  %v828_v38 = vpack.c.bf16 %v374_v35, %v374_v35  ;;  %v838_v39 = vpack.c.bf16 %v868_v37, %v868_v37  ;;  %v406_v40 = vpop.f32.mrb[7].mxu1 }
  0xf2   : > { %521 = vrot.lane.b32.xlu1 %v856_v16, %s901_s29  ;;  %490 = vst.msk [vmem:[%s962_s28 + $0x1c] sm:$0xf] %vm482_vm1, %v830_v34  ;;  %495 = vst.msk [vmem:[%s962_s28 + $0x30] sm:$0xf] %vm482_vm1, %v835_v36  ;;  %v836_v41 = vpack.c.bf16 %v406_v40, %v406_v40 }
  0xf3   : > { %517 = vrot.lane.b32.xlu0 %v358_v19, %s901_s29  ;;  %488 = vst.msk [vmem:[%s962_s28 + $0x14] sm:$0xf] %vm482_vm1, %v828_v38  ;;  %498 = vst.msk [vmem:[%s962_s28 + $0x3c] sm:$0xf] %vm482_vm1, %v838_v39 }
  0xf4   : > { %496 = vst.msk [vmem:[%s962_s28 + $0x34] sm:$0xf] %vm482_vm1, %v836_v41 }
  0xf6   : > { %537 = vrot.lane.b32.xlu1 %v864_v21, %s901_s29 }
  0xf7   : > { %527 = vrot.lane.b32.xlu0 %v859_v26, %s901_s29 }
  0xfa   : > { %533 = vrot.lane.b32.xlu1 %v390_v24, %s901_s29 }
  0xfb   : > { %543 = vrot.lane.b32.xlu0 %v867_v28, %s901_s29 }
  0xfe   : > { %598 = vrot.lane.b32.xlu1 %v358_v19, %s902_s30 }
  0xff   : > { %523 = vrot.lane.b32.xlu0 %v371_v29, %s901_s29 }
 0x102   : > { %529 = vrot.lane.b32.xlu1 %v860_v32, %s901_s29 }
 0x103   : > { %539 = vrot.lane.b32.xlu0 %v403_v33, %s901_s29 }
 0x106   : > { %545 = vrot.lane.b32.xlu1 %v868_v37, %s901_s29 }
 0x10a   : > { %525 = vrot.lane.b32.xlu1 %v374_v35, %s901_s29 }
 0x10e   : > { %602 = vrot.lane.b32.xlu1 %v856_v16, %s902_s30 }
 0x112   : > { %604 = vrot.lane.b32.xlu1 %v371_v29, %s902_s30 }
 0x116   : > { %608 = vrot.lane.b32.xlu1 %v859_v26, %s902_s30 }
 0x11a   : > { %541 = vrot.lane.b32.xlu1 %v406_v40, %s901_s29 }
 0x11e   : > { %610 = vrot.lane.b32.xlu1 %v860_v32, %s902_s30 }
 0x122   : > { %612 = vrot.lane.b32.xlu1 %v387_v17, %s902_s30 }
 0x126   : > { %614 = vrot.lane.b32.xlu1 %v390_v24, %s902_s30 }
 0x12a   : > { %616 = vrot.lane.b32.xlu1 %v964_v12, %s902_s30 }
 0x12e   : > { %618 = vrot.lane.b32.xlu1 %v864_v21, %s902_s30 }
 0x132   : > { %620 = vrot.lane.b32.xlu1 %v403_v33, %s902_s30 }
 0x136   : > { %624 = vrot.lane.b32.xlu1 %v867_v28, %s902_s30 }
 0x13a   : > { %606 = vrot.lane.b32.xlu1 %v374_v35, %s902_s30 }
 0x13e   : > { %622 = vrot.lane.b32.xlu1 %v406_v40, %s902_s30 }
 0x142   : > { %626 = vrot.lane.b32.xlu1 %v868_v37, %s902_s30 }
 0x158   : > { %v520_v42 = vpop.permute.xlu1 %519 }
 0x159   : > { %v536_v43 = vpop.permute.xlu0 %535 }
 0x15c   : > { %v601_v44 = vpop.permute.xlu1 %600 }
 0x15d   : > { %647 = vst.msk [vmem:[%s1038_s8 + $0x10] sm:$0xff] %vm644_vm2, %v601_v44  ;;  %v516_v45 = vpop.permute.xlu0 %515 }
 0x15e   : > { %563 = vxpose.xlu0.b32.start [1/16] (narrow) %v516_v45, 8 }
 0x160   : > { %v597_v46 = vpop.permute.xlu1 %596 }
 0x161   : > { %645 = vst.msk [vmem:[%s1038_s8] sm:$0xff] %vm644_vm2, %v597_v46  ;;  %v532_v47 = vpop.permute.xlu0 %531 }
 0x164   : > { %v522_v48 = vpop.permute.xlu1 %521 }
 0x165   : > { %v518_v49 = vpop.permute.xlu0 %517 }
 0x166   : > { %564 = vxpose.xlu0.b32.cont [2/16] (narrow) %v518_v49, 8 }
 0x168   : > { %v538_v50 = vpop.permute.xlu1 %537 }
 0x169   : > { %v528_v51 = vpop.permute.xlu0 %527 }
 0x16a   : > { %565 = vxpose.xlu0.b32.cont [3/16] (narrow) %v520_v42, 8 }
 0x16c   : > { %v534_v52 = vpop.permute.xlu1 %533 }
 0x16d   : > { %v544_v53 = vpop.permute.xlu0 %543 }
 0x16e   : > { %566 = vxpose.xlu0.b32.cont [4/16] (narrow) %v522_v48, 8 }
 0x170   : > { %v599_v54 = vpop.permute.xlu1 %598 }
 0x171   : > { %646 = vst.msk [vmem:[%s1038_s8 + $0x8] sm:$0xff] %vm644_vm2, %v599_v54  ;;  %v524_v55 = vpop.permute.xlu0 %523 }
 0x172   : > { %567 = vxpose.xlu0.b32.cont [5/16] (narrow) %v524_v55, 8 }
 0x174   : > { %v530_v56 = vpop.permute.xlu1 %529 }
 0x175   : > { %v540_v1 = vpop.permute.xlu0 %539 }
 0x178   : > { %v546_v57 = vpop.permute.xlu1 %545 }
 0x17c   : > { %v526_v58 = vpop.permute.xlu1 %525 }
 0x17d   : > { %568 = vxpose.xlu0.b32.cont [6/16] (narrow) %v526_v58, 8 }
 0x180   : > { %v603_v59 = vpop.permute.xlu1 %602 }
 0x181   : > { %648 = vst.msk [vmem:[%s1038_s8 + $0x18] sm:$0xff] %vm644_vm2, %v603_v59  ;;  %569 = vxpose.xlu0.b32.cont [7/16] (narrow) %v528_v51, 8 }
 0x184   : > { %v605_v60 = vpop.permute.xlu1 %604 }
 0x185   : > { %649 = vst.msk [vmem:[%s1038_s8 + $0x20] sm:$0xff] %vm644_vm2, %v605_v60  ;;  %570 = vxpose.xlu0.b32.cont [8/16] (narrow) %v530_v56, 8 }
 0x188   : > { %v609_v61 = vpop.permute.xlu1 %608 }
 0x189   : > { %651 = vst.msk [vmem:[%s1038_s8 + $0x30] sm:$0xff] %vm644_vm2, %v609_v61  ;;  %571 = vxpose.xlu0.b32.cont [9/16] (narrow) %v532_v47, 8 }
 0x18c   : > { %v542_v62 = vpop.permute.xlu1 %541 }
 0x18d   : > { %572 = vxpose.xlu0.b32.cont [10/16] (narrow) %v534_v52, 8 }
 0x190   : > { %v611_v63 = vpop.permute.xlu1 %610 }
 0x191   : > { %652 = vst.msk [vmem:[%s1038_s8 + $0x38] sm:$0xff] %vm644_vm2, %v611_v63  ;;  %573 = vxpose.xlu0.b32.cont [11/16] (narrow) %v536_v43, 8 }
 0x194   : > { %v613_v0 = vpop.permute.xlu1 %612 }
 0x195   : > { %653 = vst.msk [vmem:[%s1038_s8 + $0x40] sm:$0xff] %vm644_vm2, %v613_v0  ;;  %574 = vxpose.xlu0.b32.cont [12/16] (narrow) %v538_v50, 8 }
 0x198   : > { %v615_v2 = vpop.permute.xlu1 %614 }
 0x199   : > { %654 = vst.msk [vmem:[%s1038_s8 + $0x48] sm:$0xff] %vm644_vm2, %v615_v2  ;;  %575 = vxpose.xlu0.b32.cont [13/16] (narrow) %v540_v1, 8 }
 0x19c   : > { %v617_v3 = vpop.permute.xlu1 %616 }
 0x19d   : > { %655 = vst.msk [vmem:[%s1038_s8 + $0x50] sm:$0xff] %vm644_vm2, %v617_v3  ;;  %576 = vxpose.xlu0.b32.cont [14/16] (narrow) %v542_v62, 8 }
 0x1a0   : > { %v619_v4 = vpop.permute.xlu1 %618 }
 0x1a1   : > { %656 = vst.msk [vmem:[%s1038_s8 + $0x58] sm:$0xff] %vm644_vm2, %v619_v4  ;;  %577 = vxpose.xlu0.b32.cont [15/16] (narrow) %v544_v53, 8 }
 0x1a4   : > { %v621_v5 = vpop.permute.xlu1 %620 }
 0x1a5   : > { %657 = vst.msk [vmem:[%s1038_s8 + $0x60] sm:$0xff] %vm644_vm2, %v621_v5  ;;  %578 = vxpose.xlu0.b32.end [16/16] (narrow) %v546_v57, 8 }
 0x1a8   : > { %v625_v6 = vpop.permute.xlu1 %624 }
 0x1a9   : > { %659 = vst.msk [vmem:[%s1038_s8 + $0x70] sm:$0xff] %vm644_vm2, %v625_v6 }
 0x1ac   : > { %v607_v7 = vpop.permute.xlu1 %606 }
 0x1ad   : > { %650 = vst.msk [vmem:[%s1038_s8 + $0x28] sm:$0xff] %vm644_vm2, %v607_v7 }
 0x1b0   : > { %v623_v8 = vpop.permute.xlu1 %622 }
 0x1b1   : > { %658 = vst.msk [vmem:[%s1038_s8 + $0x68] sm:$0xff] %vm644_vm2, %v623_v8 }
 0x1b4   : > { %v627_v9 = vpop.permute.xlu1 %626 }
 0x1b5   : > { %660 = vst.msk [vmem:[%s1038_s8 + $0x78] sm:$0xff] %vm644_vm2, %v627_v9 }
 0x1e9   : > { %v579_v10 = vpop.trf.xlu0 }
 0x1ea   : > { %595 = vst [vmem:[%s216_s11] sm:$0x1] %v579_v10 }
 0x1eb PF: > { %s15_s15 = sadd.s32 1, %s899_s15  }
 0x1ec   : > { %p12_p5 = scmp.ge.s32.totalorder %s15_s15, 4  }
 0x1ee   :  { %14 = sbr.rel (!%p12_p5) target bundleno = 1 (0x1), region = 82 }

// kernel: gat_forward.7
= control target key start
LH: loop header
LB: loop body
LE: loop exit
PB: predicated region body
PF: predicated region fallthrough
CT: control target
= control target key end

     0   :  { %s2284_s18 = smov 0   ;;  %s2286_s19 = smov 0   ;;  %s3067_s0 = inlined_call_operand.vmem [shape: f32[256,1], index: 0, kind: input, shape index: {}]   ;;  %s3068_s1 = inlined_call_operand.vmem [shape: f32[1,256], index: 1, kind: input, shape index: {}]   ;;  %s3069_s2 = inlined_call_operand.vmem [shape: bf16[256,4], index: 2, kind: input, shape index: {}]   ;;  %s3070_s3 = inlined_call_operand.vmem [shape: bf16[256,256], index: 3, kind: input, shape index: {}]   ;;  %s3071_s4 = inlined_call_operand.vmem [shape: f32[1,4], index: 4, kind: input, shape index: {}]   ;;  %s3072_s5 = inlined_call_operand.vmem [shape: f32[256,4], index: 5, kind: output, shape index: {}]  }
   0x1   :  { %s2288_s20 = smov 0   ;;  %s2290_s21 = smov 0  }
   0x2   :  { %s2292_s22 = smov 0   ;;  %s2294_s23 = smov 0  }
   0x3   :  { %s2296_s24 = smov 0  }
   0x4 LB: > { %s24_s25 = sadd.s32 1, %s2240_s22  ;;  %s27_s26 = sadd.s32 1, %s2244_s23  ;;  %s2248_s24 = sphi %s2296_s24, %s15_s24   ;;  %s2244_s23 = sphi %s2294_s23, %s3078_s23   ;;  %s2240_s22 = sphi %s2292_s22, %s3077_s22   ;;  %s2236_s21 = sphi %s2290_s21, %s3076_s21   ;;  %s2232_s20 = sphi %s2288_s20, %s3075_s20   ;;  %s2228_s19 = sphi %s2286_s19, %s3074_s19   ;;  %s2224_s18 = sphi %s2284_s18, %s3073_s18  }
   0x5   : > { %p25_p0 = scmp.ge.s32.totalorder %s24_s25, 2  ;;  %p121_p1 = scmp.ne.s32.totalorder %s2228_s19, %s2224_s18 }
   0x6   : > { %p122_p2 = scmp.eq.s32.totalorder %s2248_s24, 0  ;;  %s114_s30 = sadd.s32 1, %s2228_s19 }
   0x7   : > { %s3080_s25 = smov (%p25_p0, %s24_s25), 0  ;;  %s3082_s26 = smov (!%p25_p0, %s27_s26), %s2244_s23 }
   0x8   : > { %p123_p3 = por %p122_p2, %p121_p1  ;;  %p29_p4 = scmp.ge.s32.totalorder %s3082_s26, 2 }
   0x9   : > { %s110_s27 = ssub.s32 %s2240_s22, %s3080_s25  ;;  %p1831_p6 = scmp.ge.s32.totalorder %s2248_s24, 4 }
   0xa   : > { %s3084_s26 = smov (%p29_p4, %s3082_s26), 0 }
   0xb   : > { %s109_s28 = ssub.s32 %s2244_s23, %s3084_s26  ;;  %197 = sbr.rel (%p1831_p6) target bundleno = 34 (0x22), region = 20 }
   0xc   : > { %s111_s29 = sor.u32 %s110_s27, %s109_s28 }
   0xd   : > { %p112_p5 = scmp.eq.s32.totalorder %s111_s29, 0 }
   0xf   : > { %s2335_s6 = scalar_select %p112_p5, %s2228_s19, %s114_s30  }
  0x12   : > { %224 = sbr.rel (!%p123_p3) target bundleno = 34 (0x22), region = 36  ;;  %s226_s7 = sand.u32 (%p123_p3), 1, %s2228_s19  }
  0x13   : > { %s1858_s8 = sshll.u32 (%p123_p3), %s2244_s23, 5  ;;  %s1832_s9 = sshll.u32 (%p123_p3), %s226_s7, 6 }
  0x14   : > { %s231_s10 = sadd.s32 (%p123_p3), %s2240_s22, %s1858_s8  ;;  %s228_s15 = scalar_lea.vmem (%p123_p3), [#allocation5], %s1832_s9 }
  0x15   : > { %s1835_s11 = sshll.u32 (%p123_p3), %s231_s10, 2 }
  0x16   : > { %s2344_s14 = scalar_lea.vmem (%p123_p3), %s3070_s3, %s1835_s11 }
  0x17   : > { %v249_v0 = vld [vmem:[%s2344_s14] sm:$0xf] (%p123_p3)  ;;  %v251_v1 = vld [vmem:[%s2344_s14 + $0x8] sm:$0xf] (%p123_p3)  ;;  %v253_v2 = vld [vmem:[%s2344_s14 + $0x10] sm:$0xf] (%p123_p3) }
  0x18   : > { %250 = vst [vmem:[%s228_s15] sm:$0xf] (%p123_p3), %v249_v0  ;;  %252 = vst [vmem:[%s228_s15 + $0x4] sm:$0xf] (%p123_p3), %v251_v1  ;;  %v255_v3 = vld [vmem:[%s2344_s14 + $0x18] sm:$0xf] (%p123_p3) }
  0x19   : > { %254 = vst [vmem:[%s228_s15 + $0x8] sm:$0xf] %v253_v2  ;;  %v257_v4 = vld [vmem:[%s2344_s14 + $0x20] sm:$0xf]  ;;  %v259_v5 = vld [vmem:[%s2344_s14 + $0x28] sm:$0xf] }
  0x1a   : > { %256 = vst [vmem:[%s228_s15 + $0xc] sm:$0xf] %v255_v3  ;;  %258 = vst [vmem:[%s228_s15 + $0x10] sm:$0xf] %v257_v4  ;;  %v261_v6 = vld [vmem:[%s2344_s14 + $0x30] sm:$0xf] }
  0x1b   : > { %260 = vst [vmem:[%s228_s15 + $0x14] sm:$0xf] %v259_v5  ;;  %v263_v7 = vld [vmem:[%s2344_s14 + $0x38] sm:$0xf]  ;;  %v265_v8 = vld [vmem:[%s2344_s14 + $0x40] sm:$0xf] }
  0x1c   : > { %262 = vst [vmem:[%s228_s15 + $0x18] sm:$0xf] %v261_v6  ;;  %264 = vst [vmem:[%s228_s15 + $0x1c] sm:$0xf] %v263_v7  ;;  %v267_v9 = vld [vmem:[%s2344_s14 + $0x48] sm:$0xf] }
  0x1d   : > { %266 = vst [vmem:[%s228_s15 + $0x20] sm:$0xf] %v265_v8  ;;  %v269_v10 = vld [vmem:[%s2344_s14 + $0x50] sm:$0xf]  ;;  %v271_v11 = vld [vmem:[%s2344_s14 + $0x58] sm:$0xf] }
  0x1e   : > { %268 = vst [vmem:[%s228_s15 + $0x24] sm:$0xf] %v267_v9  ;;  %270 = vst [vmem:[%s228_s15 + $0x28] sm:$0xf] %v269_v10  ;;  %v273_v12 = vld [vmem:[%s2344_s14 + $0x60] sm:$0xf] }
  0x1f   : > { %272 = vst [vmem:[%s228_s15 + $0x2c] sm:$0xf] %v271_v11  ;;  %v275_v13 = vld [vmem:[%s2344_s14 + $0x68] sm:$0xf]  ;;  %v277_v14 = vld [vmem:[%s2344_s14 + $0x70] sm:$0xf] }
  0x20   : > { %274 = vst [vmem:[%s228_s15 + $0x30] sm:$0xf] %v273_v12  ;;  %276 = vst [vmem:[%s228_s15 + $0x34] sm:$0xf] %v275_v13  ;;  %v279_v15 = vld [vmem:[%s2344_s14 + $0x78] sm:$0xf] }
  0x21   : > { %278 = vst [vmem:[%s228_s15 + $0x38] sm:$0xf] %v277_v14  ;;  %280 = vst [vmem:[%s228_s15 + $0x3c] sm:$0xf] %v279_v15 }
  0x22 PF: > { %p1836_p7 = scmp.ge.s32.totalorder %s2248_s24, 1  ;;  %p334_p8 = scmp.lt.s32.totalorder %s2248_s24, 5 }
  0x24   : > { %p335_p9 = pnand %p1836_p7, %p334_p8 }
  0x25   : > { %s341_s16 = sand.u32 (!%p335_p9), 1, %s2224_s18   ;;  %s1838_s17 = sshll.u32 (!%p335_p9), %s2236_s21, 4 }
  0x26   : > { %338 = sbr.rel (%p335_p9) target bundleno = 1219 (0x4c3), region = 77  ;;  %s1837_s27 = sshll.u32 (!%p335_p9), %s341_s16, 6 }
  0x27   : > { %p382_p10 = scmp.lt.s32.totalorder (!%p335_p9), %s1838_s17, 31  ;;  %p387_p11 = scmp.lt.s32.totalorder (!%p335_p9), %s2232_s20, 1 }
  0x28   : > { %s1840_s30 = sshll.u32 (!%p335_p9), %s2232_s20, 4  ;;  %s2390_s7 = scalar_lea.vmem (!%p335_p9), [#allocation5], %s1837_s27 }
  0x29   : > { %p391_p12 = scmp.lt.s32.totalorder (!%p335_p9), %s1840_s30, 31  ;;  %p1844_p13 = scmp.ne.s32.totalorder (!%p335_p9), %s2232_s20, 0 }
  0x2d   : > { %s3086_s17 = smov (!%p382_p10, %s1838_s17), 31  ;;  %s3088_s30 = smov (!%p391_p12, %s1840_s30), 31 }
  0x2e   : > { %s2368_s28 = scalar_select %p387_p11, %s2232_s20, 1 }
  0x2f   : > { %s1839_s29 = sshll.u32 %s3086_s17, 3  ;;  %s1841_s14 = sshll.u32 %s3088_s30, 2  ;;  %vm408_vm0 = vcmask (!%p1844_p13), 7168   ;;  %vm441_vm1 = vcmask (!%p1844_p13), 31744   ;;  %v2250_v16 = vmov (!%p1844_p13), -inf   ;;  %v2251_v17 = vmov (!%p1844_p13), 0.0  }
  0x30   : > { %s2374_s9 = scalar_lea.vmem %s3067_s0, %s1839_s29  ;;  %s389_s12 = scalar_lea.vmem %s3068_s1, %s2368_s28  ;;  %409 = vst.msk [vmem:[#allocation2] sm:$0xff] (!%p1844_p13), %vm408_vm0, %v2250_v16  ;;  %410 = vst.msk [vmem:[#allocation2 + $0x8] sm:$0xff] (!%p1844_p13), %vm408_vm0, %v2250_v16 }
  0x31   : > { %s2383_s13 = scalar_lea.vmem %s3072_s5, %s1839_s29  ;;  %s2388_s17 = scalar_lea.vmem %s3069_s2, %s1841_s14  ;;  %411 = vst.msk [vmem:[#allocation2 + $0x10] sm:$0xff] (!%p1844_p13), %vm408_vm0, %v2250_v16  ;;  %412 = vst.msk [vmem:[#allocation2 + $0x18] sm:$0xff] (!%p1844_p13), %vm408_vm0, %v2250_v16 }
  0x32   : > { %407 = sbr.rel (%p1844_p13) target bundleno = 72 (0x48), region = 85  ;;  %413 = vst.msk [vmem:[#allocation2 + $0x20] sm:$0xff] (!%p1844_p13), %vm408_vm0, %v2250_v16  ;;  %414 = vst.msk [vmem:[#allocation2 + $0x28] sm:$0xff] (!%p1844_p13), %vm408_vm0, %v2250_v16 }
  0x33   : > { %415 = vst.msk [vmem:[#allocation2 + $0x30] sm:$0xff] (!%p1844_p13), %vm408_vm0, %v2250_v16  ;;  %416 = vst.msk [vmem:[#allocation2 + $0x38] sm:$0xff] (!%p1844_p13), %vm408_vm0, %v2250_v16 }
  0x34   : > { %417 = vst.msk [vmem:[#allocation2 + $0x40] sm:$0xff] (!%p1844_p13), %vm408_vm0, %v2250_v16  ;;  %418 = vst.msk [vmem:[#allocation2 + $0x48] sm:$0xff] (!%p1844_p13), %vm408_vm0, %v2250_v16 }
  0x35   : > { %419 = vst.msk [vmem:[#allocation2 + $0x50] sm:$0xff] (!%p1844_p13), %vm408_vm0, %v2250_v16  ;;  %420 = vst.msk [vmem:[#allocation2 + $0x58] sm:$0xff] (!%p1844_p13), %vm408_vm0, %v2250_v16 }
  0x36   : > { %421 = vst.msk [vmem:[#allocation2 + $0x60] sm:$0xff] (!%p1844_p13), %vm408_vm0, %v2250_v16  ;;  %422 = vst.msk [vmem:[#allocation2 + $0x68] sm:$0xff] (!%p1844_p13), %vm408_vm0, %v2250_v16 }
  0x37   : > { %423 = vst.msk [vmem:[#allocation2 + $0x70] sm:$0xff] (!%p1844_p13), %vm408_vm0, %v2250_v16  ;;  %424 = vst.msk [vmem:[#allocation2 + $0x78] sm:$0xff] (!%p1844_p13), %vm408_vm0, %v2250_v16 }
  0x38   : > { %425 = vst.msk [vmem:[#allocation3] sm:$0xff] (!%p1844_p13), %vm408_vm0, %v2251_v17  ;;  %426 = vst.msk [vmem:[#allocation3 + $0x8] sm:$0xff] (!%p1844_p13), %vm408_vm0, %v2251_v17 }
  0x39   : > { %427 = vst.msk [vmem:[#allocation3 + $0x10] sm:$0xff] %vm408_vm0, %v2251_v17  ;;  %428 = vst.msk [vmem:[#allocation3 + $0x18] sm:$0xff] %vm408_vm0, %v2251_v17 }
  0x3a   : > { %429 = vst.msk [vmem:[#allocation3 + $0x20] sm:$0xff] %vm408_vm0, %v2251_v17  ;;  %430 = vst.msk [vmem:[#allocation3 + $0x28] sm:$0xff] %vm408_vm0, %v2251_v17 }
  0x3b   : > { %431 = vst.msk [vmem:[#allocation3 + $0x30] sm:$0xff] %vm408_vm0, %v2251_v17  ;;  %432 = vst.msk [vmem:[#allocation3 + $0x38] sm:$0xff] %vm408_vm0, %v2251_v17 }
  0x3c   : > { %433 = vst.msk [vmem:[#allocation3 + $0x40] sm:$0xff] %vm408_vm0, %v2251_v17  ;;  %434 = vst.msk [vmem:[#allocation3 + $0x48] sm:$0xff] %vm408_vm0, %v2251_v17 }
  0x3d   : > { %435 = vst.msk [vmem:[#allocation3 + $0x50] sm:$0xff] %vm408_vm0, %v2251_v17  ;;  %436 = vst.msk [vmem:[#allocation3 + $0x58] sm:$0xff] %vm408_vm0, %v2251_v17 }
  0x3e   : > { %437 = vst.msk [vmem:[#allocation3 + $0x60] sm:$0xff] %vm408_vm0, %v2251_v17  ;;  %438 = vst.msk [vmem:[#allocation3 + $0x68] sm:$0xff] %vm408_vm0, %v2251_v17 }
  0x3f   : > { %439 = vst.msk [vmem:[#allocation3 + $0x70] sm:$0xff] %vm408_vm0, %v2251_v17  ;;  %440 = vst.msk [vmem:[#allocation3 + $0x78] sm:$0xff] %vm408_vm0, %v2251_v17 }
  0x40   : > { %442 = vst.msk [vmem:[#allocation4] sm:$0xff] %vm441_vm1, %v2251_v17  ;;  %443 = vst.msk [vmem:[#allocation4 + $0x8] sm:$0xff] %vm441_vm1, %v2251_v17 }
  0x41   : > { %444 = vst.msk [vmem:[#allocation4 + $0x10] sm:$0xff] %vm441_vm1, %v2251_v17  ;;  %445 = vst.msk [vmem:[#allocation4 + $0x18] sm:$0xff] %vm441_vm1, %v2251_v17 }
  0x42   : > { %446 = vst.msk [vmem:[#allocation4 + $0x20] sm:$0xff] %vm441_vm1, %v2251_v17  ;;  %447 = vst.msk [vmem:[#allocation4 + $0x28] sm:$0xff] %vm441_vm1, %v2251_v17 }
  0x43   : > { %448 = vst.msk [vmem:[#allocation4 + $0x30] sm:$0xff] %vm441_vm1, %v2251_v17  ;;  %449 = vst.msk [vmem:[#allocation4 + $0x38] sm:$0xff] %vm441_vm1, %v2251_v17 }
  0x44   : > { %450 = vst.msk [vmem:[#allocation4 + $0x40] sm:$0xff] %vm441_vm1, %v2251_v17  ;;  %451 = vst.msk [vmem:[#allocation4 + $0x48] sm:$0xff] %vm441_vm1, %v2251_v17 }
  0x45   : > { %452 = vst.msk [vmem:[#allocation4 + $0x50] sm:$0xff] %vm441_vm1, %v2251_v17  ;;  %453 = vst.msk [vmem:[#allocation4 + $0x58] sm:$0xff] %vm441_vm1, %v2251_v17 }
  0x46   : > { %454 = vst.msk [vmem:[#allocation4 + $0x60] sm:$0xff] %vm441_vm1, %v2251_v17  ;;  %455 = vst.msk [vmem:[#allocation4 + $0x68] sm:$0xff] %vm441_vm1, %v2251_v17 }
  0x47   : > { %456 = vst.msk [vmem:[#allocation4 + $0x70] sm:$0xff] %vm441_vm1, %v2251_v17  ;;  %457 = vst.msk [vmem:[#allocation4 + $0x78] sm:$0xff] %vm441_vm1, %v2251_v17 }
  0x48 PF: > { %v466_v18 = vld [vmem:[%s2374_s9 + $0x40] sm:$0xff]  ;;  %v2252_v20 = vmov 0   ;;  %v467_v21 = vld [vmem:[%s2374_s9 + $0x48] sm:$0xff]  ;;  %v461_v23 = vld [vmem:[%s2374_s9 + $0x18] sm:$0xff]  ;;  %p1854_p0 = scmp.ne.s32.totalorder %s2232_s20, 1 }
  0x49   : > { %v458_v19 = vld [vmem:[%s2374_s9] sm:$0xff]  ;;  %2023 = vset.pattern.permute.xlu1 %v2252_v20  ;;  %2022 = vset.pattern.permute.xlu0 %v2252_v20  ;;  %v459_v22 = vld [vmem:[%s2374_s9 + $0x8] sm:$0xff]  ;;  %v460_v24 = vld [vmem:[%s2374_s9 + $0x10] sm:$0xff] }
  0x4a   : > { %549 = vperm.xlu1 %2023, %v466_v18   ;;  %509 = vperm.xlu0 %2022, %v458_v19   ;;  %v469_v25 = vld [vmem:[%s2374_s9 + $0x58] sm:$0xff]  ;;  %v468_v26 = vld [vmem:[%s2374_s9 + $0x50] sm:$0xff]  ;;  %v463_v27 = vld [vmem:[%s2374_s9 + $0x28] sm:$0xff] }
  0x4b   : > { %v462_v28 = vld [vmem:[%s2374_s9 + $0x20] sm:$0xff]  ;;  %v471_v29 = vld [vmem:[%s2374_s9 + $0x68] sm:$0xff]  ;;  %v465_v31 = vld [vmem:[%s2374_s9 + $0x38] sm:$0xff] }
  0x4c   : > { %v470_v30 = vld [vmem:[%s2374_s9 + $0x60] sm:$0xff]  ;;  %v464_v32 = vld [vmem:[%s2374_s9 + $0x30] sm:$0xff]  ;;  %v473_v33 = vld [vmem:[%s2374_s9 + $0x78] sm:$0xff] }
  0x4d   : > { %v472_v34 = vld [vmem:[%s2374_s9 + $0x70] sm:$0xff]  ;;  %v2462_v35 = vld [vmem:[%s389_s12] ss:$0 sm:$0xff]  ;;  %v1891_v56 = vld [vmem:[%s2390_s7 + $0x8] sm:$0xff]  }
  0x4e   : > { %554 = vperm.xlu1 %2023, %v467_v21   ;;  %514 = vperm.xlu0 %2022, %v459_v22   ;;  %v1860_v36 = vld [vmem:[%s2390_s7] sm:$0xff]   ;;  %v1865_v1 = vunpack.c.l.bf16 %v1891_v56  ;;  %v1895_v5 = vld [vmem:[%s2390_s7 + $0x28] sm:$0xff]   ;;  %v1866_v13 = vunpack.c.h.bf16 %v1891_v56  ;;  %v1892_v18 = vld [vmem:[%s2390_s7 + $0x10] sm:$0xff]  }
  0x4f   : > { %v1861_v41 = vunpack.c.l.bf16 %v1860_v36  ;;  %v1894_v44 = vld [vmem:[%s2390_s7 + $0x20] sm:$0xff]   ;;  %v1862_v52 = vunpack.c.h.bf16 %v1860_v36  ;;  %v1881_v14 = vunpack.c.l.bf16 %v1895_v5 }
  0x50   : > { %v1877_v51 = vunpack.c.l.bf16 %v1894_v44  ;;  %v1878_v0 = vunpack.c.h.bf16 %v1894_v44 }
  0x52   : > { %524 = vperm.xlu1 %2023, %v461_v23   ;;  %519 = vperm.xlu0 %2022, %v460_v24  }
  0x56   : > { %564 = vperm.xlu1 %2023, %v469_v25   ;;  %559 = vperm.xlu0 %2022, %v468_v26   ;;  %v1882_v26 = vunpack.c.h.bf16 %v1895_v5 }
  0x5a   : > { %534 = vperm.xlu1 %2023, %v463_v27   ;;  %529 = vperm.xlu0 %2022, %v462_v28   ;;  %v1869_v27 = vunpack.c.l.bf16 %v1892_v18 }
  0x5e   : > { %574 = vperm.xlu1 %2023, %v471_v29   ;;  %569 = vperm.xlu0 %2022, %v470_v30  }
  0x62   : > { %544 = vperm.xlu1 %2023, %v465_v31   ;;  %539 = vperm.xlu0 %2022, %v464_v32   ;;  %v1896_v31 = vld [vmem:[%s2390_s7 + $0x30] sm:$0xff]  }
  0x66   : > { %584 = vperm.xlu1 %2023, %v473_v33   ;;  %579 = vperm.xlu0 %2022, %v472_v34  }
  0xc9   : > { %v550_v37 = vpop.permute.xlu1 %549  ;;  %v510_v38 = vpop.permute.xlu0 %509 }
  0xca   : > { %v601_v39 = vadd.f32 %v2462_v35, %v550_v37  ;;  %v593_v40 = vadd.f32 %v2462_v35, %v510_v38 }
  0xcc   : > { %v633_v42 = vmul.f32 0.2, %v601_v39  ;;  %v625_v43 = vmul.f32 0.2, %v593_v40  ;;  %vm609_vm2 = vcmp.gt.f32.partialorder %v593_v40, 0.0  ;;  %vm617_vm3 = vcmp.gt.f32.partialorder %v601_v39, 0.0 }
  0xcd   : > { %v555_v45 = vpop.permute.xlu1 %554  ;;  %v515_v46 = vpop.permute.xlu0 %514 }
  0xce   : > { %v602_v47 = vadd.f32 %v2462_v35, %v555_v45  ;;  %v594_v48 = vadd.f32 %v2462_v35, %v515_v46  ;;  %v641_v49 = vsel %vm609_vm2, %v593_v40, %v625_v43  ;;  %v649_v55 = vsel %vm617_vm3, %v601_v39, %v633_v42  ;;  %v1893_v45 = vld [vmem:[%s2390_s7 + $0x18] sm:$0xff]  }
  0xcf   : > { %v2470_v50 = vadd.f32 %v1861_v41, %v641_v49  ;;  %v2476_v62 = vadd.f32 %v1877_v51, %v649_v55  ;;  %v1870_v40 = vunpack.c.h.bf16 %v1892_v18  ;;  %v1885_v41 = vunpack.c.l.bf16 %v1896_v31  ;;  %v2537_v18 = vld [vmem:[#allocation2] sm:$0xff] }
  0xd0   : > { %v634_v53 = vmul.f32 0.2, %v602_v47  ;;  %v626_v54 = vmul.f32 0.2, %v594_v48  ;;  %vm610_vm4 = vcmp.gt.f32.partialorder %v594_v48, 0.0  ;;  %vm618_vm5 = vcmp.gt.f32.partialorder %v602_v47, 0.0 }
  0xd1   : > { %v525_v57 = vpop.permute.xlu1 %524  ;;  %705 = vmax.xlane.f32.xlu0 %v2470_v50  ;;  %v520_v58 = vpop.permute.xlu0 %519  ;;  %v1873_v55 = vunpack.c.l.bf16 %v1893_v45  ;;  %v1874_v5 = vunpack.c.h.bf16 %v1893_v45  ;;  %vm1009_vm2 = vcmask 7168   ;;  %vm1307_vm3 = vcmask 31744  }
  0xd2   : > { %v596_v59 = vadd.f32 %v2462_v35, %v525_v57  ;;  %v595_v60 = vadd.f32 %v2462_v35, %v520_v58  ;;  %v642_v61 = vsel %vm610_vm4, %v594_v48, %v626_v54  ;;  %v650_v4 = vsel %vm618_vm5, %v602_v47, %v634_v53 }
  0xd3   : > { %v2478_v63 = vadd.f32 %v1862_v52, %v642_v61  ;;  %v2485_v11 = vadd.f32 %v1878_v0, %v650_v4  ;;  %v1886_v54 = vunpack.c.h.bf16 %v1896_v31  ;;  %v2556_v31 = vld [vmem:[#allocation2 + $0x48] sm:$0xff] }
  0xd4   : > { %v628_v2 = vmul.f32 0.2, %v596_v59  ;;  %v627_v3 = vmul.f32 0.2, %v595_v60  ;;  %vm611_vm6 = vcmp.gt.f32.partialorder %v595_v60, 0.0  ;;  %vm612_vm7 = vcmp.gt.f32.partialorder %v596_v59, 0.0 }
  0xd5   : > { %v565_v6 = vpop.permute.xlu1 %564  ;;  %721 = vmax.xlane.f32.xlu0 %v2476_v62  ;;  %707 = vmax.xlane.f32.xlu1 %v2478_v63  ;;  %v560_v7 = vpop.permute.xlu0 %559 }
  0xd6   : > { %v604_v8 = vadd.f32 %v2462_v35, %v565_v6  ;;  %v603_v9 = vadd.f32 %v2462_v35, %v560_v7  ;;  %v643_v10 = vsel %vm611_vm6, %v595_v60, %v627_v3  ;;  %v644_v17 = vsel %vm612_vm7, %v596_v59, %v628_v2  ;;  %v1897_v59 = vld [vmem:[%s2390_s7 + $0x38] sm:$0xff]  }
  0xd7   : > { %v2487_v12 = vadd.f32 %v1865_v1, %v643_v10  ;;  %v2494_v24 = vadd.f32 %v1866_v13, %v644_v17  ;;  %v1889_v6 = vunpack.c.l.bf16 %v1897_v59  ;;  %v2024_v17 = vld [vmem:[%s2388_s17] sm:$0xff]  }
  0xd8   : > { %v636_v15 = vmul.f32 0.2, %v604_v8  ;;  %v635_v16 = vmul.f32 0.2, %v603_v9  ;;  %vm619_vm8 = vcmp.gt.f32.partialorder %v603_v9, 0.0  ;;  %vm620_vm9 = vcmp.gt.f32.partialorder %v604_v8, 0.0  ;;  %1914 = vmatprep.subr.bf16.mxu0 %v2024_v17  ;;  %1946 = vmatprep.subr.bf16.mxu1 %v2024_v17 }
  0xd9   : > { %v535_v19 = vpop.permute.xlu1 %534  ;;  %723 = vmax.xlane.f32.xlu0 %v2485_v11  ;;  %709 = vmax.xlane.f32.xlu1 %v2487_v12  ;;  %v530_v20 = vpop.permute.xlu0 %529 }
  0xda   : > { %v598_v21 = vadd.f32 %v2462_v35, %v535_v19  ;;  %v597_v22 = vadd.f32 %v2462_v35, %v530_v20  ;;  %v651_v23 = vsel %vm619_vm8, %v603_v9, %v635_v16  ;;  %v652_v30 = vsel %vm620_vm9, %v604_v8, %v636_v15  ;;  %1915 = vmatpush3.bf16.msra.mxu0 %v2024_v17 }
  0xdb   : > { %v2496_v25 = vadd.f32 %v1881_v14, %v651_v23  ;;  %v2503_v38 = vadd.f32 %v1882_v26, %v652_v30  ;;  %v1890_v14 = vunpack.c.h.bf16 %v1897_v59  ;;  %1954 = vmatpush3.bf16.msra.mxu1 %v2024_v17  ;;  %v2025_v23 = vld [vmem:[%s2388_s17 + $0x8] sm:$0xff]   ;;  %v2554_v30 = vld [vmem:[#allocation2 + $0x10] sm:$0xff] }
  0xdc   : > { %v630_v28 = vmul.f32 0.2, %v598_v21  ;;  %v629_v29 = vmul.f32 0.2, %v597_v22  ;;  %vm613_vm10 = vcmp.gt.f32.partialorder %v597_v22, 0.0  ;;  %vm614_vm11 = vcmp.gt.f32.partialorder %v598_v21, 0.0  ;;  %1916 = vmatprep.subr.bf16.mxu0 %v2025_v23  ;;  %1947 = vmatprep.subr.bf16.mxu1 %v2025_v23 }
  0xdd   : > { %v575_v32 = vpop.permute.xlu1 %574  ;;  %711 = vmax.xlane.f32.xlu0 %v2494_v24  ;;  %725 = vmax.xlane.f32.xlu1 %v2496_v25  ;;  %v570_v33 = vpop.permute.xlu0 %569  ;;  %v2601_v59 = vld [vmem:[#allocation2 + $0x28] sm:$0xff] }
  0xde   : > { %v606_v34 = vadd.f32 %v2462_v35, %v575_v32  ;;  %v605_v36 = vadd.f32 %v2462_v35, %v570_v33  ;;  %v645_v37 = vsel %vm613_vm10, %v597_v22, %v629_v29  ;;  %v646_v44 = vsel %vm614_vm11, %v598_v21, %v630_v28  ;;  %v2542_v21 = vld [vmem:[#allocation2 + $0x8] sm:$0xff]  ;;  %v2544_v22 = vld [vmem:[#allocation2 + $0x40] sm:$0xff]  ;;  %1917 = vmatpush3.bf16.msra.mxu0 %v2025_v23  ;;  %v2026_v32 = vld [vmem:[%s2388_s17 + $0x10] sm:$0xff]  }
  0xdf   : > { %v2505_v39 = vadd.f32 %v1869_v27, %v645_v37  ;;  %v2512_v52 = vadd.f32 %v1870_v40, %v646_v44  ;;  %1955 = vmatpush3.bf16.msra.mxu1 %v2025_v23  ;;  %1918 = vmatprep.subr.bf16.mxu0 %v2026_v32  ;;  %v2569_v40 = vld [vmem:[#allocation2 + $0x50] sm:$0xff] }
  0xe0   : > { %v638_v42 = vmul.f32 0.2, %v606_v34  ;;  %v637_v43 = vmul.f32 0.2, %v605_v36  ;;  %vm621_vm12 = vcmp.gt.f32.partialorder %v605_v36, 0.0  ;;  %vm622_vm13 = vcmp.gt.f32.partialorder %v606_v34, 0.0  ;;  %1948 = vmatprep.subr.bf16.mxu1 %v2026_v32 }
  0xe1   : > { %v545_v46 = vpop.permute.xlu1 %544  ;;  %727 = vmax.xlane.f32.xlu0 %v2503_v38  ;;  %713 = vmax.xlane.f32.xlu1 %v2505_v39  ;;  %v540_v47 = vpop.permute.xlu0 %539  ;;  %v2630_v23 = vld [vmem:[#allocation2 + $0x70] sm:$0xff] }
  0xe2   : > { %v600_v48 = vadd.f32 %v2462_v35, %v545_v46  ;;  %v599_v49 = vadd.f32 %v2462_v35, %v540_v47  ;;  %v653_v51 = vsel %vm621_vm12, %v605_v36, %v637_v43  ;;  %v654_v58 = vsel %vm622_vm13, %v606_v34, %v638_v42  ;;  %1919 = vmatpush3.bf16.msra.mxu0 %v2026_v32  ;;  %v2027_v42 = vld [vmem:[%s2388_s17 + $0x18] sm:$0xff]   ;;  %v693_v47 = vld [vmem:[#allocation2 + $0x20] sm:$0xff] }
  0xe3   : > { %v2514_v53 = vadd.f32 %v1885_v41, %v653_v51  ;;  %v2521_v3 = vadd.f32 %v1886_v54, %v654_v58  ;;  %v2571_v41 = vld [vmem:[#allocation2 + $0x18] sm:$0xff]  ;;  %1956 = vmatpush3.bf16.msra.mxu1 %v2026_v32  ;;  %1920 = vmatprep.subr.bf16.mxu0 %v2027_v42  ;;  %v2599_v58 = vld [vmem:[#allocation2 + $0x60] sm:$0xff] }
  0xe4   : > { %v632_v56 = vmul.f32 0.2, %v600_v48  ;;  %v631_v57 = vmul.f32 0.2, %v599_v49  ;;  %vm615_vm14 = vcmp.gt.f32.partialorder %v599_v49, 0.0  ;;  %vm616_vm15 = vcmp.gt.f32.partialorder %v600_v48, 0.0  ;;  %1949 = vmatprep.subr.bf16.mxu1 %v2027_v42 }
  0xe5   : > { %v585_v60 = vpop.permute.xlu1 %584  ;;  %715 = vmax.xlane.f32.xlu0 %v2512_v52  ;;  %729 = vmax.xlane.f32.xlu1 %v2514_v53  ;;  %v580_v61 = vpop.permute.xlu0 %579 }
  0xe6   : > { %v608_v0 = vadd.f32 %v2462_v35, %v585_v60  ;;  %v607_v1 = vadd.f32 %v2462_v35, %v580_v61  ;;  %v647_v2 = vsel %vm615_vm14, %v599_v49, %v631_v57  ;;  %v648_v9 = vsel %vm616_vm15, %v600_v48, %v632_v56  ;;  %v2586_v48 = vld [vmem:[#allocation2 + $0x58] sm:$0xff]  ;;  %1921 = vmatpush3.bf16.msra.mxu0 %v2027_v42  ;;  %v2028_v49 = vld [vmem:[%s2388_s17 + $0x20] sm:$0xff]   ;;  %v2029_v61 = vld [vmem:[%s2388_s17 + $0x28] sm:$0xff]  }
  0xe7   : > { %v2523_v4 = vadd.f32 %v1873_v55, %v647_v2  ;;  %v2527_v13 = vadd.f32 %v1874_v5, %v648_v9  ;;  %1957 = vmatpush3.bf16.msra.mxu1 %v2027_v42  ;;  %1922 = vmatprep.subr.bf16.mxu0 %v2028_v49  ;;  %v2616_v9 = vld [vmem:[#allocation2 + $0x68] sm:$0xff] }
  0xe8   : > { %v640_v7 = vmul.f32 0.2, %v608_v0  ;;  %v639_v8 = vmul.f32 0.2, %v607_v1  ;;  %vm623_vm0 = vcmp.gt.f32.partialorder %v607_v1, 0.0  ;;  %vm624_vm1 = vcmp.gt.f32.partialorder %v608_v0, 0.0  ;;  %1950 = vmatprep.subr.bf16.mxu1 %v2028_v49 }
  0xe9   : > { %731 = vmax.xlane.f32.xlu0 %v2521_v3  ;;  %717 = vmax.xlane.f32.xlu1 %v2523_v4 }
  0xea   : > { %v655_v10 = vsel %vm623_vm0, %v607_v1, %v639_v8  ;;  %v656_v15 = vsel %vm624_vm1, %v608_v0, %v640_v7  ;;  %1923 = vmatpush3.bf16.msra.mxu0 %v2028_v49  ;;  %v695_v8 = vld [vmem:[#allocation2 + $0x30] sm:$0xff] }
  0xeb   : > { %v2529_v35 = vadd.f32 %v1889_v6, %v655_v10  ;;  %v2533_v16 = vadd.f32 %v1890_v14, %v656_v15  ;;  %1958 = vmatpush3.bf16.msra.mxu1 %v2028_v49  ;;  %1924 = vmatprep.subr.bf16.mxu0 %v2029_v61  ;;  %v2030_v14 = vld [vmem:[%s2388_s17 + $0x30] sm:$0xff]  }
  0xec   : > { %1951 = vmatprep.subr.bf16.mxu1 %v2029_v61 }
  0xed   : > { %719 = vmax.xlane.f32.xlu0 %v2527_v13  ;;  %733 = vmax.xlane.f32.xlu1 %v2529_v35 }
  0xee   : > { %1925 = vmatpush3.bf16.msra.mxu0 %v2029_v61 }
  0xef   : > { %1959 = vmatpush3.bf16.msra.mxu1 %v2029_v61  ;;  %1926 = vmatprep.subr.bf16.mxu0 %v2030_v14 }
  0xf0   : > { %1952 = vmatprep.subr.bf16.mxu1 %v2030_v14 }
  0xf1   : > { %735 = vmax.xlane.f32.xlu0 %v2533_v16 }
  0xf2   : > { %1927 = vmatpush3.bf16.msra.mxu0 %v2030_v14 }
  0xf3   : > { %1960 = vmatpush3.bf16.msra.mxu1 %v2030_v14 }
 0x15e   : > { %v706_v19 = vpop.xlane.xlu0 %705 }
 0x15f   : > { %v2540_v20 = vmax.f32 %v2537_v18, %v706_v19 }
 0x161   : > { %1324 = vst.msk [vmem:[#allocation2] sm:$0xff] %vm1009_vm2, %v2540_v20  ;;  %803 = vperm.xlu1 %2023, %v2540_v20   ;;  %v753_v60 = vsub.f32 %v2537_v18, %v2540_v20 }
 0x162   : > { %v708_v26 = vpop.xlane.xlu1 %707  ;;  %v722_v27 = vpop.xlane.xlu0 %721 }
 0x163   : > { %v738_v28 = vmax.f32 %v2542_v21, %v708_v26  ;;  %v2552_v29 = vmax.f32 %v2544_v22, %v722_v27  ;;  %v769_v10 = vmul.f32 1.442695, %v753_v60  ;;  %v696_v26 = vld [vmem:[#allocation2 + $0x38] sm:$0xff] }
 0x165   : > { %1325 = vst.msk [vmem:[#allocation2 + $0x8] sm:$0xff] %vm1009_vm2, %v738_v28  ;;  %1332 = vst.msk [vmem:[#allocation2 + $0x40] sm:$0xff] %vm1009_vm2, %v2552_v29  ;;  %808 = vperm.xlu0 %2022, %v738_v28   ;;  %843 = vperm.xlu1 %2023, %v2552_v29   ;;  %v754_v51 = vsub.f32 %v2542_v21, %v738_v28  ;;  %v761_v27 = vsub.f32 %v2544_v22, %v2552_v29 }
 0x166   : > { %v710_v33 = vpop.xlane.xlu1 %709  ;;  %v724_v34 = vpop.xlane.xlu0 %723 }
 0x167   : > { %v2564_v36 = vmax.f32 %v2554_v30, %v710_v33  ;;  %v2567_v37 = vmax.f32 %v2556_v31, %v724_v34  ;;  %v771_v0 = vmul.f32 1.442695, %v754_v51 }
 0x169   : > { %1326 = vst.msk [vmem:[#allocation2 + $0x10] sm:$0xff] %vm1009_vm2, %v2564_v36  ;;  %1333 = vst.msk [vmem:[#allocation2 + $0x48] sm:$0xff] %vm1009_vm2, %v2567_v37  ;;  %813 = vperm.xlu0 %2022, %v2564_v36   ;;  %848 = vperm.xlu1 %2023, %v2567_v37   ;;  %2032 = vpow2.f32 %v771_v0  ;;  %v755_v15 = vsub.f32 %v2554_v30, %v2564_v36  ;;  %v2031_v30 = vld [vmem:[%s2388_s17 + $0x38] sm:$0xff]  }
 0x16a   : > { %v726_v43 = vpop.xlane.xlu1 %725  ;;  %v712_v44 = vpop.xlane.xlu0 %711  ;;  %2034 = vpow2.f32 %v769_v10  ;;  %1928 = vmatprep.subr.bf16.mxu0 %v2031_v30  ;;  %1953 = vmatprep.subr.bf16.mxu1 %v2031_v30 }
 0x16b   : > { %v2581_v45 = vmax.f32 %v2569_v40, %v726_v43  ;;  %v2584_v46 = vmax.f32 %v2571_v41, %v712_v44  ;;  %v773_v32 = vmul.f32 1.442695, %v755_v15  ;;  %v2644_v43 = vld [vmem:[#allocation2 + $0x78] sm:$0xff]  ;;  %1929 = vmatpush3.bf16.msra.mxu0 %v2031_v30  ;;  %1961 = vmatpush3.bf16.msra.mxu1 %v2031_v30  ;;  %v785_v44 = vmul.f32 1.442695, %v761_v27 }
 0x16d   : > { %1334 = vst.msk [vmem:[#allocation2 + $0x50] sm:$0xff] %vm1009_vm2, %v2581_v45  ;;  %1327 = vst.msk [vmem:[#allocation2 + $0x18] sm:$0xff] %vm1009_vm2, %v2584_v46  ;;  %853 = vperm.xlu0 %2022, %v2581_v45   ;;  %818 = vperm.xlu1 %2023, %v2584_v46   ;;  %v756_v33 = vsub.f32 %v2571_v41, %v2584_v46 }
 0x16e   : > { %v714_v54 = vpop.xlane.xlu1 %713  ;;  %v728_v55 = vpop.xlane.xlu0 %727 }
 0x16f   : > { %v741_v56 = vmax.f32 %v693_v47, %v714_v54  ;;  %v2597_v57 = vmax.f32 %v2586_v48, %v728_v55  ;;  %v775_v46 = vmul.f32 1.442695, %v756_v33 }
 0x171   : > { %1328 = vst.msk [vmem:[#allocation2 + $0x20] sm:$0xff] %vm1009_vm2, %v741_v56  ;;  %1335 = vst.msk [vmem:[#allocation2 + $0x58] sm:$0xff] %vm1009_vm2, %v2597_v57  ;;  %823 = vperm.xlu0 %2022, %v741_v56   ;;  %858 = vperm.xlu1 %2023, %v2597_v57   ;;  %v757_v1 = vsub.f32 %v693_v47, %v741_v56  ;;  %v763_v47 = vsub.f32 %v2569_v40, %v2581_v45 }
 0x172   : > { %v730_v2 = vpop.xlane.xlu1 %729  ;;  %v716_v5 = vpop.xlane.xlu0 %715 }
 0x173   : > { %v2611_v6 = vmax.f32 %v2599_v58, %v730_v2  ;;  %v2614_v7 = vmax.f32 %v2601_v59, %v716_v5  ;;  %v777_v17 = vmul.f32 1.442695, %v757_v1  ;;  %v2659_v45 = vpop.eup %2032  ;;  %v789_v54 = vmul.f32 1.442695, %v763_v47 }
 0x174   : > { %v2669_v61 = vpop.eup %2034 }
 0x175   : > { %1336 = vst.msk [vmem:[#allocation2 + $0x60] sm:$0xff] %vm1009_vm2, %v2611_v6  ;;  %1329 = vst.msk [vmem:[#allocation2 + $0x28] sm:$0xff] %vm1009_vm2, %v2614_v7  ;;  %863 = vperm.xlu0 %2022, %v2611_v6   ;;  %828 = vperm.xlu1 %2023, %v2614_v7   ;;  %2036 = vpow2.f32 %v777_v17  ;;  %v758_v49 = vsub.f32 %v2601_v59, %v2614_v7  ;;  %v765_v55 = vsub.f32 %v2599_v58, %v2611_v6 }
 0x176   : > { %v718_v18 = vpop.xlane.xlu1 %717  ;;  %v732_v19 = vpop.xlane.xlu0 %731  ;;  %v762_v58 = vsub.f32 %v2556_v31, %v2567_v37 }
 0x177   : > { %v743_v20 = vmax.f32 %v695_v8, %v718_v18  ;;  %v2628_v21 = vmax.f32 %v2616_v9, %v732_v19  ;;  %v779_v59 = vmul.f32 1.442695, %v758_v49  ;;  %v793_v1 = vmul.f32 1.442695, %v765_v55 }
 0x178   : > { %v787_v7 = vmul.f32 1.442695, %v762_v58 }
 0x179   : > { %v759_v28 = vsub.f32 %v695_v8, %v743_v20  ;;  %1330 = vst.msk [vmem:[#allocation2 + $0x30] sm:$0xff] %vm1009_vm2, %v743_v20  ;;  %1337 = vst.msk [vmem:[#allocation2 + $0x68] sm:$0xff] %vm1009_vm2, %v2628_v21  ;;  %833 = vperm.xlu0 %2022, %v743_v20   ;;  %868 = vperm.xlu1 %2023, %v2628_v21   ;;  %v764_v8 = vsub.f32 %v2586_v48, %v2597_v57 }
 0x17a   : > { %v734_v34 = vpop.xlane.xlu1 %733  ;;  %v720_v36 = vpop.xlane.xlu0 %719  ;;  %v766_v37 = vsub.f32 %v2616_v9, %v2628_v21 }
 0x17b   : > { %v781_v42 = vmul.f32 1.442695, %v759_v28  ;;  %v2642_v22 = vmax.f32 %v2630_v23, %v734_v34  ;;  %v744_v29 = vmax.f32 %v696_v26, %v720_v36  ;;  %v791_v31 = vmul.f32 1.442695, %v764_v8 }
 0x17c   : > { %v795_v48 = vmul.f32 1.442695, %v766_v37 }
 0x17d   : > { %2038 = vpow2.f32 %v781_v42  ;;  %v767_v41 = vsub.f32 %v2630_v23, %v2642_v22  ;;  %1338 = vst.msk [vmem:[#allocation2 + $0x70] sm:$0xff] %vm1009_vm2, %v2642_v22  ;;  %1331 = vst.msk [vmem:[#allocation2 + $0x38] sm:$0xff] %vm1009_vm2, %v744_v29  ;;  %873 = vperm.xlu0 %2022, %v2642_v22   ;;  %838 = vperm.xlu1 %2023, %v744_v29   ;;  %v760_v60 = vsub.f32 %v696_v26, %v744_v29 }
 0x17e   : > { %2040 = vpow2.f32 %v773_v32  ;;  %v736_v51 = vpop.xlane.xlu0 %735 }
 0x17f   : > { %v2657_v40 = vmax.f32 %v2644_v43, %v736_v51  ;;  %2042 = vpow2.f32 %v785_v44  ;;  %v2671_v0 = vpop.eup %2036  ;;  %v783_v2 = vmul.f32 1.442695, %v760_v60 }
 0x180   : > { %2044 = vpow2.f32 %v775_v46 }
 0x181   : > { %v768_v56 = vsub.f32 %v2644_v43, %v2657_v40  ;;  %1339 = vst.msk [vmem:[#allocation2 + $0x78] sm:$0xff] %vm1009_vm2, %v2657_v40  ;;  %1049 = vperm.xlu0 %2022, %v2659_v45   ;;  %878 = vperm.xlu1 %2023, %v2657_v40   ;;  %2046 = vpow2.f32 %v789_v54 }
 0x182   : > { %2048 = vpow2.f32 %v779_v59 }
 0x183   : > { %2050 = vpow2.f32 %v793_v1 }
 0x184   : > { %2052 = vpow2.f32 %v783_v2 }
 0x185   : > { %1064 = vperm.xlu0 %2022, %v2671_v0   ;;  %1044 = vperm.xlu1 %2023, %v2669_v61   ;;  %2054 = vpow2.f32 %v787_v7 }
 0x186   : > { %2056 = vpow2.f32 %v791_v31 }
 0x187   : > { %v2677_v5 = vpop.eup %2038  ;;  %2058 = vpow2.f32 %v795_v48 }
 0x188   : > { %v2679_v6 = vpop.eup %2040 }
 0x189   : > { %1074 = vperm.xlu0 %2022, %v2677_v5   ;;  %1054 = vperm.xlu1 %2023, %v2679_v6   ;;  %v2685_v10 = vpop.eup %2042 }
 0x18a   : > { %v2687_v14 = vpop.eup %2044 }
 0x18b   : > { %v2693_v15 = vpop.eup %2046 }
 0x18c   : > { %v2695_v17 = vpop.eup %2048 }
 0x18d   : > { %1084 = vperm.xlu0 %2022, %v2685_v10   ;;  %1059 = vperm.xlu1 %2023, %v2687_v14   ;;  %v2699_v57 = vpop.eup %2050 }
 0x18e   : > { %v2701_v18 = vpop.eup %2052 }
 0x18f   : > { %v2705_v9 = vpop.eup %2054 }
 0x190   : > { %v2708_v19 = vpop.eup %2056 }
 0x191   : > { %1094 = vperm.xlu0 %2022, %v2693_v15   ;;  %1069 = vperm.xlu1 %2023, %v2695_v17   ;;  %v2711_v20 = vpop.eup %2058 }
 0x195   : > { %1104 = vperm.xlu0 %2022, %v2699_v57   ;;  %1079 = vperm.xlu1 %2023, %v2701_v18  }
 0x199   : > { %1089 = vperm.xlu1 %2023, %v2705_v9  }
 0x19d   : > { %1099 = vperm.xlu1 %2023, %v2708_v19  }
 0x1a1   : > { %1109 = vperm.xlu1 %2023, %v2711_v20  }
 0x1e0   : > { %v804_v21 = vpop.permute.xlu1 %803 }
 0x1e1   : > { %v881_v26 = vsub.f32 %v2470_v50, %v804_v21 }
 0x1e3   : > { %v897_v27 = vmul.f32 1.442695, %v881_v26 }
 0x1e4   : > { %v844_v28 = vpop.permute.xlu1 %843  ;;  %v809_v30 = vpop.permute.xlu0 %808 }
 0x1e5   : > { %2060 = vpow2.f32 %v897_v27  ;;  %v889_v32 = vsub.f32 %v2476_v62, %v844_v28  ;;  %v882_v33 = vsub.f32 %v2478_v63, %v809_v30 }
 0x1e7   : > { %v899_v34 = vmul.f32 1.442695, %v882_v33  ;;  %v913_v36 = vmul.f32 1.442695, %v889_v32 }
 0x1e8   : > { %v849_v42 = vpop.permute.xlu1 %848  ;;  %v814_v29 = vpop.permute.xlu0 %813 }
 0x1e9   : > { %v890_v44 = vsub.f32 %v2485_v11, %v849_v42  ;;  %v883_v47 = vsub.f32 %v2487_v12, %v814_v29  ;;  %2062 = vpow2.f32 %v899_v34 }
 0x1ea   : > { %2064 = vpow2.f32 %v913_v36 }
 0x1eb   : > { %v915_v46 = vmul.f32 1.442695, %v890_v44  ;;  %v901_v49 = vmul.f32 1.442695, %v883_v47 }
 0x1ec   : > { %v819_v50 = vpop.permute.xlu1 %818  ;;  %v854_v51 = vpop.permute.xlu0 %853 }
 0x1ed   : > { %2066 = vpow2.f32 %v915_v46  ;;  %v884_v54 = vsub.f32 %v2494_v24, %v819_v50  ;;  %v891_v62 = vsub.f32 %v2496_v25, %v854_v51 }
 0x1ee   : > { %2068 = vpow2.f32 %v901_v49 }
 0x1ef   : > { %v2061_v63 = vpop.eup %2060  ;;  %v903_v55 = vmul.f32 1.442695, %v884_v54  ;;  %v917_v59 = vmul.f32 1.442695, %v891_v62 }
 0x1f0   : > { %961 = vadd.xlane.f32.xlu0 %v2061_v63  ;;  %v859_v60 = vpop.permute.xlu1 %858  ;;  %v824_v11 = vpop.permute.xlu0 %823 }
 0x1f1   : > { %2070 = vpow2.f32 %v903_v55  ;;  %v892_v12 = vsub.f32 %v2503_v38, %v859_v60  ;;  %v885_v1 = vsub.f32 %v2505_v39, %v824_v11 }
 0x1f2   : > { %2072 = vpow2.f32 %v917_v59 }
 0x1f3   : > { %v919_v58 = vmul.f32 1.442695, %v892_v12  ;;  %v905_v2 = vmul.f32 1.442695, %v885_v1  ;;  %v2063_v7 = vpop.eup %2062 }
 0x1f4   : > { %v829_v8 = vpop.permute.xlu1 %828  ;;  %v864_v24 = vpop.permute.xlu0 %863  ;;  %963 = vadd.xlane.f32.xlu1 %v2063_v7  ;;  %v1138_v37 = vpack.c.bf16 %v2063_v7, %v2061_v63  ;;  %v799_v7 = vmul.f32 1.442695, %v768_v56 }
 0x1f5   : > { %2074 = vpow2.f32 %v919_v58  ;;  %v886_v25 = vsub.f32 %v2512_v52, %v829_v8  ;;  %v893_v31 = vsub.f32 %v2514_v53, %v864_v24  ;;  %v2065_v48 = vpop.eup %2064  ;;  %v797_v8 = vmul.f32 1.442695, %v767_v41 }
 0x1f6   : > { %2076 = vpow2.f32 %v905_v2  ;;  %1930 = vmatprep.mubr.bf16.mxu0 %v1138_v37 }
 0x1f7   : > { %v2067_v21 = vpop.eup %2066  ;;  %v907_v26 = vmul.f32 1.442695, %v886_v25  ;;  %v921_v39 = vmul.f32 1.442695, %v893_v31 }
 0x1f8   : > { %v2069_v38 = vpop.eup %2068  ;;  %v869_v27 = vpop.permute.xlu1 %868  ;;  %v1142_v30 = vpack.c.bf16 %v2067_v21, %v2065_v48 }
 0x1f9   : > { %v834_v28 = vpop.permute.xlu0 %833  ;;  %2078 = vpow2.f32 %v907_v26  ;;  %v894_v32 = vsub.f32 %v2521_v3, %v869_v27  ;;  %965 = vadd.xlane.f32.xlu0 %v2069_v38  ;;  %v929_v27 = vld [vmem:[#allocation3] sm:$0xff] }
 0x1fa   : > { %v887_v52 = vsub.f32 %v2523_v4, %v834_v28  ;;  %1938 = vmatprep.mubr.bf16.mxu1 %v1142_v30  ;;  %2080 = vpow2.f32 %v921_v39  ;;  %v945_v28 = vmul.f32 %v2669_v61, %v929_v27 }
 0x1fb   : > { %v2071_v33 = vpop.eup %2070  ;;  %v923_v53 = vmul.f32 1.442695, %v894_v32 }
 0x1fc   : > { %v909_v34 = vmul.f32 1.442695, %v887_v52  ;;  %v839_v36 = vpop.permute.xlu1 %838  ;;  %v1139_v29 = vpack.c.bf16 %v2071_v33, %v2069_v38  ;;  %v2073_v46 = vpop.eup %2072 }
 0x1fd   : > { %v874_v42 = vpop.permute.xlu0 %873  ;;  %2082 = vpow2.f32 %v923_v53  ;;  %v888_v44 = vsub.f32 %v2527_v13, %v839_v36  ;;  %967 = vadd.xlane.f32.xlu0 %v2071_v33  ;;  %v930_v33 = vld [vmem:[#allocation3 + $0x8] sm:$0xff]  ;;  %v931_v36 = vld [vmem:[#allocation3 + $0x10] sm:$0xff] }
 0x1fe   : > { %v895_v47 = vsub.f32 %v2529_v35, %v874_v42  ;;  %2084 = vpow2.f32 %v909_v34  ;;  %1931 = vmatmul.mubr.bf16.vlgmr.msra.gmra.mrb[0].mxu0 %v1139_v29  ;;  %v946_v53 = vmul.f32 %v2659_v45, %v930_v33  ;;  %v947_v29 = vmul.f32 %v2679_v6, %v931_v36 }
 0x1ff   : > { %v2075_v3 = vpop.eup %2074  ;;  %v911_v49 = vmul.f32 1.442695, %v888_v44 }
 0x200   : > { %v2077_v4 = vpop.eup %2076  ;;  %v925_v50 = vmul.f32 1.442695, %v895_v47  ;;  %v879_v51 = vpop.permute.xlu1 %878  ;;  %v1143_v54 = vpack.c.bf16 %v2075_v3, %v2073_v46  ;;  %v932_v47 = vld [vmem:[#allocation3 + $0x18] sm:$0xff] }
 0x201   : > { %2086 = vpow2.f32 %v911_v49  ;;  %v896_v62 = vsub.f32 %v2533_v16, %v879_v51  ;;  %969 = vadd.xlane.f32.xlu1 %v2077_v4  ;;  %v2746_v43 = vpop.permute.xlu0 %1049  ;;  %v948_v61 = vmul.f32 %v2687_v14, %v932_v47  ;;  %v933_v49 = vld [vmem:[#allocation3 + $0x20] sm:$0xff] }
 0x202   : > { %1939 = vmatmul.mubr.bf16.vlgmr.msra.gmra.mrb[0].mxu1 %v1143_v54  ;;  %2088 = vpow2.f32 %v925_v50  ;;  %v949_v45 = vmul.f32 %v2671_v0, %v933_v49  ;;  %v934_v50 = vld [vmem:[#allocation3 + $0x28] sm:$0xff] }
 0x203   : > { %v2079_v63 = vpop.eup %2078  ;;  %v927_v55 = vmul.f32 1.442695, %v896_v62  ;;  %v950_v62 = vmul.f32 %v2695_v17, %v934_v50  ;;  %v1029_v50 = vld [vmem:[#allocation4 + $0x18] sm:$0xff] }
 0x204   : > { %971 = vadd.xlane.f32.xlu0 %v2079_v63  ;;  %v1140_v13 = vpack.c.bf16 %v2079_v63, %v2077_v4  ;;  %v2081_v35 = vpop.eup %2080  ;;  %v2742_v31 = vpop.permute.xlu1 %1044 }
 0x205   : > { %2090 = vpow2.f32 %v927_v55  ;;  %v2750_v56 = vpop.permute.xlu0 %1064  ;;  %v935_v55 = vld [vmem:[#allocation3 + $0x30] sm:$0xff] }
 0x206   : > { %1934 = vmatprep.mubr.bf16.mxu0 %v1140_v13  ;;  %2092 = vpow2.f32 %v799_v7  ;;  %v951_v14 = vmul.f32 %v2677_v5, %v935_v55  ;;  %v936_v13 = vld [vmem:[#allocation3 + $0x38] sm:$0xff] }
 0x207   : > { %v2083_v59 = vpop.eup %2082  ;;  %2094 = vpow2.f32 %v797_v8  ;;  %v952_v0 = vmul.f32 %v2701_v18, %v936_v13  ;;  %v940_v18 = vld [vmem:[#allocation3 + $0x58] sm:$0xff] }
 0x208   : > { %v2085_v60 = vpop.eup %2084  ;;  %v1144_v11 = vpack.c.bf16 %v2083_v59, %v2081_v35  ;;  %v2744_v37 = vpop.permute.xlu1 %1054 }
 0x209   : > { %973 = vadd.xlane.f32.xlu1 %v2085_v60  ;;  %v2754_v22 = vpop.permute.xlu0 %1074 }
 0x20a   : > { %1942 = vmatprep.mubr.bf16.mxu1 %v1144_v11 }
 0x20b   : > { %v2087_v12 = vpop.eup %2086 }
 0x20c   : > { %975 = vadd.xlane.f32.xlu0 %v2087_v12  ;;  %v1141_v1 = vpack.c.bf16 %v2087_v12, %v2085_v60  ;;  %v2089_v16 = vpop.eup %2088  ;;  %v2748_v40 = vpop.permute.xlu1 %1059  ;;  %v938_v12 = vld [vmem:[#allocation3 + $0x48] sm:$0xff] }
 0x20d   : > { %977 = vadd.xlane.f32.xlu1 %v2065_v48  ;;  %v2758_v48 = vpop.permute.xlu0 %1084  ;;  %v954_v5 = vmul.f32 %v2705_v9, %v938_v12  ;;  %v942_v9 = vld [vmem:[#allocation3 + $0x68] sm:$0xff] }
 0x20e   : > { %1935 = vmatmul.mubr.bf16.gmra.mrb[4].mxu0 %v1141_v1 }
 0x20f   : > { %v2091_v58 = vpop.eup %2090 }
 0x210   : > { %979 = vadd.xlane.f32.xlu0 %v2067_v21  ;;  %v1145_v2 = vpack.c.bf16 %v2091_v58, %v2089_v16  ;;  %v2736_v24 = vpop.eup %2092  ;;  %v2752_v23 = vpop.permute.xlu1 %1069 }
 0x211   : > { %981 = vadd.xlane.f32.xlu1 %v2073_v46  ;;  %v2739_v25 = vpop.eup %2094  ;;  %v2762_v26 = vpop.permute.xlu0 %1094 }
 0x212   : > { %1943 = vmatmul.mubr.bf16.gmra.mrb[4].mxu1 %v1145_v2 }
 0x214   : > { %983 = vadd.xlane.f32.xlu0 %v2075_v3  ;;  %v2756_v41 = vpop.permute.xlu1 %1079 }
 0x215   : > { %985 = vadd.xlane.f32.xlu1 %v2081_v35  ;;  %v2766_v39 = vpop.permute.xlu0 %1104 }
 0x218   : > { %987 = vadd.xlane.f32.xlu0 %v2083_v59  ;;  %v2760_v21 = vpop.permute.xlu1 %1089  ;;  %v937_v59 = vld [vmem:[#allocation3 + $0x40] sm:$0xff] }
 0x219   : > { %989 = vadd.xlane.f32.xlu1 %v2089_v16  ;;  %v953_v11 = vmul.f32 %v2685_v10, %v937_v59 }
 0x21c   : > { %991 = vadd.xlane.f32.xlu0 %v2091_v58  ;;  %v2764_v38 = vpop.permute.xlu1 %1099  ;;  %v939_v58 = vld [vmem:[#allocation3 + $0x50] sm:$0xff] }
 0x21d   : > { %v955_v7 = vmul.f32 %v2693_v15, %v939_v58 }
 0x220   : > { %v2769_v32 = vpop.permute.xlu1 %1109 }
 0x22a   : > { %1119 = vperm.xlu1 %2023, %v2736_v24  }
 0x232   : > { %1114 = vperm.xlu0 %2022, %v2739_v25  }
 0x27d   : > { %v962_v30 = vpop.xlane.xlu0 %961 }
 0x27e   : > { %v993_v52 = vadd.f32 %v962_v30, %v945_v28  ;;  %v941_v30 = vld [vmem:[#allocation3 + $0x60] sm:$0xff] }
 0x27f   : > { %v957_v33 = vmul.f32 %v2699_v57, %v941_v30  ;;  %v1040_v30 = vld [vmem:[#allocation4 + $0x70] sm:$0xff] }
 0x280   : > { %1010 = vst.msk [vmem:[#allocation3] sm:$0xff] %vm1009_vm2, %v993_v52  ;;  %v956_v52 = vmul.f32 %v2708_v19, %v940_v18  ;;  %v944_v19 = vld [vmem:[#allocation3 + $0x78] sm:$0xff] }
 0x281   : > { %v964_v34 = vpop.xlane.xlu1 %963  ;;  %v960_v57 = vmul.f32 %v2736_v24, %v944_v19  ;;  %v1034_v24 = vld [vmem:[#allocation4 + $0x40] sm:$0xff]  ;;  %v1033_v18 = vld [vmem:[#allocation4 + $0x38] sm:$0xff] }
 0x282   : > { %v994_v42 = vadd.f32 %v964_v34, %v946_v53 }
 0x284   : > { %1011 = vst.msk [vmem:[#allocation3 + $0x8] sm:$0xff] %vm1009_vm2, %v994_v42  ;;  %v943_v42 = vld [vmem:[#allocation3 + $0x70] sm:$0xff] }
 0x286   : > { %v966_v44 = vpop.xlane.xlu0 %965 }
 0x287   : > { %v995_v46 = vadd.f32 %v966_v44, %v947_v29  ;;  %v958_v29 = vmul.f32 %v2711_v20, %v942_v9  ;;  %v959_v44 = vmul.f32 %v2739_v25, %v943_v42  ;;  %v1028_v20 = vld [vmem:[#allocation4 + $0x10] sm:$0xff]  ;;  %v1041_v42 = vld [vmem:[#allocation4 + $0x78] sm:$0xff] }
 0x288   : > { %v1124_v25 = vmul.f32 %v2744_v37, %v1028_v20 }
 0x289   : > { %1012 = vst.msk [vmem:[#allocation3 + $0x10] sm:$0xff] %vm1009_vm2, %v995_v46 }
 0x28a   : > { %v968_v3 = vpop.xlane.xlu0 %967 }
 0x28b   : > { %v996_v4 = vadd.f32 %v968_v3, %v948_v61 }
 0x28d   : > { %1013 = vst.msk [vmem:[#allocation3 + $0x18] sm:$0xff] %vm1009_vm2, %v996_v4 }
 0x28e   : > { %v970_v51 = vpop.xlane.xlu1 %969 }
 0x28f   : > { %v997_v54 = vadd.f32 %v970_v51, %v949_v45  ;;  %v1026_v45 = vld [vmem:[#allocation4] sm:$0xff]  ;;  %v1027_v51 = vld [vmem:[#allocation4 + $0x8] sm:$0xff] }
 0x290   : > { %v1123_v13 = vmul.f32 %v2746_v43, %v1027_v51  ;;  %v1362_v51 = vld [vmem:[#allocation3 + $0x10] sm:$0xff] (!%p1854_p0) }
 0x291   : > { %1014 = vst.msk [vmem:[#allocation3 + $0x20] sm:$0xff] %vm1009_vm2, %v997_v54  ;;  %v972_v6 = vpop.xlane.xlu0 %971  ;;  %v1122_v54 = vmul.f32 %v2742_v31, %v1026_v45 }
 0x292   : > { %v998_v63 = vadd.f32 %v972_v6, %v950_v62  ;;  %v1036_v62 = vld [vmem:[#allocation4 + $0x50] sm:$0xff] }
 0x294   : > { %1015 = vst.msk [vmem:[#allocation3 + $0x28] sm:$0xff] %vm1009_vm2, %v998_v63  ;;  %v1125_v63 = vmul.f32 %v2748_v40, %v1029_v50 }
 0x296   : > { %v974_v35 = vpop.xlane.xlu1 %973 }
 0x297   : > { %v999_v60 = vadd.f32 %v974_v35, %v951_v14  ;;  %v1037_v35 = vld [vmem:[#allocation4 + $0x58] sm:$0xff] }
 0x299   : > { %1016 = vst.msk [vmem:[#allocation3 + $0x30] sm:$0xff] %vm1009_vm2, %v999_v60  ;;  %v976_v17 = vpop.xlane.xlu0 %975 }
 0x29a   : > { %v978_v1 = vpop.xlane.xlu1 %977  ;;  %v1000_v16 = vadd.f32 %v976_v17, %v952_v0  ;;  %v1132_v0 = vmul.f32 %v2762_v26, %v1036_v62  ;;  %v1130_v17 = vmul.f32 %v2758_v48, %v1034_v24  ;;  %v1361_v62 = vld [vmem:[#allocation3 + $0x8] sm:$0xff] (!%p1854_p0) }
 0x29b   : > { %v1001_v2 = vadd.f32 %v978_v1, %v953_v11  ;;  %v1035_v11 = vld [vmem:[#allocation4 + $0x48] sm:$0xff]  ;;  %v1133_v1 = vmul.f32 %v2764_v38, %v1037_v35  ;;  %v1032_v38 = vld [vmem:[#allocation4 + $0x30] sm:$0xff] }
 0x29c   : > { %1017 = vst.msk [vmem:[#allocation3 + $0x38] sm:$0xff] %vm1009_vm2, %v1000_v16  ;;  %v1131_v58 = vmul.f32 %v2760_v21, %v1035_v11  ;;  %v1128_v21 = vmul.f32 %v2754_v22, %v1032_v38 }
 0x29d   : > { %1018 = vst.msk [vmem:[#allocation3 + $0x40] sm:$0xff] %vm1009_vm2, %v1001_v2  ;;  %v980_v8 = vpop.xlane.xlu0 %979 }
 0x29e   : > { %v982_v27 = vpop.xlane.xlu1 %981  ;;  %v1002_v28 = vadd.f32 %v980_v8, %v954_v5  ;;  %v1030_v8 = vld [vmem:[#allocation4 + $0x20] sm:$0xff] }
 0x29f   : > { %v1003_v10 = vadd.f32 %v982_v27, %v955_v7  ;;  %v1031_v27 = vld [vmem:[#allocation4 + $0x28] sm:$0xff] }
 0x2a0   : > { %1019 = vst.msk [vmem:[#allocation3 + $0x48] sm:$0xff] %vm1009_vm2, %v1002_v28  ;;  %v1126_v28 = vmul.f32 %v2750_v56, %v1030_v8 }
 0x2a1   : > { %1020 = vst.msk [vmem:[#allocation3 + $0x50] sm:$0xff] %vm1009_vm2, %v1003_v10  ;;  %v984_v53 = vpop.xlane.xlu0 %983 }
 0x2a2   : > { %v986_v34 = vpop.xlane.xlu1 %985  ;;  %v1004_v36 = vadd.f32 %v984_v53, %v956_v52  ;;  %v1038_v53 = vld [vmem:[#allocation4 + $0x60] sm:$0xff] }
 0x2a3   : > { %v1005_v15 = vadd.f32 %v986_v34, %v957_v33  ;;  %v1129_v33 = vmul.f32 %v2756_v41, %v1033_v18  ;;  %v1367_v24 = vld [vmem:[#allocation3 + $0x38] sm:$0xff] (!%p1854_p0) }
 0x2a4   : > { %1021 = vst.msk [vmem:[#allocation3 + $0x58] sm:$0xff] %vm1009_vm2, %v1004_v36  ;;  %v1127_v36 = vmul.f32 %v2752_v23, %v1031_v27 }
 0x2a5   : > { %1022 = vst.msk [vmem:[#allocation3 + $0x60] sm:$0xff] %vm1009_vm2, %v1005_v15  ;;  %v988_v47 = vpop.xlane.xlu0 %987 }
 0x2a6   : > { %v990_v46 = vpop.xlane.xlu1 %989  ;;  %v1006_v61 = vadd.f32 %v988_v47, %v958_v29  ;;  %v1039_v47 = vld [vmem:[#allocation4 + $0x68] sm:$0xff] }
 0x2a7   : > { %v1007_v3 = vadd.f32 %v990_v46, %v959_v44  ;;  %v1134_v46 = vmul.f32 %v2766_v39, %v1038_v53 }
 0x2a8   : > { %1023 = vst.msk [vmem:[#allocation3 + $0x68] sm:$0xff] %vm1009_vm2, %v1006_v61 }
 0x2a9   : > { %1024 = vst.msk [vmem:[#allocation3 + $0x70] sm:$0xff] %vm1009_vm2, %v1007_v3  ;;  %v992_v49 = vpop.xlane.xlu0 %991 }
 0x2aa   : > { %v1008_v4 = vadd.f32 %v992_v49, %v960_v57  ;;  %v1120_v15 = vpop.permute.xlu1 %1119  ;;  %v1135_v49 = vmul.f32 %v2769_v32, %v1039_v47  ;;  %v1360_v32 = vld [vmem:[#allocation3] sm:$0xff] (!%p1854_p0) }
 0x2ab   : > { %v1137_v3 = vmul.f32 %v1120_v15, %v1041_v42  ;;  %v1371_v35 = vld [vmem:[#allocation3 + $0x58] sm:$0xff] (!%p1854_p0) }
 0x2ac   : > { %1025 = vst.msk [vmem:[#allocation3 + $0x78] sm:$0xff] %vm1009_vm2, %v1008_v4 }
 0x2b1   : > { %v1115_v10 = vpop.permute.xlu0 %1114 }
 0x2b2   : > { %v1136_v19 = vmul.f32 %v1115_v10, %v1040_v30 }
 0x2b3   : > { %v1375_v11 = vld [vmem:[#allocation3 + $0x78] sm:$0xff] (!%p1854_p0) }
 0x2d1   : > { %v1932_v6 = vpop.f32.mrb[0].mxu0 }
 0x2d2   : > { %v1293_v55 = vadd.f32 %v1932_v6, %v1124_v25  ;;  %v1228_v14 = vpop.f32.mrb[1].mxu0  ;;  %v2253_v25 = vmov (!%p1854_p0), 0   ;;  %v1365_v6 = vld [vmem:[#allocation3 + $0x28] sm:$0xff] (!%p1854_p0) }
 0x2d3   : > { %v1291_v59 = vadd.f32 %v1228_v14, %v1122_v54  ;;  %v1933_v60 = vpop.f32.mrb[2].mxu0  ;;  %2097 = vset.pattern.permute.xlu1 (!%p1854_p0), %v2253_v25  ;;  %2096 = vset.pattern.permute.xlu0 (!%p1854_p0), %v2253_v25  ;;  %v1363_v54 = vld [vmem:[#allocation3 + $0x18] sm:$0xff] (!%p1854_p0)  ;;  %v1369_v14 = vld [vmem:[#allocation3 + $0x48] sm:$0xff] (!%p1854_p0) }
 0x2d4   : > { %1310 = vst.msk [vmem:[#allocation4 + $0x10] sm:$0xff] %vm1307_vm3, %v1293_v55  ;;  %v1294_v37 = vadd.f32 %v1933_v60, %v1125_v63  ;;  %v1231_v31 = vpop.f32.mrb[3].mxu0  ;;  %1388 = vperm.xlu1 (!%p1854_p0), %2097, %v1362_v51   ;;  %1378 = vperm.xlu0 (!%p1854_p0), %2096, %v1360_v32   ;;  %v1364_v63 = vld [vmem:[#allocation3 + $0x20] sm:$0xff] (!%p1854_p0)  ;;  %v1366_v55 = vld [vmem:[#allocation3 + $0x30] sm:$0xff] (!%p1854_p0)  ;;  %v1373_v60 = vld [vmem:[#allocation3 + $0x68] sm:$0xff] (!%p1854_p0) }
 0x2d5   : > { %1308 = vst.msk [vmem:[#allocation4] sm:$0xff] %vm1307_vm3, %v1291_v59  ;;  %v1292_v40 = vadd.f32 %v1231_v31, %v1123_v13  ;;  %v1940_v12 = vpop.f32.mrb[0].mxu1  ;;  %v1368_v13 = vld [vmem:[#allocation3 + $0x40] sm:$0xff] (!%p1854_p0)  ;;  %v1370_v59 = vld [vmem:[#allocation3 + $0x50] sm:$0xff] (!%p1854_p0) }
 0x2d6   : > { %1311 = vst.msk [vmem:[#allocation4 + $0x18] sm:$0xff] %vm1307_vm3, %v1294_v37  ;;  %v1301_v43 = vadd.f32 %v1940_v12, %v1132_v0  ;;  %v1260_v16 = vpop.f32.mrb[1].mxu1  ;;  %v1372_v0 = vld [vmem:[#allocation3 + $0x60] sm:$0xff] (!%p1854_p0)  ;;  %v1374_v37 = vld [vmem:[#allocation3 + $0x70] sm:$0xff] (!%p1854_p0) }
 0x2d7   : > { %1309 = vst.msk [vmem:[#allocation4 + $0x8] sm:$0xff] %vm1307_vm3, %v1292_v40  ;;  %v1299_v26 = vadd.f32 %v1260_v16, %v1130_v17  ;;  %v1941_v2 = vpop.f32.mrb[2].mxu1 }
 0x2d8   : > { %1318 = vst.msk [vmem:[#allocation4 + $0x50] sm:$0xff] %vm1307_vm3, %v1301_v43  ;;  %v1302_v5 = vadd.f32 %v1941_v2, %v1133_v1  ;;  %v1263_v48 = vpop.f32.mrb[3].mxu1  ;;  %1393 = vperm.xlu1 (!%p1854_p0), %2097, %v1363_v54   ;;  %1383 = vperm.xlu0 (!%p1854_p0), %2096, %v1361_v62  }
 0x2d9   : > { %1316 = vst.msk [vmem:[#allocation4 + $0x40] sm:$0xff] %vm1307_vm3, %v1299_v26  ;;  %v1300_v7 = vadd.f32 %v1263_v48, %v1131_v58 }
 0x2da   : > { %1319 = vst.msk [vmem:[#allocation4 + $0x58] sm:$0xff] %vm1307_vm3, %v1302_v5 }
 0x2db   : > { %1317 = vst.msk [vmem:[#allocation4 + $0x48] sm:$0xff] %vm1307_vm3, %v1300_v7  ;;  %v1346_v16 = vld [vmem:[#allocation4 + $0x10] sm:$0xff] (!%p1854_p0)  ;;  %v2836_v7 = vld [vmem:[%s3071_s4] ss:$0 sm:$0xff] (!%p1854_p0) }
 0x2dc   : > { %1403 = vperm.xlu1 (!%p1854_p0), %2097, %v1365_v6   ;;  %1398 = vperm.xlu0 (!%p1854_p0), %2096, %v1364_v63   ;;  %v1344_v58 = vld [vmem:[#allocation4] sm:$0xff] (!%p1854_p0) }
 0x2de   : > { %v1345_v18 = vld [vmem:[#allocation4 + $0x8] sm:$0xff] (!%p1854_p0) }
 0x2e0   : > { %1413 = vperm.xlu1 (!%p1854_p0), %2097, %v1367_v24   ;;  %1408 = vperm.xlu0 (!%p1854_p0), %2096, %v1366_v55   ;;  %v1352_v54 = vld [vmem:[#allocation4 + $0x40] sm:$0xff] (!%p1854_p0) }
 0x2e1   : > { %v1936_v52 = vpop.f32.mrb[4].mxu0 }
 0x2e2   : > { %v1297_v9 = vadd.f32 %v1936_v52, %v1128_v21  ;;  %v1244_v34 = vpop.f32.mrb[5].mxu0  ;;  %v1347_v21 = vld [vmem:[#allocation4 + $0x18] sm:$0xff] (!%p1854_p0)  ;;  %v1353_v62 = vld [vmem:[#allocation4 + $0x48] sm:$0xff] (!%p1854_p0) }
 0x2e3   : > { %v1295_v29 = vadd.f32 %v1244_v34, %v1126_v28  ;;  %v1937_v44 = vpop.f32.mrb[6].mxu0 }
 0x2e4   : > { %1314 = vst.msk [vmem:[#allocation4 + $0x30] sm:$0xff] %vm1307_vm3, %v1297_v9  ;;  %v1298_v22 = vadd.f32 %v1937_v44, %v1129_v33  ;;  %v1247_v56 = vpop.f32.mrb[7].mxu0  ;;  %1423 = vperm.xlu1 (!%p1854_p0), %2097, %v1369_v14   ;;  %1418 = vperm.xlu0 (!%p1854_p0), %2096, %v1368_v13  }
 0x2e5   : > { %1312 = vst.msk [vmem:[#allocation4 + $0x20] sm:$0xff] %vm1307_vm3, %v1295_v29  ;;  %v1296_v41 = vadd.f32 %v1247_v56, %v1127_v36  ;;  %v1944_v61 = vpop.f32.mrb[4].mxu1  ;;  %1343 = sbr.rel (%p1854_p0) target bundleno = 1219 (0x4c3), region = 89 }
 0x2e6   : > { %1315 = vst.msk [vmem:[#allocation4 + $0x38] sm:$0xff] %vm1307_vm3, %v1298_v22  ;;  %v1305_v23 = vadd.f32 %v1944_v61, %v1136_v19  ;;  %v1276_v57 = vpop.f32.mrb[5].mxu1 }
 0x2e7   : > { %1313 = vst.msk [vmem:[#allocation4 + $0x28] sm:$0xff] %vm1307_vm3, %v1296_v41  ;;  %v1303_v4 = vadd.f32 %v1276_v57, %v1134_v46  ;;  %v1945_v20 = vpop.f32.mrb[6].mxu1 }
 0x2e8   : > { %1322 = vst.msk [vmem:[#allocation4 + $0x70] sm:$0xff] %vm1307_vm3, %v1305_v23  ;;  %v1306_v45 = vadd.f32 %v1945_v20, %v1137_v3  ;;  %v1279_v50 = vpop.f32.mrb[7].mxu1  ;;  %1433 = vperm.xlu1 (!%p1854_p0), %2097, %v1371_v35   ;;  %1428 = vperm.xlu0 (!%p1854_p0), %2096, %v1370_v59  }
 0x2e9   : > { %1320 = vst.msk [vmem:[#allocation4 + $0x60] sm:$0xff] %vm1307_vm3, %v1303_v4  ;;  %v1304_v39 = vadd.f32 %v1279_v50, %v1135_v49 }
 0x2ea   : > { %1323 = vst.msk [vmem:[#allocation4 + $0x78] sm:$0xff] %vm1307_vm3, %v1306_v45 }
 0x2eb   : > { %1321 = vst.msk [vmem:[#allocation4 + $0x68] sm:$0xff] %vm1307_vm3, %v1304_v39  ;;  %v1350_v23 = vld [vmem:[#allocation4 + $0x30] sm:$0xff] (!%p1854_p0) }
 0x2ec   : > { %1443 = vperm.xlu1 %2097, %v1373_v60   ;;  %1438 = vperm.xlu0 %2096, %v1372_v0   ;;  %v1348_v42 = vld [vmem:[#allocation4 + $0x20] sm:$0xff] }
 0x2ed   : > { %v1351_v3 = vld [vmem:[#allocation4 + $0x38] sm:$0xff] }
 0x2ee   : > { %v1349_v36 = vld [vmem:[#allocation4 + $0x28] sm:$0xff] }
 0x2f0   : > { %1453 = vperm.xlu1 %2097, %v1375_v11   ;;  %1448 = vperm.xlu0 %2096, %v1374_v37   ;;  %v1355_v11 = vld [vmem:[#allocation4 + $0x58] sm:$0xff]  ;;  %v1354_v37 = vld [vmem:[#allocation4 + $0x50] sm:$0xff] }
 0x353   : > { %v1389_v31 = vpop.permute.xlu1 %1388  ;;  %v1379_v17 = vpop.permute.xlu0 %1378 }
 0x354   : > { %2098 = vrcp.f32 %v1389_v31 }
 0x355   : > { %2100 = vrcp.f32 %v1379_v17 }
 0x357   : > { %v1394_v40 = vpop.permute.xlu1 %1393  ;;  %v1384_v12 = vpop.permute.xlu0 %1383 }
 0x358   : > { %2102 = vrcp.f32 %v1394_v40 }
 0x359   : > { %2104 = vrcp.f32 %v1384_v12 }
 0x35b   : > { %v1404_v1 = vpop.permute.xlu1 %1403  ;;  %v1399_v43 = vpop.permute.xlu0 %1398 }
 0x35c   : > { %2106 = vrcp.f32 %v1404_v1 }
 0x35d   : > { %2108 = vrcp.f32 %v1399_v43 }
 0x35e   : > { %v2099_v26 = vpop.eup %2098 }
 0x35f   : > { %v2101_v2 = vpop.eup %2100  ;;  %v1414_v5 = vpop.permute.xlu1 %1413  ;;  %v1461_v38 = vmul.f32 %v2099_v26, %v1346_v16  ;;  %v1356_v26 = vld [vmem:[#allocation4 + $0x60] sm:$0xff] }
 0x360   : > { %v1409_v48 = vpop.permute.xlu0 %1408  ;;  %2110 = vrcp.f32 %v1414_v5  ;;  %v1457_v8 = vmul.f32 %v2101_v2, %v1344_v58  ;;  %v1357_v2 = vld [vmem:[#allocation4 + $0x68] sm:$0xff] }
 0x361   : > { %2112 = vrcp.f32 %v1409_v48  ;;  %v2842_v30 = vadd.f32 %v2836_v7, %v1461_v38 }
 0x362   : > { %v2103_v27 = vpop.eup %2102  ;;  %v2839_v28 = vadd.f32 %v2836_v7, %v1457_v8 }
 0x363   : > { %v2105_v10 = vpop.eup %2104  ;;  %v1424_v52 = vpop.permute.xlu1 %1423  ;;  %v1463_v34 = vmul.f32 %v2103_v27, %v1347_v21  ;;  %v1517_v44 = vsel %vm1307_vm3, %v2842_v30, -inf }
 0x364   : > { %v1419_v33 = vpop.permute.xlu0 %1418  ;;  %2114 = vrcp.f32 %v1424_v52  ;;  %v1511_v53 = vsel %vm1307_vm3, %v2839_v28, -inf  ;;  %v1459_v9 = vmul.f32 %v2105_v10, %v1345_v18  ;;  %v1358_v52 = vld [vmem:[#allocation4 + $0x70] sm:$0xff] }
 0x365   : > { %2116 = vrcp.f32 %v1419_v33  ;;  %1512 = vmax.xlane.f32.xlu0 %v1511_v53  ;;  %v2854_v61 = vadd.f32 %v2836_v7, %v1463_v34  ;;  %v1359_v33 = vld [vmem:[#allocation4 + $0x78] sm:$0xff] }
 0x366   : > { %v2107_v15 = vpop.eup %2106  ;;  %v2847_v29 = vadd.f32 %v2836_v7, %v1459_v9 }
 0x367   : > { %v2109_v47 = vpop.eup %2108  ;;  %v1434_v19 = vpop.permute.xlu1 %1433  ;;  %v1467_v56 = vmul.f32 %v2107_v15, %v1349_v36  ;;  %v1520_v32 = vsel %vm1307_vm3, %v2854_v61, -inf }
 0x368   : > { %v1429_v22 = vpop.permute.xlu0 %1428  ;;  %2118 = vrcp.f32 %v1434_v19  ;;  %v1514_v46 = vsel %vm1307_vm3, %v2847_v29, -inf  ;;  %v1465_v41 = vmul.f32 %v2109_v47, %v1348_v42 }
 0x369   : > { %2120 = vrcp.f32 %v1429_v22  ;;  %1515 = vmax.xlane.f32.xlu1 %v1514_v46  ;;  %1518 = vmax.xlane.f32.xlu0 %v1517_v44  ;;  %v2860_v50 = vadd.f32 %v2836_v7, %v1467_v56 }
 0x36a   : > { %v2111_v57 = vpop.eup %2110  ;;  %v2857_v49 = vadd.f32 %v2836_v7, %v1465_v41 }
 0x36b   : > { %v2113_v4 = vpop.eup %2112  ;;  %v1444_v20 = vpop.permute.xlu1 %1443  ;;  %v1471_v39 = vmul.f32 %v2111_v57, %v1351_v3  ;;  %v1526_v13 = vsel %vm1307_vm3, %v2860_v50, -inf }
 0x36c   : > { %v1439_v45 = vpop.permute.xlu0 %1438  ;;  %2122 = vrcp.f32 %v1444_v20  ;;  %v1523_v51 = vsel %vm1307_vm3, %v2857_v49, -inf  ;;  %v1469_v25 = vmul.f32 %v2113_v4, %v1350_v23 }
 0x36d   : > { %2124 = vrcp.f32 %v1439_v45  ;;  %1524 = vmax.xlane.f32.xlu1 %v1523_v51  ;;  %1521 = vmax.xlane.f32.xlu0 %v1520_v32  ;;  %v2872_v35 = vadd.f32 %v2836_v7, %v1471_v39 }
 0x36e   : > { %v2115_v6 = vpop.eup %2114  ;;  %v2867_v63 = vadd.f32 %v2836_v7, %v1469_v25 }
 0x36f   : > { %v2117_v24 = vpop.eup %2116  ;;  %v1454_v55 = vpop.permute.xlu1 %1453  ;;  %v1475_v0 = vmul.f32 %v2115_v6, %v1353_v62  ;;  %v1532_v43 = vsel %vm1307_vm3, %v2872_v35, -inf }
 0x370   : > { %v1449_v14 = vpop.permute.xlu0 %1448  ;;  %2126 = vrcp.f32 %v1454_v55  ;;  %v1529_v59 = vsel %vm1307_vm3, %v2867_v63, -inf  ;;  %v1473_v60 = vmul.f32 %v2117_v24, %v1352_v54 }
 0x371   : > { %2128 = vrcp.f32 %v1449_v14  ;;  %1530 = vmax.xlane.f32.xlu1 %v1529_v59  ;;  %1527 = vmax.xlane.f32.xlu0 %v1526_v13  ;;  %v2884_v58 = vadd.f32 %v2836_v7, %v1475_v0 }
 0x372   : > { %v2119_v31 = vpop.eup %2118  ;;  %v2877_v17 = vadd.f32 %v2836_v7, %v1473_v60 }
 0x373   : > { %v2121_v40 = vpop.eup %2120  ;;  %v1479_v12 = vmul.f32 %v2119_v31, %v1355_v11  ;;  %v1538_v21 = vsel %vm1307_vm3, %v2884_v58, -inf }
 0x374   : > { %v1535_v1 = vsel %vm1307_vm3, %v2877_v17, -inf  ;;  %v1477_v16 = vmul.f32 %v2121_v40, %v1354_v37 }
 0x375   : > { %1536 = vmax.xlane.f32.xlu1 %v1535_v1  ;;  %1533 = vmax.xlane.f32.xlu0 %v1532_v43  ;;  %v2890_v8 = vadd.f32 %v2836_v7, %v1479_v12 }
 0x376   : > { %v2123_v5 = vpop.eup %2122  ;;  %v2887_v48 = vadd.f32 %v2836_v7, %v1477_v16 }
 0x377   : > { %v2125_v38 = vpop.eup %2124  ;;  %v1483_v10 = vmul.f32 %v2123_v5, %v1357_v2  ;;  %v1544_v36 = vsel %vm1307_vm3, %v2890_v8, -inf }
 0x378   : > { %v1541_v18 = vsel %vm1307_vm3, %v2887_v48, -inf  ;;  %v1481_v27 = vmul.f32 %v2125_v38, %v1356_v26 }
 0x379   : > { %1542 = vmax.xlane.f32.xlu1 %v1541_v18  ;;  %1539 = vmax.xlane.f32.xlu0 %v1538_v21  ;;  %v2904_v44 = vadd.f32 %v2836_v7, %v1483_v10 }
 0x37a   : > { %v2127_v53 = vpop.eup %2126  ;;  %v2897_v9 = vadd.f32 %v2836_v7, %v1481_v27 }
 0x37b   : > { %v2129_v34 = vpop.eup %2128  ;;  %v1487_v47 = vmul.f32 %v2127_v53, %v1359_v33  ;;  %v1550_v56 = vsel %vm1307_vm3, %v2904_v44, -inf }
 0x37c   : > { %v1547_v42 = vsel %vm1307_vm3, %v2897_v9, -inf  ;;  %v1485_v15 = vmul.f32 %v2129_v34, %v1358_v52 }
 0x37d   : > { %1548 = vmax.xlane.f32.xlu1 %v1547_v42  ;;  %1545 = vmax.xlane.f32.xlu0 %v1544_v36  ;;  %v2914_v46 = vadd.f32 %v2836_v7, %v1487_v47 }
 0x37e   : > { %v2907_v19 = vadd.f32 %v2836_v7, %v1485_v15 }
 0x37f   : > { %v1556_v41 = vsel %vm1307_vm3, %v2914_v46, -inf }
 0x380   : > { %v1553_v22 = vsel %vm1307_vm3, %v2907_v19, -inf }
 0x381   : > { %1554 = vmax.xlane.f32.xlu1 %v1553_v22  ;;  %1551 = vmax.xlane.f32.xlu0 %v1550_v56 }
 0x385   : > { %1557 = vmax.xlane.f32.xlu0 %v1556_v41 }
 0x3f2   : > { %v1513_v3 = vpop.xlane.xlu0 %1512 }
 0x3f3   : > { %v2919_v23 = vsub.f32 %v2839_v28, %v1513_v3 }
 0x3f5   : > { %v1575_v57 = vmul.f32 1.442695, %v2919_v23 }
 0x3f6   : > { %v1516_v4 = vpop.xlane.xlu1 %1515  ;;  %v1519_v20 = vpop.xlane.xlu0 %1518 }
 0x3f7   : > { %2130 = vpow2.f32 %v1575_v57  ;;  %v2923_v45 = vsub.f32 %v2847_v29, %v1516_v4  ;;  %v2926_v7 = vsub.f32 %v2842_v30, %v1519_v20 }
 0x3f9   : > { %v1577_v39 = vmul.f32 1.442695, %v2923_v45  ;;  %v1579_v51 = vmul.f32 1.442695, %v2926_v7 }
 0x3fa   : > { %v1525_v32 = vpop.xlane.xlu1 %1524  ;;  %v1522_v25 = vpop.xlane.xlu0 %1521 }
 0x3fb   : > { %2132 = vpow2.f32 %v1577_v39  ;;  %v2931_v28 = vsub.f32 %v2857_v49, %v1525_v32  ;;  %v2934_v54 = vsub.f32 %v2854_v61, %v1522_v25 }
 0x3fc   : > { %2134 = vpow2.f32 %v1579_v51 }
 0x3fd   : > { %v1583_v29 = vmul.f32 1.442695, %v2931_v28  ;;  %v1581_v62 = vmul.f32 1.442695, %v2934_v54 }
 0x3fe   : > { %v1531_v30 = vpop.xlane.xlu1 %1530  ;;  %v1528_v6 = vpop.xlane.xlu0 %1527 }
 0x3ff   : > { %2136 = vpow2.f32 %v1583_v29  ;;  %v2939_v24 = vsub.f32 %v2867_v63, %v1531_v30  ;;  %v2942_v55 = vsub.f32 %v2860_v50, %v1528_v6 }
 0x400   : > { %2138 = vpow2.f32 %v1581_v62 }
 0x401   : > { %v2131_v49 = vpop.eup %2130  ;;  %v1587_v14 = vmul.f32 1.442695, %v2939_v24  ;;  %v1585_v61 = vmul.f32 1.442695, %v2942_v55 }
 0x402   : > { %v1537_v13 = vpop.xlane.xlu1 %1536  ;;  %v1534_v59 = vpop.xlane.xlu0 %1533  ;;  %v1607_v60 = vsel %vm1307_vm3, %v2131_v49, 0.0 }
 0x403   : > { %2140 = vpow2.f32 %v1587_v14  ;;  %v2948_v0 = vsub.f32 %v2877_v17, %v1537_v13  ;;  %v2951_v63 = vsub.f32 %v2872_v35, %v1534_v59  ;;  %1608 = vadd.xlane.f32.xlu1 %v1607_v60 }
 0x404   : > { %2142 = vpow2.f32 %v1585_v61 }
 0x405   : > { %v2133_v50 = vpop.eup %2132  ;;  %v1591_v11 = vmul.f32 1.442695, %v2948_v0  ;;  %v1589_v37 = vmul.f32 1.442695, %v2951_v63 }
 0x406   : > { %v2135_v31 = vpop.eup %2134  ;;  %v1543_v40 = vpop.xlane.xlu1 %1542  ;;  %v1610_v1 = vsel %vm1307_vm3, %v2133_v50, 0.0 }
 0x407   : > { %v1540_v12 = vpop.xlane.xlu0 %1539  ;;  %2144 = vpow2.f32 %v1591_v11  ;;  %v2957_v43 = vsub.f32 %v2887_v48, %v1543_v40  ;;  %1611 = vadd.xlane.f32.xlu0 %v1610_v1  ;;  %v1613_v35 = vsel %vm1307_vm3, %v2135_v31, 0.0 }
 0x408   : > { %v2960_v17 = vsub.f32 %v2884_v58, %v1540_v12  ;;  %2146 = vpow2.f32 %v1589_v37  ;;  %1614 = vadd.xlane.f32.xlu1 %v1613_v35 }
 0x409   : > { %v2137_v16 = vpop.eup %2136  ;;  %v1595_v26 = vmul.f32 1.442695, %v2957_v43 }
 0x40a   : > { %v1593_v2 = vmul.f32 1.442695, %v2960_v17  ;;  %v2139_v5 = vpop.eup %2138  ;;  %v1549_v38 = vpop.xlane.xlu1 %1548  ;;  %v1619_v21 = vsel %vm1307_vm3, %v2137_v16, 0.0 }
 0x40b   : > { %v1546_v18 = vpop.xlane.xlu0 %1545  ;;  %2148 = vpow2.f32 %v1595_v26  ;;  %v2967_v48 = vsub.f32 %v2897_v9, %v1549_v38  ;;  %v1616_v27 = vsel %vm1307_vm3, %v2139_v5, 0.0 }
 0x40c   : > { %v2970_v58 = vsub.f32 %v2890_v8, %v1546_v18  ;;  %2150 = vpow2.f32 %v1593_v2  ;;  %1620 = vadd.xlane.f32.xlu1 %v1619_v21  ;;  %1617 = vadd.xlane.f32.xlu0 %v1616_v27 }
 0x40d   : > { %v2141_v10 = vpop.eup %2140  ;;  %v1599_v52 = vmul.f32 1.442695, %v2967_v48 }
 0x40e   : > { %v1597_v33 = vmul.f32 1.442695, %v2970_v58  ;;  %v2143_v53 = vpop.eup %2142  ;;  %v1555_v34 = vpop.xlane.xlu1 %1554  ;;  %v1625_v42 = vsel %vm1307_vm3, %v2141_v10, 0.0 }
 0x40f   : > { %v1552_v36 = vpop.xlane.xlu0 %1551  ;;  %2152 = vpow2.f32 %v1599_v52  ;;  %v2977_v9 = vsub.f32 %v2907_v19, %v1555_v34  ;;  %v1622_v15 = vsel %vm1307_vm3, %v2143_v53, 0.0 }
 0x410   : > { %v2980_v8 = vsub.f32 %v2904_v44, %v1552_v36  ;;  %2154 = vpow2.f32 %v1597_v33  ;;  %1626 = vadd.xlane.f32.xlu1 %v1625_v42  ;;  %1623 = vadd.xlane.f32.xlu0 %v1622_v15 }
 0x411   : > { %v2145_v47 = vpop.eup %2144  ;;  %v1603_v22 = vmul.f32 1.442695, %v2977_v9 }
 0x412   : > { %v1601_v56 = vmul.f32 1.442695, %v2980_v8  ;;  %v2147_v41 = vpop.eup %2146  ;;  %v1631_v57 = vsel %vm1307_vm3, %v2145_v47, 0.0 }
 0x413   : > { %v1558_v3 = vpop.xlane.xlu0 %1557  ;;  %2156 = vpow2.f32 %v1603_v22  ;;  %v1628_v44 = vsel %vm1307_vm3, %v2147_v41, 0.0 }
 0x414   : > { %v2987_v19 = vsub.f32 %v2914_v46, %v1558_v3  ;;  %2158 = vpow2.f32 %v1601_v56  ;;  %1632 = vadd.xlane.f32.xlu1 %v1631_v57  ;;  %1629 = vadd.xlane.f32.xlu0 %v1628_v44 }
 0x415   : > { %v2149_v4 = vpop.eup %2148 }
 0x416   : > { %v1605_v20 = vmul.f32 1.442695, %v2987_v19  ;;  %v2151_v39 = vpop.eup %2150  ;;  %v1637_v51 = vsel %vm1307_vm3, %v2149_v4, 0.0 }
 0x417   : > { %v1634_v32 = vsel %vm1307_vm3, %v2151_v39, 0.0 }
 0x418   : > { %2160 = vpow2.f32 %v1605_v20  ;;  %1638 = vadd.xlane.f32.xlu1 %v1637_v51  ;;  %1635 = vadd.xlane.f32.xlu0 %v1634_v32 }
 0x419   : > { %v2153_v25 = vpop.eup %2152 }
 0x41a   : > { %v2155_v29 = vpop.eup %2154  ;;  %v1643_v46 = vsel %vm1307_vm3, %v2153_v25, 0.0 }
 0x41b   : > { %v1640_v62 = vsel %vm1307_vm3, %v2155_v29, 0.0 }
 0x41c   : > { %1644 = vadd.xlane.f32.xlu1 %v1643_v46  ;;  %1641 = vadd.xlane.f32.xlu0 %v1640_v62 }
 0x41d   : > { %v2157_v30 = vpop.eup %2156 }
 0x41e   : > { %v2159_v6 = vpop.eup %2158  ;;  %v1649_v49 = vsel %vm1307_vm3, %v2157_v30, 0.0 }
 0x41f   : > { %v1646_v14 = vsel %vm1307_vm3, %v2159_v6, 0.0 }
 0x420   : > { %1650 = vadd.xlane.f32.xlu1 %v1649_v49  ;;  %1647 = vadd.xlane.f32.xlu0 %v1646_v14 }
 0x422   : > { %v2161_v61 = vpop.eup %2160 }
 0x423   : > { %v1652_v13 = vsel %vm1307_vm3, %v2161_v61, 0.0 }
 0x424   : > { %1653 = vadd.xlane.f32.xlu0 %v1652_v13 }
 0x490   : > { %v1609_v59 = vpop.xlane.xlu1 %1608 }
 0x491   : > { %2162 = vlog2.f32 %v1609_v59 }
 0x494   : > { %v1612_v60 = vpop.xlane.xlu0 %1611 }
 0x495   : > { %v1615_v50 = vpop.xlane.xlu1 %1614  ;;  %2164 = vlog2.f32 %v1612_v60 }
 0x496   : > { %2166 = vlog2.f32 %v1615_v50 }
 0x499   : > { %v1621_v11 = vpop.xlane.xlu1 %1620  ;;  %v1618_v37 = vpop.xlane.xlu0 %1617 }
 0x49a   : > { %2168 = vlog2.f32 %v1621_v11 }
 0x49b   : > { %v2163_v31 = vpop.eup %2162  ;;  %2170 = vlog2.f32 %v1618_v37 }
 0x49c   : > { %v1656_v40 = vmul.f32 0.6931472, %v2163_v31 }
 0x49d   : > { %v1627_v12 = vpop.xlane.xlu1 %1626  ;;  %v1624_v1 = vpop.xlane.xlu0 %1623 }
 0x49e   : > { %v1687_v35 = vsub.f32 %v2919_v23, %v1656_v40  ;;  %2172 = vlog2.f32 %v1627_v12 }
 0x49f   : > { %v2165_v16 = vpop.eup %2164  ;;  %2174 = vlog2.f32 %v1624_v1 }
 0x4a0   : > { %v2167_v26 = vpop.eup %2166  ;;  %1703 = vst.msk [vmem:[%s2383_s13] sm:$0xff] %vm1307_vm3, %v1687_v35  ;;  %v1658_v2 = vmul.f32 0.6931472, %v2165_v16 }
 0x4a1   : > { %v1660_v5 = vmul.f32 0.6931472, %v2167_v26  ;;  %v1633_v38 = vpop.xlane.xlu1 %1632  ;;  %v1630_v18 = vpop.xlane.xlu0 %1629 }
 0x4a2   : > { %v1688_v21 = vsub.f32 %v2923_v45, %v1658_v2  ;;  %2176 = vlog2.f32 %v1633_v38 }
 0x4a3   : > { %v1689_v27 = vsub.f32 %v2926_v7, %v1660_v5  ;;  %2178 = vlog2.f32 %v1630_v18 }
 0x4a4   : > { %v2169_v10 = vpop.eup %2168  ;;  %1704 = vst.msk [vmem:[%s2383_s13 + $0x8] sm:$0xff] %vm1307_vm3, %v1688_v21 }
 0x4a5   : > { %v2171_v23 = vpop.eup %2170  ;;  %1705 = vst.msk [vmem:[%s2383_s13 + $0x10] sm:$0xff] %vm1307_vm3, %v1689_v27  ;;  %v1664_v52 = vmul.f32 0.6931472, %v2169_v10  ;;  %v1639_v33 = vpop.xlane.xlu1 %1638 }
 0x4a6   : > { %v1636_v53 = vpop.xlane.xlu0 %1635  ;;  %v1662_v34 = vmul.f32 0.6931472, %v2171_v23  ;;  %2180 = vlog2.f32 %v1639_v33 }
 0x4a7   : > { %v1691_v36 = vsub.f32 %v2931_v28, %v1664_v52  ;;  %2182 = vlog2.f32 %v1636_v53 }
 0x4a8   : > { %v2173_v45 = vpop.eup %2172  ;;  %v1690_v7 = vsub.f32 %v2934_v54, %v1662_v34 }
 0x4a9   : > { %v2175_v42 = vpop.eup %2174  ;;  %1707 = vst.msk [vmem:[%s2383_s13 + $0x20] sm:$0xff] %vm1307_vm3, %v1691_v36  ;;  %v1668_v15 = vmul.f32 0.6931472, %v2173_v45  ;;  %v1645_v47 = vpop.xlane.xlu1 %1644 }
 0x4aa   : > { %v1642_v22 = vpop.xlane.xlu0 %1641  ;;  %1706 = vst.msk [vmem:[%s2383_s13 + $0x18] sm:$0xff] %vm1307_vm3, %v1690_v7  ;;  %v1666_v56 = vmul.f32 0.6931472, %v2175_v42  ;;  %2184 = vlog2.f32 %v1645_v47 }
 0x4ab   : > { %v1693_v41 = vsub.f32 %v2939_v24, %v1668_v15  ;;  %2186 = vlog2.f32 %v1642_v22 }
 0x4ac   : > { %v2177_v28 = vpop.eup %2176  ;;  %v1692_v3 = vsub.f32 %v2942_v55, %v1666_v56 }
 0x4ad   : > { %v2179_v57 = vpop.eup %2178  ;;  %1709 = vst.msk [vmem:[%s2383_s13 + $0x30] sm:$0xff] %vm1307_vm3, %v1693_v41  ;;  %v1672_v54 = vmul.f32 0.6931472, %v2177_v28  ;;  %v1651_v44 = vpop.xlane.xlu1 %1650 }
 0x4ae   : > { %v1648_v4 = vpop.xlane.xlu0 %1647  ;;  %1708 = vst.msk [vmem:[%s2383_s13 + $0x28] sm:$0xff] %vm1307_vm3, %v1692_v3  ;;  %v1670_v20 = vmul.f32 0.6931472, %v2179_v57  ;;  %2188 = vlog2.f32 %v1651_v44 }
 0x4af   : > { %v1695_v39 = vsub.f32 %v2948_v0, %v1672_v54  ;;  %2190 = vlog2.f32 %v1648_v4 }
 0x4b0   : > { %v2181_v24 = vpop.eup %2180  ;;  %v1694_v51 = vsub.f32 %v2951_v63, %v1670_v20 }
 0x4b1   : > { %v2183_v55 = vpop.eup %2182  ;;  %1711 = vst.msk [vmem:[%s2383_s13 + $0x40] sm:$0xff] %vm1307_vm3, %v1695_v39  ;;  %v1676_v32 = vmul.f32 0.6931472, %v2181_v24 }
 0x4b2   : > { %v1654_v25 = vpop.xlane.xlu0 %1653  ;;  %1710 = vst.msk [vmem:[%s2383_s13 + $0x38] sm:$0xff] %vm1307_vm3, %v1694_v51  ;;  %v1674_v29 = vmul.f32 0.6931472, %v2183_v55 }
 0x4b3   : > { %2192 = vlog2.f32 %v1654_v25  ;;  %v1697_v46 = vsub.f32 %v2957_v43, %v1676_v32 }
 0x4b4   : > { %v2185_v62 = vpop.eup %2184  ;;  %v1696_v0 = vsub.f32 %v2960_v17, %v1674_v29 }
 0x4b5   : > { %v2187_v30 = vpop.eup %2186  ;;  %1713 = vst.msk [vmem:[%s2383_s13 + $0x50] sm:$0xff] %vm1307_vm3, %v1697_v46  ;;  %v1680_v63 = vmul.f32 0.6931472, %v2185_v62 }
 0x4b6   : > { %1712 = vst.msk [vmem:[%s2383_s13 + $0x48] sm:$0xff] %vm1307_vm3, %v1696_v0  ;;  %v1678_v6 = vmul.f32 0.6931472, %v2187_v30 }
 0x4b7   : > { %v1699_v49 = vsub.f32 %v2967_v48, %v1680_v63 }
 0x4b8   : > { %v2189_v14 = vpop.eup %2188  ;;  %v1698_v61 = vsub.f32 %v2970_v58, %v1678_v6 }
 0x4b9   : > { %v2191_v13 = vpop.eup %2190  ;;  %1715 = vst.msk [vmem:[%s2383_s13 + $0x60] sm:$0xff] %vm1307_vm3, %v1699_v49  ;;  %v1684_v43 = vmul.f32 0.6931472, %v2189_v14 }
 0x4ba   : > { %1714 = vst.msk [vmem:[%s2383_s13 + $0x58] sm:$0xff] %vm1307_vm3, %v1698_v61  ;;  %v1682_v17 = vmul.f32 0.6931472, %v2191_v13 }
 0x4bb   : > { %v1701_v59 = vsub.f32 %v2977_v9, %v1684_v43 }
 0x4bc   : > { %v1700_v50 = vsub.f32 %v2980_v8, %v1682_v17 }
 0x4bd   : > { %v2193_v60 = vpop.eup %2192  ;;  %1717 = vst.msk [vmem:[%s2383_s13 + $0x70] sm:$0xff] %vm1307_vm3, %v1701_v59 }
 0x4be   : > { %v1686_v11 = vmul.f32 0.6931472, %v2193_v60  ;;  %1716 = vst.msk [vmem:[%s2383_s13 + $0x68] sm:$0xff] %vm1307_vm3, %v1700_v50 }
 0x4c0   : > { %v1702_v48 = vsub.f32 %v2987_v19, %v1686_v11 }
 0x4c2   : > { %1718 = vst.msk [vmem:[%s2383_s13 + $0x78] sm:$0xff] %vm1307_vm3, %v1702_v48 }
 0x4c3 PF: > { %s15_s24 = sadd.s32 1, %s2248_s24   ;;  %s3073_s18 = smov %s2228_s19 }
 0x4c4   : > { %p12_p1 = scmp.ge.s32.totalorder %s15_s24, 6   ;;  %s3074_s19 = smov %s2335_s6 }
 0x4c5   : > { %s3075_s20 = smov %s2240_s22  ;;  %s3076_s21 = smov %s2244_s23 }
 0x4c6   : > { %s3077_s22 = smov %s3080_s25  ;;  %s3078_s23 = smov %s3084_s26 }
 0x4c7   :  { %14 = sbr.rel (!%p12_p1) target bundleno = 4 (0x4), region = 133 }

// kernel: gat_forward.5
= control target key start
LH: loop header
LB: loop body
LE: loop exit
PB: predicated region body
PF: predicated region fallthrough
CT: control target
= control target key end

     0   :  { %s8261_s0 = inlined_call_operand.vmem [shape: f32[256,4], index: 0, kind: input, shape index: {}]   ;;  %s8262_s1 = inlined_call_operand.vmem [shape: f32[4,256], index: 1, kind: input, shape index: {}]   ;;  %s8263_s2 = inlined_call_operand.vmem [shape: bf16[256,32], index: 2, kind: input, shape index: {}]   ;;  %s8264_s3 = inlined_call_operand.vmem [shape: bf16[256,256], index: 3, kind: input, shape index: {}]   ;;  %s8265_s4 = inlined_call_operand.vmem [shape: f32[1,32], index: 4, kind: input, shape index: {}]   ;;  %s8266_s5 = inlined_call_operand.vmem [shape: bf16[256,32], index: 5, kind: output, shape index: {}]  }
   0x1   :  { %8395 = sst [smem:[#allocation64_spill]] %s8264_s3 }
   0x2   :  { %s5483_s18 = smov 0   ;;  %s5485_s19 = smov 0  }
   0x3   :  { %s5487_s20 = smov 0   ;;  %s5489_s21 = smov 0  }
   0x4   :  { %s5491_s22 = smov 0   ;;  %s5493_s23 = smov 0  }
   0x5   :  { %s5495_s24 = smov 0  }
   0x6 LB: > { %s24_s25 = sadd.s32 1, %s5427_s22  ;;  %s27_s26 = sadd.s32 1, %s5431_s23  ;;  %s5435_s24 = sphi %s5495_s24, %s15_s24   ;;  %s5431_s23 = sphi %s5493_s23, %s8665_s23   ;;  %s5427_s22 = sphi %s5491_s22, %s8664_s22   ;;  %s5423_s21 = sphi %s5489_s21, %s8663_s21   ;;  %s5419_s20 = sphi %s5487_s20, %s8662_s20   ;;  %s5415_s19 = sphi %s5485_s19, %s8661_s19   ;;  %s5411_s18 = sphi %s5483_s18, %s8660_s18  }
   0x7   : > { %p25_p0 = scmp.ge.s32.totalorder %s24_s25, 2  ;;  %p121_p1 = scmp.ne.s32.totalorder %s5415_s19, %s5411_s18 }
   0x8   : > { %p122_p2 = scmp.eq.s32.totalorder %s5435_s24, 0  ;;  %s114_s30 = sadd.s32 1, %s5415_s19 }
   0x9   : > { %s8667_s25 = smov (%p25_p0, %s24_s25), 0  ;;  %s8669_s26 = smov (!%p25_p0, %s27_s26), %s5431_s23 }
   0xa   : > { %p123_p3 = por %p122_p2, %p121_p1  ;;  %p29_p4 = scmp.ge.s32.totalorder %s8669_s26, 2 }
   0xb   : > { %s110_s27 = ssub.s32 %s5427_s22, %s8667_s25  ;;  %p4563_p6 = scmp.ge.s32.totalorder %s5435_s24, 4 }
   0xc   : > { %s8671_s26 = smov (%p29_p4, %s8669_s26), 0 }
   0xd   : > { %8396 = sst [smem:[#allocation6_spill]] %s8671_s26  ;;  %s109_s28 = ssub.s32 %s5431_s23, %s8671_s26 }
   0xe   : > { %s111_s29 = sor.u32 %s110_s27, %s109_s28  ;;  %197 = sbr.rel (%p4563_p6) target bundleno = 41 (0x29), region = 20 }
   0xf   : > { %p112_p5 = scmp.eq.s32.totalorder %s111_s29, 0 }
  0x11   : > { %s5534_s6 = scalar_select %p112_p5, %s5415_s19, %s114_s30  }
  0x15   : > { %225 = sbr.rel (!%p123_p3) target bundleno = 41 (0x29), region = 36  ;;  %s227_s7 = sand.u32 (%p123_p3), 1, %s5415_s19  }
  0x16   : > { %s4606_s8 = sshll.u32 (%p123_p3), %s5431_s23, 5  ;;  %s4564_s9 = sshll.u32 (%p123_p3), %s227_s7, 6 }
  0x17   : > { %s232_s10 = sadd.s32 (%p123_p3), %s5427_s22, %s4606_s8  ;;  %s8397_s3 = sld [smem:[#allocation64_spill]] (%p123_p3) }
  0x18   : > { %s4567_s11 = sshll.u32 (%p123_p3), %s232_s10, 2  ;;  %s229_s15 = scalar_lea.vmem (%p123_p3), [#allocation5], %s4564_s9 }
  0x1d   : > { %s5543_s14 = scalar_lea.vmem %s8397_s3, %s4567_s11 }
  0x1e   : > { %v250_v0 = vld [vmem:[%s5543_s14] sm:$0xf]  ;;  %v252_v1 = vld [vmem:[%s5543_s14 + $0x8] sm:$0xf]  ;;  %v254_v2 = vld [vmem:[%s5543_s14 + $0x10] sm:$0xf] }
  0x1f   : > { %251 = vst [vmem:[%s229_s15] sm:$0xf] %v250_v0  ;;  %253 = vst [vmem:[%s229_s15 + $0x4] sm:$0xf] %v252_v1  ;;  %v256_v3 = vld [vmem:[%s5543_s14 + $0x18] sm:$0xf] }
  0x20   : > { %255 = vst [vmem:[%s229_s15 + $0x8] sm:$0xf] %v254_v2  ;;  %v258_v4 = vld [vmem:[%s5543_s14 + $0x20] sm:$0xf]  ;;  %v260_v5 = vld [vmem:[%s5543_s14 + $0x28] sm:$0xf] }
  0x21   : > { %257 = vst [vmem:[%s229_s15 + $0xc] sm:$0xf] %v256_v3  ;;  %259 = vst [vmem:[%s229_s15 + $0x10] sm:$0xf] %v258_v4  ;;  %v262_v6 = vld [vmem:[%s5543_s14 + $0x30] sm:$0xf] }
  0x22   : > { %261 = vst [vmem:[%s229_s15 + $0x14] sm:$0xf] %v260_v5  ;;  %v264_v7 = vld [vmem:[%s5543_s14 + $0x38] sm:$0xf]  ;;  %v266_v8 = vld [vmem:[%s5543_s14 + $0x40] sm:$0xf] }
  0x23   : > { %263 = vst [vmem:[%s229_s15 + $0x18] sm:$0xf] %v262_v6  ;;  %265 = vst [vmem:[%s229_s15 + $0x1c] sm:$0xf] %v264_v7  ;;  %v268_v9 = vld [vmem:[%s5543_s14 + $0x48] sm:$0xf] }
  0x24   : > { %267 = vst [vmem:[%s229_s15 + $0x20] sm:$0xf] %v266_v8  ;;  %v270_v10 = vld [vmem:[%s5543_s14 + $0x50] sm:$0xf]  ;;  %v272_v11 = vld [vmem:[%s5543_s14 + $0x58] sm:$0xf] }
  0x25   : > { %269 = vst [vmem:[%s229_s15 + $0x24] sm:$0xf] %v268_v9  ;;  %271 = vst [vmem:[%s229_s15 + $0x28] sm:$0xf] %v270_v10  ;;  %v274_v12 = vld [vmem:[%s5543_s14 + $0x60] sm:$0xf] }
  0x26   : > { %273 = vst [vmem:[%s229_s15 + $0x2c] sm:$0xf] %v272_v11  ;;  %v276_v13 = vld [vmem:[%s5543_s14 + $0x68] sm:$0xf]  ;;  %v278_v14 = vld [vmem:[%s5543_s14 + $0x70] sm:$0xf] }
  0x27   : > { %275 = vst [vmem:[%s229_s15 + $0x30] sm:$0xf] %v274_v12  ;;  %277 = vst [vmem:[%s229_s15 + $0x34] sm:$0xf] %v276_v13  ;;  %v280_v15 = vld [vmem:[%s5543_s14 + $0x78] sm:$0xf] }
  0x28   : > { %279 = vst [vmem:[%s229_s15 + $0x38] sm:$0xf] %v278_v14  ;;  %281 = vst [vmem:[%s229_s15 + $0x3c] sm:$0xf] %v280_v15 }
  0x29 PF: > { %p4568_p7 = scmp.ge.s32.totalorder %s5435_s24, 1  ;;  %p335_p8 = scmp.lt.s32.totalorder %s5435_s24, 5 }
  0x2b   : > { %p336_p9 = pnand %p4568_p7, %p335_p8 }
  0x2d   : > { %339 = sbr.rel (%p336_p9) target bundleno = 2473 (0x9a9), region = 77 }
  0x34   : > { %s342_s16 = sand.u32 1, %s5411_s18   ;;  %s4570_s17 = sshll.u32 %s5423_s21, 4 }
  0x35   : > { %s4569_s27 = sshll.u32 %s342_s16, 6  ;;  %p384_p10 = scmp.lt.s32.totalorder %s4570_s17, 31 }
  0x36   : > { %p389_p11 = scmp.lt.s32.totalorder %s5419_s20, 1  ;;  %s4573_s30 = sshll.u32 %s5419_s20, 4 }
  0x37   : > { %s8673_s17 = smov (!%p384_p10, %s4570_s17), 31  ;;  %p394_p12 = scmp.lt.s32.totalorder %s4573_s30, 31 }
  0x38   : > { %s390_s28 = scalar_select %p389_p11, %s5419_s20, 1 }
  0x39   : > { %s4571_s29 = sshll.u32 %s8673_s17, 3  ;;  %s4576_s18 = sshll.u32 %s8673_s17, 2 }
  0x3a   : > { %s5571_s9 = scalar_lea.vmem %s8261_s0, %s4571_s29  ;;  %s4572_s10 = sshll.u32 %s390_s28, 2 }
  0x3b   : > { %s5576_s13 = scalar_lea.vmem %s8262_s1, %s4572_s10  ;;  %s8675_s30 = smov (!%p394_p12, %s4573_s30), 31 }
  0x3c   : > { %s5581_s15 = scalar_lea.vmem %s8266_s5, %s4576_s18  ;;  %s4574_s16 = sshll.u32 %s8675_s30, 2 }
  0x3d   : > { %s5586_s29 = scalar_lea.vmem %s8263_s2, %s4574_s16  ;;  %s5588_s28 = scalar_lea.vmem [#allocation5], %s4569_s27 }
  0x3e   : > { %p4577_p13 = scmp.ne.s32.totalorder %s5419_s20, 0 }
  0x3f   : > { %vm411_vm0 = vcmask (!%p4577_p13), 31744   ;;  %vm444_vm1 = vcmask (!%p4577_p13), 261120   ;;  %v5437_v16 = vmov (!%p4577_p13), -inf   ;;  %v5438_v17 = vmov (!%p4577_p13), 0.0  }
  0x40   : > { %410 = sbr.rel (%p4577_p13) target bundleno = 88 (0x58), region = 85  ;;  %412 = vst.msk [vmem:[#allocation2] sm:$0xff] (!%p4577_p13), %vm411_vm0, %v5437_v16  ;;  %413 = vst.msk [vmem:[#allocation2 + $0x8] sm:$0xff] (!%p4577_p13), %vm411_vm0, %v5437_v16 }
  0x41   : > { %414 = vst.msk [vmem:[#allocation2 + $0x10] sm:$0xff] (!%p4577_p13), %vm411_vm0, %v5437_v16  ;;  %415 = vst.msk [vmem:[#allocation2 + $0x18] sm:$0xff] (!%p4577_p13), %vm411_vm0, %v5437_v16 }
  0x42   : > { %416 = vst.msk [vmem:[#allocation2 + $0x20] sm:$0xff] (!%p4577_p13), %vm411_vm0, %v5437_v16  ;;  %417 = vst.msk [vmem:[#allocation2 + $0x28] sm:$0xff] (!%p4577_p13), %vm411_vm0, %v5437_v16 }
  0x43   : > { %418 = vst.msk [vmem:[#allocation2 + $0x30] sm:$0xff] (!%p4577_p13), %vm411_vm0, %v5437_v16  ;;  %419 = vst.msk [vmem:[#allocation2 + $0x38] sm:$0xff] (!%p4577_p13), %vm411_vm0, %v5437_v16 }
  0x44   : > { %420 = vst.msk [vmem:[#allocation2 + $0x40] sm:$0xff] (!%p4577_p13), %vm411_vm0, %v5437_v16  ;;  %421 = vst.msk [vmem:[#allocation2 + $0x48] sm:$0xff] (!%p4577_p13), %vm411_vm0, %v5437_v16 }
  0x45   : > { %422 = vst.msk [vmem:[#allocation2 + $0x50] sm:$0xff] (!%p4577_p13), %vm411_vm0, %v5437_v16  ;;  %423 = vst.msk [vmem:[#allocation2 + $0x58] sm:$0xff] (!%p4577_p13), %vm411_vm0, %v5437_v16 }
  0x46   : > { %424 = vst.msk [vmem:[#allocation2 + $0x60] sm:$0xff] (!%p4577_p13), %vm411_vm0, %v5437_v16  ;;  %425 = vst.msk [vmem:[#allocation2 + $0x68] sm:$0xff] (!%p4577_p13), %vm411_vm0, %v5437_v16 }
  0x47   : > { %426 = vst.msk [vmem:[#allocation2 + $0x70] sm:$0xff] %vm411_vm0, %v5437_v16  ;;  %427 = vst.msk [vmem:[#allocation2 + $0x78] sm:$0xff] %vm411_vm0, %v5437_v16 }
  0x48   : > { %428 = vst.msk [vmem:[#allocation3] sm:$0xff] %vm411_vm0, %v5438_v17  ;;  %429 = vst.msk [vmem:[#allocation3 + $0x8] sm:$0xff] %vm411_vm0, %v5438_v17 }
  0x49   : > { %430 = vst.msk [vmem:[#allocation3 + $0x10] sm:$0xff] %vm411_vm0, %v5438_v17  ;;  %431 = vst.msk [vmem:[#allocation3 + $0x18] sm:$0xff] %vm411_vm0, %v5438_v17 }
  0x4a   : > { %432 = vst.msk [vmem:[#allocation3 + $0x20] sm:$0xff] %vm411_vm0, %v5438_v17  ;;  %433 = vst.msk [vmem:[#allocation3 + $0x28] sm:$0xff] %vm411_vm0, %v5438_v17 }
  0x4b   : > { %434 = vst.msk [vmem:[#allocation3 + $0x30] sm:$0xff] %vm411_vm0, %v5438_v17  ;;  %435 = vst.msk [vmem:[#allocation3 + $0x38] sm:$0xff] %vm411_vm0, %v5438_v17 }
  0x4c   : > { %436 = vst.msk [vmem:[#allocation3 + $0x40] sm:$0xff] %vm411_vm0, %v5438_v17  ;;  %437 = vst.msk [vmem:[#allocation3 + $0x48] sm:$0xff] %vm411_vm0, %v5438_v17 }
  0x4d   : > { %438 = vst.msk [vmem:[#allocation3 + $0x50] sm:$0xff] %vm411_vm0, %v5438_v17  ;;  %439 = vst.msk [vmem:[#allocation3 + $0x58] sm:$0xff] %vm411_vm0, %v5438_v17 }
  0x4e   : > { %440 = vst.msk [vmem:[#allocation3 + $0x60] sm:$0xff] %vm411_vm0, %v5438_v17  ;;  %441 = vst.msk [vmem:[#allocation3 + $0x68] sm:$0xff] %vm411_vm0, %v5438_v17 }
  0x4f   : > { %442 = vst.msk [vmem:[#allocation3 + $0x70] sm:$0xff] %vm411_vm0, %v5438_v17  ;;  %443 = vst.msk [vmem:[#allocation3 + $0x78] sm:$0xff] %vm411_vm0, %v5438_v17 }
  0x50   : > { %445 = vst.msk [vmem:[#allocation4] sm:$0xff] %vm444_vm1, %v5438_v17  ;;  %446 = vst.msk [vmem:[#allocation4 + $0x8] sm:$0xff] %vm444_vm1, %v5438_v17 }
  0x51   : > { %447 = vst.msk [vmem:[#allocation4 + $0x10] sm:$0xff] %vm444_vm1, %v5438_v17  ;;  %448 = vst.msk [vmem:[#allocation4 + $0x18] sm:$0xff] %vm444_vm1, %v5438_v17 }
  0x52   : > { %449 = vst.msk [vmem:[#allocation4 + $0x20] sm:$0xff] %vm444_vm1, %v5438_v17  ;;  %450 = vst.msk [vmem:[#allocation4 + $0x28] sm:$0xff] %vm444_vm1, %v5438_v17 }
  0x53   : > { %451 = vst.msk [vmem:[#allocation4 + $0x30] sm:$0xff] %vm444_vm1, %v5438_v17  ;;  %452 = vst.msk [vmem:[#allocation4 + $0x38] sm:$0xff] %vm444_vm1, %v5438_v17 }
  0x54   : > { %453 = vst.msk [vmem:[#allocation4 + $0x40] sm:$0xff] %vm444_vm1, %v5438_v17  ;;  %454 = vst.msk [vmem:[#allocation4 + $0x48] sm:$0xff] %vm444_vm1, %v5438_v17 }
  0x55   : > { %455 = vst.msk [vmem:[#allocation4 + $0x50] sm:$0xff] %vm444_vm1, %v5438_v17  ;;  %456 = vst.msk [vmem:[#allocation4 + $0x58] sm:$0xff] %vm444_vm1, %v5438_v17 }
  0x56   : > { %457 = vst.msk [vmem:[#allocation4 + $0x60] sm:$0xff] %vm444_vm1, %v5438_v17  ;;  %458 = vst.msk [vmem:[#allocation4 + $0x68] sm:$0xff] %vm444_vm1, %v5438_v17 }
  0x57   : > { %459 = vst.msk [vmem:[#allocation4 + $0x70] sm:$0xff] %vm444_vm1, %v5438_v17  ;;  %460 = vst.msk [vmem:[#allocation4 + $0x78] sm:$0xff] %vm444_vm1, %v5438_v17 }
  0x58 PF: > { %v461_v18 = vld [vmem:[%s5571_s9] sm:$0xff]  ;;  %v463_v19 = vld [vmem:[%s5571_s9 + $0x10] sm:$0xff]  ;;  %v8268_v20 = vmov 1   ;;  %v5440_v21 = vmov 0   ;;  %v464_v22 = vld [vmem:[%s5571_s9 + $0x18] sm:$0xff]  ;;  %v590_v45 = vlaneseq  ;;  %s5441_s3 = smov 120  }
  0x59   : > { %4927 = vset.pattern.permute.xlu0 %v8268_v20  ;;  %4926 = vset.pattern.permute.xlu1 %v5440_v21  ;;  %v466_v23 = vld [vmem:[%s5571_s9 + $0x28] sm:$0xff]  ;;  %v468_v24 = vld [vmem:[%s5571_s9 + $0x38] sm:$0xff]  ;;  %v465_v30 = vld [vmem:[%s5571_s9 + $0x20] sm:$0xff]  ;;  %s5443_s26 = smov 8   ;;  %s5445_s17 = smov 112  }
  0x5a   : > { %1342 = vperm.xlu0 %4927, %v461_v18   ;;  %522 = vperm.xlu1 %4926, %v463_v19   ;;  %v470_v25 = vld [vmem:[%s5571_s9 + $0x48] sm:$0xff]  ;;  %v472_v26 = vld [vmem:[%s5571_s9 + $0x58] sm:$0xff]  ;;  %v467_v31 = vld [vmem:[%s5571_s9 + $0x30] sm:$0xff]  ;;  %v5669_v47 = vshrl.u32 %v590_v45, 7  ;;  %s5446_s27 = smov 104   ;;  %s5447_s30 = smov 16  }
  0x5b   : > { %v474_v27 = vld [vmem:[%s5571_s9 + $0x68] sm:$0xff]  ;;  %v476_v28 = vld [vmem:[%s5571_s9 + $0x78] sm:$0xff]  ;;  %v469_v32 = vld [vmem:[%s5571_s9 + $0x40] sm:$0xff]  ;;  %s5448_s7 = smov 24   ;;  %p4586_p0 = scmp.ne.s32.totalorder %s5419_s20, 1 }
  0x5c   : > { %v462_v29 = vld [vmem:[%s5571_s9 + $0x8] sm:$0xff]  ;;  %v471_v33 = vld [vmem:[%s5571_s9 + $0x50] sm:$0xff]  ;;  %v473_v34 = vld [vmem:[%s5571_s9 + $0x60] sm:$0xff]  ;;  %8398 = vst [vmem:[#allocation7_spill] sm:$0xff] %v5669_v47  ;;  %v592_v50 = vsub.s32 0, %v5669_v47  ;;  %v1407_v45 = vsub.s32 1, %v5669_v47 }
  0x5d   : > { %v475_v35 = vld [vmem:[%s5571_s9 + $0x70] sm:$0xff]  ;;  %v5675_v51 = vld [vmem:[%s5576_s13] sm:$0xf]  ;;  %v4655_v1 = vld [vmem:[%s5588_s28 + $0x8] sm:$0xff]  }
  0x5e   : > { %1354 = vperm.xlu0 %4927, %v464_v22   ;;  %527 = vperm.xlu1 %4926, %v464_v22   ;;  %v5680_v53 = vrot.slane %v5675_v51, %v592_v50  ;;  %v4624_v58 = vld [vmem:[%s5588_s28] sm:$0xff]   ;;  %v5694_v4 = vunpack.c.l.bf16 %v4655_v1  ;;  %v4656_v15 = vld [vmem:[%s5588_s28 + $0x10] sm:$0xff]  }
  0x5f   : > { %v5690_v0 = vunpack.c.l.bf16 %v4624_v58  ;;  %v5699_v8 = vunpack.c.h.bf16 %v4624_v58 }
  0x60   : > { %8400 = vst [vmem:[#allocation9_spill] sm:$0xff] %v5694_v4 }
  0x61   : > { %8399 = vst [vmem:[#allocation8_spill] sm:$0xff] %v5690_v0  ;;  %8401 = vst [vmem:[#allocation10_spill] sm:$0xff] %v5699_v8 }
  0x62   : > { %1362 = vperm.xlu0 %4927, %v466_v23   ;;  %537 = vperm.xlu1 %4926, %v466_v23  }
  0x66   : > { %1370 = vperm.xlu0 %4927, %v468_v24   ;;  %547 = vperm.xlu1 %4926, %v468_v24  }
  0x6a   : > { %1378 = vperm.xlu0 %4927, %v470_v25   ;;  %557 = vperm.xlu1 %4926, %v470_v25   ;;  %v5718_v25 = vunpack.c.h.bf16 %v4655_v1 }
  0x6c   : > { %8403 = vst [vmem:[#allocation12_spill] sm:$0xff] %v5718_v25 }
  0x6e   : > { %1386 = vperm.xlu0 %4927, %v472_v26   ;;  %567 = vperm.xlu1 %4926, %v472_v26  }
  0x72   : > { %1394 = vperm.xlu0 %4927, %v474_v27   ;;  %577 = vperm.xlu1 %4926, %v474_v27  }
  0x76   : > { %1402 = vperm.xlu0 %4927, %v476_v28   ;;  %587 = vperm.xlu1 %4926, %v476_v28  }
  0x7a   : > { %4929 = vset.pattern.permute.xlu0 %v5440_v21  ;;  %4928 = vset.pattern.permute.xlu1 %v8268_v20  ;;  %v5938_v20 = vld [vmem:[#allocation2 + $0x30] sm:$0xff] }
  0x7b   : > { %512 = vperm.xlu0 %4929, %v461_v18   ;;  %1346 = vperm.xlu1 %4928, %v462_v29  }
  0x7f   : > { %517 = vperm.xlu0 %4929, %v462_v29   ;;  %1350 = vperm.xlu1 %4928, %v463_v19   ;;  %v5713_v19 = vunpack.c.l.bf16 %v4656_v15  ;;  %v4657_v29 = vld [vmem:[%s5588_s28 + $0x18] sm:$0xff]  }
  0x81   : > { %8402 = vst [vmem:[#allocation11_spill] sm:$0xff] %v5713_v19 }
  0x83   : > { %532 = vperm.xlu0 %4929, %v465_v30   ;;  %1358 = vperm.xlu1 %4928, %v465_v30  }
  0x87   : > { %542 = vperm.xlu0 %4929, %v467_v31   ;;  %1366 = vperm.xlu1 %4928, %v467_v31  }
  0x8b   : > { %552 = vperm.xlu0 %4929, %v469_v32   ;;  %1374 = vperm.xlu1 %4928, %v469_v32  }
  0x8f   : > { %562 = vperm.xlu0 %4929, %v471_v33   ;;  %1382 = vperm.xlu1 %4928, %v471_v33   ;;  %v5731_v33 = vunpack.c.l.bf16 %v4657_v29 }
  0x91   : > { %8404 = vst [vmem:[#allocation13_spill] sm:$0xff] %v5731_v33 }
  0x93   : > { %572 = vperm.xlu0 %4929, %v473_v34   ;;  %1390 = vperm.xlu1 %4928, %v473_v34  }
  0x97   : > { %582 = vperm.xlu0 %4929, %v475_v35   ;;  %1398 = vperm.xlu1 %4928, %v475_v35  }
  0x9b   : > { %4930 = vset.pattern.permute.xlu1 %v5440_v21 }
  0xd9   : > { %v5657_v36 = vpop.permute.xlu0 %1342  ;;  %v523_v37 = vpop.permute.xlu1 %522 }
  0xda   : > { %v596_v55 = vadd.f32 %v5680_v53, %v523_v37 }
  0xdc   : > { %v628_v59 = vmul.f32 0.2, %v596_v55  ;;  %vm612_vm3 = vcmp.gt.f32.partialorder %v596_v55, 0.0 }
  0xdd   : > { %v5659_v38 = vpop.permute.xlu0 %1354  ;;  %v528_v39 = vpop.permute.xlu1 %527 }
  0xde   : > { %v597_v60 = vadd.f32 %v5680_v53, %v528_v39  ;;  %v644_v7 = vsel %vm612_vm3, %v596_v55, %v628_v59 }
  0xdf   : > { %v5708_v16 = vadd.f32 %v5694_v4, %v644_v7 }
  0xe0   : > { %v629_v5 = vmul.f32 0.2, %v597_v60  ;;  %vm613_vm5 = vcmp.gt.f32.partialorder %v597_v60, 0.0 }
  0xe1   : > { %v5661_v40 = vpop.permute.xlu0 %1362  ;;  %v538_v41 = vpop.permute.xlu1 %537 }
  0xe2   : > { %v599_v9 = vadd.f32 %v5680_v53, %v538_v41  ;;  %v645_v18 = vsel %vm613_vm5, %v597_v60, %v629_v5  ;;  %v5735_v41 = vunpack.c.h.bf16 %v4656_v15 }
  0xe3   : > { %v5726_v31 = vadd.f32 %v5718_v25, %v645_v18 }
  0xe4   : > { %v631_v21 = vmul.f32 0.2, %v599_v9  ;;  %vm615_vm7 = vcmp.gt.f32.partialorder %v599_v9, 0.0  ;;  %8405 = vst [vmem:[#allocation14_spill] sm:$0xff] %v5735_v41 }
  0xe5   : > { %v5663_v42 = vpop.permute.xlu0 %1370  ;;  %v548_v44 = vpop.permute.xlu1 %547 }
  0xe6   : > { %v601_v22 = vadd.f32 %v5680_v53, %v548_v44  ;;  %v647_v37 = vsel %vm615_vm7, %v599_v9, %v631_v21  ;;  %v4658_v44 = vld [vmem:[%s5588_s28 + $0x20] sm:$0xff]  }
  0xe7   : > { %v5740_v55 = vunpack.c.l.bf16 %v4658_v44  ;;  %v5745_v58 = vadd.f32 %v5735_v41, %v647_v37  ;;  %v5773_v21 = vunpack.c.h.bf16 %v4658_v44 }
  0xe8   : > { %v633_v34 = vmul.f32 0.2, %v601_v22  ;;  %vm617_vm9 = vcmp.gt.f32.partialorder %v601_v22, 0.0 }
  0xe9   : > { %v5665_v43 = vpop.permute.xlu0 %1378  ;;  %v558_v48 = vpop.permute.xlu1 %557  ;;  %8406 = vst [vmem:[#allocation15_spill] sm:$0xff] %v5740_v55  ;;  %8409 = vst [vmem:[#allocation18_spill] sm:$0xff] %v5773_v21 }
  0xea   : > { %v603_v30 = vadd.f32 %v5680_v53, %v558_v48 }
  0xec   : > { %vm619_vm11 = vcmp.gt.f32.partialorder %v603_v30, 0.0 }
  0xed   : > { %v5667_v46 = vpop.permute.xlu0 %1386  ;;  %v5682_v54 = vpop.permute.xlu1 %567 }
  0xf1   : > { %v5671_v49 = vpop.permute.xlu0 %1394  ;;  %v5688_v61 = vpop.permute.xlu1 %577 }
  0xf2   : > { %v607_v15 = vadd.f32 %v5680_v53, %v5688_v61 }
  0xf4   : > { %vm623_vm15 = vcmp.gt.f32.partialorder %v607_v15, 0.0 }
  0xf5   : > { %v5677_v52 = vpop.permute.xlu0 %1402  ;;  %v5702_v11 = vpop.permute.xlu1 %587 }
  0xf6   : > { %v609_v37 = vadd.f32 %v5680_v53, %v5702_v11 }
  0xf8   : > { %vm625_vm1 = vcmp.gt.f32.partialorder %v609_v37, 0.0 }
  0xfa   : > { %v513_v56 = vpop.permute.xlu0 %512  ;;  %v5720_v26 = vpop.permute.xlu1 %1346 }
  0xfb   : > { %v594_v57 = vadd.f32 %v5680_v53, %v513_v56  ;;  %v635_v56 = vmul.f32 0.2, %v603_v30 }
  0xfd   : > { %v626_v62 = vmul.f32 0.2, %v594_v57  ;;  %vm610_vm2 = vcmp.gt.f32.partialorder %v594_v57, 0.0 }
  0xfe   : > { %v518_v63 = vpop.permute.xlu0 %517  ;;  %v5750_v60 = vpop.permute.xlu1 %1350 }
  0xff   : > { %v595_v2 = vadd.f32 %v5680_v53, %v518_v63  ;;  %v642_v3 = vsel %vm610_vm2, %v594_v57, %v626_v62  ;;  %v605_v57 = vadd.f32 %v5680_v53, %v5682_v54  ;;  %v649_v63 = vsel %vm617_vm9, %v601_v22, %v633_v34  ;;  %v4659_v54 = vld [vmem:[%s5588_s28 + $0x28] sm:$0xff]   ;;  %v4660_v22 = vld [vmem:[%s5588_s28 + $0x30] sm:$0xff]  }
 0x100   : > { %v5697_v6 = vadd.f32 %v5690_v0, %v642_v3  ;;  %v5758_v3 = vrot.slane %v5675_v51, %v1407_v45  ;;  %v5761_v9 = vunpack.c.l.bf16 %v4659_v54  ;;  %v5791_v45 = vunpack.c.h.bf16 %v4659_v54 }
 0x101   : > { %v627_v10 = vmul.f32 0.2, %v595_v2  ;;  %vm611_vm4 = vcmp.gt.f32.partialorder %v595_v2, 0.0  ;;  %vm621_vm13 = vcmp.gt.f32.partialorder %v605_v57, 0.0 }
 0x102   : > { %706 = vmax.xlane.f32.xlu0 %v5697_v6  ;;  %v533_v12 = vpop.permute.xlu0 %532  ;;  %8408 = vst [vmem:[#allocation17_spill] sm:$0xff] %v5761_v9  ;;  %v1409_v61 = vadd.f32 %v5758_v3, %v5657_v36  ;;  %8411 = vst [vmem:[#allocation20_spill] sm:$0xff] %v5791_v45  ;;  %v4661_v36 = vld [vmem:[%s5588_s28 + $0x38] sm:$0xff]  }
 0x103   : > { %v598_v13 = vadd.f32 %v5680_v53, %v533_v12  ;;  %v643_v14 = vsel %vm611_vm4, %v595_v2, %v627_v10  ;;  %v5754_v2 = vunpack.c.h.bf16 %v4657_v29  ;;  %v637_v10 = vmul.f32 0.2, %v605_v57 }
 0x104   : > { %v5711_v17 = vadd.f32 %v5699_v8, %v643_v14  ;;  %v651_v14 = vsel %vm619_vm11, %v603_v30, %v635_v56  ;;  %v1410_v56 = vadd.f32 %v5758_v3, %v5720_v26  ;;  %v1441_v11 = vmul.f32 0.2, %v1409_v61 }
 0x105   : > { %v630_v23 = vmul.f32 0.2, %v598_v13  ;;  %vm614_vm6 = vcmp.gt.f32.partialorder %v598_v13, 0.0  ;;  %8407 = vst [vmem:[#allocation16_spill] sm:$0xff] %v5754_v2  ;;  %v5764_v12 = vadd.f32 %v5754_v2, %v649_v63  ;;  %v5782_v29 = vadd.f32 %v5773_v21, %v651_v14 }
 0x106   : > { %710 = vmax.xlane.f32.xlu0 %v5708_v16  ;;  %708 = vmax.xlane.f32.xlu1 %v5711_v17  ;;  %v543_v24 = vpop.permute.xlu0 %542  ;;  %v653_v34 = vsel %vm621_vm13, %v605_v57, %v637_v10  ;;  %v5797_v57 = vunpack.c.l.bf16 %v4661_v36  ;;  %v5809_v26 = vunpack.c.h.bf16 %v4660_v22  ;;  %vm1425_vm2 = vcmp.gt.f32.partialorder %v1409_v61, 0.0 }
 0x107   : > { %v600_v27 = vadd.f32 %v5680_v53, %v543_v24  ;;  %v646_v28 = vsel %vm614_vm6, %v598_v13, %v630_v23  ;;  %v1359_v23 = vpop.permute.xlu1 %1358  ;;  %v5802_v63 = vadd.f32 %v5791_v45, %v653_v34  ;;  %v1411_v14 = vadd.f32 %v5758_v3, %v5750_v60 }
 0x108   : > { %v5729_v32 = vadd.f32 %v5713_v19, %v646_v28  ;;  %v5777_v28 = vunpack.c.l.bf16 %v4660_v22  ;;  %8412 = vst [vmem:[#allocation21_spill] sm:$0xff] %v5797_v57  ;;  %8413 = vst [vmem:[#allocation22_spill] sm:$0xff] %v5809_v26  ;;  %vm1426_vm3 = vcmp.gt.f32.partialorder %v1410_v56, 0.0  ;;  %v5823_v34 = vunpack.c.h.bf16 %v4661_v36 }
 0x109   : > { %v632_v35 = vmul.f32 0.2, %v600_v27  ;;  %vm616_vm8 = vcmp.gt.f32.partialorder %v600_v27, 0.0  ;;  %vm1427_vm5 = vcmp.gt.f32.partialorder %v1411_v14, 0.0 }
 0x10a   : > { %712 = vmax.xlane.f32.xlu0 %v5726_v31  ;;  %714 = vmax.xlane.f32.xlu1 %v5729_v32  ;;  %v553_v39 = vpop.permute.xlu0 %552  ;;  %8410 = vst [vmem:[#allocation19_spill] sm:$0xff] %v5777_v28  ;;  %8414 = vst [vmem:[#allocation23_spill] sm:$0xff] %v5823_v34 }
 0x10b   : > { %v602_v48 = vadd.f32 %v5680_v53, %v553_v39  ;;  %v648_v50 = vsel %vm616_vm8, %v600_v27, %v632_v35  ;;  %v639_v35 = vmul.f32 0.2, %v607_v15  ;;  %v1367_v54 = vpop.permute.xlu1 %1366 }
 0x10c   : > { %v5748_v59 = vadd.f32 %v5731_v33, %v648_v50 }
 0x10d   : > { %v634_v62 = vmul.f32 0.2, %v602_v48  ;;  %vm618_vm10 = vcmp.gt.f32.partialorder %v602_v48, 0.0 }
 0x10e   : > { %716 = vmax.xlane.f32.xlu0 %v5745_v58  ;;  %718 = vmax.xlane.f32.xlu1 %v5748_v59  ;;  %v563_v1 = vpop.permute.xlu0 %562 }
 0x10f   : > { %v604_v5 = vadd.f32 %v5680_v53, %v563_v1  ;;  %v650_v7 = vsel %vm618_vm10, %v602_v48, %v634_v62  ;;  %v1412_v62 = vadd.f32 %v5758_v3, %v5659_v38  ;;  %v1442_v38 = vmul.f32 0.2, %v1410_v56  ;;  %v1375_v60 = vpop.permute.xlu1 %1374 }
 0x110   : > { %v5767_v13 = vadd.f32 %v5740_v55, %v650_v7 }
 0x111   : > { %v636_v18 = vmul.f32 0.2, %v604_v5  ;;  %vm620_vm12 = vcmp.gt.f32.partialorder %v604_v5, 0.0  ;;  %vm1428_vm4 = vcmp.gt.f32.partialorder %v1412_v62, 0.0 }
 0x112   : > { %720 = vmax.xlane.f32.xlu0 %v5764_v12  ;;  %722 = vmax.xlane.f32.xlu1 %v5767_v13  ;;  %v573_v51 = vpop.permute.xlu0 %572 }
 0x113   : > { %v606_v24 = vadd.f32 %v5680_v53, %v573_v51  ;;  %v652_v27 = vsel %vm620_vm12, %v604_v5, %v636_v18  ;;  %v641_v5 = vmul.f32 0.2, %v609_v37 }
 0x114   : > { %v5785_v30 = vadd.f32 %v5761_v9, %v652_v27  ;;  %v1457_v27 = vsel %vm1425_vm2, %v1409_v61, %v1441_v11  ;;  %v1416_v61 = vadd.f32 %v5758_v3, %v5663_v42  ;;  %v1418_v42 = vadd.f32 %v5758_v3, %v5665_v43 }
 0x115   : > { %v638_v39 = vmul.f32 0.2, %v606_v24  ;;  %vm622_vm14 = vcmp.gt.f32.partialorder %v606_v24, 0.0  ;;  %v657_v22 = vsel %vm625_vm1, %v609_v37, %v641_v5  ;;  %v1420_v43 = vadd.f32 %v5758_v3, %v5667_v46 }
 0x116   : > { %724 = vmax.xlane.f32.xlu0 %v5782_v29  ;;  %726 = vmax.xlane.f32.xlu1 %v5785_v30  ;;  %v583_v44 = vpop.permute.xlu0 %582  ;;  %vm1432_vm8 = vcmp.gt.f32.partialorder %v1416_v61, 0.0  ;;  %vm1434_vm10 = vcmp.gt.f32.partialorder %v1418_v42, 0.0  ;;  %v1422_v46 = vadd.f32 %v5758_v3, %v5671_v49  ;;  %v1424_v49 = vadd.f32 %v5758_v3, %v5677_v52 }
 0x117   : > { %v608_v48 = vadd.f32 %v5680_v53, %v583_v44  ;;  %v654_v50 = vsel %vm622_vm14, %v606_v24, %v638_v39  ;;  %v655_v53 = vsel %vm623_vm15, %v607_v15, %v639_v35  ;;  %v1444_v15 = vmul.f32 0.2, %v1412_v62 }
 0x118   : > { %v5805_v1 = vadd.f32 %v5777_v28, %v654_v50  ;;  %v5814_v18 = vadd.f32 %v5809_v26, %v655_v53  ;;  %v1414_v24 = vadd.f32 %v5758_v3, %v5661_v40  ;;  %v1443_v35 = vmul.f32 0.2, %v1411_v14 }
 0x119   : > { %v640_v7 = vmul.f32 0.2, %v608_v48  ;;  %vm624_vm0 = vcmp.gt.f32.partialorder %v608_v48, 0.0  ;;  %v1413_v39 = vadd.f32 %v5758_v3, %v1359_v23  ;;  %v1458_v44 = vsel %vm1426_vm3, %v1410_v56, %v1442_v38 }
 0x11a   : > { %728 = vmax.xlane.f32.xlu0 %v5802_v63  ;;  %730 = vmax.xlane.f32.xlu1 %v5805_v1  ;;  %v5830_v50 = vadd.f32 %v5690_v0, %v1457_v27  ;;  %v1446_v40 = vmul.f32 0.2, %v1414_v24  ;;  %v1460_v37 = vsel %vm1428_vm4, %v1412_v62, %v1444_v15  ;;  %v5837_v36 = vadd.f32 %v5699_v8, %v1458_v44  ;;  %v5968_v0 = vld [vmem:[#allocation2 + $0x48] sm:$0xff] }
 0x11b   : > { %v656_v10 = vsel %vm624_vm0, %v608_v48, %v640_v7  ;;  %v5827_v48 = vadd.f32 %v5823_v34, %v657_v22  ;;  %vm1430_vm6 = vcmp.gt.f32.partialorder %v1414_v24, 0.0  ;;  %v1445_v23 = vmul.f32 0.2, %v1413_v39  ;;  %v1383_v7 = vpop.permute.xlu1 %1382 }
 0x11c   : > { %v5817_v51 = vadd.f32 %v5797_v57, %v656_v10  ;;  %v1415_v56 = vadd.f32 %v5758_v3, %v1367_v54  ;;  %v1459_v11 = vsel %vm1427_vm5, %v1411_v14, %v1443_v35  ;;  %v5841_v5 = vadd.f32 %v5718_v25, %v1460_v37 }
 0x11d   : > { %vm1429_vm7 = vcmp.gt.f32.partialorder %v1413_v39, 0.0  ;;  %v1448_v53 = vmul.f32 0.2, %v1416_v61  ;;  %v1462_v62 = vsel %vm1430_vm6, %v1414_v24, %v1446_v40  ;;  %v5848_v38 = vadd.f32 %v5694_v4, %v1459_v11 }
 0x11e   : > { %732 = vmax.xlane.f32.xlu0 %v5814_v18  ;;  %734 = vmax.xlane.f32.xlu1 %v5817_v51  ;;  %v1447_v54 = vmul.f32 0.2, %v1415_v56  ;;  %v1417_v10 = vadd.f32 %v5758_v3, %v1375_v60  ;;  %v1461_v14 = vsel %vm1429_vm7, %v1413_v39, %v1445_v23  ;;  %v5852_v15 = vadd.f32 %v5735_v41, %v1462_v62 }
 0x11f   : > { %vm1431_vm9 = vcmp.gt.f32.partialorder %v1415_v56, 0.0  ;;  %v1450_v22 = vmul.f32 0.2, %v1418_v42  ;;  %v1464_v24 = vsel %vm1432_vm8, %v1416_v61, %v1448_v53  ;;  %v5859_v27 = vadd.f32 %v5713_v19, %v1461_v14  ;;  %v1391_v35 = vpop.permute.xlu1 %1390 }
 0x120   : > { %v1449_v60 = vmul.f32 0.2, %v1417_v10  ;;  %v1419_v39 = vadd.f32 %v5758_v3, %v1383_v7  ;;  %v1463_v44 = vsel %vm1431_vm9, %v1415_v56, %v1447_v54  ;;  %v5863_v40 = vadd.f32 %v5754_v2, %v1464_v24  ;;  %v4946_v2 = vld [vmem:[%s5586_s29 + $0x28] sm:$0xff]  }
 0x121   : > { %vm1433_vm11 = vcmp.gt.f32.partialorder %v1417_v10, 0.0  ;;  %v1452_v37 = vmul.f32 0.2, %v1420_v43  ;;  %v1466_v61 = vsel %vm1434_vm10, %v1418_v42, %v1450_v22  ;;  %v5870_v23 = vadd.f32 %v5731_v33, %v1463_v44  ;;  %v6008_v33 = vld [vmem:[#allocation2 + $0x68] sm:$0xff] }
 0x122   : > { %736 = vmax.xlane.f32.xlu0 %v5827_v48  ;;  %1505 = vmax.xlane.f32.xlu1 %v5830_v50  ;;  %vm1436_vm12 = vcmp.gt.f32.partialorder %v1420_v43, 0.0  ;;  %v1451_v11 = vmul.f32 0.2, %v1419_v39  ;;  %v1421_v56 = vadd.f32 %v5758_v3, %v1391_v35  ;;  %v1465_v7 = vsel %vm1433_vm11, %v1417_v10, %v1449_v60 }
 0x123   : > { %v5874_v53 = vadd.f32 %v5773_v21, %v1466_v61  ;;  %v1399_v62 = vpop.permute.xlu1 %1398  ;;  %vm1435_vm13 = vcmp.gt.f32.partialorder %v1419_v39, 0.0  ;;  %v1454_v54 = vmul.f32 0.2, %v1422_v46  ;;  %v1468_v42 = vsel %vm1436_vm12, %v1420_v43, %v1452_v37  ;;  %v5951_v21 = vld [vmem:[#allocation2 + $0x40] sm:$0xff] }
 0x124   : > { %v5881_v14 = vadd.f32 %v5740_v55, %v1465_v7  ;;  %vm1438_vm14 = vcmp.gt.f32.partialorder %v1422_v46, 0.0  ;;  %v1453_v22 = vmul.f32 0.2, %v1421_v56  ;;  %v1423_v10 = vadd.f32 %v5758_v3, %v1399_v62  ;;  %v4941_v7 = vld [vmem:[%s5586_s29] sm:$0xff]   ;;  %v4942_v62 = vld [vmem:[%s5586_s29 + $0x8] sm:$0xff]  }
 0x125   : > { %v1467_v24 = vsel %vm1435_vm13, %v1419_v39, %v1451_v11  ;;  %v5885_v35 = vadd.f32 %v5791_v45, %v1468_v42  ;;  %vm1437_vm15 = vcmp.gt.f32.partialorder %v1421_v56, 0.0  ;;  %v1456_v60 = vmul.f32 0.2, %v1424_v49  ;;  %4726 = vmatprep.subr.bf16.mxu0 %v4941_v7 }
 0x126   : > { %1507 = vmax.xlane.f32.xlu0 %v5837_v36  ;;  %1511 = vmax.xlane.f32.xlu1 %v5841_v5  ;;  %v1470_v44 = vsel %vm1438_vm14, %v1422_v46, %v1454_v54  ;;  %v5890_v52 = vadd.f32 %v5761_v9, %v1467_v24  ;;  %vm1440_vm0 = vcmp.gt.f32.partialorder %v1424_v49, 0.0  ;;  %v1455_v43 = vmul.f32 0.2, %v1423_v10  ;;  %v5911_v54 = vld [vmem:[#allocation2] sm:$0xff]  ;;  %v4943_v24 = vld [vmem:[%s5586_s29 + $0x10] sm:$0xff]   ;;  %v5988_v9 = vld [vmem:[#allocation2 + $0x58] sm:$0xff] }
 0x127   : > { %v1469_v37 = vsel %vm1437_vm15, %v1421_v56, %v1453_v22  ;;  %v5893_v3 = vadd.f32 %v5809_v26, %v1470_v44  ;;  %vm1439_vm1 = vcmp.gt.f32.partialorder %v1423_v10, 0.0  ;;  %v1472_v39 = vsel %vm1440_vm0, %v1424_v49, %v1456_v60  ;;  %4727 = vmatpush3.bf16.msra.mxu0 %v4941_v7  ;;  %v691_v22 = vld [vmem:[#allocation2 + $0x8] sm:$0xff]  ;;  %v4944_v7 = vld [vmem:[%s5586_s29 + $0x18] sm:$0xff]  }
 0x128   : > { %v5898_v46 = vadd.f32 %v5777_v28, %v1469_v37  ;;  %v1471_v61 = vsel %vm1439_vm1, %v1423_v10, %v1455_v43  ;;  %v5901_v11 = vadd.f32 %v5823_v34, %v1472_v39  ;;  %4728 = vmatprep.subr.bf16.mxu0 %v4942_v62  ;;  %vm1010_vm2 = vcmask 7168   ;;  %v5916_v10 = vld [vmem:[#allocation2 + $0x10] sm:$0xff]  ;;  %v5925_v39 = vld [vmem:[#allocation2 + $0x20] sm:$0xff] }
 0x129   : > { %v5906_v56 = vadd.f32 %v5797_v57, %v1471_v61  ;;  %v5927_v61 = vld [vmem:[#allocation2 + $0x18] sm:$0xff]  ;;  %v4945_v34 = vld [vmem:[%s5586_s29 + $0x20] sm:$0xff]   ;;  %vm1809_vm3 = vcmask 15368   ;;  %vm1308_vm4 = vcmask 64512  }
 0x12a   : > { %1509 = vmax.xlane.f32.xlu0 %v5848_v38  ;;  %1515 = vmax.xlane.f32.xlu1 %v5852_v15  ;;  %8415 = vst [vmem:[#allocation24_spill] sm:$0xff] %v5901_v11 }
 0x12b   : > { %4729 = vmatpush3.bf16.msra.mxu0 %v4942_v62 }
 0x12c   : > { %4730 = vmatprep.subr.bf16.mxu0 %v4943_v24 }
 0x12e   : > { %1513 = vmax.xlane.f32.xlu0 %v5859_v27  ;;  %1519 = vmax.xlane.f32.xlu1 %v5863_v40 }
 0x12f   : > { %4731 = vmatpush3.bf16.msra.mxu0 %v4943_v24  ;;  %v5940_v24 = vld [vmem:[#allocation2 + $0x28] sm:$0xff] }
 0x130   : > { %4732 = vmatprep.subr.bf16.mxu0 %v4944_v7 }
 0x132   : > { %1517 = vmax.xlane.f32.xlu0 %v5870_v23  ;;  %1523 = vmax.xlane.f32.xlu1 %v5874_v53 }
 0x133   : > { %4733 = vmatpush3.bf16.msra.mxu0 %v4944_v7  ;;  %v5953_v7 = vld [vmem:[#allocation2 + $0x38] sm:$0xff] }
 0x134   : > { %4734 = vmatprep.subr.bf16.mxu0 %v4945_v34 }
 0x136   : > { %1521 = vmax.xlane.f32.xlu0 %v5881_v14  ;;  %1527 = vmax.xlane.f32.xlu1 %v5885_v35 }
 0x137   : > { %4735 = vmatpush3.bf16.msra.mxu0 %v4945_v34  ;;  %v5966_v34 = vld [vmem:[#allocation2 + $0x50] sm:$0xff] }
 0x138   : > { %4736 = vmatprep.subr.bf16.mxu0 %v4946_v2 }
 0x13a   : > { %1525 = vmax.xlane.f32.xlu0 %v5890_v52  ;;  %1531 = vmax.xlane.f32.xlu1 %v5893_v3 }
 0x13b   : > { %4737 = vmatpush3.bf16.msra.mxu0 %v4946_v2 }
 0x13e   : > { %1529 = vmax.xlane.f32.xlu0 %v5898_v46  ;;  %1535 = vmax.xlane.f32.xlu1 %v5901_v11 }
 0x142   : > { %1533 = vmax.xlane.f32.xlu0 %v5906_v56 }
 0x18f   : > { %v707_v49 = vpop.xlane.xlu0 %706 }
 0x190   : > { %v5914_v42 = vmax.f32 %v5911_v54, %v707_v49 }
 0x192   : > { %1325 = vst.msk [vmem:[#allocation2] sm:$0xff] %vm1010_vm2, %v5914_v42  ;;  %804 = vperm.xlu1 %4930, %v5914_v42   ;;  %v754_v57 = vsub.f32 %v5911_v54, %v5914_v42  ;;  %v5986_v42 = vld [vmem:[#allocation2 + $0x60] sm:$0xff] }
 0x193   : > { %v709_v60 = vpop.xlane.xlu1 %708  ;;  %v711_v44 = vpop.xlane.xlu0 %710 }
 0x194   : > { %v739_v43 = vmax.f32 %v691_v22, %v709_v60  ;;  %v5923_v37 = vmax.f32 %v5916_v10, %v711_v44  ;;  %v770_v55 = vmul.f32 1.442695, %v754_v57 }
 0x196   : > { %1326 = vst.msk [vmem:[#allocation2 + $0x8] sm:$0xff] %vm1010_vm2, %v739_v43  ;;  %1327 = vst.msk [vmem:[#allocation2 + $0x10] sm:$0xff] %vm1010_vm2, %v5923_v37  ;;  %809 = vperm.xlu0 %4929, %v739_v43   ;;  %814 = vperm.xlu1 %4930, %v5923_v37  }
 0x197   : > { %v715_v62 = vpop.xlane.xlu1 %714  ;;  %v713_v49 = vpop.xlane.xlu0 %712 }
 0x198   : > { %v742_v60 = vmax.f32 %v5925_v39, %v715_v62  ;;  %v5936_v44 = vmax.f32 %v5927_v61, %v713_v49 }
 0x19a   : > { %1329 = vst.msk [vmem:[#allocation2 + $0x20] sm:$0xff] %vm1010_vm2, %v742_v60  ;;  %1328 = vst.msk [vmem:[#allocation2 + $0x18] sm:$0xff] %vm1010_vm2, %v5936_v44  ;;  %824 = vperm.xlu0 %4929, %v742_v60   ;;  %819 = vperm.xlu1 %4930, %v5936_v44  }
 0x19b   : > { %v719_v62 = vpop.xlane.xlu1 %718  ;;  %v717_v26 = vpop.xlane.xlu0 %716 }
 0x19c   : > { %v744_v49 = vmax.f32 %v5938_v20, %v719_v62  ;;  %v5949_v45 = vmax.f32 %v5940_v24, %v717_v26  ;;  %v755_v62 = vsub.f32 %v691_v22, %v739_v43  ;;  %v758_v43 = vsub.f32 %v5925_v39, %v742_v60  ;;  %v4948_v39 = vld [vmem:[%s5586_s29 + $0x38] sm:$0xff]  }
 0x19e   : > { %1331 = vst.msk [vmem:[#allocation2 + $0x30] sm:$0xff] %vm1010_vm2, %v744_v49  ;;  %1330 = vst.msk [vmem:[#allocation2 + $0x28] sm:$0xff] %vm1010_vm2, %v5949_v45  ;;  %834 = vperm.xlu0 %4929, %v744_v49   ;;  %829 = vperm.xlu1 %4930, %v5949_v45   ;;  %v772_v22 = vmul.f32 1.442695, %v755_v62  ;;  %v756_v62 = vsub.f32 %v5916_v10, %v5923_v37  ;;  %v778_v60 = vmul.f32 1.442695, %v758_v43 }
 0x19f   : > { %v723_v41 = vpop.xlane.xlu1 %722  ;;  %v721_v26 = vpop.xlane.xlu0 %720  ;;  %v6006_v37 = vld [vmem:[#allocation2 + $0x70] sm:$0xff] }
 0x1a0   : > { %v5961_v25 = vmax.f32 %v5951_v21, %v723_v41  ;;  %v5964_v4 = vmax.f32 %v5953_v7, %v721_v26  ;;  %v4947_v41 = vld [vmem:[%s5586_s29 + $0x30] sm:$0xff]   ;;  %4949 = vpow2.f32 %v772_v22  ;;  %v774_v19 = vmul.f32 1.442695, %v756_v62 }
 0x1a1   : > { %4738 = vmatprep.subr.bf16.mxu0 %v4947_v41  ;;  %4951 = vpow2.f32 %v770_v55  ;;  %v757_v22 = vsub.f32 %v5927_v61, %v5936_v44  ;;  %v759_v44 = vsub.f32 %v5940_v24, %v5949_v45  ;;  %v6038_v24 = vld [vmem:[#allocation2] sm:$0xff] }
 0x1a2   : > { %1333 = vst.msk [vmem:[#allocation2 + $0x40] sm:$0xff] %vm1010_vm2, %v5961_v25  ;;  %1332 = vst.msk [vmem:[#allocation2 + $0x38] sm:$0xff] %vm1010_vm2, %v5964_v4  ;;  %844 = vperm.xlu0 %4929, %v5961_v25   ;;  %839 = vperm.xlu1 %4930, %v5964_v4   ;;  %4953 = vpow2.f32 %v778_v60 }
 0x1a3   : > { %v727_v26 = vpop.xlane.xlu1 %726  ;;  %v725_v2 = vpop.xlane.xlu0 %724  ;;  %4739 = vmatpush3.bf16.msra.mxu0 %v4947_v41  ;;  %4955 = vpow2.f32 %v774_v19 }
 0x1a4   : > { %v5981_v28 = vmax.f32 %v5966_v34, %v727_v26  ;;  %v5984_v54 = vmax.f32 %v5968_v0, %v725_v2  ;;  %v760_v26 = vsub.f32 %v5938_v20, %v744_v49  ;;  %4740 = vmatprep.subr.bf16.mxu0 %v4948_v39  ;;  %v762_v49 = vsub.f32 %v5951_v21, %v5961_v25 }
 0x1a6   : > { %1335 = vst.msk [vmem:[#allocation2 + $0x50] sm:$0xff] %vm1010_vm2, %v5981_v28  ;;  %1334 = vst.msk [vmem:[#allocation2 + $0x48] sm:$0xff] %vm1010_vm2, %v5984_v54  ;;  %854 = vperm.xlu0 %4929, %v5981_v28   ;;  %849 = vperm.xlu1 %4930, %v5984_v54   ;;  %v782_v20 = vmul.f32 1.442695, %v760_v26  ;;  %v786_v25 = vmul.f32 1.442695, %v762_v49  ;;  %v764_v21 = vsub.f32 %v5966_v34, %v5981_v28 }
 0x1a7   : > { %v731_v41 = vpop.xlane.xlu1 %730  ;;  %v729_v57 = vpop.xlane.xlu0 %728  ;;  %4741 = vmatpush3.bf16.msra.mxu0 %v4948_v39  ;;  %v6028_v39 = vld [vmem:[#allocation2 + $0x78] sm:$0xff] }
 0x1a8   : > { %v6001_v2 = vmax.f32 %v5986_v42, %v731_v41  ;;  %v6004_v10 = vmax.f32 %v5988_v9, %v729_v57  ;;  %v776_v41 = vmul.f32 1.442695, %v757_v22  ;;  %4957 = vpow2.f32 %v782_v20 }
 0x1a9   : > { %v780_v22 = vmul.f32 1.442695, %v759_v44  ;;  %v761_v20 = vsub.f32 %v5953_v7, %v5964_v4  ;;  %v790_v34 = vmul.f32 1.442695, %v764_v21  ;;  %v6060_v4 = vld [vmem:[#allocation2 + $0x18] sm:$0xff]  ;;  %v6062_v7 = vld [vmem:[#allocation2 + $0x8] sm:$0xff] }
 0x1aa   : > { %1337 = vst.msk [vmem:[#allocation2 + $0x60] sm:$0xff] %vm1010_vm2, %v6001_v2  ;;  %1336 = vst.msk [vmem:[#allocation2 + $0x58] sm:$0xff] %vm1010_vm2, %v6004_v10  ;;  %864 = vperm.xlu0 %4929, %v6001_v2   ;;  %859 = vperm.xlu1 %4930, %v6004_v10   ;;  %v6046_v57 = vpop.eup %4949  ;;  %4959 = vpow2.f32 %v776_v41  ;;  %v766_v49 = vsub.f32 %v5986_v42, %v6001_v2  ;;  %v763_v42 = vsub.f32 %v5968_v0, %v5984_v54 }
 0x1ab   : > { %v735_v55 = vpop.xlane.xlu1 %734  ;;  %v733_v43 = vpop.xlane.xlu0 %732  ;;  %8416 = vst [vmem:[#allocation25_spill] sm:$0xff] %v6046_v57  ;;  %4961 = vpow2.f32 %v786_v25  ;;  %8417 = vst [vmem:[#allocation26_spill] sm:$0xff] %v6062_v7  ;;  %v784_v25 = vmul.f32 1.442695, %v761_v20  ;;  %v6088_v20 = vld [vmem:[#allocation2 + $0x28] sm:$0xff] }
 0x1ac   : > { %v6021_v62 = vmax.f32 %v6006_v37, %v735_v55  ;;  %v6024_v61 = vmax.f32 %v6008_v33, %v733_v43  ;;  %v6064_v44 = vpop.eup %4951  ;;  %4963 = vpow2.f32 %v780_v22  ;;  %v794_v22 = vmul.f32 1.442695, %v766_v49 }
 0x1ad   : > { %4965 = vpow2.f32 %v790_v34  ;;  %v788_v34 = vmul.f32 1.442695, %v763_v42  ;;  %v765_v49 = vsub.f32 %v5988_v9, %v6004_v10  ;;  %v6144_v9 = vld [vmem:[#allocation2 + $0x30] sm:$0xff] }
 0x1ae   : > { %1339 = vst.msk [vmem:[#allocation2 + $0x70] sm:$0xff] %vm1010_vm2, %v6021_v62  ;;  %1338 = vst.msk [vmem:[#allocation2 + $0x68] sm:$0xff] %vm1010_vm2, %v6024_v61  ;;  %874 = vperm.xlu0 %4929, %v6021_v62   ;;  %869 = vperm.xlu1 %4930, %v6024_v61   ;;  %v768_v0 = vsub.f32 %v6006_v37, %v6021_v62  ;;  %4967 = vpow2.f32 %v784_v25 }
 0x1af   : > { %v1506_v45 = vpop.xlane.xlu1 %1505  ;;  %v737_v19 = vpop.xlane.xlu0 %736  ;;  %4969 = vpow2.f32 %v794_v22  ;;  %8428 = vst [vmem:[#allocation37_spill] sm:$0xff] %v6144_v9 }
 0x1b0   : > { %v6041_v60 = vmax.f32 %v6038_v24, %v1506_v45  ;;  %v6044_v26 = vmax.f32 %v6028_v39, %v737_v19  ;;  %v6072_v19 = vpop.eup %4953  ;;  %v798_v25 = vmul.f32 1.442695, %v768_v0  ;;  %4971 = vpow2.f32 %v788_v34 }
 0x1b1   : > { %8419 = vst [vmem:[#allocation28_spill] sm:$0xff] %v6072_v19  ;;  %v6092_v2 = vpop.eup %4955  ;;  %v792_v0 = vmul.f32 1.442695, %v765_v49  ;;  %v767_v34 = vsub.f32 %v6008_v33, %v6024_v61  ;;  %v6168_v49 = vld [vmem:[#allocation2 + $0x40] sm:$0xff] }
 0x1b2   : > { %2164 = vst.msk [vmem:[#allocation2] sm:$0xff] %vm1809_vm3, %v6041_v60  ;;  %1050 = vperm.xlu0 %4929, %v6046_v57   ;;  %879 = vperm.xlu1 %4930, %v6044_v26   ;;  %v6100_v8 = vpop.eup %4957  ;;  %4973 = vpow2.f32 %v798_v25  ;;  %v769_v25 = vsub.f32 %v6028_v39, %v6044_v26  ;;  %8431 = vst [vmem:[#allocation40_spill] sm:$0xff] %v6168_v49 }
 0x1b3   : > { %1340 = vst.msk [vmem:[#allocation2 + $0x78] sm:$0xff] %vm1010_vm2, %v6044_v26  ;;  %v1512_v55 = vpop.xlane.xlu1 %1511  ;;  %v1508_v43 = vpop.xlane.xlu0 %1507  ;;  %8422 = vst [vmem:[#allocation31_spill] sm:$0xff] %v6100_v8  ;;  %4975 = vpow2.f32 %v792_v0  ;;  %v796_v61 = vmul.f32 1.442695, %v767_v34 }
 0x1b4   : > { %v6067_v41 = vmax.f32 %v6060_v4, %v1512_v55  ;;  %v6070_v45 = vmax.f32 %v6062_v7, %v1508_v43  ;;  %v6090_v55 = vld [vmem:[#allocation2 + $0x10] sm:$0xff]  ;;  %v6118_v47 = vpop.eup %4959 }
 0x1b5   : > { %8420 = vst [vmem:[#allocation29_spill] sm:$0xff] %v6090_v55  ;;  %8424 = vst [vmem:[#allocation33_spill] sm:$0xff] %v6118_v47  ;;  %4977 = vpow2.f32 %v796_v61  ;;  %v6190_v34 = vld [vmem:[#allocation2 + $0x68] sm:$0xff] }
 0x1b6   : > { %8418 = vst [vmem:[#allocation27_spill] sm:$0xff] %v6070_v45  ;;  %2167 = vst.msk [vmem:[#allocation2 + $0x18] sm:$0xff] %vm1809_vm3, %v6067_v41  ;;  %1065 = vperm.xlu0 %4929, %v6072_v19   ;;  %1045 = vperm.xlu1 %4930, %v6064_v44  }
 0x1b7   : > { %2165 = vst.msk [vmem:[#allocation2 + $0x8] sm:$0xff] %vm1809_vm3, %v6070_v45  ;;  %v1516_v54 = vpop.xlane.xlu1 %1515  ;;  %v1510_v43 = vpop.xlane.xlu0 %1509 }
 0x1b8   : > { %v6095_v21 = vmax.f32 %v6088_v20, %v1516_v54  ;;  %v6098_v28 = vmax.f32 %v6090_v55, %v1510_v43  ;;  %v6114_v54 = vld [vmem:[#allocation2 + $0x38] sm:$0xff]  ;;  %v6116_v43 = vld [vmem:[#allocation2 + $0x20] sm:$0xff]  ;;  %v6126_v55 = vpop.eup %4961 }
 0x1b9   : > { %8423 = vst [vmem:[#allocation32_spill] sm:$0xff] %v6116_v43  ;;  %8426 = vst [vmem:[#allocation35_spill] sm:$0xff] %v6126_v55  ;;  %v6138_v22 = vpop.eup %4963 }
 0x1ba   : > { %8421 = vst [vmem:[#allocation30_spill] sm:$0xff] %v6098_v28  ;;  %2169 = vst.msk [vmem:[#allocation2 + $0x28] sm:$0xff] %vm1809_vm3, %v6095_v21  ;;  %1075 = vperm.xlu0 %4929, %v6100_v8   ;;  %1055 = vperm.xlu1 %4930, %v6092_v2  }
 0x1bb   : > { %2166 = vst.msk [vmem:[#allocation2 + $0x10] sm:$0xff] %vm1809_vm3, %v6098_v28  ;;  %v1520_v42 = vpop.xlane.xlu1 %1519  ;;  %v1514_v37 = vpop.xlane.xlu0 %1513  ;;  %8427 = vst [vmem:[#allocation36_spill] sm:$0xff] %v6138_v22 }
 0x1bc   : > { %v6121_v62 = vmax.f32 %v6114_v54, %v1520_v42  ;;  %v6124_v11 = vmax.f32 %v6116_v43, %v1514_v37  ;;  %v6142_v42 = vld [vmem:[#allocation2 + $0x48] sm:$0xff] }
 0x1be   : > { %8425 = vst [vmem:[#allocation34_spill] sm:$0xff] %v6124_v11  ;;  %2171 = vst.msk [vmem:[#allocation2 + $0x38] sm:$0xff] %vm1809_vm3, %v6121_v62  ;;  %1085 = vperm.xlu0 %4929, %v6126_v55   ;;  %1060 = vperm.xlu1 %4930, %v6118_v47   ;;  %v6152_v55 = vpop.eup %4965 }
 0x1bf   : > { %2168 = vst.msk [vmem:[#allocation2 + $0x20] sm:$0xff] %vm1809_vm3, %v6124_v11  ;;  %v1524_v37 = vpop.xlane.xlu1 %1523  ;;  %v1518_v10 = vpop.xlane.xlu0 %1517  ;;  %8430 = vst [vmem:[#allocation39_spill] sm:$0xff] %v6152_v55 }
 0x1c0   : > { %v6147_v43 = vmax.f32 %v6142_v42, %v1524_v37  ;;  %v6150_v7 = vmax.f32 %v6144_v9, %v1518_v10  ;;  %v6166_v37 = vld [vmem:[#allocation2 + $0x58] sm:$0xff]  ;;  %v6170_v19 = vpop.eup %4967 }
 0x1c1   : > { %8432 = vst [vmem:[#allocation41_spill] sm:$0xff] %v6170_v19 }
 0x1c2   : > { %8429 = vst [vmem:[#allocation38_spill] sm:$0xff] %v6150_v7  ;;  %2173 = vst.msk [vmem:[#allocation2 + $0x48] sm:$0xff] %vm1809_vm3, %v6147_v43  ;;  %1095 = vperm.xlu0 %4929, %v6152_v55   ;;  %1070 = vperm.xlu1 %4930, %v6138_v22   ;;  %v6178_v55 = vpop.eup %4969 }
 0x1c3   : > { %2170 = vst.msk [vmem:[#allocation2 + $0x30] sm:$0xff] %vm1809_vm3, %v6150_v7  ;;  %v1528_v10 = vpop.xlane.xlu1 %1527  ;;  %v1522_v8 = vpop.xlane.xlu0 %1521  ;;  %8434 = vst [vmem:[#allocation43_spill] sm:$0xff] %v6178_v55 }
 0x1c4   : > { %v6173_v33 = vmax.f32 %v6166_v37, %v1528_v10  ;;  %v6176_v9 = vmax.f32 %v6168_v49, %v1522_v8  ;;  %v800_v8 = vmul.f32 1.442695, %v769_v25  ;;  %v6192_v10 = vld [vmem:[#allocation2 + $0x50] sm:$0xff]  ;;  %v6194_v22 = vpop.eup %4971 }
 0x1c5   : > { %8435 = vst [vmem:[#allocation44_spill] sm:$0xff] %v6192_v10  ;;  %8436 = vst [vmem:[#allocation45_spill] sm:$0xff] %v6194_v22  ;;  %v6202_v49 = vpop.eup %4973 }
 0x1c6   : > { %8433 = vst [vmem:[#allocation42_spill] sm:$0xff] %v6176_v9  ;;  %2175 = vst.msk [vmem:[#allocation2 + $0x58] sm:$0xff] %vm1809_vm3, %v6173_v33  ;;  %1105 = vperm.xlu0 %4929, %v6178_v55   ;;  %1080 = vperm.xlu1 %4930, %v6170_v19   ;;  %4979 = vpow2.f32 %v800_v8  ;;  %v6216_v55 = vld [vmem:[#allocation2 + $0x60] sm:$0xff]  ;;  %v6224_v25 = vpop.eup %4975 }
 0x1c7   : > { %2172 = vst.msk [vmem:[#allocation2 + $0x40] sm:$0xff] %vm1809_vm3, %v6176_v9  ;;  %v1532_v26 = vpop.xlane.xlu1 %1531  ;;  %v1526_v0 = vpop.xlane.xlu0 %1525  ;;  %8438 = vst [vmem:[#allocation47_spill] sm:$0xff] %v6202_v49 }
 0x1c8   : > { %v6197_v47 = vmax.f32 %v6190_v34, %v1532_v26  ;;  %v6200_v39 = vmax.f32 %v6192_v10, %v1526_v0  ;;  %v6214_v26 = vld [vmem:[#allocation2 + $0x78] sm:$0xff]  ;;  %8439 = vst [vmem:[#allocation48_spill] sm:$0xff] %v6216_v55  ;;  %v8441_v10 = vmov 1  }
 0x1ca   : > { %8437 = vst [vmem:[#allocation46_spill] sm:$0xff] %v6200_v39  ;;  %2177 = vst.msk [vmem:[#allocation2 + $0x68] sm:$0xff] %vm1809_vm3, %v6197_v47  ;;  %1115 = vperm.xlu0 %4929, %v6202_v49   ;;  %1090 = vperm.xlu1 %4930, %v6194_v22   ;;  %v6240_v22 = vpop.eup %4977 }
 0x1cb   : > { %2174 = vst.msk [vmem:[#allocation2 + $0x50] sm:$0xff] %vm1809_vm3, %v6200_v39  ;;  %v1536_v0 = vpop.xlane.xlu1 %1535  ;;  %v1530_v61 = vpop.xlane.xlu0 %1529  ;;  %8444 = vst [vmem:[#allocation52_spill] sm:$0xff] %v6240_v22 }
 0x1cc   : > { %v6219_v19 = vmax.f32 %v6214_v26, %v1536_v0  ;;  %v6222_v57 = vmax.f32 %v6216_v55, %v1530_v61  ;;  %v6235_v0 = vld [vmem:[#allocation2 + $0x70] sm:$0xff] }
 0x1cd   : > { %8442 = vst [vmem:[#allocation50_spill] sm:$0xff] %v6235_v0 }
 0x1ce   : > { %8440 = vst [vmem:[#allocation49_spill] sm:$0xff] %v6222_v57  ;;  %2179 = vst.msk [vmem:[#allocation2 + $0x78] sm:$0xff] %vm1809_vm3, %v6219_v19  ;;  %4931 = vset.pattern.permute.xlu0 %v8441_v10  ;;  %1100 = vperm.xlu1 %4930, %v6224_v25  }
 0x1cf   : > { %2176 = vst.msk [vmem:[#allocation2 + $0x60] sm:$0xff] %vm1809_vm3, %v6222_v57  ;;  %1603 = vperm.xlu0 %4931, %v6041_v60   ;;  %v1534_v61 = vpop.xlane.xlu0 %1533 }
 0x1d0   : > { %v6238_v49 = vmax.f32 %v6235_v0, %v1534_v61  ;;  %v6248_v55 = vpop.eup %4979 }
 0x1d1   : > { %8445 = vst [vmem:[#allocation53_spill] sm:$0xff] %v6248_v55 }
 0x1d2   : > { %8443 = vst [vmem:[#allocation51_spill] sm:$0xff] %v6238_v49  ;;  %2178 = vst.msk [vmem:[#allocation2 + $0x70] sm:$0xff] %vm1809_vm3, %v6238_v49  ;;  %1110 = vperm.xlu1 %4930, %v6240_v22  }
 0x1d3   : > { %1618 = vperm.xlu0 %4931, %v6067_v41  }
 0x1d6   : > { %1120 = vperm.xlu1 %4930, %v6248_v55  }
 0x1d7   : > { %1628 = vperm.xlu0 %4931, %v6095_v21  }
 0x1da   : > { %4932 = vset.pattern.permute.xlu1 %v8441_v10 }
 0x1db   : > { %1638 = vperm.xlu0 %4931, %v6121_v62   ;;  %1608 = vperm.xlu1 %4932, %v6070_v45  }
 0x1df   : > { %1648 = vperm.xlu0 %4931, %v6147_v43   ;;  %1613 = vperm.xlu1 %4932, %v6098_v28  }
 0x1e3   : > { %1658 = vperm.xlu0 %4931, %v6173_v33   ;;  %1623 = vperm.xlu1 %4932, %v6124_v11  }
 0x1e7   : > { %1668 = vperm.xlu0 %4931, %v6197_v47   ;;  %1633 = vperm.xlu1 %4932, %v6150_v7  }
 0x1eb   : > { %1643 = vperm.xlu1 %4932, %v6176_v9  }
 0x1ef   : > { %1653 = vperm.xlu1 %4932, %v6200_v39  }
 0x1f3   : > { %1663 = vperm.xlu1 %4932, %v6222_v57  }
 0x1f7   : > { %1673 = vperm.xlu1 %4932, %v6238_v49  }
 0x211   : > { %v805_v10 = vpop.permute.xlu1 %804 }
 0x212   : > { %v882_v61 = vsub.f32 %v5697_v6, %v805_v10 }
 0x214   : > { %v898_v8 = vmul.f32 1.442695, %v882_v61 }
 0x215   : > { %v815_v0 = vpop.permute.xlu1 %814  ;;  %v810_v28 = vpop.permute.xlu0 %809 }
 0x216   : > { %4981 = vpow2.f32 %v898_v8  ;;  %v884_v11 = vsub.f32 %v5708_v16, %v815_v0  ;;  %v883_v45 = vsub.f32 %v5711_v17, %v810_v28 }
 0x218   : > { %v902_v7 = vmul.f32 1.442695, %v884_v11  ;;  %v900_v55 = vmul.f32 1.442695, %v883_v45 }
 0x219   : > { %v820_v9 = vpop.permute.xlu1 %819  ;;  %v825_v22 = vpop.permute.xlu0 %824 }
 0x21a   : > { %4983 = vpow2.f32 %v902_v7  ;;  %v885_v57 = vsub.f32 %v5726_v31, %v820_v9  ;;  %v886_v49 = vsub.f32 %v5729_v32, %v825_v22 }
 0x21b   : > { %4985 = vpow2.f32 %v900_v55 }
 0x21c   : > { %v904_v39 = vmul.f32 1.442695, %v885_v57  ;;  %v906_v6 = vmul.f32 1.442695, %v886_v49 }
 0x21d   : > { %v830_v10 = vpop.permute.xlu1 %829  ;;  %v835_v61 = vpop.permute.xlu0 %834 }
 0x21e   : > { %4987 = vpow2.f32 %v904_v39  ;;  %v887_v8 = vsub.f32 %v5745_v58, %v830_v10  ;;  %v888_v16 = vsub.f32 %v5748_v59, %v835_v61 }
 0x21f   : > { %4989 = vpow2.f32 %v906_v6 }
 0x220   : > { %v4982_v17 = vpop.eup %4981  ;;  %v908_v11 = vmul.f32 1.442695, %v887_v8  ;;  %v910_v28 = vmul.f32 1.442695, %v888_v16 }
 0x221   : > { %v840_v45 = vpop.permute.xlu1 %839  ;;  %962 = vadd.xlane.f32.xlu0 %v4982_v17  ;;  %v845_v7 = vpop.permute.xlu0 %844 }
 0x222   : > { %4991 = vpow2.f32 %v908_v11  ;;  %v889_v31 = vsub.f32 %v5764_v12, %v840_v45  ;;  %v890_v32 = vsub.f32 %v5767_v13, %v845_v7 }
 0x223   : > { %4993 = vpow2.f32 %v910_v28 }
 0x224   : > { %v4984_v57 = vpop.eup %4983  ;;  %v912_v55 = vmul.f32 1.442695, %v889_v31  ;;  %v914_v9 = vmul.f32 1.442695, %v890_v32 }
 0x225   : > { %v4986_v22 = vpop.eup %4985  ;;  %v850_v58 = vpop.permute.xlu1 %849  ;;  %966 = vadd.xlane.f32.xlu0 %v4984_v57 }
 0x226   : > { %v855_v59 = vpop.permute.xlu0 %854  ;;  %4995 = vpow2.f32 %v912_v55  ;;  %v891_v49 = vsub.f32 %v5782_v29, %v850_v58  ;;  %964 = vadd.xlane.f32.xlu1 %v4986_v22  ;;  %v1139_v0 = vpack.c.bf16 %v4986_v22, %v4982_v17 }
 0x227   : > { %v892_v39 = vsub.f32 %v5785_v30, %v855_v59  ;;  %4997 = vpow2.f32 %v914_v9 }
 0x228   : > { %v4988_v6 = vpop.eup %4987  ;;  %v916_v12 = vmul.f32 1.442695, %v891_v49  ;;  %4742 = vmatprep.mubr.bf16.mxu0 %v1139_v0 }
 0x229   : > { %v918_v10 = vmul.f32 1.442695, %v892_v39  ;;  %v4990_v13 = vpop.eup %4989  ;;  %v860_v61 = vpop.permute.xlu1 %859  ;;  %968 = vadd.xlane.f32.xlu0 %v4988_v6  ;;  %v1140_v16 = vpack.c.bf16 %v4988_v6, %v4984_v57 }
 0x22a   : > { %v865_v8 = vpop.permute.xlu0 %864  ;;  %4999 = vpow2.f32 %v916_v12  ;;  %v893_v11 = vsub.f32 %v5802_v63, %v860_v61  ;;  %970 = vadd.xlane.f32.xlu1 %v4990_v13 }
 0x22b   : > { %v894_v29 = vsub.f32 %v5805_v1, %v865_v8  ;;  %5001 = vpow2.f32 %v918_v10  ;;  %4743 = vmatmul.mubr.bf16.vlgmr.msra.gmra.mrb[0].mxu0 %v1140_v16 }
 0x22c   : > { %v4992_v30 = vpop.eup %4991  ;;  %v920_v17 = vmul.f32 1.442695, %v893_v11 }
 0x22d   : > { %v922_v28 = vmul.f32 1.442695, %v894_v29  ;;  %v4994_v45 = vpop.eup %4993  ;;  %v870_v7 = vpop.permute.xlu1 %869  ;;  %972 = vadd.xlane.f32.xlu0 %v4992_v30  ;;  %v1141_v32 = vpack.c.bf16 %v4992_v30, %v4990_v13 }
 0x22e   : > { %v875_v31 = vpop.permute.xlu0 %874  ;;  %5003 = vpow2.f32 %v920_v17  ;;  %v895_v55 = vsub.f32 %v5814_v18, %v870_v7  ;;  %974 = vadd.xlane.f32.xlu1 %v4994_v45 }
 0x22f   : > { %v896_v57 = vsub.f32 %v5817_v51, %v875_v31  ;;  %5005 = vpow2.f32 %v922_v28  ;;  %4746 = vmatprep.mubr.bf16.mxu0 %v1141_v32 }
 0x230   : > { %v4996_v63 = vpop.eup %4995  ;;  %v924_v1 = vmul.f32 1.442695, %v895_v55 }
 0x231   : > { %v926_v9 = vmul.f32 1.442695, %v896_v57  ;;  %v4998_v22 = vpop.eup %4997  ;;  %976 = vadd.xlane.f32.xlu0 %v4996_v63  ;;  %v880_v58 = vpop.permute.xlu1 %879  ;;  %v1142_v49 = vpack.c.bf16 %v4996_v63, %v4994_v45 }
 0x232   : > { %v6280_v59 = vpop.permute.xlu0 %1050  ;;  %5007 = vpow2.f32 %v924_v1  ;;  %v897_v39 = vsub.f32 %v5827_v48, %v880_v58  ;;  %978 = vadd.xlane.f32.xlu1 %v4998_v22 }
 0x233   : > { %5009 = vpow2.f32 %v926_v9  ;;  %4747 = vmatmul.mubr.bf16.gmra.mrb[4].mxu0 %v1142_v49 }
 0x234   : > { %v5000_v18 = vpop.eup %4999  ;;  %v928_v0 = vmul.f32 1.442695, %v897_v39 }
 0x235   : > { %v5002_v51 = vpop.eup %5001  ;;  %980 = vadd.xlane.f32.xlu0 %v5000_v18  ;;  %v6283_v6 = vpop.permute.xlu1 %1045  ;;  %v1143_v10 = vpack.c.bf16 %v5000_v18, %v4998_v22 }
 0x236   : > { %v6285_v12 = vpop.permute.xlu0 %1065  ;;  %5011 = vpow2.f32 %v928_v0  ;;  %982 = vadd.xlane.f32.xlu1 %v5002_v51 }
 0x237   : > { %4750 = vmatprep.mubr.bf16.mxu0 %v1143_v10 }
 0x238   : > { %v5004_v13 = vpop.eup %5003 }
 0x239   : > { %v5006_v61 = vpop.eup %5005  ;;  %984 = vadd.xlane.f32.xlu0 %v5004_v13  ;;  %v6287_v8 = vpop.permute.xlu1 %1055  ;;  %v1144_v16 = vpack.c.bf16 %v5004_v13, %v5002_v51 }
 0x23a   : > { %v6289_v48 = vpop.permute.xlu0 %1075  ;;  %986 = vadd.xlane.f32.xlu1 %v5006_v61 }
 0x23b   : > { %4751 = vmatmul.mubr.bf16.gmra.mrb[8].mxu0 %v1144_v16 }
 0x23c   : > { %v5008_v11 = vpop.eup %5007 }
 0x23d   : > { %v5010_v29 = vpop.eup %5009  ;;  %988 = vadd.xlane.f32.xlu0 %v5008_v11  ;;  %v6291_v30 = vpop.permute.xlu1 %1060  ;;  %v1145_v28 = vpack.c.bf16 %v5008_v11, %v5006_v61 }
 0x23e   : > { %v6293_v17 = vpop.permute.xlu0 %1085  ;;  %990 = vadd.xlane.f32.xlu1 %v5010_v29 }
 0x23f   : > { %4754 = vmatprep.mubr.bf16.mxu0 %v1145_v28 }
 0x240   : > { %v5012_v45 = vpop.eup %5011 }
 0x241   : > { %992 = vadd.xlane.f32.xlu0 %v5012_v45  ;;  %v6295_v7 = vpop.permute.xlu1 %1070  ;;  %v1146_v32 = vpack.c.bf16 %v5012_v45, %v5010_v29 }
 0x242   : > { %v6297_v31 = vpop.permute.xlu0 %1095 }
 0x243   : > { %4755 = vmatmul.mubr.bf16.gmra.mrb[12].mxu0 %v1146_v32 }
 0x245   : > { %v6299_v55 = vpop.permute.xlu1 %1080 }
 0x246   : > { %v6301_v57 = vpop.permute.xlu0 %1105 }
 0x249   : > { %v6303_v63 = vpop.permute.xlu1 %1090 }
 0x24a   : > { %v6305_v1 = vpop.permute.xlu0 %1115 }
 0x24d   : > { %v6307_v9 = vpop.permute.xlu1 %1100 }
 0x24e   : > { %v1604_v22 = vpop.permute.xlu0 %1603 }
 0x24f   : > { %v1681_v58 = vsub.f32 %v5830_v50, %v1604_v22 }
 0x251   : > { %v1697_v49 = vmul.f32 1.442695, %v1681_v58  ;;  %v6310_v39 = vpop.permute.xlu1 %1110 }
 0x252   : > { %v1619_v18 = vpop.permute.xlu0 %1618 }
 0x253   : > { %5013 = vpow2.f32 %v1697_v49  ;;  %v1684_v0 = vsub.f32 %v5841_v5, %v1619_v18 }
 0x255   : > { %v1703_v51 = vmul.f32 1.442695, %v1684_v0  ;;  %v6313_v10 = vpop.permute.xlu1 %1120 }
 0x256   : > { %v1629_v13 = vpop.permute.xlu0 %1628 }
 0x257   : > { %5015 = vpow2.f32 %v1703_v51  ;;  %v1686_v61 = vsub.f32 %v5852_v15, %v1629_v13 }
 0x259   : > { %v1707_v16 = vmul.f32 1.442695, %v1686_v61 }
 0x25a   : > { %v1609_v11 = vpop.permute.xlu1 %1608  ;;  %v1639_v29 = vpop.permute.xlu0 %1638 }
 0x25b   : > { %5017 = vpow2.f32 %v1707_v16  ;;  %v1682_v50 = vsub.f32 %v5837_v36, %v1609_v11  ;;  %v1688_v28 = vsub.f32 %v5863_v40, %v1639_v29 }
 0x25d   : > { %v5014_v45 = vpop.eup %5013  ;;  %v1699_v32 = vmul.f32 1.442695, %v1682_v50  ;;  %v1711_v22 = vmul.f32 1.442695, %v1688_v28 }
 0x25e   : > { %v1614_v58 = vpop.permute.xlu1 %1613  ;;  %1761 = vadd.xlane.f32.xlu1 %v5014_v45  ;;  %v1649_v5 = vpop.permute.xlu0 %1648 }
 0x25f   : > { %5019 = vpow2.f32 %v1699_v32  ;;  %v1683_v49 = vsub.f32 %v5848_v38, %v1614_v58  ;;  %v1690_v18 = vsub.f32 %v5874_v53, %v1649_v5 }
 0x260   : > { %5021 = vpow2.f32 %v1711_v22 }
 0x261   : > { %v6320_v15 = vpop.eup %5015  ;;  %v1701_v0 = vmul.f32 1.442695, %v1683_v49  ;;  %v1715_v51 = vmul.f32 1.442695, %v1690_v18 }
 0x262   : > { %v1624_v13 = vpop.permute.xlu1 %1623  ;;  %1767 = vadd.xlane.f32.xlu1 %v6320_v15  ;;  %v1659_v36 = vpop.permute.xlu0 %1658 }
 0x263   : > { %5023 = vpow2.f32 %v1701_v0  ;;  %v1685_v40 = vsub.f32 %v5859_v27, %v1624_v13  ;;  %v1692_v61 = vsub.f32 %v5885_v35, %v1659_v36 }
 0x264   : > { %5025 = vpow2.f32 %v1715_v51 }
 0x265   : > { %v6325_v16 = vpop.eup %5017  ;;  %v1705_v38 = vmul.f32 1.442695, %v1685_v40  ;;  %v1719_v11 = vmul.f32 1.442695, %v1692_v61 }
 0x266   : > { %v1634_v53 = vpop.permute.xlu1 %1633  ;;  %1771 = vadd.xlane.f32.xlu1 %v6325_v16  ;;  %v1669_v29 = vpop.permute.xlu0 %1668 }
 0x267   : > { %5027 = vpow2.f32 %v1705_v38  ;;  %v1687_v50 = vsub.f32 %v5870_v23, %v1634_v53  ;;  %v1694_v28 = vsub.f32 %v5893_v3, %v1669_v29 }
 0x268   : > { %5029 = vpow2.f32 %v1719_v11 }
 0x269   : > { %v5020_v32 = vpop.eup %5019  ;;  %v1709_v22 = vmul.f32 1.442695, %v1687_v50  ;;  %v1723_v27 = vmul.f32 1.442695, %v1694_v28 }
 0x26a   : > { %v6330_v58 = vpop.eup %5021  ;;  %1763 = vadd.xlane.f32.xlu0 %v5020_v32  ;;  %v1644_v35 = vpop.permute.xlu1 %1643  ;;  %v1938_v5 = vpack.c.bf16 %v5020_v32, %v5014_v45 }
 0x26b   : > { %5031 = vpow2.f32 %v1709_v22  ;;  %v1689_v49 = vsub.f32 %v5881_v14, %v1644_v35  ;;  %1775 = vadd.xlane.f32.xlu1 %v6330_v58 }
 0x26c   : > { %5033 = vpow2.f32 %v1723_v27  ;;  %4774 = vmatprep.mubr.bf16.mxu1 %v1938_v5 }
 0x26d   : > { %v6334_v18 = vpop.eup %5023  ;;  %v1713_v23 = vmul.f32 1.442695, %v1689_v49 }
 0x26e   : > { %v6336_v3 = vpop.eup %5025  ;;  %1765 = vadd.xlane.f32.xlu0 %v6334_v18  ;;  %v1654_v0 = vpop.permute.xlu1 %1653 }
 0x26f   : > { %5035 = vpow2.f32 %v1713_v23  ;;  %v1691_v45 = vsub.f32 %v5890_v52, %v1654_v0  ;;  %1779 = vadd.xlane.f32.xlu1 %v6336_v3  ;;  %v8446_v23 = vsub.f32 %v6038_v24, %v6041_v60  ;;  %v8450_v24 = vsub.f32 %v6142_v42, %v6147_v43  ;;  %v930_v42 = vld [vmem:[#allocation3] sm:$0xff] }
 0x270   : > { %v1568_v43 = vsub.f32 %v6214_v26, %v6219_v19 }
 0x271   : > { %v6343_v14 = vpop.eup %5027  ;;  %v1717_v13 = vmul.f32 1.442695, %v1691_v45  ;;  %v1569_v0 = vmul.f32 1.442695, %v8446_v23  ;;  %v8447_v45 = vsub.f32 %v6060_v4, %v6067_v41  ;;  %v1587_v60 = vmul.f32 1.442695, %v8450_v24 }
 0x272   : > { %v6345_v36 = vpop.eup %5029  ;;  %1769 = vadd.xlane.f32.xlu0 %v6343_v14  ;;  %v1664_v40 = vpop.permute.xlu1 %1663  ;;  %v8451_v41 = vsub.f32 %v6166_v37, %v6173_v33  ;;  %v1599_v33 = vmul.f32 1.442695, %v1568_v43  ;;  %v946_v37 = vmul.f32 %v6064_v44, %v930_v42  ;;  %v934_v24 = vld [vmem:[#allocation3 + $0x20] sm:$0xff]  ;;  %v935_v43 = vld [vmem:[#allocation3 + $0x28] sm:$0xff] }
 0x273   : > { %5037 = vpow2.f32 %v1717_v13  ;;  %v1693_v38 = vsub.f32 %v5898_v46, %v1664_v40  ;;  %1783 = vadd.xlane.f32.xlu1 %v6345_v36  ;;  %v1575_v13 = vmul.f32 1.442695, %v8447_v45  ;;  %v8448_v40 = vsub.f32 %v6088_v20, %v6095_v21 }
 0x274   : > { %v1591_v21 = vmul.f32 1.442695, %v8451_v41  ;;  %v8454_v41 = vld [vmem:[#allocation33_spill] sm:$0xff] }
 0x275   : > { %v6352_v11 = vpop.eup %5031  ;;  %v1721_v52 = vmul.f32 1.442695, %v1693_v38  ;;  %v1579_v38 = vmul.f32 1.442695, %v8448_v40  ;;  %v931_v40 = vld [vmem:[#allocation3 + $0x8] sm:$0xff] }
 0x276   : > { %v6354_v53 = vpop.eup %5033  ;;  %1773 = vadd.xlane.f32.xlu0 %v6352_v11  ;;  %v1674_v29 = vpop.permute.xlu1 %1673 }
 0x277   : > { %5039 = vpow2.f32 %v1721_v52  ;;  %v1695_v28 = vsub.f32 %v5906_v56, %v1674_v29  ;;  %1787 = vadd.xlane.f32.xlu1 %v6354_v53  ;;  %v8449_v52 = vsub.f32 %v6114_v54, %v6121_v62  ;;  %v8452_v62 = vsub.f32 %v6190_v34, %v6197_v47 }
 0x279   : > { %v6361_v32 = vpop.eup %5035  ;;  %v1725_v46 = vmul.f32 1.442695, %v1695_v28  ;;  %v1583_v29 = vmul.f32 1.442695, %v8449_v52  ;;  %v1595_v54 = vmul.f32 1.442695, %v8452_v62 }
 0x27a   : > { %1777 = vadd.xlane.f32.xlu0 %v6361_v32  ;;  %v8455_v62 = vld [vmem:[#allocation28_spill] sm:$0xff] }
 0x27b   : > { %5041 = vpow2.f32 %v1725_v46 }
 0x27c   : > { %5043 = vpow2.f32 %v1569_v0  ;;  %v932_v0 = vld [vmem:[#allocation3 + $0x10] sm:$0xff] }
 0x27d   : > { %v6366_v27 = vpop.eup %5037  ;;  %5045 = vpow2.f32 %v1575_v13  ;;  %v948_v47 = vmul.f32 %v6092_v2, %v932_v0  ;;  %v950_v2 = vmul.f32 %v8455_v62, %v934_v24  ;;  %v938_v24 = vld [vmem:[#allocation3 + $0x40] sm:$0xff] }
 0x27e   : > { %1781 = vadd.xlane.f32.xlu0 %v6366_v27  ;;  %5047 = vpow2.f32 %v1579_v38  ;;  %v933_v38 = vld [vmem:[#allocation3 + $0x18] sm:$0xff]  ;;  %v8459_v62 = vld [vmem:[#allocation35_spill] sm:$0xff] }
 0x27f   : > { %5049 = vpow2.f32 %v1583_v29 }
 0x280   : > { %5051 = vpow2.f32 %v1587_v60 }
 0x281   : > { %v6371_v5 = vpop.eup %5039  ;;  %5053 = vpow2.f32 %v1591_v21  ;;  %v949_v21 = vmul.f32 %v8454_v41, %v933_v38  ;;  %v8458_v41 = vld [vmem:[#allocation41_spill] sm:$0xff] }
 0x282   : > { %1785 = vadd.xlane.f32.xlu0 %v6371_v5  ;;  %5055 = vpow2.f32 %v1595_v54 }
 0x283   : > { %5057 = vpow2.f32 %v1599_v33 }
 0x285   : > { %v6376_v49 = vpop.eup %5041 }
 0x286   : > { %1789 = vadd.xlane.f32.xlu0 %v6376_v49  ;;  %v6392_v28 = vpop.eup %5043 }
 0x287   : > { %v6398_v4 = vpop.eup %5045 }
 0x288   : > { %v6404_v20 = vpop.eup %5047 }
 0x289   : > { %v6412_v46 = vpop.eup %5049 }
 0x28a   : > { %v6416_v45 = vpop.eup %5051 }
 0x28b   : > { %v6422_v52 = vpop.eup %5053 }
 0x28c   : > { %v6429_v42 = vpop.eup %5055 }
 0x28d   : > { %v6436_v38 = vpop.eup %5057 }
 0x29c   : > { %1678 = vperm.xlu0 %4931, %v6219_v19   ;;  %v8453_v19 = vld [vmem:[#allocation25_spill] sm:$0xff] }
 0x29d   : > { %v947_v34 = vmul.f32 %v8453_v19, %v931_v40 }
 0x2a0   : > { %1844 = vperm.xlu0 %4931, %v6392_v28  }
 0x2a4   : > { %1859 = vperm.xlu0 %4931, %v6398_v4  }
 0x2a8   : > { %1869 = vperm.xlu0 %4931, %v6404_v20  }
 0x2ac   : > { %1879 = vperm.xlu0 %4931, %v6412_v46  }
 0x2ae   : > { %v963_v23 = vpop.xlane.xlu0 %962 }
 0x2af   : > { %v994_v13 = vadd.f32 %v963_v23, %v946_v37  ;;  %v936_v23 = vld [vmem:[#allocation3 + $0x30] sm:$0xff] }
 0x2b0   : > { %1889 = vperm.xlu0 %4931, %v6416_v45  }
 0x2b1   : > { %1011 = vst.msk [vmem:[#allocation3] sm:$0xff] %vm1010_vm2, %v994_v13  ;;  %v8456_v13 = vld [vmem:[#allocation36_spill] sm:$0xff] }
 0x2b2   : > { %v967_v26 = vpop.xlane.xlu0 %966  ;;  %v951_v40 = vmul.f32 %v8456_v13, %v935_v43  ;;  %v939_v43 = vld [vmem:[#allocation3 + $0x48] sm:$0xff] }
 0x2b3   : > { %v965_v44 = vpop.xlane.xlu1 %964  ;;  %v996_v29 = vadd.f32 %v967_v26, %v948_v47  ;;  %v8457_v47 = vld [vmem:[#allocation31_spill] sm:$0xff]  ;;  %v937_v26 = vld [vmem:[#allocation3 + $0x38] sm:$0xff]  ;;  %v5205_v13 = vld [vmem:[%s5586_s29 + $0x8] sm:$0xff]  }
 0x2b4   : > { %v995_v60 = vadd.f32 %v965_v44, %v947_v34  ;;  %1899 = vperm.xlu0 %4931, %v6422_v52   ;;  %v952_v19 = vmul.f32 %v8457_v47, %v936_v23  ;;  %v940_v23 = vld [vmem:[#allocation3 + $0x50] sm:$0xff] }
 0x2b5   : > { %1013 = vst.msk [vmem:[#allocation3 + $0x10] sm:$0xff] %vm1010_vm2, %v996_v29 }
 0x2b6   : > { %1012 = vst.msk [vmem:[#allocation3 + $0x8] sm:$0xff] %vm1010_vm2, %v995_v60  ;;  %v969_v54 = vpop.xlane.xlu0 %968 }
 0x2b7   : > { %v971_v33 = vpop.xlane.xlu1 %970  ;;  %v997_v37 = vadd.f32 %v969_v54, %v949_v21  ;;  %v953_v21 = vmul.f32 %v8458_v41, %v937_v26  ;;  %v942_v41 = vld [vmem:[#allocation3 + $0x60] sm:$0xff] }
 0x2b8   : > { %v998_v0 = vadd.f32 %v971_v33, %v950_v2  ;;  %1909 = vperm.xlu0 %4931, %v6429_v42   ;;  %v954_v2 = vmul.f32 %v8459_v62, %v938_v24  ;;  %v5206_v62 = vld [vmem:[%s5586_s29 + $0x18] sm:$0xff]  }
 0x2b9   : > { %1014 = vst.msk [vmem:[#allocation3 + $0x18] sm:$0xff] %vm1010_vm2, %v997_v37 }
 0x2ba   : > { %1015 = vst.msk [vmem:[#allocation3 + $0x20] sm:$0xff] %vm1010_vm2, %v998_v0  ;;  %v973_v34 = vpop.xlane.xlu0 %972 }
 0x2bb   : > { %v975_v44 = vpop.xlane.xlu1 %974  ;;  %v999_v29 = vadd.f32 %v973_v34, %v951_v40  ;;  %v8460_v40 = vld [vmem:[#allocation45_spill] sm:$0xff]  ;;  %v8461_v34 = vld [vmem:[#allocation39_spill] sm:$0xff] }
 0x2bc   : > { %v1000_v60 = vadd.f32 %v975_v44, %v952_v19  ;;  %1919 = vperm.xlu0 %4931, %v6436_v38   ;;  %v955_v47 = vmul.f32 %v8460_v40, %v939_v43  ;;  %v8334_v19 = vmov 2   ;;  %v956_v26 = vmul.f32 %v8461_v34, %v940_v23  ;;  %v8463_v34 = vld [vmem:[#allocation52_spill] sm:$0xff] }
 0x2bd   : > { %1016 = vst.msk [vmem:[#allocation3 + $0x28] sm:$0xff] %vm1010_vm2, %v999_v29  ;;  %v941_v29 = vld [vmem:[#allocation3 + $0x58] sm:$0xff] }
 0x2be   : > { %1017 = vst.msk [vmem:[#allocation3 + $0x30] sm:$0xff] %vm1010_vm2, %v1000_v60  ;;  %v977_v54 = vpop.xlane.xlu0 %976 }
 0x2bf   : > { %v979_v33 = vpop.xlane.xlu1 %978  ;;  %v1001_v37 = vadd.f32 %v977_v54, %v953_v21  ;;  %v8462_v54 = vld [vmem:[#allocation43_spill] sm:$0xff] }
 0x2c0   : > { %v1002_v0 = vadd.f32 %v979_v33, %v954_v2  ;;  %1948 = vrot.lane.b32.xlu0 %v5205_v13, %s5441_s3  ;;  %v957_v2 = vmul.f32 %v6224_v25, %v941_v29  ;;  %v958_v43 = vmul.f32 %v8462_v54, %v942_v41  ;;  %v944_v13 = vld [vmem:[#allocation3 + $0x70] sm:$0xff]  ;;  %v8464_v25 = vld [vmem:[#allocation47_spill] sm:$0xff] }
 0x2c1   : > { %1018 = vst.msk [vmem:[#allocation3 + $0x38] sm:$0xff] %vm1010_vm2, %v1001_v37  ;;  %4934 = vset.pattern.permute.xlu0 %v8334_v19  ;;  %v943_v37 = vld [vmem:[#allocation3 + $0x68] sm:$0xff] }
 0x2c2   : > { %1019 = vst.msk [vmem:[#allocation3 + $0x40] sm:$0xff] %vm1010_vm2, %v1002_v0  ;;  %v981_v44 = vpop.xlane.xlu0 %980 }
 0x2c3   : > { %v983_v24 = vpop.xlane.xlu1 %982  ;;  %v1003_v60 = vadd.f32 %v981_v44, %v955_v47  ;;  %v5207_v47 = vld [vmem:[%s5586_s29 + $0x28] sm:$0xff]   ;;  %v960_v44 = vmul.f32 %v8464_v25, %v944_v13  ;;  %v5212_v13 = vld [vmem:[%s5571_s9 + $0x40] sm:$0xff] }
 0x2c4   : > { %v1004_v21 = vadd.f32 %v983_v24, %v956_v26  ;;  %1952 = vrot.lane.b32.xlu0 %v5206_v62, %s5441_s3  ;;  %v959_v26 = vmul.f32 %v8463_v34, %v943_v37  ;;  %v945_v24 = vld [vmem:[#allocation3 + $0x78] sm:$0xff]  ;;  %v5209_v37 = vld [vmem:[%s5571_s9 + $0x8] sm:$0xff] }
 0x2c5   : > { %1020 = vst.msk [vmem:[#allocation3 + $0x48] sm:$0xff] %vm1010_vm2, %v1003_v60  ;;  %v5208_v62 = vld [vmem:[%s5586_s29 + $0x38] sm:$0xff]  }
 0x2c6   : > { %1021 = vst.msk [vmem:[#allocation3 + $0x50] sm:$0xff] %vm1010_vm2, %v1004_v21  ;;  %v985_v33 = vpop.xlane.xlu0 %984  ;;  %v8466_v34 = vld [vmem:[#allocation26_spill] sm:$0xff] }
 0x2c7   : > { %v987_v23 = vpop.xlane.xlu1 %986  ;;  %v1005_v0 = vadd.f32 %v985_v33, %v957_v2  ;;  %v8465_v2 = vld [vmem:[#allocation53_spill] sm:$0xff] }
 0x2c8   : > { %v1006_v40 = vadd.f32 %v987_v23, %v958_v43  ;;  %1956 = vrot.lane.b32.xlu0 %v5207_v47, %s5441_s3  ;;  %v961_v54 = vmul.f32 %v8465_v2, %v945_v24  ;;  %v5210_v23 = vld [vmem:[%s5571_s9 + $0x20] sm:$0xff]  ;;  %v5215_v24 = vld [vmem:[%s5571_s9 + $0x70] sm:$0xff] }
 0x2c9   : > { %1022 = vst.msk [vmem:[#allocation3 + $0x58] sm:$0xff] %vm1010_vm2, %v1005_v0  ;;  %v5211_v0 = vld [vmem:[%s5571_s9 + $0x30] sm:$0xff]  ;;  %v5214_v47 = vld [vmem:[%s5571_s9 + $0x60] sm:$0xff] }
 0x2ca   : > { %1023 = vst.msk [vmem:[#allocation3 + $0x60] sm:$0xff] %vm1010_vm2, %v1006_v40  ;;  %v989_v29 = vpop.xlane.xlu0 %988  ;;  %v5213_v40 = vld [vmem:[%s5571_s9 + $0x50] sm:$0xff] }
 0x2cb   : > { %v991_v60 = vpop.xlane.xlu1 %990  ;;  %v1007_v41 = vadd.f32 %v989_v29, %v959_v26  ;;  %v8467_v26 = vld [vmem:[#allocation27_spill] sm:$0xff] }
 0x2cc   : > { %v1008_v21 = vadd.f32 %v991_v60, %v960_v44  ;;  %1960 = vrot.lane.b32.xlu0 %v5208_v62, %s5441_s3  ;;  %v8468_v25 = vsub.f32 %v8466_v34, %v8467_v26  ;;  %v1729_v29 = vld [vmem:[#allocation3] sm:$0xff]  ;;  %v1734_v34 = vld [vmem:[#allocation3 + $0x28] sm:$0xff] }
 0x2cd   : > { %1024 = vst.msk [vmem:[#allocation3 + $0x68] sm:$0xff] %vm1010_vm2, %v1007_v41  ;;  %v1745_v60 = vmul.f32 %v6392_v28, %v1729_v29  ;;  %v8469_v41 = vld [vmem:[#allocation29_spill] sm:$0xff]  ;;  %v1750_v26 = vmul.f32 %v6404_v20, %v1734_v34 }
 0x2ce   : > { %1025 = vst.msk [vmem:[#allocation3 + $0x70] sm:$0xff] %vm1010_vm2, %v1008_v21  ;;  %v993_v43 = vpop.xlane.xlu0 %992  ;;  %v1571_v44 = vmul.f32 1.442695, %v8468_v25  ;;  %v8470_v21 = vld [vmem:[#allocation30_spill] sm:$0xff]  ;;  %v8475_v25 = vld [vmem:[#allocation37_spill] sm:$0xff] }
 0x2cf   : > { %v1009_v33 = vadd.f32 %v993_v43, %v961_v54  ;;  %v8471_v62 = vsub.f32 %v8469_v41, %v8470_v21  ;;  %v1732_v43 = vld [vmem:[#allocation3 + $0x18] sm:$0xff]  ;;  %v1730_v41 = vld [vmem:[#allocation3 + $0x8] sm:$0xff] }
 0x2d0   : > { %2185 = vperm.xlu0 %4934, %v5209_v37   ;;  %5059 = vpow2.f32 %v1571_v44  ;;  %v1748_v37 = vmul.f32 %v6398_v4, %v1732_v43  ;;  %v8476_v44 = vld [vmem:[#allocation38_spill] sm:$0xff] }
 0x2d1   : > { %1026 = vst.msk [vmem:[#allocation3 + $0x78] sm:$0xff] %vm1010_vm2, %v1009_v33  ;;  %v1573_v2 = vmul.f32 1.442695, %v8471_v62  ;;  %v8477_v29 = vsub.f32 %v8475_v25, %v8476_v44  ;;  %v1736_v21 = vld [vmem:[#allocation3 + $0x38] sm:$0xff] }
 0x2d2   : > { %v8479_v43 = vld [vmem:[#allocation42_spill] sm:$0xff] }
 0x2d3   : > { %5061 = vpow2.f32 %v1573_v2  ;;  %v8482_v25 = vld [vmem:[#allocation46_spill] sm:$0xff] }
 0x2d4   : > { %2197 = vperm.xlu0 %4934, %v5210_v23   ;;  %v8472_v23 = vld [vmem:[#allocation32_spill] sm:$0xff] }
 0x2d8   : > { %2205 = vperm.xlu0 %4934, %v5211_v0   ;;  %v8473_v0 = vld [vmem:[#allocation34_spill] sm:$0xff] }
 0x2da   : > { %v6492_v62 = vpop.eup %5059 }
 0x2db   : > { %v1746_v2 = vmul.f32 %v6492_v62, %v1730_v41  ;;  %v1027_v41 = vld [vmem:[#allocation4] sm:$0xff] }
 0x2dc   : > { %2213 = vperm.xlu0 %4934, %v5212_v13   ;;  %v8474_v13 = vsub.f32 %v8472_v23, %v8473_v0  ;;  %v1731_v0 = vld [vmem:[#allocation3 + $0x10] sm:$0xff] }
 0x2dd   : > { %v6500_v34 = vpop.eup %5061 }
 0x2e0   : > { %2221 = vperm.xlu0 %4934, %v5213_v40   ;;  %v1577_v40 = vmul.f32 1.442695, %v8474_v13 }
 0x2e2   : > { %5063 = vpow2.f32 %v1577_v40 }
 0x2e4   : > { %2229 = vperm.xlu0 %4934, %v5214_v47  }
 0x2e8   : > { %2237 = vperm.xlu0 %4934, %v5215_v24   ;;  %v1581_v24 = vmul.f32 1.442695, %v8477_v29 }
 0x2ea   : > { %5065 = vpow2.f32 %v1581_v24  ;;  %v1747_v24 = vmul.f32 %v6500_v34, %v1731_v0 }
 0x2eb   : > { %v1762_v54 = vpop.xlane.xlu1 %1761 }
 0x2ec   : > { %v1793_v33 = vadd.f32 %v1762_v54, %v1745_v60  ;;  %v8478_v54 = vld [vmem:[#allocation40_spill] sm:$0xff] }
 0x2ee   : > { %1810 = vst.msk [vmem:[#allocation3] sm:$0xff] %vm1809_vm3, %v1793_v33  ;;  %v8480_v33 = vsub.f32 %v8478_v54, %v8479_v43 }
 0x2ef   : > { %v1768_v47 = vpop.xlane.xlu1 %1767 }
 0x2f0   : > { %v1796_v28 = vadd.f32 %v1768_v47, %v1748_v37  ;;  %v1585_v20 = vmul.f32 1.442695, %v8480_v33  ;;  %v1752_v37 = vmul.f32 %v6412_v46, %v1736_v21  ;;  %v1738_v47 = vld [vmem:[#allocation3 + $0x48] sm:$0xff]  ;;  %v1733_v21 = vld [vmem:[#allocation3 + $0x20] sm:$0xff]  ;;  %v1740_v33 = vld [vmem:[#allocation3 + $0x58] sm:$0xff] }
 0x2f1   : > { %v1754_v46 = vmul.f32 %v6416_v45, %v1738_v47  ;;  %v8484_v47 = vld [vmem:[#allocation48_spill] sm:$0xff] }
 0x2f2   : > { %1813 = vst.msk [vmem:[#allocation3 + $0x18] sm:$0xff] %vm1809_vm3, %v1796_v28  ;;  %5067 = vpow2.f32 %v1585_v20  ;;  %v1123_v20 = vmul.f32 %v6283_v6, %v1027_v41  ;;  %v1735_v6 = vld [vmem:[#allocation3 + $0x30] sm:$0xff] }
 0x2f3   : > { %v1772_v60 = vpop.xlane.xlu1 %1771 }
 0x2f4   : > { %v1798_v4 = vadd.f32 %v1772_v60, %v1750_v26  ;;  %v8481_v26 = vld [vmem:[#allocation44_spill] sm:$0xff]  ;;  %v1029_v60 = vld [vmem:[#allocation4 + $0x10] sm:$0xff] }
 0x2f5   : > { %v8483_v44 = vsub.f32 %v8481_v26, %v8482_v25 }
 0x2f6   : > { %1815 = vst.msk [vmem:[#allocation3 + $0x28] sm:$0xff] %vm1809_vm3, %v1798_v4 }
 0x2f7   : > { %v1764_v23 = vpop.xlane.xlu0 %1763  ;;  %v1589_v29 = vmul.f32 1.442695, %v8483_v44 }
 0x2f8   : > { %v1776_v13 = vpop.xlane.xlu1 %1775  ;;  %v1794_v40 = vadd.f32 %v1764_v23, %v1746_v2  ;;  %v1030_v2 = vld [vmem:[#allocation4 + $0x18] sm:$0xff]  ;;  %v1028_v23 = vld [vmem:[#allocation4 + $0x8] sm:$0xff] }
 0x2f9   : > { %v1800_v28 = vadd.f32 %v1776_v13, %v1752_v37  ;;  %v6509_v37 = vpop.eup %5063  ;;  %v1125_v13 = vmul.f32 %v6287_v8, %v1029_v60  ;;  %5069 = vpow2.f32 %v1589_v29  ;;  %v1126_v44 = vmul.f32 %v6291_v30, %v1030_v2 }
 0x2fa   : > { %1811 = vst.msk [vmem:[#allocation3 + $0x8] sm:$0xff] %vm1809_vm3, %v1794_v40  ;;  %v1749_v45 = vmul.f32 %v6509_v37, %v1733_v21  ;;  %v1756_v29 = vmul.f32 %v6422_v52, %v1740_v33  ;;  %v1124_v41 = vmul.f32 %v6280_v59, %v1028_v23  ;;  %v6522_v56 = vpop.eup %5065  ;;  %v8487_v33 = vld [vmem:[#allocation50_spill] sm:$0xff]  ;;  %v8488_v23 = vld [vmem:[#allocation51_spill] sm:$0xff] }
 0x2fb   : > { %1817 = vst.msk [vmem:[#allocation3 + $0x38] sm:$0xff] %vm1809_vm3, %v1800_v28  ;;  %v1766_v4 = vpop.xlane.xlu0 %1765  ;;  %v8485_v28 = vld [vmem:[#allocation49_spill] sm:$0xff]  ;;  %v1751_v59 = vmul.f32 %v6522_v56, %v1735_v6 }
 0x2fc   : > { %v1780_v54 = vpop.xlane.xlu1 %1779  ;;  %v1795_v43 = vadd.f32 %v1766_v4, %v1747_v24  ;;  %v8486_v26 = vsub.f32 %v8484_v47, %v8485_v28 }
 0x2fd   : > { %v1802_v40 = vadd.f32 %v1780_v54, %v1754_v46 }
 0x2fe   : > { %1812 = vst.msk [vmem:[#allocation3 + $0x10] sm:$0xff] %vm1809_vm3, %v1795_v43  ;;  %v4744_v0 = vpop.f32.mrb[0].mxu0  ;;  %v1593_v25 = vmul.f32 1.442695, %v8486_v26  ;;  %v1742_v43 = vld [vmem:[#allocation3 + $0x68] sm:$0xff]  ;;  %v1737_v26 = vld [vmem:[#allocation3 + $0x40] sm:$0xff] }
 0x2ff   : > { %1819 = vst.msk [vmem:[#allocation3 + $0x48] sm:$0xff] %vm1809_vm3, %v1802_v40  ;;  %v1294_v24 = vadd.f32 %v4744_v0, %v1125_v13  ;;  %v1229_v8 = vpop.f32.mrb[1].mxu0  ;;  %v1770_v60 = vpop.xlane.xlu0 %1769  ;;  %v1033_v13 = vld [vmem:[#allocation4 + $0x30] sm:$0xff]  ;;  %v1758_v47 = vmul.f32 %v6429_v42, %v1742_v43 }
 0x300   : > { %v1292_v46 = vadd.f32 %v1229_v8, %v1123_v20  ;;  %v1784_v4 = vpop.xlane.xlu1 %1783  ;;  %v1797_v54 = vadd.f32 %v1770_v60, %v1749_v45  ;;  %v4745_v21 = vpop.f32.mrb[2].mxu0  ;;  %5071 = vpow2.f32 %v1593_v25  ;;  %v8489_v20 = vsub.f32 %v8487_v33, %v8488_v23  ;;  %v1031_v45 = vld [vmem:[#allocation4 + $0x20] sm:$0xff]  ;;  %v1032_v60 = vld [vmem:[#allocation4 + $0x28] sm:$0xff]  ;;  %v1037_v33 = vld [vmem:[#allocation4 + $0x50] sm:$0xff] }
 0x301   : > { %1311 = vst.msk [vmem:[#allocation4 + $0x10] sm:$0xff] %vm1308_vm4, %v1294_v24  ;;  %v1804_v30 = vadd.f32 %v1784_v4, %v1756_v29  ;;  %v1295_v2 = vadd.f32 %v4745_v21, %v1126_v44  ;;  %v1232_v40 = vpop.f32.mrb[3].mxu0  ;;  %v1034_v44 = vld [vmem:[#allocation4 + $0x38] sm:$0xff]  ;;  %v6535_v29 = vpop.eup %5067  ;;  %v1129_v25 = vmul.f32 %v6289_v48, %v1033_v13  ;;  %v1128_v48 = vmul.f32 %v6295_v7, %v1032_v60  ;;  %v1741_v7 = vld [vmem:[#allocation3 + $0x60] sm:$0xff] }
 0x302   : > { %1309 = vst.msk [vmem:[#allocation4] sm:$0xff] %vm1308_vm4, %v1292_v46  ;;  %v1293_v52 = vadd.f32 %v1232_v40, %v1124_v41  ;;  %v1597_v0 = vmul.f32 1.442695, %v8489_v20  ;;  %v1127_v41 = vmul.f32 %v6285_v12, %v1031_v45  ;;  %v1753_v42 = vmul.f32 %v6535_v29, %v1737_v26  ;;  %v1035_v20 = vld [vmem:[#allocation4 + $0x40] sm:$0xff]  ;;  %v1038_v45 = vld [vmem:[#allocation4 + $0x58] sm:$0xff] }
 0x303   : > { %1814 = vst.msk [vmem:[#allocation3 + $0x20] sm:$0xff] %vm1809_vm3, %v1797_v54  ;;  %1821 = vst.msk [vmem:[#allocation3 + $0x58] sm:$0xff] %vm1809_vm3, %v1804_v30  ;;  %v1774_v28 = vpop.xlane.xlu0 %1773  ;;  %v1130_v4 = vmul.f32 %v6299_v55, %v1034_v44  ;;  %v1739_v30 = vld [vmem:[#allocation3 + $0x50] sm:$0xff]  ;;  %v1133_v26 = vmul.f32 %v6297_v31, %v1037_v33  ;;  %v1036_v44 = vld [vmem:[#allocation4 + $0x48] sm:$0xff]  ;;  %v1134_v60 = vmul.f32 %v6307_v9, %v1038_v45 }
 0x304   : > { %1312 = vst.msk [vmem:[#allocation4 + $0x18] sm:$0xff] %vm1308_vm4, %v1295_v2  ;;  %1310 = vst.msk [vmem:[#allocation4 + $0x8] sm:$0xff] %vm1308_vm4, %v1293_v52  ;;  %v1788_v24 = vpop.xlane.xlu1 %1787  ;;  %v1799_v8 = vadd.f32 %v1774_v28, %v1751_v59  ;;  %5073 = vpow2.f32 %v1597_v0  ;;  %v6543_v2 = vpop.eup %5069  ;;  %v1040_v33 = vld [vmem:[#allocation4 + $0x68] sm:$0xff] }
 0x305   : > { %v1806_v6 = vadd.f32 %v1788_v24, %v1758_v47  ;;  %v1755_v23 = vmul.f32 %v6543_v2, %v1739_v30  ;;  %v1131_v24 = vmul.f32 %v6293_v17, %v1035_v20  ;;  %v1136_v45 = vmul.f32 %v6310_v39, %v1040_v33 }
 0x306   : > { %1816 = vst.msk [vmem:[#allocation3 + $0x30] sm:$0xff] %vm1809_vm3, %v1799_v8  ;;  %v4748_v46 = vpop.f32.mrb[4].mxu0 }
 0x307   : > { %1823 = vst.msk [vmem:[#allocation3 + $0x68] sm:$0xff] %vm1809_vm3, %v1806_v6  ;;  %v1298_v54 = vadd.f32 %v4748_v46, %v1129_v25  ;;  %v1245_v21 = vpop.f32.mrb[5].mxu0  ;;  %v1778_v43 = vpop.xlane.xlu0 %1777 }
 0x308   : > { %v1296_v40 = vadd.f32 %v1245_v21, %v1127_v41  ;;  %v1801_v12 = vadd.f32 %v1778_v43, %v1753_v42  ;;  %v4749_v13 = vpop.f32.mrb[6].mxu0  ;;  %v1743_v42 = vld [vmem:[#allocation3 + $0x70] sm:$0xff] }
 0x309   : > { %1315 = vst.msk [vmem:[#allocation4 + $0x30] sm:$0xff] %vm1308_vm4, %v1298_v54  ;;  %v1299_v52 = vadd.f32 %v4749_v13, %v1130_v4  ;;  %v1248_v59 = vpop.f32.mrb[7].mxu0  ;;  %v1132_v4 = vmul.f32 %v6303_v63, %v1036_v44  ;;  %v1042_v63 = vld [vmem:[#allocation4 + $0x78] sm:$0xff] }
 0x30a   : > { %1313 = vst.msk [vmem:[#allocation4 + $0x20] sm:$0xff] %vm1308_vm4, %v1296_v40  ;;  %v1297_v55 = vadd.f32 %v1248_v59, %v1128_v48  ;;  %v5072_v28 = vpop.eup %5071  ;;  %v1041_v48 = vld [vmem:[#allocation4 + $0x70] sm:$0xff]  ;;  %v1138_v20 = vmul.f32 %v6313_v10, %v1042_v63 }
 0x30b   : > { %1818 = vst.msk [vmem:[#allocation3 + $0x40] sm:$0xff] %vm1809_vm3, %v1801_v12  ;;  %v1782_v0 = vpop.xlane.xlu0 %1781  ;;  %v1757_v25 = vmul.f32 %v5072_v28, %v1741_v7  ;;  %v1039_v12 = vld [vmem:[#allocation4 + $0x60] sm:$0xff]  ;;  %v1137_v59 = vmul.f32 %v6305_v1, %v1041_v48  ;;  %v6631_v48 = vld [vmem:[%s5571_s9 + $0x48] sm:$0xff] }
 0x30c   : > { %1316 = vst.msk [vmem:[#allocation4 + $0x38] sm:$0xff] %vm1308_vm4, %v1299_v52  ;;  %1314 = vst.msk [vmem:[#allocation4 + $0x28] sm:$0xff] %vm1308_vm4, %v1297_v55  ;;  %v1803_v47 = vadd.f32 %v1782_v0, %v1755_v23  ;;  %v1135_v55 = vmul.f32 %v6301_v57, %v1039_v12  ;;  %v6641_v12 = vld [vmem:[%s5571_s9 + $0x68] sm:$0xff] }
 0x30e   : > { %1820 = vst.msk [vmem:[#allocation3 + $0x50] sm:$0xff] %vm1809_vm3, %v1803_v47  ;;  %v4752_v8 = vpop.f32.mrb[8].mxu0  ;;  %v5074_v30 = vpop.eup %5073 }
 0x30f   : > { %v1302_v6 = vadd.f32 %v4752_v8, %v1133_v26  ;;  %v1261_v41 = vpop.f32.mrb[9].mxu0  ;;  %v1786_v46 = vpop.xlane.xlu0 %1785  ;;  %v1759_v40 = vmul.f32 %v5074_v30, %v1743_v42  ;;  %v8490_v8 = vld [vmem:[#allocation24_spill] sm:$0xff] }
 0x310   : > { %v1300_v54 = vadd.f32 %v1261_v41, %v1131_v24  ;;  %v1805_v21 = vadd.f32 %v1786_v46, %v1757_v25  ;;  %v4753_v43 = vpop.f32.mrb[10].mxu0  ;;  %v6603_v46 = vld [vmem:[%s5571_s9] sm:$0xff] }
 0x311   : > { %1319 = vst.msk [vmem:[#allocation4 + $0x50] sm:$0xff] %vm1308_vm4, %v1302_v6  ;;  %v1303_v31 = vadd.f32 %v4753_v43, %v1134_v60  ;;  %v1264_v17 = vpop.f32.mrb[11].mxu0  ;;  %v6619_v43 = vld [vmem:[%s5571_s9 + $0x28] sm:$0xff] }
 0x312   : > { %1317 = vst.msk [vmem:[#allocation4 + $0x40] sm:$0xff] %vm1308_vm4, %v1300_v54  ;;  %v1301_v9 = vadd.f32 %v1264_v17, %v1132_v4  ;;  %v6609_v4 = vld [vmem:[%s5571_s9 + $0x10] sm:$0xff] }
 0x313   : > { %1822 = vst.msk [vmem:[#allocation3 + $0x60] sm:$0xff] %vm1809_vm3, %v1805_v21  ;;  %v1790_v13 = vpop.xlane.xlu0 %1789  ;;  %v6615_v21 = vld [vmem:[%s5571_s9 + $0x18] sm:$0xff] }
 0x314   : > { %1320 = vst.msk [vmem:[#allocation4 + $0x58] sm:$0xff] %vm1308_vm4, %v1303_v31  ;;  %1318 = vst.msk [vmem:[#allocation4 + $0x48] sm:$0xff] %vm1308_vm4, %v1301_v9  ;;  %v1807_v52 = vadd.f32 %v1790_v13, %v1759_v40  ;;  %v6625_v31 = vld [vmem:[%s5571_s9 + $0x38] sm:$0xff] }
 0x315   : > { %v6635_v9 = vld [vmem:[%s5571_s9 + $0x58] sm:$0xff] }
 0x316   : > { %1824 = vst.msk [vmem:[#allocation3 + $0x70] sm:$0xff] %vm1809_vm3, %v1807_v52  ;;  %v4756_v23 = vpop.f32.mrb[12].mxu0  ;;  %v8491_v52 = vld [vmem:[#allocation7_spill] sm:$0xff] }
 0x317   : > { %v1306_v0 = vadd.f32 %v4756_v23, %v1137_v59  ;;  %v1277_v7 = vpop.f32.mrb[13].mxu0  ;;  %v2246_v59 = vsub.s32 2, %v8491_v52 }
 0x318   : > { %v1304_v47 = vadd.f32 %v1277_v7, %v1135_v55  ;;  %v4757_v26 = vpop.f32.mrb[14].mxu0  ;;  %v6648_v55 = vld [vmem:[%s5576_s13] sm:$0xf] }
 0x319   : > { %1323 = vst.msk [vmem:[#allocation4 + $0x70] sm:$0xff] %vm1308_vm4, %v1306_v0  ;;  %v1307_v44 = vadd.f32 %v4757_v26, %v1138_v20  ;;  %v1280_v24 = vpop.f32.mrb[15].mxu0  ;;  %v6651_v23 = vrot.slane %v6648_v55, %v2246_v59 }
 0x31a   : > { %1321 = vst.msk [vmem:[#allocation4 + $0x60] sm:$0xff] %vm1308_vm4, %v1304_v47  ;;  %v1305_v1 = vadd.f32 %v1280_v24, %v1136_v45 }
 0x31b   : > { %1324 = vst.msk [vmem:[#allocation4 + $0x78] sm:$0xff] %vm1308_vm4, %v1307_v44  ;;  %v1679_v57 = vpop.permute.xlu0 %1678 }
 0x31c   : > { %1322 = vst.msk [vmem:[#allocation4 + $0x68] sm:$0xff] %vm1308_vm4, %v1305_v1  ;;  %v1696_v10 = vsub.f32 %v8490_v8, %v1679_v57  ;;  %v8492_v57 = vld [vmem:[#allocation10_spill] sm:$0xff] }
 0x31e   : > { %v1727_v25 = vmul.f32 1.442695, %v1696_v10 }
 0x31f   : > { %v6579_v60 = vpop.permute.xlu0 %1844 }
 0x320   : > { %5075 = vpow2.f32 %v1727_v25 }
 0x323   : > { %v6582_v6 = vpop.permute.xlu0 %1859 }
 0x327   : > { %v6585_v41 = vpop.permute.xlu0 %1869 }
 0x32a   : > { %v6572_v39 = vpop.eup %5075 }
 0x32b   : > { %1791 = vadd.xlane.f32.xlu1 %v6572_v39 }
 0x33c   : > { %1849 = vperm.xlu1 %4932, %v6492_v62   ;;  %v6587_v62 = vpop.permute.xlu0 %1879 }
 0x340   : > { %1854 = vperm.xlu1 %4932, %v6500_v34   ;;  %v5216_v34 = vld [vmem:[%s5586_s29] sm:$0xff]  }
 0x344   : > { %1864 = vperm.xlu1 %4932, %v6509_v37   ;;  %v6594_v37 = vpop.permute.xlu0 %1889 }
 0x348   : > { %1874 = vperm.xlu1 %4932, %v6522_v56   ;;  %v5217_v56 = vld [vmem:[%s5586_s29 + $0x10] sm:$0xff]  }
 0x34c   : > { %1884 = vperm.xlu1 %4932, %v6535_v29   ;;  %v5218_v29 = vld [vmem:[%s5586_s29 + $0x20] sm:$0xff]  }
 0x350   : > { %1894 = vperm.xlu1 %4932, %v6543_v2   ;;  %v6598_v2 = vpop.permute.xlu0 %1899 }
 0x354   : > { %1904 = vperm.xlu1 %4932, %v5072_v28   ;;  %v5219_v28 = vld [vmem:[%s5586_s29 + $0x30] sm:$0xff]   ;;  %v6606_v42 = vpop.permute.xlu0 %1909 }
 0x358   : > { %1914 = vperm.xlu1 %4932, %v5074_v30   ;;  %v6612_v54 = vpop.permute.xlu0 %1919 }
 0x35c   : > { %1946 = vrot.lane.b32.xlu1 %v5216_v34, %s5441_s3  ;;  %v6622_v30 = vpop.permute.xlu0 %1948 }
 0x35d   : > { %4933 = vset.pattern.permute.xlu1 %v8334_v19 }
 0x360   : > { %1950 = vrot.lane.b32.xlu1 %v5217_v56, %s5441_s3  ;;  %v6628_v17 = vpop.permute.xlu0 %1952  ;;  %v8493_v56 = vld [vmem:[#allocation11_spill] sm:$0xff] }
 0x364   : > { %1954 = vrot.lane.b32.xlu1 %v5218_v29, %s5441_s3  ;;  %v6638_v40 = vpop.permute.xlu0 %1956 }
 0x368   : > { %1958 = vrot.lane.b32.xlu1 %v5219_v28, %s5441_s3  ;;  %v6644_v13 = vpop.permute.xlu0 %1960 }
 0x36c   : > { %2181 = vperm.xlu1 %4933, %v6603_v46   ;;  %v2186_v63 = vpop.permute.xlu0 %2185 }
 0x36d   : > { %v2249_v0 = vadd.f32 %v6651_v23, %v2186_v63 }
 0x36f   : > { %v2281_v7 = vmul.f32 0.2, %v2249_v0  ;;  %vm2265_vm5 = vcmp.gt.f32.partialorder %v2249_v0, 0.0 }
 0x370   : > { %2189 = vperm.xlu1 %4933, %v6609_v4   ;;  %v2198_v33 = vpop.permute.xlu0 %2197 }
 0x371   : > { %v2252_v45 = vadd.f32 %v6651_v23, %v2198_v33  ;;  %v2297_v24 = vsel %vm2265_vm5, %v2249_v0, %v2281_v7  ;;  %vm2648_vm5 = vcmask 23568  }
 0x372   : > { %v6657_v8 = vadd.f32 %v8492_v57, %v2297_v24  ;;  %v1744_v24 = vld [vmem:[#allocation3 + $0x78] sm:$0xff] }
 0x373   : > { %v2284_v26 = vmul.f32 0.2, %v2252_v45  ;;  %vm2268_vm6 = vcmp.gt.f32.partialorder %v2252_v45, 0.0  ;;  %v1760_v19 = vmul.f32 %v6436_v38, %v1744_v24  ;;  %v8501_v38 = vld [vmem:[#allocation19_spill] sm:$0xff] }
 0x374   : > { %2193 = vperm.xlu1 %4933, %v6615_v21   ;;  %v2206_v20 = vpop.permute.xlu0 %2205 }
 0x375   : > { %v2254_v44 = vadd.f32 %v6651_v23, %v2206_v20  ;;  %v2300_v34 = vsel %vm2268_vm6, %v2252_v45, %v2284_v26  ;;  %v8495_v20 = vld [vmem:[#allocation13_spill] sm:$0xff] }
 0x376   : > { %v6662_v29 = vadd.f32 %v8493_v56, %v2300_v34  ;;  %v8497_v34 = vld [vmem:[#allocation15_spill] sm:$0xff] }
 0x377   : > { %v2286_v10 = vmul.f32 0.2, %v2254_v44  ;;  %vm2270_vm7 = vcmp.gt.f32.partialorder %v2254_v44, 0.0 }
 0x378   : > { %2201 = vperm.xlu1 %4933, %v6619_v43   ;;  %v2214_v47 = vpop.permute.xlu0 %2213  ;;  %8494 = vst [vmem:[#allocation25_spill] sm:$0xff] %v6662_v29 }
 0x379   : > { %v2256_v25 = vadd.f32 %v6651_v23, %v2214_v47  ;;  %v2302_v63 = vsel %vm2270_vm7, %v2254_v44, %v2286_v10  ;;  %vm2147_vm7 = vcmask 130112  }
 0x37a   : > { %v6667_v0 = vadd.f32 %v8495_v20, %v2302_v63 }
 0x37b   : > { %v2288_v28 = vmul.f32 0.2, %v2256_v25  ;;  %vm2272_vm8 = vcmp.gt.f32.partialorder %v2256_v25, 0.0 }
 0x37c   : > { %2209 = vperm.xlu1 %4933, %v6625_v31   ;;  %v2222_v1 = vpop.permute.xlu0 %2221  ;;  %8496 = vst [vmem:[#allocation33_spill] sm:$0xff] %v6667_v0 }
 0x37d   : > { %v2258_v33 = vadd.f32 %v6651_v23, %v2222_v1  ;;  %v2304_v7 = vsel %vm2272_vm8, %v2256_v25, %v2288_v28  ;;  %v8499_v28 = vld [vmem:[#allocation17_spill] sm:$0xff] }
 0x37e   : > { %v6672_v44 = vadd.f32 %v8497_v34, %v2304_v7 }
 0x37f   : > { %v2290_v47 = vmul.f32 0.2, %v2258_v33  ;;  %vm2274_vm9 = vcmp.gt.f32.partialorder %v2258_v33, 0.0 }
 0x380   : > { %2217 = vperm.xlu1 %4933, %v6631_v48   ;;  %v2230_v59 = vpop.permute.xlu0 %2229  ;;  %8498 = vst [vmem:[#allocation28_spill] sm:$0xff] %v6672_v44 }
 0x381   : > { %v2260_v45 = vadd.f32 %v6651_v23, %v2230_v59  ;;  %v2306_v35 = vsel %vm2274_vm9, %v2258_v33, %v2290_v47 }
 0x382   : > { %v6678_v59 = vadd.f32 %v8499_v28, %v2306_v35  ;;  %v8503_v35 = vld [vmem:[#allocation21_spill] sm:$0xff] }
 0x383   : > { %v2292_v10 = vmul.f32 0.2, %v2260_v45  ;;  %vm2276_vm10 = vcmp.gt.f32.partialorder %v2260_v45, 0.0 }
 0x384   : > { %2225 = vperm.xlu1 %4933, %v6635_v9   ;;  %v2238_v26 = vpop.permute.xlu0 %2237  ;;  %8500 = vst [vmem:[#allocation36_spill] sm:$0xff] %v6678_v59 }
 0x385   : > { %v2262_v1 = vadd.f32 %v6651_v23, %v2238_v26  ;;  %v2308_v7 = vsel %vm2276_vm10, %v2260_v45, %v2292_v10 }
 0x386   : > { %v6685_v33 = vadd.f32 %v8501_v38, %v2308_v7 }
 0x387   : > { %v2294_v22 = vmul.f32 0.2, %v2262_v1  ;;  %vm2278_vm11 = vcmp.gt.f32.partialorder %v2262_v1, 0.0 }
 0x388   : > { %2233 = vperm.xlu1 %4933, %v6641_v12   ;;  %8502 = vst [vmem:[#allocation31_spill] sm:$0xff] %v6685_v33 }
 0x389   : > { %v2310_v47 = vsel %vm2278_vm11, %v2262_v1, %v2294_v22  ;;  %v6705_v22 = vld [vmem:[%s5571_s9 + $0x78] sm:$0xff] }
 0x3ac   : > { %2346 = vmax.xlane.f32.xlu1 %v6657_v8 }
 0x3b0   : > { %2352 = vmax.xlane.f32.xlu1 %v6662_v29 }
 0x3b4   : > { %2356 = vmax.xlane.f32.xlu1 %v6667_v0 }
 0x3b8   : > { %v1792_v63 = vpop.xlane.xlu1 %1791  ;;  %2360 = vmax.xlane.f32.xlu1 %v6672_v44 }
 0x3b9   : > { %v1808_v25 = vadd.f32 %v1792_v63, %v1760_v19  ;;  %v6691_v19 = vadd.f32 %v8503_v35, %v2310_v47  ;;  %v8506_v35 = vld [vmem:[#allocation9_spill] sm:$0xff] }
 0x3bb   : > { %1825 = vst.msk [vmem:[#allocation3 + $0x78] sm:$0xff] %vm1809_vm3, %v1808_v25  ;;  %8504 = vst [vmem:[#allocation41_spill] sm:$0xff] %v6691_v19 }
 0x3bc   : > { %v6681_v50 = vpop.permute.xlu1 %1849  ;;  %2364 = vmax.xlane.f32.xlu1 %v6678_v59 }
 0x3c0   : > { %v6687_v26 = vpop.permute.xlu1 %1854  ;;  %2368 = vmax.xlane.f32.xlu1 %v6685_v33 }
 0x3c4   : > { %v6693_v24 = vpop.permute.xlu1 %1864  ;;  %2372 = vmax.xlane.f32.xlu1 %v6691_v19 }
 0x3c8   : > { %v6696_v45 = vpop.permute.xlu1 %1874 }
 0x3cc   : > { %v6698_v10 = vpop.permute.xlu1 %1884 }
 0x3d0   : > { %v6700_v63 = vpop.permute.xlu1 %1894 }
 0x3d4   : > { %v6702_v25 = vpop.permute.xlu1 %1904 }
 0x3d5   : > { %2241 = vperm.xlu1 %4933, %v6705_v22  }
 0x3d8   : > { %v6708_v1 = vpop.permute.xlu1 %1914 }
 0x3dc   : > { %v1947_v7 = vpop.permute.xlu1 %1946 }
 0x3dd   : > { %4758 = vmatprep.subr.bf16.mxu1 %v1947_v7 }
 0x3de   : > { %4759 = vmatpush3.bf16.msra.mxu1 %v1947_v7 }
 0x3df   : > { %4760 = vmatprep.subr.bf16.mxu1 %v6622_v30 }
 0x3e0   : > { %v1951_v47 = vpop.permute.xlu1 %1950 }
 0x3e2   : > { %4761 = vmatpush3.bf16.msra.mxu1 %v6622_v30 }
 0x3e3   : > { %4762 = vmatprep.subr.bf16.mxu1 %v1951_v47 }
 0x3e4   : > { %v1955_v61 = vpop.permute.xlu1 %1954 }
 0x3e6   : > { %4763 = vmatpush3.bf16.msra.mxu1 %v1951_v47  ;;  %v8505_v47 = vld [vmem:[#allocation8_spill] sm:$0xff] }
 0x3e7   : > { %4764 = vmatprep.subr.bf16.mxu1 %v6628_v17 }
 0x3e8   : > { %v1959_v51 = vpop.permute.xlu1 %1958 }
 0x3ea   : > { %4765 = vmatpush3.bf16.msra.mxu1 %v6628_v17 }
 0x3eb   : > { %4766 = vmatprep.subr.bf16.mxu1 %v1955_v61 }
 0x3ec   : > { %v2182_v19 = vpop.permute.xlu1 %2181 }
 0x3ed   : > { %v2248_v33 = vadd.f32 %v6651_v23, %v2182_v19 }
 0x3ee   : > { %4767 = vmatpush3.bf16.msra.mxu1 %v1955_v61 }
 0x3ef   : > { %vm2264_vm12 = vcmp.gt.f32.partialorder %v2248_v33, 0.0  ;;  %v2280_v7 = vmul.f32 0.2, %v2248_v33  ;;  %4768 = vmatprep.subr.bf16.mxu1 %v6638_v40 }
 0x3f0   : > { %v2190_v59 = vpop.permute.xlu1 %2189 }
 0x3f1   : > { %v2250_v30 = vadd.f32 %v6651_v23, %v2190_v59  ;;  %v2296_v44 = vsel %vm2264_vm12, %v2248_v33, %v2280_v7  ;;  %v8508_v7 = vld [vmem:[#allocation12_spill] sm:$0xff] }
 0x3f2   : > { %4769 = vmatpush3.bf16.msra.mxu1 %v6638_v40  ;;  %v6719_v0 = vadd.f32 %v8505_v47, %v2296_v44 }
 0x3f3   : > { %vm2266_vm13 = vcmp.gt.f32.partialorder %v2250_v30, 0.0  ;;  %v2282_v17 = vmul.f32 0.2, %v2250_v30  ;;  %4770 = vmatprep.subr.bf16.mxu1 %v1959_v51 }
 0x3f4   : > { %2344 = vmax.xlane.f32.xlu0 %v6719_v0  ;;  %v2194_v19 = vpop.permute.xlu1 %2193 }
 0x3f5   : > { %v2251_v61 = vadd.f32 %v6651_v23, %v2194_v19  ;;  %v2298_v29 = vsel %vm2266_vm13, %v2250_v30, %v2282_v17  ;;  %v8510_v17 = vpack.c.bf16 %v6320_v15, %v6334_v18 }
 0x3f6   : > { %4771 = vmatpush3.bf16.msra.mxu1 %v1959_v51  ;;  %v6724_v38 = vadd.f32 %v8506_v35, %v2298_v29 }
 0x3f7   : > { %vm2267_vm14 = vcmp.gt.f32.partialorder %v2251_v61, 0.0  ;;  %v2283_v59 = vmul.f32 0.2, %v2251_v61  ;;  %4772 = vmatprep.subr.bf16.mxu1 %v6644_v13 }
 0x3f8   : > { %8507 = vst [vmem:[#allocation35_spill] sm:$0xff] %v6724_v38  ;;  %2348 = vmax.xlane.f32.xlu0 %v6724_v38  ;;  %v2202_v40 = vpop.permute.xlu1 %2201  ;;  %v8513_v38 = vld [vmem:[#allocation16_spill] sm:$0xff] }
 0x3f9   : > { %v2253_v44 = vadd.f32 %v6651_v23, %v2202_v40  ;;  %v2299_v33 = vsel %vm2267_vm14, %v2251_v61, %v2283_v59  ;;  %v8511_v61 = vpack.c.bf16 %v6325_v16, %v6343_v14  ;;  %v8514_v14 = vpack.c.bf16 %v6330_v58, %v6352_v11 }
 0x3fa   : > { %4773 = vmatpush3.bf16.msra.mxu1 %v6644_v13  ;;  %v6731_v28 = vadd.f32 %v8508_v7, %v2299_v33  ;;  %v8512_v13 = vld [vmem:[#allocation14_spill] sm:$0xff] }
 0x3fb   : > { %vm2269_vm15 = vcmp.gt.f32.partialorder %v2253_v44, 0.0  ;;  %v2285_v51 = vmul.f32 0.2, %v2253_v44 }
 0x3fc   : > { %8509 = vst [vmem:[#allocation45_spill] sm:$0xff] %v6731_v28  ;;  %2350 = vmax.xlane.f32.xlu0 %v6731_v28  ;;  %v2210_v29 = vpop.permute.xlu1 %2209 }
 0x3fd   : > { %v2255_v30 = vadd.f32 %v6651_v23, %v2210_v29  ;;  %4775 = vmatmul.mubr.bf16.vlgmr.msra.gmra.mrb[0].mxu1 %v8510_v17  ;;  %v2301_v19 = vsel %vm2269_vm15, %v2253_v44, %v2285_v51  ;;  %v8515_v51 = vpack.c.bf16 %v6336_v3, %v6361_v32  ;;  %v8518_v3 = vpack.c.bf16 %v6345_v36, %v6366_v27  ;;  %v6787_v27 = vld [vmem:[#allocation2 + $0x20] sm:$0xff] }
 0x3fe   : > { %4778 = vmatprep.mubr.bf16.mxu1 %v8511_v61  ;;  %v6742_v59 = vadd.f32 %v8512_v13, %v2301_v19  ;;  %v8519_v32 = vpack.c.bf16 %v6354_v53, %v6371_v5  ;;  %8524 = vst [vmem:[#allocation47_spill] sm:$0xff] %v6787_v27 }
 0x3ff   : > { %vm2271_vm0 = vcmp.gt.f32.partialorder %v2255_v30, 0.0  ;;  %v2287_v40 = vmul.f32 0.2, %v2255_v30 }
 0x400   : > { %2354 = vmax.xlane.f32.xlu0 %v6742_v59  ;;  %v2218_v33 = vpop.permute.xlu1 %2217 }
 0x401   : > { %v2257_v28 = vadd.f32 %v6651_v23, %v2218_v33  ;;  %v2303_v29 = vsel %vm2271_vm0, %v2255_v30, %v2287_v40  ;;  %v8516_v30 = vld [vmem:[#allocation18_spill] sm:$0xff] }
 0x402   : > { %v6747_v34 = vadd.f32 %v8513_v38, %v2303_v29  ;;  %v8517_v29 = vld [vmem:[#allocation20_spill] sm:$0xff] }
 0x403   : > { %vm2273_vm1 = vcmp.gt.f32.partialorder %v2257_v28, 0.0  ;;  %v2289_v15 = vmul.f32 0.2, %v2257_v28 }
 0x404   : > { %2358 = vmax.xlane.f32.xlu0 %v6747_v34  ;;  %v2226_v16 = vpop.permute.xlu1 %2225 }
 0x405   : > { %v2259_v18 = vadd.f32 %v6651_v23, %v2226_v16  ;;  %4779 = vmatmul.mubr.bf16.gmra.mrb[4].mxu1 %v8514_v14  ;;  %v2305_v44 = vsel %vm2273_vm1, %v2257_v28, %v2289_v15  ;;  %v8520_v28 = vld [vmem:[#allocation22_spill] sm:$0xff]  ;;  %v6778_v14 = vld [vmem:[#allocation2 + $0x8] sm:$0xff] }
 0x406   : > { %4782 = vmatprep.mubr.bf16.mxu1 %v8515_v51  ;;  %v6758_v17 = vadd.f32 %v8516_v30, %v2305_v44  ;;  %8522 = vst [vmem:[#allocation43_spill] sm:$0xff] %v6778_v14 }
 0x407   : > { %vm2275_vm2 = vcmp.gt.f32.partialorder %v2259_v18, 0.0  ;;  %v2291_v19 = vmul.f32 0.2, %v2259_v18 }
 0x408   : > { %2362 = vmax.xlane.f32.xlu0 %v6758_v17  ;;  %v2234_v61 = vpop.permute.xlu1 %2233 }
 0x409   : > { %v2261_v40 = vadd.f32 %v6651_v23, %v2234_v61  ;;  %v2307_v33 = vsel %vm2275_vm2, %v2259_v18, %v2291_v19  ;;  %v1945_v18 = vpack.c.bf16 %v6572_v39, %v6376_v49  ;;  %v6796_v39 = vld [vmem:[#allocation2 + $0x30] sm:$0xff] }
 0x40a   : > { %v6763_v16 = vadd.f32 %v8517_v29, %v2307_v33  ;;  %8526 = vst [vmem:[#allocation26_spill] sm:$0xff] %v6796_v39  ;;  %v6805_v33 = vld [vmem:[#allocation2 + $0x40] sm:$0xff] }
 0x40b   : > { %vm2277_vm3 = vcmp.gt.f32.partialorder %v2261_v40, 0.0  ;;  %v2293_v58 = vmul.f32 0.2, %v2261_v40  ;;  %8528 = vst [vmem:[#allocation29_spill] sm:$0xff] %v6805_v33 }
 0x40c   : > { %2366 = vmax.xlane.f32.xlu0 %v6763_v16 }
 0x40d   : > { %4783 = vmatmul.mubr.bf16.gmra.mrb[8].mxu1 %v8518_v3  ;;  %v2309_v11 = vsel %vm2277_vm3, %v2261_v40, %v2293_v58 }
 0x40e   : > { %4786 = vmatprep.mubr.bf16.mxu1 %v8519_v32  ;;  %v6773_v15 = vadd.f32 %v8520_v28, %v2309_v11  ;;  %v6812_v11 = vld [vmem:[#allocation2 + $0x50] sm:$0xff] }
 0x40f   : > { %8529 = vst [vmem:[#allocation30_spill] sm:$0xff] %v6812_v11 }
 0x410   : > { %8521 = vst [vmem:[#allocation39_spill] sm:$0xff] %v6773_v15  ;;  %2370 = vmax.xlane.f32.xlu0 %v6773_v15 }
 0x415   : > { %4787 = vmatmul.mubr.bf16.gmra.mrb[12].mxu1 %v1945_v18 }
 0x439   : > { %v2347_v44 = vpop.xlane.xlu1 %2346 }
 0x43a   : > { %v6781_v36 = vmax.f32 %v6778_v14, %v2347_v44  ;;  %v6819_v44 = vld [vmem:[#allocation2 + $0x60] sm:$0xff] }
 0x43b   : > { %8530 = vst [vmem:[#allocation32_spill] sm:$0xff] %v6819_v44 }
 0x43c   : > { %8523 = vst [vmem:[#allocation52_spill] sm:$0xff] %v6781_v36  ;;  %3004 = vst.msk [vmem:[#allocation2 + $0x8] sm:$0xff] %vm2648_vm5, %v6781_v36 }
 0x43d   : > { %v2353_v5 = vpop.xlane.xlu1 %2352 }
 0x43e   : > { %v6790_v51 = vmax.f32 %v6787_v27, %v2353_v5 }
 0x440   : > { %8525 = vst [vmem:[#allocation53_spill] sm:$0xff] %v6790_v51  ;;  %3007 = vst.msk [vmem:[#allocation2 + $0x20] sm:$0xff] %vm2648_vm5, %v6790_v51 }
 0x441   : > { %v2357_v19 = vpop.xlane.xlu1 %2356 }
 0x442   : > { %v6799_v61 = vmax.f32 %v6796_v39, %v2357_v19 }
 0x444   : > { %8527 = vst [vmem:[#allocation27_spill] sm:$0xff] %v6799_v61  ;;  %3009 = vst.msk [vmem:[#allocation2 + $0x30] sm:$0xff] %vm2648_vm5, %v6799_v61 }
 0x445   : > { %v2361_v58 = vpop.xlane.xlu1 %2360 }
 0x446   : > { %v6808_v3 = vmax.f32 %v6805_v33, %v2361_v58  ;;  %v6826_v58 = vld [vmem:[#allocation2 + $0x70] sm:$0xff] }
 0x447   : > { %8532 = vst [vmem:[#allocation37_spill] sm:$0xff] %v6826_v58 }
 0x448   : > { %3011 = vst.msk [vmem:[#allocation2 + $0x40] sm:$0xff] %vm2648_vm5, %v6808_v3 }
 0x449   : > { %v2365_v32 = vpop.xlane.xlu1 %2364 }
 0x44a   : > { %v6815_v18 = vmax.f32 %v6812_v11, %v2365_v32 }
 0x44c   : > { %3013 = vst.msk [vmem:[#allocation2 + $0x50] sm:$0xff] %vm2648_vm5, %v6815_v18 }
 0x44d   : > { %v2369_v5 = vpop.xlane.xlu1 %2368 }
 0x44e   : > { %v6822_v19 = vmax.f32 %v6819_v44, %v2369_v5  ;;  %v8534_v5 = vld [vmem:[#allocation23_spill] sm:$0xff] }
 0x450   : > { %8531 = vst [vmem:[#allocation34_spill] sm:$0xff] %v6822_v19  ;;  %3015 = vst.msk [vmem:[#allocation2 + $0x60] sm:$0xff] %vm2648_vm5, %v6822_v19 }
 0x451   : > { %v2373_v40 = vpop.xlane.xlu1 %2372 }
 0x452   : > { %v6829_v49 = vmax.f32 %v6826_v58, %v2373_v40  ;;  %v6841_v40 = vld [vmem:[#allocation2] sm:$0xff] }
 0x454   : > { %8533 = vst [vmem:[#allocation38_spill] sm:$0xff] %v6829_v49  ;;  %3017 = vst.msk [vmem:[#allocation2 + $0x70] sm:$0xff] %vm2648_vm5, %v6829_v49 }
 0x455   : > { %v2242_v32 = vpop.permute.xlu1 %2241 }
 0x456   : > { %v2263_v53 = vadd.f32 %v6651_v23, %v2242_v32 }
 0x458   : > { %vm2279_vm6 = vcmp.gt.f32.partialorder %v2263_v53, 0.0  ;;  %v2295_v11 = vmul.f32 0.2, %v2263_v53 }
 0x45a   : > { %v2311_v33 = vsel %vm2279_vm6, %v2263_v53, %v2295_v11  ;;  %v6851_v53 = vld [vmem:[#allocation2 + $0x10] sm:$0xff] }
 0x45b   : > { %v6835_v44 = vadd.f32 %v8534_v5, %v2311_v33  ;;  %8536 = vst [vmem:[#allocation42_spill] sm:$0xff] %v6851_v53 }
 0x45d   : > { %8535 = vst [vmem:[#allocation40_spill] sm:$0xff] %v6835_v44  ;;  %2374 = vmax.xlane.f32.xlu0 %v6835_v44 }
 0x473   : > { %2447 = vperm.xlu0 %4934, %v6781_v36  }
 0x477   : > { %2462 = vperm.xlu0 %4934, %v6790_v51  }
 0x47b   : > { %2472 = vperm.xlu0 %4934, %v6799_v61  }
 0x481   : > { %v2345_v58 = vpop.xlane.xlu0 %2344 }
 0x482   : > { %v6844_v39 = vmax.f32 %v6841_v40, %v2345_v58  ;;  %v6861_v58 = vld [vmem:[#allocation2 + $0x18] sm:$0xff] }
 0x483   : > { %8538 = vst [vmem:[#allocation46_spill] sm:$0xff] %v6861_v58 }
 0x484   : > { %3003 = vst.msk [vmem:[#allocation2] sm:$0xff] %vm2648_vm5, %v6844_v39  ;;  %2442 = vperm.xlu1 %4933, %v6844_v39  }
 0x485   : > { %v2349_v33 = vpop.xlane.xlu0 %2348 }
 0x486   : > { %v6854_v11 = vmax.f32 %v6851_v53, %v2349_v33  ;;  %v6871_v33 = vld [vmem:[#allocation2 + $0x28] sm:$0xff] }
 0x487   : > { %8540 = vst [vmem:[#allocation49_spill] sm:$0xff] %v6871_v33 }
 0x488   : > { %8537 = vst [vmem:[#allocation44_spill] sm:$0xff] %v6854_v11  ;;  %3005 = vst.msk [vmem:[#allocation2 + $0x10] sm:$0xff] %vm2648_vm5, %v6854_v11  ;;  %2452 = vperm.xlu1 %4933, %v6854_v11  }
 0x489   : > { %v2351_v23 = vpop.xlane.xlu0 %2350 }
 0x48a   : > { %v6864_v61 = vmax.f32 %v6861_v58, %v2351_v23  ;;  %v6881_v23 = vld [vmem:[#allocation2 + $0x38] sm:$0xff] }
 0x48b   : > { %8542 = vst [vmem:[#allocation51_spill] sm:$0xff] %v6881_v23 }
 0x48c   : > { %8539 = vst [vmem:[#allocation48_spill] sm:$0xff] %v6864_v61  ;;  %3006 = vst.msk [vmem:[#allocation2 + $0x18] sm:$0xff] %vm2648_vm5, %v6864_v61  ;;  %2457 = vperm.xlu1 %4933, %v6864_v61   ;;  %v6905_v61 = vld [vmem:[#allocation2 + $0x68] sm:$0xff] }
 0x48d   : > { %v2355_v32 = vpop.xlane.xlu0 %2354  ;;  %8546 = vst [vmem:[#allocation11_spill] sm:$0xff] %v6905_v61 }
 0x48e   : > { %v6874_v27 = vmax.f32 %v6871_v33, %v2355_v32  ;;  %v6891_v32 = vld [vmem:[#allocation2 + $0x48] sm:$0xff] }
 0x48f   : > { %8544 = vst [vmem:[#allocation7_spill] sm:$0xff] %v6891_v32 }
 0x490   : > { %8541 = vst [vmem:[#allocation50_spill] sm:$0xff] %v6874_v27  ;;  %3008 = vst.msk [vmem:[#allocation2 + $0x28] sm:$0xff] %vm2648_vm5, %v6874_v27  ;;  %2467 = vperm.xlu1 %4933, %v6874_v27   ;;  %v6898_v27 = vld [vmem:[#allocation2 + $0x58] sm:$0xff] }
 0x491   : > { %v2359_v51 = vpop.xlane.xlu0 %2358  ;;  %8545 = vst [vmem:[#allocation10_spill] sm:$0xff] %v6898_v27 }
 0x492   : > { %v6884_v58 = vmax.f32 %v6881_v23, %v2359_v51 }
 0x494   : > { %8543 = vst [vmem:[#allocation24_spill] sm:$0xff] %v6884_v58  ;;  %3010 = vst.msk [vmem:[#allocation2 + $0x38] sm:$0xff] %vm2648_vm5, %v6884_v58  ;;  %2477 = vperm.xlu1 %4933, %v6884_v58  }
 0x495   : > { %v2363_v11 = vpop.xlane.xlu0 %2362 }
 0x496   : > { %v6894_v33 = vmax.f32 %v6891_v32, %v2363_v11 }
 0x498   : > { %3012 = vst.msk [vmem:[#allocation2 + $0x48] sm:$0xff] %vm2648_vm5, %v6894_v33 }
 0x499   : > { %v2367_v51 = vpop.xlane.xlu0 %2366 }
 0x49a   : > { %v6901_v53 = vmax.f32 %v6898_v27, %v2367_v51 }
 0x49c   : > { %3014 = vst.msk [vmem:[#allocation2 + $0x58] sm:$0xff] %vm2648_vm5, %v6901_v53 }
 0x49d   : > { %v2371_v58 = vpop.xlane.xlu0 %2370 }
 0x49e   : > { %v6908_v23 = vmax.f32 %v6905_v61, %v2371_v58 }
 0x4a0   : > { %3016 = vst.msk [vmem:[#allocation2 + $0x68] sm:$0xff] %vm2648_vm5, %v6908_v23 }
 0x4d0   : > { %v4776_v11 = vpop.f32.mrb[0].mxu1 }
 0x4d1   : > { %v2004_v32 = vpop.f32.mrb[1].mxu1  ;;  %2087 = vrot.lane.b32.xlu1 %v4776_v11, %s5443_s26 }
 0x4d2   : > { %v4777_v36 = vpop.f32.mrb[2].mxu1 }
 0x4d3   : > { %v2007_v51 = vpop.f32.mrb[3].mxu1  ;;  %2089 = vrot.lane.b32.xlu0 %v4777_v36, %s5443_s26 }
 0x4d5   : > { %2083 = vrot.lane.b32.xlu1 %v2004_v32, %s5443_s26 }
 0x4d7   : > { %2085 = vrot.lane.b32.xlu0 %v2007_v51, %s5443_s26 }
 0x4d8   : > { %v4780_v27 = vpop.f32.mrb[4].mxu1 }
 0x4d9   : > { %v2020_v14 = vpop.f32.mrb[5].mxu1  ;;  %2095 = vrot.lane.b32.xlu1 %v4780_v27, %s5443_s26 }
 0x4da   : > { %v4781_v58 = vpop.f32.mrb[6].mxu1 }
 0x4db   : > { %v2023_v61 = vpop.f32.mrb[7].mxu1  ;;  %2097 = vrot.lane.b32.xlu0 %v4781_v58, %s5443_s26 }
 0x4dd   : > { %2091 = vrot.lane.b32.xlu1 %v2020_v14, %s5443_s26  ;;  %v6925_v14 = vld [vmem:[#allocation2 + $0x78] sm:$0xff] }
 0x4df   : > { %2093 = vrot.lane.b32.xlu0 %v2023_v61, %s5443_s26 }
 0x4e0   : > { %v4784_v11 = vpop.f32.mrb[8].mxu1 }
 0x4e1   : > { %v2036_v44 = vpop.f32.mrb[9].mxu1  ;;  %2103 = vrot.lane.b32.xlu1 %v4784_v11, %s5443_s26 }
 0x4e2   : > { %v4785_v36 = vpop.f32.mrb[10].mxu1 }
 0x4e3   : > { %v2039_v32 = vpop.f32.mrb[11].mxu1  ;;  %2105 = vrot.lane.b32.xlu0 %v4785_v36, %s5443_s26  ;;  %v5230_v36 = vld [vmem:[%s5571_s9 + $0x8] sm:$0xff] }
 0x4e5   : > { %2099 = vrot.lane.b32.xlu1 %v2036_v44, %s5443_s26 }
 0x4e7   : > { %2101 = vrot.lane.b32.xlu0 %v2039_v32, %s5443_s26 }
 0x4e8   : > { %v4788_v27 = vpop.f32.mrb[12].mxu1 }
 0x4e9   : > { %v2052_v51 = vpop.f32.mrb[13].mxu1  ;;  %2111 = vrot.lane.b32.xlu1 %v4788_v27, %s5443_s26  ;;  %v8367_v27 = vmov 3  }
 0x4ea   : > { %v4789_v58 = vpop.f32.mrb[14].mxu1  ;;  %v2375_v61 = vpop.xlane.xlu0 %2374 }
 0x4eb   : > { %v6928_v15 = vmax.f32 %v6925_v14, %v2375_v61  ;;  %v2055_v11 = vpop.f32.mrb[15].mxu1  ;;  %2113 = vrot.lane.b32.xlu0 %v4789_v58, %s5443_s26 }
 0x4ed   : > { %8547 = vst [vmem:[#allocation13_spill] sm:$0xff] %v6928_v15  ;;  %3018 = vst.msk [vmem:[#allocation2 + $0x78] sm:$0xff] %vm2648_vm5, %v6928_v15  ;;  %2107 = vrot.lane.b32.xlu1 %v2052_v51, %s5443_s26 }
 0x4ef   : > { %2109 = vrot.lane.b32.xlu0 %v2055_v11, %s5443_s26 }
 0x4f1   : > { %2487 = vperm.xlu1 %4933, %v6894_v33  }
 0x4f2   : > { %v2448_v44 = vpop.permute.xlu0 %2447 }
 0x4f3   : > { %2482 = vperm.xlu0 %4934, %v6808_v3   ;;  %v2521_v32 = vsub.f32 %v6657_v8, %v2448_v44  ;;  %v5231_v44 = vld [vmem:[%s5571_s9 + $0x20] sm:$0xff] }
 0x4f5   : > { %2497 = vperm.xlu1 %4933, %v6901_v53   ;;  %v2538_v51 = vmul.f32 1.442695, %v2521_v32 }
 0x4f7   : > { %2492 = vperm.xlu0 %4934, %v6815_v18   ;;  %5077 = vpow2.f32 %v2538_v51 }
 0x4f9   : > { %2507 = vperm.xlu1 %4933, %v6908_v23  }
 0x4fb   : > { %2502 = vperm.xlu0 %4934, %v6822_v19  }
 0x4fd   : > { %2517 = vperm.xlu1 %4933, %v6928_v15  }
 0x4ff   : > { %2512 = vperm.xlu0 %4934, %v6829_v49  }
 0x501   : > { %4935 = vset.pattern.permute.xlu1 %v8367_v27  ;;  %v6953_v8 = vpop.eup %5077 }
 0x502   : > { %3020 = vperm.xlu1 %4935, %v6603_v46  }
 0x503   : > { %v2443_v58 = vpop.permute.xlu1 %2442  ;;  %4936 = vset.pattern.permute.xlu0 %v8367_v27 }
 0x504   : > { %v2520_v61 = vsub.f32 %v6719_v0, %v2443_v58  ;;  %v5232_v0 = vld [vmem:[%s5571_s9 + $0x30] sm:$0xff] }
 0x505   : > { %v5236_v58 = vld [vmem:[%s5571_s9 + $0x70] sm:$0xff] }
 0x506   : > { %v2536_v11 = vmul.f32 1.442695, %v2520_v61  ;;  %3024 = vperm.xlu1 %4935, %v5230_v36   ;;  %v5234_v36 = vld [vmem:[%s5571_s9 + $0x60] sm:$0xff] }
 0x508   : > { %5079 = vpow2.f32 %v2536_v11 }
 0x50a   : > { %3028 = vperm.xlu1 %4935, %v6609_v4   ;;  %v5233_v4 = vld [vmem:[%s5571_s9 + $0x50] sm:$0xff] }
 0x50e   : > { %3032 = vperm.xlu1 %4935, %v6615_v21   ;;  %v6963_v21 = vpop.permute.xlu1 %2452 }
 0x512   : > { %v5080_v46 = vpop.eup %5079  ;;  %3036 = vperm.xlu1 %4935, %v5231_v44   ;;  %v6967_v51 = vpop.permute.xlu1 %2457 }
 0x513   : > { %v2777_v32 = vpack.c.bf16 %v6953_v8, %v5080_v46 }
 0x515   : > { %4806 = vmatprep.mubr.bf16.mxu0 %v2777_v32 }
 0x516   : > { %3040 = vperm.xlu1 %4935, %v6619_v43   ;;  %v5235_v43 = vld [vmem:[%s5571_s9 + $0x40] sm:$0xff]  ;;  %v6971_v61 = vpop.permute.xlu1 %2467 }
 0x51a   : > { %3044 = vperm.xlu1 %4935, %v5232_v0  }
 0x51e   : > { %2600 = vadd.xlane.f32.xlu0 %v5080_v46  ;;  %3048 = vperm.xlu1 %4935, %v6625_v31   ;;  %v6974_v31 = vpop.permute.xlu0 %2462 }
 0x522   : > { %3056 = vperm.xlu1 %4935, %v6631_v48   ;;  %v6976_v48 = vpop.permute.xlu1 %2477  ;;  %v6978_v11 = vpop.permute.xlu0 %2472 }
 0x526   : > { %3060 = vperm.xlu1 %4935, %v5233_v4   ;;  %v1826_v4 = vld [vmem:[#allocation4] sm:$0xff] }
 0x52a   : > { %3064 = vperm.xlu1 %4935, %v6635_v9   ;;  %v1828_v9 = vld [vmem:[#allocation4 + $0x10] sm:$0xff] }
 0x52b   : > { %v1924_v46 = vmul.f32 %v6687_v26, %v1828_v9  ;;  %v1832_v9 = vld [vmem:[#allocation4 + $0x30] sm:$0xff] }
 0x52c   : > { %v1928_v15 = vmul.f32 %v6696_v45, %v1832_v9  ;;  %v1834_v9 = vld [vmem:[#allocation4 + $0x40] sm:$0xff] }
 0x52e   : > { %3068 = vperm.xlu1 %4935, %v5234_v36  }
 0x532   : > { %3072 = vperm.xlu1 %4935, %v6641_v12   ;;  %v1829_v12 = vld [vmem:[#allocation4 + $0x18] sm:$0xff] }
 0x533   : > { %v1925_v32 = vmul.f32 %v6582_v6, %v1829_v12 }
 0x534   : > { %3052 = vperm.xlu0 %4936, %v5235_v43   ;;  %v1922_v43 = vmul.f32 %v6579_v60, %v1826_v4  ;;  %v1831_v4 = vld [vmem:[#allocation4 + $0x28] sm:$0xff] }
 0x535   : > { %v1927_v45 = vmul.f32 %v6585_v41, %v1831_v4  ;;  %v1930_v41 = vmul.f32 %v6698_v10, %v1834_v9 }
 0x536   : > { %3076 = vperm.xlu1 %4935, %v5236_v58   ;;  %v1827_v58 = vld [vmem:[#allocation4 + $0x8] sm:$0xff] }
 0x537   : > { %v1923_v49 = vmul.f32 %v6681_v50, %v1827_v58 }
 0x53a   : > { %3080 = vperm.xlu1 %4935, %v6705_v22  }
 0x543   : > { %v2088_v44 = vpop.permute.xlu1 %2087 }
 0x544   : > { %v2133_v0 = vadd.f32 %v2088_v44, %v1924_v46  ;;  %v1833_v46 = vld [vmem:[#allocation4 + $0x38] sm:$0xff] }
 0x545   : > { %v2090_v36 = vpop.permute.xlu0 %2089  ;;  %v1929_v60 = vmul.f32 %v6587_v62, %v1833_v46 }
 0x546   : > { %2150 = vst.msk [vmem:[#allocation4 + $0x10] sm:$0xff] %vm2147_vm7, %v2133_v0  ;;  %v2134_v22 = vadd.f32 %v2090_v36, %v1925_v32  ;;  %v1830_v32 = vld [vmem:[#allocation4 + $0x20] sm:$0xff] }
 0x547   : > { %v2084_v27 = vpop.permute.xlu1 %2083  ;;  %v1926_v50 = vmul.f32 %v6693_v24, %v1830_v32  ;;  %v1840_v32 = vld [vmem:[#allocation4 + $0x70] sm:$0xff] }
 0x548   : > { %2151 = vst.msk [vmem:[#allocation4 + $0x18] sm:$0xff] %vm2147_vm7, %v2134_v22  ;;  %v2131_v26 = vadd.f32 %v2084_v27, %v1922_v43  ;;  %v1837_v22 = vld [vmem:[#allocation4 + $0x58] sm:$0xff] }
 0x549   : > { %v2086_v19 = vpop.permute.xlu0 %2085  ;;  %v1933_v24 = vmul.f32 %v6598_v2, %v1837_v22  ;;  %v1936_v2 = vmul.f32 %v6708_v1, %v1840_v32 }
 0x54a   : > { %2148 = vst.msk [vmem:[#allocation4] sm:$0xff] %vm2147_vm7, %v2131_v26  ;;  %v2132_v6 = vadd.f32 %v2086_v19, %v1923_v49  ;;  %v1836_v19 = vld [vmem:[#allocation4 + $0x50] sm:$0xff] }
 0x54b   : > { %v2096_v12 = vpop.permute.xlu1 %2095  ;;  %v1932_v62 = vmul.f32 %v6700_v63, %v1836_v19 }
 0x54c   : > { %2149 = vst.msk [vmem:[#allocation4 + $0x8] sm:$0xff] %vm2147_vm7, %v2132_v6  ;;  %v2137_v44 = vadd.f32 %v2096_v12, %v1928_v15  ;;  %v1835_v12 = vld [vmem:[#allocation4 + $0x48] sm:$0xff] }
 0x54d   : > { %v2098_v0 = vpop.permute.xlu0 %2097  ;;  %v1931_v63 = vmul.f32 %v6594_v37, %v1835_v12 }
 0x54e   : > { %2154 = vst.msk [vmem:[#allocation4 + $0x30] sm:$0xff] %vm2147_vm7, %v2137_v44  ;;  %v2138_v27 = vadd.f32 %v2098_v0, %v1929_v60 }
 0x54f   : > { %v2092_v36 = vpop.permute.xlu1 %2091 }
 0x550   : > { %2155 = vst.msk [vmem:[#allocation4 + $0x38] sm:$0xff] %vm2147_vm7, %v2138_v27  ;;  %v2135_v49 = vadd.f32 %v2092_v36, %v1926_v50  ;;  %v1841_v27 = vld [vmem:[#allocation4 + $0x78] sm:$0xff] }
 0x551   : > { %v2094_v43 = vpop.permute.xlu0 %2093  ;;  %v1937_v10 = vmul.f32 %v6612_v54, %v1841_v27 }
 0x552   : > { %2152 = vst.msk [vmem:[#allocation4 + $0x20] sm:$0xff] %vm2147_vm7, %v2135_v49  ;;  %v2136_v15 = vadd.f32 %v2094_v43, %v1927_v45  ;;  %v1838_v45 = vld [vmem:[#allocation4 + $0x60] sm:$0xff]  ;;  %v1839_v43 = vld [vmem:[#allocation4 + $0x68] sm:$0xff] }
 0x553   : > { %v2104_v58 = vpop.permute.xlu1 %2103  ;;  %v1934_v37 = vmul.f32 %v6702_v25, %v1838_v45  ;;  %v1935_v1 = vmul.f32 %v6606_v42, %v1839_v43 }
 0x554   : > { %2153 = vst.msk [vmem:[#allocation4 + $0x28] sm:$0xff] %vm2147_vm7, %v2136_v15  ;;  %v2141_v26 = vadd.f32 %v2104_v58, %v1932_v62 }
 0x555   : > { %v2106_v6 = vpop.permute.xlu0 %2105 }
 0x556   : > { %2158 = vst.msk [vmem:[#allocation4 + $0x50] sm:$0xff] %vm2147_vm7, %v2141_v26  ;;  %v2142_v46 = vadd.f32 %v2106_v6, %v1933_v24  ;;  %v3085_v26 = vsub.s32 3, %v8491_v52 }
 0x557   : > { %v2100_v60 = vpop.permute.xlu1 %2099 }
 0x558   : > { %2159 = vst.msk [vmem:[#allocation4 + $0x58] sm:$0xff] %vm2147_vm7, %v2142_v46  ;;  %v2139_v44 = vadd.f32 %v2100_v60, %v1930_v41  ;;  %v7022_v42 = vrot.slane %v6648_v55, %v3085_v26 }
 0x559   : > { %v2102_v0 = vpop.permute.xlu0 %2101 }
 0x55a   : > { %2156 = vst.msk [vmem:[#allocation4 + $0x40] sm:$0xff] %vm2147_vm7, %v2139_v44  ;;  %v2140_v50 = vadd.f32 %v2102_v0, %v1931_v63 }
 0x55b   : > { %v2112_v4 = vpop.permute.xlu1 %2111 }
 0x55c   : > { %2157 = vst.msk [vmem:[#allocation4 + $0x48] sm:$0xff] %vm2147_vm7, %v2140_v50  ;;  %v2145_v36 = vadd.f32 %v2112_v4, %v1936_v2 }
 0x55d   : > { %v2114_v49 = vpop.permute.xlu0 %2113 }
 0x55e   : > { %2162 = vst.msk [vmem:[#allocation4 + $0x70] sm:$0xff] %vm2147_vm7, %v2145_v36  ;;  %v2146_v19 = vadd.f32 %v2114_v49, %v1937_v10 }
 0x55f   : > { %v2108_v62 = vpop.permute.xlu1 %2107 }
 0x560   : > { %2163 = vst.msk [vmem:[#allocation4 + $0x78] sm:$0xff] %vm2147_vm7, %v2146_v19  ;;  %v2143_v15 = vadd.f32 %v2108_v62, %v1934_v37 }
 0x561   : > { %v2110_v22 = vpop.permute.xlu0 %2109 }
 0x562   : > { %2160 = vst.msk [vmem:[#allocation4 + $0x60] sm:$0xff] %vm2147_vm7, %v2143_v15  ;;  %v2144_v54 = vadd.f32 %v2110_v22, %v1935_v1 }
 0x564   : > { %2161 = vst.msk [vmem:[#allocation4 + $0x68] sm:$0xff] %vm2147_vm7, %v2144_v54  ;;  %v8548_v54 = vsub.f32 %v6841_v40, %v6844_v39 }
 0x570   : > { %v7012_v58 = vpop.permute.xlu1 %2487 }
 0x572   : > { %v7044_v43 = vpop.permute.xlu0 %2482 }
 0x574   : > { %v7014_v24 = vpop.permute.xlu1 %2497 }
 0x578   : > { %v7016_v25 = vpop.permute.xlu1 %2507 }
 0x57c   : > { %v7019_v9 = vpop.permute.xlu1 %2517 }
 0x581   : > { %v3021_v6 = vpop.permute.xlu1 %3020 }
 0x582   : > { %v3087_v41 = vadd.f32 %v7022_v42, %v3021_v6 }
 0x584   : > { %vm3103_vm8 = vcmp.gt.f32.partialorder %v3087_v41, 0.0  ;;  %v3119_v46 = vmul.f32 0.2, %v3087_v41 }
 0x585   : > { %v3025_v12 = vpop.permute.xlu1 %3024 }
 0x586   : > { %v3088_v60 = vadd.f32 %v7022_v42, %v3025_v12  ;;  %v3135_v63 = vsel %vm3103_vm8, %v3087_v41, %v3119_v46  ;;  %v7056_v46 = vpop.permute.xlu0 %2492 }
 0x587   : > { %v7027_v44 = vadd.f32 %v8505_v47, %v3135_v63 }
 0x588   : > { %vm3104_vm9 = vcmp.gt.f32.partialorder %v3088_v60, 0.0  ;;  %v3120_v32 = vmul.f32 0.2, %v3088_v60 }
 0x589   : > { %3183 = vmax.xlane.f32.xlu1 %v7027_v44  ;;  %v3029_v52 = vpop.permute.xlu1 %3028 }
 0x58a   : > { %v3089_v55 = vadd.f32 %v7022_v42, %v3029_v52  ;;  %v3136_v0 = vsel %vm3104_vm9, %v3088_v60, %v3120_v32  ;;  %v7066_v52 = vpop.permute.xlu0 %2502 }
 0x58b   : > { %v7032_v2 = vadd.f32 %v8492_v57, %v3136_v0 }
 0x58c   : > { %vm3105_vm10 = vcmp.gt.f32.partialorder %v3089_v55, 0.0  ;;  %v3121_v50 = vmul.f32 0.2, %v3089_v55 }
 0x58d   : > { %3185 = vmax.xlane.f32.xlu0 %v7032_v2  ;;  %v3033_v27 = vpop.permute.xlu1 %3032 }
 0x58e   : > { %v3090_v4 = vadd.f32 %v7022_v42, %v3033_v27  ;;  %v3137_v47 = vsel %vm3105_vm10, %v3089_v55, %v3121_v50  ;;  %vm3487_vm10 = vcmask 31768  }
 0x58f   : > { %v7037_v10 = vadd.f32 %v8506_v35, %v3137_v47 }
 0x590   : > { %vm3106_vm11 = vcmp.gt.f32.partialorder %v3090_v4, 0.0  ;;  %v3122_v36 = vmul.f32 0.2, %v3090_v4 }
 0x591   : > { %3187 = vmax.xlane.f32.xlu1 %v7037_v10  ;;  %v3037_v45 = vpop.permute.xlu1 %3036 }
 0x592   : > { %v3091_v49 = vadd.f32 %v7022_v42, %v3037_v45  ;;  %v3138_v57 = vsel %vm3106_vm11, %v3090_v4, %v3122_v36  ;;  %v7076_v36 = vpop.permute.xlu0 %2512  ;;  %vm3825_vm11 = vcmask 261312  }
 0x593   : > { %v7042_v37 = vadd.f32 %v8508_v7, %v3138_v57  ;;  %v2408_v7 = vmul.f32 1.442695, %v8548_v54  ;;  %v2568_v57 = vld [vmem:[#allocation3] sm:$0xff] }
 0x594   : > { %vm3107_vm12 = vcmp.gt.f32.partialorder %v3091_v49, 0.0  ;;  %v3123_v19 = vmul.f32 0.2, %v3091_v49 }
 0x595   : > { %3189 = vmax.xlane.f32.xlu1 %v7042_v37  ;;  %v3041_v62 = vpop.permute.xlu1 %3040  ;;  %5081 = vpow2.f32 %v2408_v7 }
 0x596   : > { %v3092_v35 = vadd.f32 %v7022_v42, %v3041_v62  ;;  %v3139_v1 = vsel %vm3107_vm12, %v3091_v49, %v3123_v19  ;;  %vm4310_vm12 = vcmask (!%p4586_p0), 130048  }
 0x597   : > { %v7049_v15 = vadd.f32 %v8493_v56, %v3139_v1 }
 0x598   : > { %vm3108_vm13 = vcmp.gt.f32.partialorder %v3092_v35, 0.0  ;;  %v3124_v22 = vmul.f32 0.2, %v3092_v35 }
 0x599   : > { %3191 = vmax.xlane.f32.xlu1 %v7049_v15  ;;  %v3045_v26 = vpop.permute.xlu1 %3044 }
 0x59a   : > { %v3093_v6 = vadd.f32 %v7022_v42, %v3045_v26  ;;  %v3140_v41 = vsel %vm3108_vm13, %v3092_v35, %v3124_v22  ;;  %vm4327_vm13 = vcmask (!%p4586_p0), 195584  }
 0x59b   : > { %v7059_v12 = vadd.f32 %v8512_v13, %v3140_v41 }
 0x59c   : > { %vm3109_vm14 = vcmp.gt.f32.partialorder %v3093_v6, 0.0  ;;  %v3125_v56 = vmul.f32 0.2, %v3093_v6 }
 0x59d   : > { %3193 = vmax.xlane.f32.xlu0 %v7059_v12  ;;  %v3049_v60 = vpop.permute.xlu1 %3048 }
 0x59e   : > { %v3094_v39 = vadd.f32 %v7022_v42, %v3049_v60  ;;  %v3141_v40 = vsel %vm3109_vm14, %v3093_v6, %v3125_v56  ;;  %vm4431_vm14 = vcmask (!%p4586_p0), 257024  }
 0x59f   : > { %v7064_v63 = vadd.f32 %v8495_v20, %v3141_v40  ;;  %v7074_v47 = vpop.eup %5081 }
 0x5a0   : > { %vm3110_vm15 = vcmp.gt.f32.partialorder %v3094_v39, 0.0  ;;  %v3126_v32 = vmul.f32 0.2, %v3094_v39  ;;  %v2584_v19 = vmul.f32 %v7074_v47, %v2568_v57 }
 0x5a1   : > { %3195 = vmax.xlane.f32.xlu1 %v7064_v63  ;;  %v3057_v13 = vpop.permute.xlu1 %3056 }
 0x5a2   : > { %v3096_v55 = vadd.f32 %v7022_v42, %v3057_v13  ;;  %v3142_v0 = vsel %vm3110_vm15, %v3094_v39, %v3126_v32 }
 0x5a3   : > { %v7071_v50 = vadd.f32 %v8513_v38, %v3142_v0 }
 0x5a4   : > { %vm3112_vm0 = vcmp.gt.f32.partialorder %v3096_v55, 0.0  ;;  %v3128_v27 = vmul.f32 0.2, %v3096_v55 }
 0x5a5   : > { %3197 = vmax.xlane.f32.xlu0 %v7071_v50  ;;  %v3061_v4 = vpop.permute.xlu1 %3060 }
 0x5a6   : > { %v3144_v20 = vsel %vm3112_vm0, %v3096_v55, %v3128_v27 }
 0x5a7   : > { %v7079_v45 = vadd.f32 %v8516_v30, %v3144_v20  ;;  %v3097_v30 = vadd.f32 %v7022_v42, %v3061_v4  ;;  %v8549_v4 = vld [vmem:[#allocation15_spill] sm:$0xff] }
 0x5a9   : > { %3201 = vmax.xlane.f32.xlu0 %v7079_v45  ;;  %v3065_v49 = vpop.permute.xlu1 %3064  ;;  %v3129_v39 = vmul.f32 0.2, %v3097_v30  ;;  %vm3113_vm6 = vcmp.gt.f32.partialorder %v3097_v30, 0.0 }
 0x5aa   : > { %v3098_v38 = vadd.f32 %v7022_v42, %v3065_v49 }
 0x5ab   : > { %v2601_v62 = vpop.xlane.xlu0 %2600 }
 0x5ac   : > { %vm3114_vm1 = vcmp.gt.f32.partialorder %v3098_v38, 0.0  ;;  %v3130_v35 = vmul.f32 0.2, %v3098_v38  ;;  %v2632_v1 = vadd.f32 %v2601_v62, %v2584_v19  ;;  %v3145_v19 = vsel %vm3113_vm6, %v3097_v30, %v3129_v39  ;;  %v8550_v62 = vld [vmem:[#allocation17_spill] sm:$0xff]  ;;  %v8551_v30 = vld [vmem:[#allocation19_spill] sm:$0xff] }
 0x5ad   : > { %v3069_v22 = vpop.permute.xlu1 %3068  ;;  %v5239_v39 = vld [vmem:[%s5586_s29 + $0x10] sm:$0xff]  }
 0x5ae   : > { %2649 = vst.msk [vmem:[#allocation3] sm:$0xff] %vm2648_vm5, %v2632_v1  ;;  %v3146_v54 = vsel %vm3114_vm1, %v3098_v38, %v3130_v35  ;;  %v3099_v32 = vadd.f32 %v7022_v42, %v3069_v22  ;;  %v7104_v35 = vadd.f32 %v8550_v62, %v3145_v19  ;;  %v5242_v19 = vld [vmem:[%s5586_s29 + $0x28] sm:$0xff]  }
 0x5af   : > { %v7086_v7 = vadd.f32 %v8517_v29, %v3146_v54 }
 0x5b0   : > { %v3131_v49 = vmul.f32 0.2, %v3099_v32  ;;  %vm3115_vm7 = vcmp.gt.f32.partialorder %v3099_v32, 0.0 }
 0x5b1   : > { %3205 = vmax.xlane.f32.xlu0 %v7086_v7  ;;  %v3073_v26 = vpop.permute.xlu1 %3072 }
 0x5b2   : > { %v3100_v6 = vadd.f32 %v7022_v42, %v3073_v26  ;;  %v3147_v54 = vsel %vm3115_vm7, %v3099_v32, %v3131_v49  ;;  %v5241_v32 = vld [vmem:[%s5586_s29 + $0x20] sm:$0xff]  }
 0x5b3   : > { %v3053_v41 = vpop.permute.xlu0 %3052  ;;  %v7112_v26 = vadd.f32 %v8551_v30, %v3147_v54  ;;  %v7163_v54 = vld [vmem:[#allocation2 + $0x18] sm:$0xff] }
 0x5b4   : > { %vm3116_vm2 = vcmp.gt.f32.partialorder %v3100_v6, 0.0  ;;  %v3132_v56 = vmul.f32 0.2, %v3100_v6  ;;  %v3095_v60 = vadd.f32 %v7022_v42, %v3053_v41  ;;  %v8552_v41 = vld [vmem:[#allocation21_spill] sm:$0xff] }
 0x5b5   : > { %v3077_v40 = vpop.permute.xlu1 %3076 }
 0x5b6   : > { %vm3111_vm3 = vcmp.gt.f32.partialorder %v3095_v60, 0.0  ;;  %v3127_v13 = vmul.f32 0.2, %v3095_v60  ;;  %v3148_v29 = vsel %vm3116_vm2, %v3100_v6, %v3132_v56  ;;  %v3101_v57 = vadd.f32 %v7022_v42, %v3077_v40  ;;  %v5240_v40 = vld [vmem:[%s5586_s29 + $0x18] sm:$0xff]  }
 0x5b7   : > { %v7094_v55 = vadd.f32 %v8520_v28, %v3148_v29 }
 0x5b8   : > { %v3143_v0 = vsel %vm3111_vm3, %v3095_v60, %v3127_v13  ;;  %v3133_v1 = vmul.f32 0.2, %v3101_v57  ;;  %vm3117_vm9 = vcmp.gt.f32.partialorder %v3101_v57, 0.0  ;;  %v5237_v60 = vld [vmem:[%s5586_s29 + $0x8] sm:$0xff]   ;;  %v7131_v13 = vld [vmem:[#allocation2] sm:$0xff] }
 0x5b9   : > { %3209 = vmax.xlane.f32.xlu0 %v7094_v55  ;;  %v3081_v27 = vpop.permute.xlu1 %3080  ;;  %v7098_v20 = vadd.f32 %v8549_v4, %v3143_v0  ;;  %v7141_v4 = vld [vmem:[#allocation2 + $0x8] sm:$0xff] }
 0x5ba   : > { %v3102_v38 = vadd.f32 %v7022_v42, %v3081_v27  ;;  %v3149_v6 = vsel %vm3117_vm9, %v3101_v57, %v3133_v1 }
 0x5bb   : > { %3199 = vmax.xlane.f32.xlu1 %v7098_v20  ;;  %v7116_v56 = vadd.f32 %v8552_v41, %v3149_v6 }
 0x5bc   : > { %vm3118_vm8 = vcmp.gt.f32.partialorder %v3102_v38, 0.0  ;;  %v3134_v28 = vmul.f32 0.2, %v3102_v38 }
 0x5be   : > { %v3150_v22 = vsel %vm3118_vm8, %v3102_v38, %v3134_v28  ;;  %v7153_v28 = vld [vmem:[#allocation2 + $0x10] sm:$0xff] }
 0x5bf   : > { %3203 = vmax.xlane.f32.xlu1 %v7104_v35  ;;  %v7108_v42 = vadd.f32 %v8534_v5, %v3150_v22  ;;  %v5238_v5 = vld [vmem:[%s5586_s29] sm:$0xff]   ;;  %v7200_v38 = vld [vmem:[#allocation2 + $0x30] sm:$0xff]  ;;  %v7212_v22 = vld [vmem:[#allocation2 + $0x38] sm:$0xff] }
 0x5c0   : > { %8556 = vst [vmem:[#allocation14_spill] sm:$0xff] %v7200_v38  ;;  %8558 = vst [vmem:[#allocation18_spill] sm:$0xff] %v7212_v22 }
 0x5c1   : > { %3213 = vmax.xlane.f32.xlu0 %v7108_v42 }
 0x5c3   : > { %3207 = vmax.xlane.f32.xlu1 %v7112_v26 }
 0x5c7   : > { %3211 = vmax.xlane.f32.xlu1 %v7116_v56 }
 0x5d7   : > { %2787 = vrot.lane.b32.xlu0 %v5237_v60, %s5445_s17 }
 0x5d8   : > { %2785 = vrot.lane.b32.xlu1 %v5238_v5, %s5445_s17 }
 0x5db   : > { %3624 = vrot.lane.b32.xlu0 %v5238_v5, %s5446_s27 }
 0x5dc   : > { %2789 = vrot.lane.b32.xlu1 %v5239_v39, %s5445_s17 }
 0x5df   : > { %3626 = vrot.lane.b32.xlu0 %v5237_v60, %s5446_s27  ;;  %v7174_v60 = vld [vmem:[#allocation2 + $0x20] sm:$0xff] }
 0x5e0   : > { %2791 = vrot.lane.b32.xlu1 %v5240_v40, %s5445_s17 }
 0x5e4   : > { %2793 = vrot.lane.b32.xlu1 %v5241_v32, %s5445_s17 }
 0x616   : > { %v3184_v29 = vpop.xlane.xlu1 %3183 }
 0x617   : > { %v7134_v0 = vmax.f32 %v7131_v13, %v3184_v29 }
 0x619   : > { %3842 = vst.msk [vmem:[#allocation2] sm:$0xff] %vm3487_vm10, %v7134_v0  ;;  %3281 = vperm.xlu1 %4935, %v7134_v0  }
 0x61a   : > { %v3186_v49 = vpop.xlane.xlu0 %3185 }
 0x61b   : > { %v7144_v57 = vmax.f32 %v7141_v4, %v3186_v49  ;;  %v5244_v49 = vld [vmem:[%s5586_s29 + $0x38] sm:$0xff]  }
 0x61d   : > { %3843 = vst.msk [vmem:[#allocation2 + $0x8] sm:$0xff] %vm3487_vm10, %v7144_v57  ;;  %3286 = vperm.xlu0 %4936, %v7144_v57   ;;  %2795 = vrot.lane.b32.xlu1 %v5242_v19, %s5445_s17 }
 0x61e   : > { %v3188_v62 = vpop.xlane.xlu1 %3187 }
 0x61f   : > { %v7156_v1 = vmax.f32 %v7153_v28, %v3188_v62  ;;  %v7184_v62 = vld [vmem:[%s5586_s29 + $0x30] sm:$0xff]  }
 0x621   : > { %3844 = vst.msk [vmem:[#allocation2 + $0x10] sm:$0xff] %vm3487_vm10, %v7156_v1  ;;  %3291 = vperm.xlu0 %4936, %v7156_v1  }
 0x622   : > { %v3190_v30 = vpop.xlane.xlu1 %3189 }
 0x623   : > { %v7166_v6 = vmax.f32 %v7163_v54, %v3190_v30 }
 0x625   : > { %3845 = vst.msk [vmem:[#allocation2 + $0x18] sm:$0xff] %vm3487_vm10, %v7166_v6  ;;  %3296 = vperm.xlu1 %4935, %v7166_v6   ;;  %3628 = vrot.lane.b32.xlu0 %v5239_v39, %s5446_s27  ;;  %v7189_v39 = vld [vmem:[#allocation2 + $0x28] sm:$0xff] }
 0x626   : > { %v3192_v5 = vpop.xlane.xlu1 %3191  ;;  %8554 = vst [vmem:[#allocation9_spill] sm:$0xff] %v7189_v39 }
 0x627   : > { %v7177_v29 = vmax.f32 %v7174_v60, %v3192_v5 }
 0x629   : > { %8553 = vst [vmem:[#allocation8_spill] sm:$0xff] %v7177_v29  ;;  %3846 = vst.msk [vmem:[#allocation2 + $0x20] sm:$0xff] %vm3487_vm10, %v7177_v29  ;;  %2797 = vrot.lane.b32.xlu1 %v7184_v62, %s5445_s17  ;;  %3630 = vrot.lane.b32.xlu0 %v5240_v40, %s5446_s27 }
 0x62a   : > { %v3194_v30 = vpop.xlane.xlu0 %3193 }
 0x62b   : > { %v7192_v5 = vmax.f32 %v7189_v39, %v3194_v30  ;;  %v7223_v30 = vld [vmem:[#allocation2 + $0x48] sm:$0xff]  ;;  %v7296_v39 = vld [vmem:[#allocation2 + $0x70] sm:$0xff] }
 0x62c   : > { %8560 = vst [vmem:[#allocation22_spill] sm:$0xff] %v7223_v30  ;;  %8574 = vst [vmem:[#allocation62_spill] sm:$0xff] %v7296_v39 }
 0x62d   : > { %8555 = vst [vmem:[#allocation12_spill] sm:$0xff] %v7192_v5  ;;  %3847 = vst.msk [vmem:[#allocation2 + $0x28] sm:$0xff] %vm3487_vm10, %v7192_v5  ;;  %3301 = vperm.xlu1 %4935, %v7177_v29   ;;  %3306 = vperm.xlu0 %4936, %v7192_v5  }
 0x62e   : > { %v3196_v41 = vpop.xlane.xlu1 %3195 }
 0x62f   : > { %v7203_v40 = vmax.f32 %v7200_v38, %v3196_v41  ;;  %v7234_v41 = vld [vmem:[#allocation2 + $0x58] sm:$0xff] }
 0x630   : > { %8562 = vst [vmem:[#allocation15_spill] sm:$0xff] %v7234_v41 }
 0x631   : > { %8557 = vst [vmem:[#allocation16_spill] sm:$0xff] %v7203_v40  ;;  %3848 = vst.msk [vmem:[#allocation2 + $0x30] sm:$0xff] %vm3487_vm10, %v7203_v40  ;;  %2799 = vrot.lane.b32.xlu1 %v5244_v49, %s5445_s17  ;;  %3311 = vperm.xlu0 %4936, %v7203_v40  }
 0x632   : > { %v3198_v27 = vpop.xlane.xlu0 %3197 }
 0x633   : > { %v7215_v5 = vmax.f32 %v7212_v22, %v3198_v27  ;;  %v7245_v27 = vld [vmem:[#allocation2 + $0x68] sm:$0xff] }
 0x634   : > { %8564 = vst [vmem:[#allocation19_spill] sm:$0xff] %v7245_v27 }
 0x635   : > { %8559 = vst [vmem:[#allocation20_spill] sm:$0xff] %v7215_v5  ;;  %3849 = vst.msk [vmem:[#allocation2 + $0x38] sm:$0xff] %vm3487_vm10, %v7215_v5  ;;  %3316 = vperm.xlu1 %4935, %v7215_v5   ;;  %3632 = vrot.lane.b32.xlu0 %v5241_v32, %s5446_s27 }
 0x636   : > { %v3202_v38 = vpop.xlane.xlu0 %3201 }
 0x637   : > { %v7226_v40 = vmax.f32 %v7223_v30, %v3202_v38  ;;  %v7250_v30 = vld [vmem:[#allocation2 + $0x40] sm:$0xff] }
 0x638   : > { %8566 = vst [vmem:[#allocation54_spill] sm:$0xff] %v7250_v30 }
 0x639   : > { %8561 = vst [vmem:[#allocation23_spill] sm:$0xff] %v7226_v40  ;;  %3851 = vst.msk [vmem:[#allocation2 + $0x48] sm:$0xff] %vm3487_vm10, %v7226_v40  ;;  %3634 = vrot.lane.b32.xlu1 %v5242_v19, %s5446_s27 }
 0x63d   : > { %3326 = vperm.xlu1 %4935, %v7226_v40  }
 0x63e   : > { %v3206_v5 = vpop.xlane.xlu0 %3205 }
 0x63f   : > { %v7237_v32 = vmax.f32 %v7234_v41, %v3206_v5  ;;  %v7280_v41 = vld [vmem:[#allocation2 + $0x60] sm:$0xff] }
 0x640   : > { %8572 = vst [vmem:[#allocation60_spill] sm:$0xff] %v7280_v41 }
 0x641   : > { %8563 = vst [vmem:[#allocation17_spill] sm:$0xff] %v7237_v32  ;;  %3853 = vst.msk [vmem:[#allocation2 + $0x58] sm:$0xff] %vm3487_vm10, %v7237_v32  ;;  %3336 = vperm.xlu1 %4935, %v7237_v32  }
 0x645   : > { %3638 = vrot.lane.b32.xlu1 %v5244_v49, %s5446_s27 }
 0x646   : > { %v3210_v19 = vpop.xlane.xlu0 %3209 }
 0x647   : > { %v7248_v40 = vmax.f32 %v7245_v27, %v3210_v19  ;;  %v7265_v19 = vld [vmem:[#allocation2 + $0x50] sm:$0xff]  ;;  %v7270_v27 = vld [vmem:[#allocation2 + $0x78] sm:$0xff] }
 0x648   : > { %v3200_v5 = vpop.xlane.xlu1 %3199  ;;  %8568 = vst [vmem:[#allocation56_spill] sm:$0xff] %v7265_v19  ;;  %8570 = vst [vmem:[#allocation58_spill] sm:$0xff] %v7270_v27 }
 0x649   : > { %8565 = vst [vmem:[#allocation21_spill] sm:$0xff] %v7248_v40  ;;  %3855 = vst.msk [vmem:[#allocation2 + $0x68] sm:$0xff] %vm3487_vm10, %v7248_v40  ;;  %v7257_v38 = vmax.f32 %v7250_v30, %v3200_v5  ;;  %3346 = vperm.xlu1 %4935, %v7248_v40  }
 0x64b   : > { %8567 = vst [vmem:[#allocation55_spill] sm:$0xff] %v7257_v38  ;;  %3850 = vst.msk [vmem:[#allocation2 + $0x40] sm:$0xff] %vm3487_vm10, %v7257_v38  ;;  %3321 = vperm.xlu0 %4936, %v7257_v38  }
 0x64c   : > { %v3204_v32 = vpop.xlane.xlu1 %3203 }
 0x64d   : > { %v7268_v22 = vmax.f32 %v7265_v19, %v3204_v32 }
 0x64e   : > { %v3214_v5 = vpop.xlane.xlu0 %3213 }
 0x64f   : > { %8569 = vst [vmem:[#allocation57_spill] sm:$0xff] %v7268_v22  ;;  %3852 = vst.msk [vmem:[#allocation2 + $0x50] sm:$0xff] %vm3487_vm10, %v7268_v22  ;;  %v7277_v49 = vmax.f32 %v7270_v27, %v3214_v5  ;;  %3331 = vperm.xlu0 %4936, %v7268_v22  }
 0x650   : > { %v3208_v38 = vpop.xlane.xlu1 %3207 }
 0x651   : > { %8571 = vst [vmem:[#allocation59_spill] sm:$0xff] %v7277_v49  ;;  %3857 = vst.msk [vmem:[#allocation2 + $0x78] sm:$0xff] %vm3487_vm10, %v7277_v49  ;;  %v7287_v30 = vmax.f32 %v7280_v41, %v3208_v38  ;;  %3356 = vperm.xlu1 %4935, %v7277_v49   ;;  %v8576_v38 = vmov 2  }
 0x652   : > { %v2788_v40 = vpop.permute.xlu0 %2787 }
 0x653   : > { %8573 = vst [vmem:[#allocation61_spill] sm:$0xff] %v7287_v30  ;;  %3854 = vst.msk [vmem:[#allocation2 + $0x60] sm:$0xff] %vm3487_vm10, %v7287_v30  ;;  %3636 = vrot.lane.b32.xlu0 %v7184_v62, %s5446_s27 }
 0x654   : > { %v3212_v32 = vpop.xlane.xlu1 %3211 }
 0x655   : > { %v7299_v27 = vmax.f32 %v7296_v39, %v3212_v32  ;;  %4938 = vset.pattern.permute.xlu1 %v8576_v38  ;;  %v8577_v39 = vld [vmem:[#allocation35_spill] sm:$0xff] }
 0x656   : > { %v3625_v22 = vpop.permute.xlu0 %3624 }
 0x657   : > { %8575 = vst [vmem:[#allocation63_spill] sm:$0xff] %v7299_v27  ;;  %3856 = vst.msk [vmem:[#allocation2 + $0x70] sm:$0xff] %vm3487_vm10, %v7299_v27  ;;  %3341 = vperm.xlu0 %4936, %v7287_v30   ;;  %4822 = vmatprep.subr.bf16.mxu1 %v3625_v22  ;;  %v2522_v30 = vsub.f32 %v8577_v39, %v6963_v21  ;;  %v2529_v39 = vsub.f32 %v6758_v17, %v7012_v58  ;;  %v8581_v58 = vld [vmem:[#allocation39_spill] sm:$0xff] }
 0x658   : > { %v2786_v5 = vpop.permute.xlu1 %2785  ;;  %4823 = vmatpush3.bf16.msra.mxu1 %v3625_v22 }
 0x659   : > { %4790 = vmatprep.subr.bf16.mxu0 %v2786_v5  ;;  %v2540_v41 = vmul.f32 1.442695, %v2522_v30  ;;  %v8579_v30 = vld [vmem:[#allocation25_spill] sm:$0xff] }
 0x65a   : > { %4791 = vmatpush3.bf16.msra.mxu0 %v2786_v5  ;;  %v3627_v62 = vpop.permute.xlu0 %3626  ;;  %v2525_v5 = vsub.f32 %v6742_v59, %v6971_v61  ;;  %v2554_v61 = vmul.f32 1.442695, %v2529_v39 }
 0x65b   : > { %3351 = vperm.xlu0 %4936, %v7299_v27   ;;  %4792 = vmatprep.subr.bf16.mxu0 %v2788_v40  ;;  %5083 = vpow2.f32 %v2540_v41  ;;  %v2531_v41 = vsub.f32 %v6763_v16, %v7014_v24  ;;  %v8583_v24 = vld [vmem:[#allocation40_spill] sm:$0xff] }
 0x65c   : > { %v2790_v32 = vpop.permute.xlu1 %2789  ;;  %4824 = vmatprep.subr.bf16.mxu1 %v3627_v62  ;;  %v2546_v27 = vmul.f32 1.442695, %v2525_v5 }
 0x65d   : > { %4825 = vmatpush3.bf16.msra.mxu1 %v3627_v62  ;;  %v2558_v17 = vmul.f32 1.442695, %v2531_v41 }
 0x65e   : > { %4793 = vmatpush3.bf16.msra.mxu0 %v2788_v40  ;;  %v2527_v40 = vsub.f32 %v6747_v34, %v6976_v48  ;;  %5085 = vpow2.f32 %v2546_v27  ;;  %v8580_v34 = vld [vmem:[#allocation33_spill] sm:$0xff] }
 0x65f   : > { %4794 = vmatprep.subr.bf16.mxu0 %v2790_v32  ;;  %4937 = vset.pattern.permute.xlu0 %v8576_v38  ;;  %v8578_v38 = vld [vmem:[#allocation45_spill] sm:$0xff]  ;;  %v2526_v48 = vsub.f32 %v8580_v34, %v6978_v11 }
 0x660   : > { %v2792_v49 = vpop.permute.xlu1 %2791  ;;  %v2523_v62 = vsub.f32 %v8578_v38, %v6967_v51  ;;  %v2550_v21 = vmul.f32 1.442695, %v2527_v40  ;;  %v2535_v40 = vsub.f32 %v8583_v24, %v7019_v9  ;;  %v8585_v9 = vld [vmem:[#allocation31_spill] sm:$0xff]  ;;  %v8590_v24 = vld [vmem:[#allocation42_spill] sm:$0xff] }
 0x661   : > { %v2548_v27 = vmul.f32 1.442695, %v2526_v48 }
 0x662   : > { %4795 = vmatpush3.bf16.msra.mxu0 %v2790_v32  ;;  %v2524_v32 = vsub.f32 %v8579_v30, %v6974_v31  ;;  %v2542_v59 = vmul.f32 1.442695, %v2523_v62  ;;  %5087 = vpow2.f32 %v2550_v21  ;;  %v2533_v31 = vsub.f32 %v8581_v58, %v7016_v25  ;;  %v8584_v25 = vld [vmem:[#allocation36_spill] sm:$0xff] }
 0x663   : > { %4796 = vmatprep.subr.bf16.mxu0 %v2792_v49  ;;  %v2530_v62 = vsub.f32 %v8584_v25, %v7056_v46 }
 0x664   : > { %v2794_v22 = vpop.permute.xlu1 %2793  ;;  %5089 = vpow2.f32 %v2542_v59  ;;  %v2562_v11 = vmul.f32 1.442695, %v2533_v31  ;;  %v8587_v31 = vld [vmem:[#allocation43_spill] sm:$0xff] }
 0x665   : > { %v7325_v51 = vpop.eup %5083  ;;  %5091 = vpow2.f32 %v2554_v61  ;;  %v2556_v30 = vmul.f32 1.442695, %v2530_v62  ;;  %v8586_v61 = vld [vmem:[#allocation41_spill] sm:$0xff] }
 0x666   : > { %4797 = vmatpush3.bf16.msra.mxu0 %v2792_v49  ;;  %v2544_v49 = vmul.f32 1.442695, %v2524_v32  ;;  %v2534_v41 = vsub.f32 %v8586_v61, %v7076_v36 }
 0x667   : > { %4798 = vmatprep.subr.bf16.mxu0 %v2794_v22 }
 0x668   : > { %5093 = vpow2.f32 %v2544_v49  ;;  %v7332_v16 = vpop.eup %5085 }
 0x669   : > { %5095 = vpow2.f32 %v2558_v17 }
 0x66a   : > { %4799 = vmatpush3.bf16.msra.mxu0 %v2794_v22  ;;  %v8582_v22 = vld [vmem:[#allocation28_spill] sm:$0xff]  ;;  %5097 = vpow2.f32 %v2548_v27 }
 0x66b   : > { %v2528_v5 = vsub.f32 %v8582_v22, %v7044_v43  ;;  %5099 = vpow2.f32 %v2562_v11  ;;  %v2566_v43 = vmul.f32 1.442695, %v2535_v40  ;;  %v8588_v27 = vld [vmem:[#allocation52_spill] sm:$0xff] }
 0x66c   : > { %v7340_v21 = vpop.eup %5087  ;;  %v8589_v22 = vsub.f32 %v8587_v31, %v8588_v27  ;;  %v8591_v40 = vld [vmem:[#allocation44_spill] sm:$0xff] }
 0x66d   : > { %v2552_v38 = vmul.f32 1.442695, %v2528_v5 }
 0x66e   : > { %v7342_v39 = vpop.eup %5089  ;;  %v2410_v5 = vmul.f32 1.442695, %v8589_v22 }
 0x66f   : > { %5101 = vpow2.f32 %v2552_v38  ;;  %v7348_v32 = vpop.eup %5091  ;;  %v8592_v38 = vsub.f32 %v8590_v24, %v8591_v40 }
 0x670   : > { %5103 = vpow2.f32 %v2566_v43  ;;  %v8593_v43 = vld [vmem:[#allocation46_spill] sm:$0xff] }
 0x671   : > { %5105 = vpow2.f32 %v2556_v30  ;;  %v2412_v25 = vmul.f32 1.442695, %v8592_v38  ;;  %v8594_v30 = vld [vmem:[#allocation48_spill] sm:$0xff]  ;;  %v8599_v38 = vld [vmem:[#allocation7_spill] sm:$0xff] }
 0x672   : > { %v7350_v59 = vpop.eup %5093 }
 0x673   : > { %v7356_v49 = vpop.eup %5095 }
 0x674   : > { %v7358_v34 = vpop.eup %5097 }
 0x675   : > { %2604 = vadd.xlane.f32.xlu1 %v7325_v51  ;;  %v7362_v48 = vpop.eup %5099 }
 0x679   : > { %2610 = vadd.xlane.f32.xlu1 %v7332_v16  ;;  %v7364_v17 = vpop.eup %5101 }
 0x67a   : > { %2602 = vadd.xlane.f32.xlu0 %v6953_v8  ;;  %v2532_v8 = vsub.f32 %v8585_v9, %v7066_v52  ;;  %v2564_v52 = vmul.f32 1.442695, %v2534_v41  ;;  %v7368_v36 = vpop.eup %5103  ;;  %v8595_v9 = vsub.f32 %v8593_v43, %v8594_v30  ;;  %v8596_v41 = vld [vmem:[#allocation47_spill] sm:$0xff]  ;;  %v8601_v43 = vld [vmem:[#allocation50_spill] sm:$0xff] }
 0x67b   : > { %v7370_v58 = vpop.eup %5105 }
 0x67c   : > { %v2560_v46 = vmul.f32 1.442695, %v2532_v8  ;;  %v2414_v8 = vmul.f32 1.442695, %v8595_v9 }
 0x67d   : > { %2614 = vadd.xlane.f32.xlu1 %v7340_v21 }
 0x67e   : > { %2606 = vadd.xlane.f32.xlu0 %v7342_v39  ;;  %5107 = vpow2.f32 %v2560_v46 }
 0x67f   : > { %5109 = vpow2.f32 %v2564_v52  ;;  %v8597_v52 = vld [vmem:[#allocation53_spill] sm:$0xff] }
 0x680   : > { %5111 = vpow2.f32 %v2410_v5  ;;  %v8598_v31 = vsub.f32 %v8596_v41, %v8597_v52 }
 0x681   : > { %2618 = vadd.xlane.f32.xlu1 %v7348_v32  ;;  %5113 = vpow2.f32 %v2412_v25  ;;  %v2401_v25 = vsub.f32 %v8599_v38, %v6894_v33  ;;  %v8603_v33 = vld [vmem:[#allocation10_spill] sm:$0xff] }
 0x682   : > { %2608 = vadd.xlane.f32.xlu0 %v7350_v59  ;;  %v2416_v27 = vmul.f32 1.442695, %v8598_v31  ;;  %5115 = vpow2.f32 %v2414_v8  ;;  %v2403_v52 = vsub.f32 %v8603_v33, %v6901_v53  ;;  %v8605_v31 = vld [vmem:[#allocation27_spill] sm:$0xff]  ;;  %v8608_v53 = vld [vmem:[#allocation29_spill] sm:$0xff] }
 0x683   : > { %v2426_v41 = vmul.f32 1.442695, %v2401_v25  ;;  %v8607_v25 = vld [vmem:[#allocation11_spill] sm:$0xff] }
 0x684   : > { %5117 = vpow2.f32 %v2416_v27  ;;  %v2430_v38 = vmul.f32 1.442695, %v2403_v52 }
 0x685   : > { %2622 = vadd.xlane.f32.xlu1 %v7356_v49 }
 0x686   : > { %2612 = vadd.xlane.f32.xlu0 %v7358_v34 }
 0x688   : > { %v7377_v11 = vpop.eup %5107 }
 0x689   : > { %2626 = vadd.xlane.f32.xlu1 %v7362_v48  ;;  %v7383_v62 = vpop.eup %5109 }
 0x68a   : > { %2616 = vadd.xlane.f32.xlu0 %v7364_v17  ;;  %v7393_v40 = vpop.eup %5111 }
 0x68d   : > { %2630 = vadd.xlane.f32.xlu1 %v7368_v36 }
 0x68e   : > { %2620 = vadd.xlane.f32.xlu0 %v7370_v58 }
 0x692   : > { %2624 = vadd.xlane.f32.xlu0 %v7377_v11 }
 0x696   : > { %2628 = vadd.xlane.f32.xlu0 %v7383_v62 }
 0x698   : > { %v3282_v46 = vpop.permute.xlu1 %3281 }
 0x699   : > { %v3359_v61 = vsub.f32 %v7027_v44, %v3282_v46  ;;  %v8600_v44 = vld [vmem:[#allocation49_spill] sm:$0xff] }
 0x69a   : > { %v8602_v30 = vsub.f32 %v8600_v44, %v8601_v43  ;;  %v2405_v44 = vsub.f32 %v8607_v25, %v6908_v23  ;;  %v2400_v43 = vsub.f32 %v8608_v53, %v6808_v3 }
 0x69b   : > { %v3375_v22 = vmul.f32 1.442695, %v3359_v61  ;;  %v7404_v61 = vpop.eup %5113 }
 0x69c   : > { %v2796_v5 = vpop.permute.xlu1 %2795  ;;  %v3287_v24 = vpop.permute.xlu0 %3286  ;;  %v2418_v9 = vmul.f32 1.442695, %v8602_v30  ;;  %v8609_v30 = vld [vmem:[#allocation51_spill] sm:$0xff]  ;;  %v2424_v3 = vmul.f32 1.442695, %v2400_v43 }
 0x69d   : > { %v3360_v19 = vsub.f32 %v7032_v2, %v3287_v24  ;;  %4800 = vmatprep.subr.bf16.mxu0 %v2796_v5  ;;  %5119 = vpow2.f32 %v3375_v22  ;;  %v8604_v2 = vld [vmem:[#allocation26_spill] sm:$0xff]  ;;  %v7414_v22 = vpop.eup %5115 }
 0x69e   : > { %2688 = vperm.xlu1 %4938, %v7393_v40   ;;  %4801 = vmatpush3.bf16.msra.mxu0 %v2796_v5  ;;  %v8606_v27 = vsub.f32 %v8604_v2, %v8605_v31 }
 0x69f   : > { %v3377_v8 = vmul.f32 1.442695, %v3360_v19 }
 0x6a0   : > { %v7402_v46 = vpop.permute.xlu0 %3291  ;;  %v2420_v5 = vmul.f32 1.442695, %v8606_v27  ;;  %v7424_v27 = vpop.eup %5117 }
 0x6a1   : > { %5121 = vpow2.f32 %v3377_v8 }
 0x6a2   : > { %2693 = vperm.xlu1 %4938, %v7404_v61   ;;  %5123 = vpow2.f32 %v2418_v9  ;;  %v8610_v9 = vld [vmem:[#allocation24_spill] sm:$0xff] }
 0x6a3   : > { %5125 = vpow2.f32 %v2426_v41  ;;  %v8611_v8 = vsub.f32 %v8609_v30, %v8610_v9  ;;  %v2434_v41 = vmul.f32 1.442695, %v2405_v44  ;;  %v8613_v30 = vld [vmem:[#allocation13_spill] sm:$0xff] }
 0x6a4   : > { %v7412_v24 = vpop.permute.xlu1 %3296  ;;  %v3629_v19 = vpop.permute.xlu0 %3628  ;;  %5127 = vpow2.f32 %v2420_v5  ;;  %v8612_v5 = vld [vmem:[#allocation30_spill] sm:$0xff]  ;;  %v8614_v43 = vsub.f32 %v6925_v14, %v8613_v30 }
 0x6a5   : > { %4826 = vmatprep.subr.bf16.mxu1 %v3629_v19  ;;  %v2422_v33 = vmul.f32 1.442695, %v8611_v8  ;;  %5129 = vpow2.f32 %v2430_v38 }
 0x6a6   : > { %2698 = vperm.xlu1 %4938, %v7414_v22   ;;  %4827 = vmatpush3.bf16.msra.mxu1 %v3629_v19  ;;  %v2402_v19 = vsub.f32 %v8612_v5, %v6815_v18  ;;  %v2438_v9 = vmul.f32 1.442695, %v8614_v43  ;;  %v2778_v43 = vpack.c.bf16 %v7342_v39, %v7325_v51 }
 0x6a7   : > { %v7426_v23 = vpop.eup %5119  ;;  %5131 = vpow2.f32 %v2422_v33  ;;  %v8616_v33 = vld [vmem:[#allocation32_spill] sm:$0xff] }
 0x6a8   : > { %v2798_v2 = vpop.permute.xlu1 %2797  ;;  %v3631_v31 = vpop.permute.xlu0 %3630  ;;  %5133 = vpow2.f32 %v2434_v41  ;;  %v2428_v8 = vmul.f32 1.442695, %v2402_v19  ;;  %v8617_v19 = vld [vmem:[#allocation38_spill] sm:$0xff] }
 0x6a9   : > { %4802 = vmatprep.subr.bf16.mxu0 %v2798_v2  ;;  %4828 = vmatprep.subr.bf16.mxu1 %v3631_v31  ;;  %5135 = vpow2.f32 %v2424_v3 }
 0x6aa   : > { %2703 = vperm.xlu1 %4938, %v7424_v27   ;;  %4803 = vmatpush3.bf16.msra.mxu0 %v2798_v2  ;;  %5137 = vpow2.f32 %v2438_v9  ;;  %v2779_v9 = vpack.c.bf16 %v7332_v16, %v7350_v59  ;;  %v2780_v59 = vpack.c.bf16 %v7340_v21, %v7358_v34  ;;  %v3362_v21 = vsub.f32 %v7042_v37, %v7412_v24 }
 0x6ab   : > { %v7429_v52 = vpop.eup %5121  ;;  %4829 = vmatpush3.bf16.msra.mxu1 %v3631_v31  ;;  %5139 = vpow2.f32 %v2428_v8  ;;  %v2782_v34 = vpack.c.bf16 %v7356_v49, %v7370_v58 }
 0x6ac   : > { %v7433_v25 = vpop.permute.xlu1 %3301  ;;  %2683 = vperm.xlu0 %4937, %v7074_v47   ;;  %v7436_v38 = vpop.permute.xlu0 %3306  ;;  %v3616_v44 = vpack.c.bf16 %v7429_v52, %v7426_v23  ;;  %v8615_v47 = vld [vmem:[#allocation34_spill] sm:$0xff]  ;;  %v3381_v37 = vmul.f32 1.442695, %v3362_v21 }
 0x6ad   : > { %v7440_v53 = vpop.eup %5123  ;;  %v2404_v2 = vsub.f32 %v8616_v33, %v8615_v47 }
 0x6ae   : > { %2708 = vperm.xlu1 %4938, %v7440_v53   ;;  %4838 = vmatprep.mubr.bf16.mxu1 %v3616_v44  ;;  %v7446_v18 = vpop.eup %5125  ;;  %v8618_v44 = vld [vmem:[#allocation37_spill] sm:$0xff] }
 0x6af   : > { %v7453_v41 = vpop.eup %5127  ;;  %v2432_v3 = vmul.f32 1.442695, %v2404_v2  ;;  %v2406_v30 = vsub.f32 %v8618_v44, %v8617_v19  ;;  %v8619_v19 = vmov 3  }
 0x6b0   : > { %v2800_v31 = vpop.permute.xlu1 %2799  ;;  %2728 = vperm.xlu0 %4937, %v7446_v18   ;;  %v7451_v5 = vpop.permute.xlu0 %3311 }
 0x6b1   : > { %4804 = vmatprep.subr.bf16.mxu0 %v2800_v31  ;;  %v7456_v14 = vpop.eup %5129  ;;  %5141 = vpow2.f32 %v2432_v3  ;;  %v2436_v2 = vmul.f32 1.442695, %v2406_v30 }
 0x6b2   : > { %2713 = vperm.xlu1 %4938, %v7453_v41   ;;  %4805 = vmatpush3.bf16.msra.mxu0 %v2800_v31  ;;  %v7465_v29 = vpop.eup %5131  ;;  %v2781_v31 = vpack.c.bf16 %v7348_v32, %v7364_v17  ;;  %v3363_v32 = vsub.f32 %v7049_v15, %v7433_v25  ;;  %v2783_v17 = vpack.c.bf16 %v7362_v48, %v7377_v11 }
 0x6b3   : > { %v7468_v8 = vpop.eup %5133  ;;  %5143 = vpow2.f32 %v2436_v2  ;;  %v2784_v48 = vpack.c.bf16 %v7368_v36, %v7383_v62  ;;  %v3365_v11 = vsub.f32 %v7064_v63, %v7451_v5 }
 0x6b4   : > { %2738 = vperm.xlu0 %4937, %v7456_v14   ;;  %v3317_v47 = vpop.permute.xlu1 %3316  ;;  %v3633_v33 = vpop.permute.xlu0 %3632  ;;  %v3383_v49 = vmul.f32 1.442695, %v3363_v32  ;;  %5145 = vpow2.f32 %v3381_v37 }
 0x6b5   : > { %4807 = vmatmul.mubr.bf16.vlgmr.msra.gmra.mrb[16].mxu0 %v2778_v43  ;;  %4830 = vmatprep.subr.bf16.mxu1 %v3633_v33  ;;  %v7471_v39 = vpop.eup %5135 }
 0x6b6   : > { %2718 = vperm.xlu1 %4938, %v7465_v29   ;;  %4810 = vmatprep.mubr.bf16.mxu0 %v2779_v9  ;;  %v7474_v16 = vpop.eup %5137  ;;  %v3364_v9 = vsub.f32 %v7059_v12, %v7436_v38  ;;  %5147 = vpow2.f32 %v3383_v49  ;;  %v3366_v12 = vsub.f32 %v7071_v50, %v3317_v47 }
 0x6b7   : > { %4831 = vmatpush3.bf16.msra.mxu1 %v3633_v33  ;;  %v7481_v3 = vpop.eup %5139  ;;  %v3361_v33 = vsub.f32 %v7037_v10, %v7402_v46 }
 0x6b8   : > { %2748 = vperm.xlu0 %4937, %v7468_v8   ;;  %v3635_v51 = vpop.permute.xlu1 %3634  ;;  %v3385_v24 = vmul.f32 1.442695, %v3364_v9 }
 0x6b9   : > { %4832 = vmatprep.subr.bf16.mxu1 %v3635_v51  ;;  %v3379_v15 = vmul.f32 1.442695, %v3361_v33 }
 0x6ba   : > { %2723 = vperm.xlu1 %4938, %v7471_v39   ;;  %5149 = vpow2.f32 %v3385_v24 }
 0x6bb   : > { %4833 = vmatpush3.bf16.msra.mxu1 %v3635_v51  ;;  %v7485_v44 = vpop.eup %5141  ;;  %5151 = vpow2.f32 %v3379_v15  ;;  %v3389_v51 = vmul.f32 1.442695, %v3366_v12 }
 0x6bc   : > { %2758 = vperm.xlu0 %4937, %v7474_v16   ;;  %v3327_v30 = vpop.permute.xlu1 %3326 }
 0x6bd   : > { %4811 = vmatmul.mubr.bf16.gmra.mrb[20].mxu0 %v2780_v59  ;;  %v7496_v43 = vpop.eup %5143  ;;  %v3368_v2 = vsub.f32 %v7079_v45, %v3327_v30  ;;  %5153 = vpow2.f32 %v3389_v51 }
 0x6be   : > { %2733 = vperm.xlu1 %4938, %v7481_v3   ;;  %4814 = vmatprep.mubr.bf16.mxu0 %v2781_v31  ;;  %v3387_v31 = vmul.f32 1.442695, %v3365_v11 }
 0x6bf   : > { %v3393_v36 = vmul.f32 1.442695, %v3368_v2 }
 0x6c0   : > { %4940 = vset.pattern.permute.xlu0 %v8619_v19  ;;  %v3337_v58 = vpop.permute.xlu1 %3336 }
 0x6c1   : > { %v3370_v45 = vsub.f32 %v7086_v7, %v3337_v58 }
 0x6c2   : > { %2743 = vperm.xlu1 %4938, %v7485_v44  }
 0x6c3   : > { %v3397_v9 = vmul.f32 1.442695, %v3370_v45 }
 0x6c4   : > { %v3639_v46 = vpop.permute.xlu1 %3638 }
 0x6c5   : > { %4815 = vmatmul.mubr.bf16.gmra.mrb[24].mxu0 %v2782_v34 }
 0x6c6   : > { %2753 = vperm.xlu1 %4938, %v7496_v43   ;;  %4818 = vmatprep.mubr.bf16.mxu0 %v2783_v17 }
 0x6c8   : > { %v3347_v50 = vpop.permute.xlu1 %3346 }
 0x6c9   : > { %v3372_v30 = vsub.f32 %v7094_v55, %v3347_v50 }
 0x6ca   : > { %v3322_v25 = vpop.permute.xlu0 %3321  ;;  %4939 = vset.pattern.permute.xlu1 %v8619_v19 }
 0x6cb   : > { %v3367_v10 = vsub.f32 %v7098_v20, %v3322_v25  ;;  %v7512_v20 = vpop.eup %5145  ;;  %v3401_v37 = vmul.f32 1.442695, %v3372_v30 }
 0x6cc   : > { %v7514_v63 = vpop.eup %5147 }
 0x6cd   : > { %4819 = vmatmul.mubr.bf16.gmra.mrb[28].mxu0 %v2784_v48  ;;  %v3391_v59 = vmul.f32 1.442695, %v3367_v10  ;;  %v7517_v47 = vpop.eup %5149 }
 0x6ce   : > { %v3332_v38 = vpop.permute.xlu0 %3331  ;;  %v7521_v34 = vpop.eup %5151  ;;  %v3618_v7 = vpack.c.bf16 %v7517_v47, %v7514_v63 }
 0x6cf   : > { %v3369_v62 = vsub.f32 %v7104_v35, %v3332_v38  ;;  %5155 = vpow2.f32 %v3391_v59  ;;  %v3617_v17 = vpack.c.bf16 %v7512_v20, %v7521_v34 }
 0x6d0   : > { %5157 = vpow2.f32 %v3387_v31  ;;  %v3357_v49 = vpop.permute.xlu1 %3356 }
 0x6d1   : > { %5159 = vpow2.f32 %v3393_v36  ;;  %v3395_v35 = vmul.f32 1.442695, %v3369_v62  ;;  %v3374_v58 = vsub.f32 %v7108_v42, %v3357_v49  ;;  %v2570_v36 = vld [vmem:[#allocation3 + $0x10] sm:$0xff] }
 0x6d2   : > { %v3637_v19 = vpop.permute.xlu0 %3636  ;;  %v2586_v50 = vmul.f32 %v7404_v61, %v2570_v36  ;;  %v2571_v61 = vld [vmem:[#allocation3 + $0x18] sm:$0xff] }
 0x6d3   : > { %4834 = vmatprep.subr.bf16.mxu1 %v3637_v19  ;;  %5161 = vpow2.f32 %v3395_v35  ;;  %v3405_v10 = vmul.f32 1.442695, %v3374_v58  ;;  %v2579_v36 = vld [vmem:[#allocation3 + $0x58] sm:$0xff] }
 0x6d4   : > { %4835 = vmatpush3.bf16.msra.mxu1 %v3637_v19 }
 0x6d5   : > { %4836 = vmatprep.subr.bf16.mxu1 %v3639_v46 }
 0x6d6   : > { %v3342_v5 = vpop.permute.xlu0 %3341 }
 0x6d7   : > { %v3371_v21 = vsub.f32 %v7112_v26, %v3342_v5  ;;  %v7528_v26 = vpop.eup %5153  ;;  %v2573_v5 = vld [vmem:[#allocation3 + $0x28] sm:$0xff] }
 0x6d8   : > { %4837 = vmatpush3.bf16.msra.mxu1 %v3639_v46  ;;  %v2589_v30 = vmul.f32 %v7440_v53, %v2573_v5 }
 0x6d9   : > { %v3399_v32 = vmul.f32 1.442695, %v3371_v21  ;;  %v7531_v24 = vpop.eup %5155  ;;  %v2569_v21 = vld [vmem:[#allocation3 + $0x8] sm:$0xff] }
 0x6da   : > { %v3352_v33 = vpop.permute.xlu0 %3351  ;;  %v7533_v15 = vpop.eup %5157 }
 0x6db   : > { %4839 = vmatmul.mubr.bf16.vlgmr.msra.gmra.mrb[16].mxu1 %v3617_v17  ;;  %v3373_v55 = vsub.f32 %v7116_v56, %v3352_v33  ;;  %5163 = vpow2.f32 %v3399_v32  ;;  %v7535_v48 = vpop.eup %5159  ;;  %v3619_v12 = vpack.c.bf16 %v7528_v26, %v7533_v15  ;;  %v2585_v32 = vmul.f32 %v7393_v40, %v2569_v21  ;;  %v2581_v21 = vld [vmem:[#allocation3 + $0x68] sm:$0xff] }
 0x6dc   : > { %4842 = vmatprep.mubr.bf16.mxu1 %v3618_v7  ;;  %5165 = vpow2.f32 %v3397_v9  ;;  %v3620_v56 = vpack.c.bf16 %v7535_v48, %v7531_v24  ;;  %v2575_v7 = vld [vmem:[#allocation3 + $0x38] sm:$0xff] }
 0x6dd   : > { %5167 = vpow2.f32 %v3401_v37  ;;  %v3403_v25 = vmul.f32 1.442695, %v3373_v55  ;;  %v7541_v11 = vpop.eup %5161  ;;  %v2591_v37 = vmul.f32 %v7465_v29, %v2575_v7  ;;  %v2587_v55 = vmul.f32 %v7414_v22, %v2571_v61  ;;  %v2583_v7 = vld [vmem:[#allocation3 + $0x78] sm:$0xff] }
 0x6de   : > { %v2595_v22 = vmul.f32 %v7456_v14, %v2579_v36 }
 0x6df   : > { %5169 = vpow2.f32 %v3403_v25 }
 0x6e0   : > { %5171 = vpow2.f32 %v3405_v10  ;;  %v2572_v10 = vld [vmem:[#allocation3 + $0x20] sm:$0xff] }
 0x6e1   : > { %v2588_v29 = vmul.f32 %v7424_v27, %v2572_v10  ;;  %v2597_v27 = vmul.f32 %v7468_v8, %v2581_v21 }
 0x6e3   : > { %4843 = vmatmul.mubr.bf16.gmra.mrb[20].mxu1 %v3619_v12  ;;  %v2577_v12 = vld [vmem:[#allocation3 + $0x48] sm:$0xff] }
 0x6e4   : > { %4846 = vmatprep.mubr.bf16.mxu1 %v3620_v56  ;;  %v2593_v40 = vmul.f32 %v7446_v18, %v2577_v12 }
 0x6e5   : > { %v7543_v42 = vpop.eup %5163 }
 0x6e6   : > { %v7545_v46 = vpop.eup %5165 }
 0x6e7   : > { %v7547_v38 = vpop.eup %5167  ;;  %v3621_v2 = vpack.c.bf16 %v7545_v46, %v7541_v11 }
 0x6e8   : > { %v3622_v51 = vpack.c.bf16 %v7547_v38, %v7543_v42 }
 0x6e9   : > { %v7553_v59 = vpop.eup %5169 }
 0x6ea   : > { %v7555_v31 = vpop.eup %5171 }
 0x6eb   : > { %4847 = vmatmul.mubr.bf16.gmra.mrb[24].mxu1 %v3621_v2  ;;  %v3623_v19 = vpack.c.bf16 %v7555_v31, %v7553_v59 }
 0x6ec   : > { %4850 = vmatprep.mubr.bf16.mxu1 %v3622_v51 }
 0x6f3   : > { %4851 = vmatmul.mubr.bf16.gmra.mrb[28].mxu1 %v3623_v19 }
 0x702   : > { %v2605_v62 = vpop.xlane.xlu1 %2604 }
 0x703   : > { %v2634_v45 = vadd.f32 %v2605_v62, %v2586_v50  ;;  %v2574_v50 = vld [vmem:[#allocation3 + $0x30] sm:$0xff] }
 0x704   : > { %v2590_v18 = vmul.f32 %v7453_v41, %v2574_v50  ;;  %v2599_v41 = vmul.f32 %v7474_v16, %v2583_v7 }
 0x705   : > { %2651 = vst.msk [vmem:[#allocation3 + $0x10] sm:$0xff] %vm2648_vm5, %v2634_v45 }
 0x706   : > { %v2611_v35 = vpop.xlane.xlu1 %2610 }
 0x707   : > { %v2637_v17 = vadd.f32 %v2611_v35, %v2589_v30  ;;  %v2603_v9 = vpop.xlane.xlu0 %2602  ;;  %v2576_v35 = vld [vmem:[#allocation3 + $0x40] sm:$0xff] }
 0x708   : > { %v2633_v33 = vadd.f32 %v2603_v9, %v2585_v32  ;;  %v2592_v14 = vmul.f32 %v7471_v39, %v2576_v35  ;;  %v2580_v39 = vld [vmem:[#allocation3 + $0x60] sm:$0xff] }
 0x709   : > { %2654 = vst.msk [vmem:[#allocation3 + $0x28] sm:$0xff] %vm2648_vm5, %v2637_v17 }
 0x70a   : > { %2650 = vst.msk [vmem:[#allocation3 + $0x8] sm:$0xff] %vm2648_vm5, %v2633_v33  ;;  %v2615_v49 = vpop.xlane.xlu1 %2614 }
 0x70b   : > { %v2639_v58 = vadd.f32 %v2615_v49, %v2591_v37  ;;  %v2607_v53 = vpop.xlane.xlu0 %2606  ;;  %v2578_v37 = vld [vmem:[#allocation3 + $0x50] sm:$0xff] }
 0x70c   : > { %v2635_v25 = vadd.f32 %v2607_v53, %v2587_v55  ;;  %v2594_v8 = vmul.f32 %v7481_v3, %v2578_v37  ;;  %v2596_v53 = vmul.f32 %v7485_v44, %v2580_v39 }
 0x70d   : > { %2656 = vst.msk [vmem:[#allocation3 + $0x38] sm:$0xff] %vm2648_vm5, %v2639_v58 }
 0x70e   : > { %2652 = vst.msk [vmem:[#allocation3 + $0x18] sm:$0xff] %vm2648_vm5, %v2635_v25  ;;  %v2619_v56 = vpop.xlane.xlu1 %2618 }
 0x70f   : > { %v2641_v2 = vadd.f32 %v2619_v56, %v2593_v40  ;;  %v2609_v51 = vpop.xlane.xlu0 %2608  ;;  %v2582_v40 = vld [vmem:[#allocation3 + $0x70] sm:$0xff] }
 0x710   : > { %v2636_v19 = vadd.f32 %v2609_v51, %v2588_v29  ;;  %v2598_v16 = vmul.f32 %v7496_v43, %v2582_v40 }
 0x711   : > { %2658 = vst.msk [vmem:[#allocation3 + $0x48] sm:$0xff] %vm2648_vm5, %v2641_v2 }
 0x712   : > { %2653 = vst.msk [vmem:[#allocation3 + $0x20] sm:$0xff] %vm2648_vm5, %v2636_v19  ;;  %v2623_v62 = vpop.xlane.xlu1 %2622 }
 0x713   : > { %v2643_v45 = vadd.f32 %v2623_v62, %v2595_v22  ;;  %v2613_v5 = vpop.xlane.xlu0 %2612 }
 0x714   : > { %v2638_v30 = vadd.f32 %v2613_v5, %v2590_v18 }
 0x715   : > { %2660 = vst.msk [vmem:[#allocation3 + $0x58] sm:$0xff] %vm2648_vm5, %v2643_v45 }
 0x716   : > { %2655 = vst.msk [vmem:[#allocation3 + $0x30] sm:$0xff] %vm2648_vm5, %v2638_v30  ;;  %v2627_v32 = vpop.xlane.xlu1 %2626 }
 0x717   : > { %v2645_v17 = vadd.f32 %v2627_v32, %v2597_v27  ;;  %v2617_v9 = vpop.xlane.xlu0 %2616 }
 0x718   : > { %v2640_v33 = vadd.f32 %v2617_v9, %v2592_v14 }
 0x719   : > { %2662 = vst.msk [vmem:[#allocation3 + $0x68] sm:$0xff] %vm2648_vm5, %v2645_v17 }
 0x71a   : > { %2657 = vst.msk [vmem:[#allocation3 + $0x40] sm:$0xff] %vm2648_vm5, %v2640_v33  ;;  %v2631_v61 = vpop.xlane.xlu1 %2630 }
 0x71b   : > { %v2647_v49 = vadd.f32 %v2631_v61, %v2599_v41  ;;  %v2621_v55 = vpop.xlane.xlu0 %2620 }
 0x71c   : > { %v2642_v58 = vadd.f32 %v2621_v55, %v2594_v8 }
 0x71d   : > { %2664 = vst.msk [vmem:[#allocation3 + $0x78] sm:$0xff] %vm2648_vm5, %v2647_v49 }
 0x71e   : > { %2659 = vst.msk [vmem:[#allocation3 + $0x50] sm:$0xff] %vm2648_vm5, %v2642_v58  ;;  %v7605_v41 = vpop.permute.xlu1 %2688 }
 0x71f   : > { %v2625_v25 = vpop.xlane.xlu0 %2624 }
 0x720   : > { %v2644_v12 = vadd.f32 %v2625_v25, %v2596_v53 }
 0x722   : > { %2661 = vst.msk [vmem:[#allocation3 + $0x60] sm:$0xff] %vm2648_vm5, %v2644_v12  ;;  %v7615_v55 = vpop.permute.xlu1 %2693 }
 0x723   : > { %v2629_v10 = vpop.xlane.xlu0 %2628 }
 0x724   : > { %v2646_v56 = vadd.f32 %v2629_v10, %v2598_v16  ;;  %v8627_v10 = vld [vmem:[#allocation57_spill] sm:$0xff] }
 0x726   : > { %2663 = vst.msk [vmem:[#allocation3 + $0x70] sm:$0xff] %vm2648_vm5, %v2646_v56  ;;  %v7622_v53 = vpop.permute.xlu1 %2698  ;;  %vm2986_vm5 = vcmask 195712  }
 0x72a   : > { %v7630_v40 = vpop.permute.xlu1 %2703 }
 0x788   : > { %v4808_v3 = vpop.f32.mrb[16].mxu0 }
 0x789   : > { %v2843_v29 = vpop.f32.mrb[17].mxu0 }
 0x78a   : > { %2922 = vrot.lane.b32.xlu1 %v2843_v29, %s5447_s30  ;;  %v4809_v2 = vpop.f32.mrb[18].mxu0 }
 0x78b   : > { %v2846_v51 = vpop.f32.mrb[19].mxu0 }
 0x78c   : > { %2924 = vrot.lane.b32.xlu0 %v2846_v51, %s5447_s30  ;;  %v8632_v51 = vld [vmem:[#allocation60_spill] sm:$0xff] }
 0x78e   : > { %2926 = vrot.lane.b32.xlu1 %v4808_v3, %s5447_s30 }
 0x790   : > { %2928 = vrot.lane.b32.xlu0 %v4809_v2, %s5447_s30  ;;  %v4812_v44 = vpop.f32.mrb[20].mxu0 }
 0x791   : > { %v2859_v19 = vpop.f32.mrb[21].mxu0 }
 0x792   : > { %2930 = vrot.lane.b32.xlu1 %v2859_v19, %s5447_s30  ;;  %v4813_v36 = vpop.f32.mrb[22].mxu0 }
 0x793   : > { %v2862_v22 = vpop.f32.mrb[23].mxu0 }
 0x794   : > { %2932 = vrot.lane.b32.xlu0 %v2862_v22, %s5447_s30  ;;  %v8635_v22 = vld [vmem:[#allocation14_spill] sm:$0xff] }
 0x796   : > { %2934 = vrot.lane.b32.xlu1 %v4812_v44, %s5447_s30  ;;  %v8633_v44 = vld [vmem:[#allocation61_spill] sm:$0xff] }
 0x797   : > { %v8634_v19 = vsub.f32 %v8632_v51, %v8633_v44 }
 0x798   : > { %2936 = vrot.lane.b32.xlu0 %v4813_v36, %s5447_s30  ;;  %v4816_v43 = vpop.f32.mrb[24].mxu0 }
 0x799   : > { %v2875_v50 = vpop.f32.mrb[25].mxu0  ;;  %v3271_v36 = vmul.f32 1.442695, %v8634_v19  ;;  %v2668_v19 = vld [vmem:[#allocation4 + $0x18] sm:$0xff] }
 0x79a   : > { %2938 = vrot.lane.b32.xlu1 %v2875_v50, %s5447_s30  ;;  %v4817_v62 = vpop.f32.mrb[26].mxu0 }
 0x79b   : > { %v2878_v18 = vpop.f32.mrb[27].mxu0 }
 0x79c   : > { %2940 = vrot.lane.b32.xlu0 %v2878_v18, %s5447_s30 }
 0x79e   : > { %2942 = vrot.lane.b32.xlu1 %v4816_v43, %s5447_s30  ;;  %v8636_v43 = vld [vmem:[#allocation16_spill] sm:$0xff] }
 0x79f   : > { %v8637_v50 = vsub.f32 %v8635_v22, %v8636_v43  ;;  %v2764_v22 = vmul.f32 %v7622_v53, %v2668_v19  ;;  %v8648_v53 = vld [vmem:[#allocation23_spill] sm:$0xff] }
 0x7a0   : > { %2944 = vrot.lane.b32.xlu0 %v4817_v62, %s5447_s30  ;;  %v4820_v45 = vpop.f32.mrb[28].mxu0  ;;  %v2673_v19 = vld [vmem:[#allocation4 + $0x40] sm:$0xff] }
 0x7a1   : > { %v2891_v5 = vpop.f32.mrb[29].mxu0  ;;  %v3259_v62 = vmul.f32 1.442695, %v8637_v50  ;;  %v2669_v50 = vld [vmem:[#allocation4 + $0x20] sm:$0xff] }
 0x7a2   : > { %2946 = vrot.lane.b32.xlu1 %v2891_v5, %s5447_s30  ;;  %v4821_v30 = vpop.f32.mrb[30].mxu0  ;;  %v8638_v5 = vld [vmem:[#allocation62_spill] sm:$0xff] }
 0x7a3   : > { %v2894_v21 = vpop.f32.mrb[31].mxu0 }
 0x7a4   : > { %2948 = vrot.lane.b32.xlu0 %v2894_v21, %s5447_s30 }
 0x7a6   : > { %2950 = vrot.lane.b32.xlu1 %v4820_v45, %s5447_s30 }
 0x7a8   : > { %2952 = vrot.lane.b32.xlu0 %v4821_v30, %s5447_s30  ;;  %v8639_v30 = vld [vmem:[#allocation63_spill] sm:$0xff] }
 0x7a9   : > { %v8640_v21 = vsub.f32 %v8638_v5, %v8639_v30  ;;  %v2765_v5 = vmul.f32 %v7630_v40, %v2669_v50  ;;  %v8653_v50 = vld [vmem:[#allocation19_spill] sm:$0xff] }
 0x7ae   : > { %v7589_v27 = vpop.f32.mrb[16].mxu1 }
 0x7af   : > { %v7591_v35 = vpop.f32.mrb[17].mxu1 }
 0x7b0   : > { %v7593_v32 = vpop.f32.mrb[18].mxu1 }
 0x7b1   : > { %v7595_v14 = vpop.f32.mrb[19].mxu1 }
 0x7b6   : > { %v7597_v17 = vpop.f32.mrb[20].mxu1 }
 0x7b7   : > { %v7599_v9 = vpop.f32.mrb[21].mxu1 }
 0x7b8   : > { %v7601_v33 = vpop.f32.mrb[22].mxu1 }
 0x7b9   : > { %v7603_v7 = vpop.f32.mrb[23].mxu1 }
 0x7be   : > { %v7607_v37 = vpop.f32.mrb[24].mxu1 }
 0x7bf   : > { %v7609_v61 = vpop.f32.mrb[25].mxu1 }
 0x7c0   : > { %v7611_v8 = vpop.f32.mrb[26].mxu1 }
 0x7c1   : > { %v7613_v49 = vpop.f32.mrb[27].mxu1 }
 0x7c6   : > { %v7617_v58 = vpop.f32.mrb[28].mxu1 }
 0x7c7   : > { %3441 = vadd.xlane.f32.xlu0 %v7429_v52  ;;  %v7620_v39 = vpop.f32.mrb[29].mxu1  ;;  %v7636_v52 = vpop.permute.xlu1 %2708 }
 0x7c8   : > { %v7624_v25 = vpop.f32.mrb[30].mxu1 }
 0x7c9   : > { %v7626_v12 = vpop.f32.mrb[31].mxu1 }
 0x7ca   : > { %3439 = vadd.xlane.f32.xlu1 %v7426_v23 }
 0x7cb   : > { %3443 = vadd.xlane.f32.xlu0 %v7521_v34  ;;  %v7640_v16 = vpop.permute.xlu1 %2713 }
 0x7ce   : > { %3447 = vadd.xlane.f32.xlu1 %v7514_v63  ;;  %v8620_v63 = vsub.f32 %v7131_v13, %v7134_v0  ;;  %v8623_v13 = vsub.f32 %v7141_v4, %v7144_v57  ;;  %v8629_v4 = vld [vmem:[#allocation9_spill] sm:$0xff]  ;;  %v8630_v57 = vld [vmem:[#allocation12_spill] sm:$0xff] }
 0x7cf   : > { %3445 = vadd.xlane.f32.xlu0 %v7512_v20  ;;  %v7646_v23 = vpop.permute.xlu1 %2718  ;;  %v2684_v20 = vpop.permute.xlu0 %2683  ;;  %v8631_v3 = vsub.f32 %v8629_v4, %v8630_v57 }
 0x7d0   : > { %v3249_v0 = vmul.f32 1.442695, %v8623_v13  ;;  %v8642_v13 = vld [vmem:[#allocation20_spill] sm:$0xff] }
 0x7d1   : > { %v3257_v29 = vmul.f32 1.442695, %v8631_v3 }
 0x7d2   : > { %3451 = vadd.xlane.f32.xlu1 %v7533_v15 }
 0x7d3   : > { %3449 = vadd.xlane.f32.xlu0 %v7517_v47  ;;  %v3247_v47 = vmul.f32 1.442695, %v8620_v63  ;;  %v7653_v34 = vpop.permute.xlu1 %2723  ;;  %v7659_v15 = vpop.permute.xlu0 %2728  ;;  %v3275_v63 = vmul.f32 1.442695, %v8640_v21 }
 0x7d5   : > { %5173 = vpow2.f32 %v3247_v47  ;;  %v2665_v47 = vld [vmem:[#allocation4] sm:$0xff] }
 0x7d6   : > { %3455 = vadd.xlane.f32.xlu1 %v7531_v24 }
 0x7d7   : > { %3453 = vadd.xlane.f32.xlu0 %v7528_v26  ;;  %v8621_v26 = vsub.f32 %v7153_v28, %v7156_v1 }
 0x7d9   : > { %v3251_v24 = vmul.f32 1.442695, %v8621_v26 }
 0x7da   : > { %3459 = vadd.xlane.f32.xlu1 %v7541_v11 }
 0x7db   : > { %3457 = vadd.xlane.f32.xlu0 %v7535_v48  ;;  %5175 = vpow2.f32 %v3251_v24  ;;  %v8622_v48 = vsub.f32 %v7163_v54, %v7166_v6  ;;  %v2761_v24 = vmul.f32 %v2684_v20, %v2665_v47  ;;  %v2667_v20 = vld [vmem:[#allocation4 + $0x10] sm:$0xff] }
 0x7dc   : > { %v2763_v4 = vmul.f32 %v7615_v55, %v2667_v20 }
 0x7dd   : > { %v3253_v11 = vmul.f32 1.442695, %v8622_v48 }
 0x7de   : > { %3463 = vadd.xlane.f32.xlu1 %v7543_v42  ;;  %v7664_v42 = vpop.permute.xlu1 %2733 }
 0x7df   : > { %3461 = vadd.xlane.f32.xlu0 %v7545_v46  ;;  %v7669_v46 = vpop.permute.xlu0 %2738  ;;  %5177 = vpow2.f32 %v3253_v11  ;;  %v8641_v11 = vld [vmem:[#allocation18_spill] sm:$0xff] }
 0x7e0   : > { %5179 = vpow2.f32 %v3249_v0  ;;  %v8643_v0 = vsub.f32 %v8641_v11, %v8642_v13  ;;  %v2670_v11 = vld [vmem:[#allocation4 + $0x28] sm:$0xff] }
 0x7e2   : > { %3467 = vadd.xlane.f32.xlu1 %v7553_v59  ;;  %v7674_v59 = vpop.eup %5173  ;;  %v7679_v56 = vpop.permute.xlu1 %2743 }
 0x7e3   : > { %3465 = vadd.xlane.f32.xlu0 %v7547_v38  ;;  %v8624_v38 = vld [vmem:[#allocation8_spill] sm:$0xff]  ;;  %v7685_v2 = vpop.permute.xlu0 %2748 }
 0x7e4   : > { %v8625_v28 = vsub.f32 %v7174_v60, %v8624_v38  ;;  %v3261_v38 = vmul.f32 1.442695, %v8643_v0  ;;  %v2766_v0 = vmul.f32 %v7636_v52, %v2670_v11  ;;  %v8650_v52 = vld [vmem:[#allocation15_spill] sm:$0xff] }
 0x7e5   : > { %v7687_v60 = vpop.eup %5175 }
 0x7e6   : > { %v3255_v1 = vmul.f32 1.442695, %v8625_v28  ;;  %v7696_v18 = vpop.permute.xlu1 %2753  ;;  %v2666_v28 = vld [vmem:[#allocation4 + $0x8] sm:$0xff] }
 0x7e7   : > { %3469 = vadd.xlane.f32.xlu0 %v7555_v31  ;;  %v8626_v31 = vld [vmem:[#allocation56_spill] sm:$0xff]  ;;  %v7703_v26 = vpop.permute.xlu0 %2758 }
 0x7e8   : > { %v8628_v54 = vsub.f32 %v8626_v31, %v8627_v10  ;;  %5181 = vpow2.f32 %v3255_v1  ;;  %v2762_v31 = vmul.f32 %v7605_v41, %v2666_v28  ;;  %v8645_v41 = vld [vmem:[#allocation55_spill] sm:$0xff]  ;;  %v2671_v28 = vld [vmem:[#allocation4 + $0x30] sm:$0xff] }
 0x7e9   : > { %v7698_v45 = vpop.eup %5177 }
 0x7ea   : > { %v3267_v6 = vmul.f32 1.442695, %v8628_v54  ;;  %v7706_v48 = vpop.eup %5179 }
 0x7ec   : > { %5183 = vpow2.f32 %v3267_v6 }
 0x7ed   : > { %5185 = vpow2.f32 %v3257_v29  ;;  %v8644_v29 = vld [vmem:[#allocation54_spill] sm:$0xff] }
 0x7ee   : > { %5187 = vpow2.f32 %v3271_v36  ;;  %v8646_v51 = vsub.f32 %v8644_v29, %v8645_v41  ;;  %v2672_v29 = vld [vmem:[#allocation4 + $0x38] sm:$0xff] }
 0x7ef   : > { %5189 = vpow2.f32 %v3259_v62 }
 0x7f0   : > { %5191 = vpow2.f32 %v3275_v63  ;;  %v3263_v44 = vmul.f32 1.442695, %v8646_v51  ;;  %v8647_v63 = vld [vmem:[#allocation22_spill] sm:$0xff]  ;;  %v2768_v51 = vmul.f32 %v7646_v23, %v2672_v29 }
 0x7f1   : > { %5193 = vpow2.f32 %v3261_v38  ;;  %v8649_v47 = vsub.f32 %v8647_v63, %v8648_v53 }
 0x7f2   : > { %v7713_v54 = vpop.eup %5181  ;;  %5195 = vpow2.f32 %v3263_v44 }
 0x7f3   : > { %3522 = vperm.xlu1 %4939, %v7674_v59  }
 0x7f6   : > { %v7718_v3 = vpop.eup %5183 }
 0x7f7   : > { %3532 = vperm.xlu1 %4939, %v7687_v60   ;;  %v7726_v55 = vpop.eup %5185 }
 0x7f8   : > { %v7731_v21 = vpop.eup %5187 }
 0x7f9   : > { %v7739_v40 = vpop.eup %5189 }
 0x7fa   : > { %v7744_v20 = vpop.eup %5191 }
 0x7fb   : > { %3537 = vperm.xlu1 %4939, %v7698_v45  }
 0x7fc   : > { %v2923_v1 = vpop.permute.xlu1 %2922 }
 0x7fd   : > { %v2970_v10 = vadd.f32 %v2923_v1, %v2761_v24  ;;  %3527 = vperm.xlu0 %4940, %v7706_v48   ;;  %v3265_v24 = vmul.f32 1.442695, %v8649_v47 }
 0x7fe   : > { %v2925_v6 = vpop.permute.xlu0 %2924 }
 0x7ff   : > { %2987 = vst.msk [vmem:[#allocation4] sm:$0xff] %vm2986_vm5, %v2970_v10  ;;  %v2971_v57 = vadd.f32 %v2925_v6, %v2762_v31  ;;  %3542 = vperm.xlu1 %4939, %v7713_v54   ;;  %v2767_v31 = vmul.f32 %v7640_v16, %v2671_v28  ;;  %5197 = vpow2.f32 %v3265_v24  ;;  %v8651_v6 = vld [vmem:[#allocation17_spill] sm:$0xff]  ;;  %v7752_v16 = vpop.eup %5193 }
 0x800   : > { %v2927_v36 = vpop.permute.xlu1 %2926  ;;  %v2675_v24 = vld [vmem:[#allocation4 + $0x50] sm:$0xff] }
 0x801   : > { %2988 = vst.msk [vmem:[#allocation4 + $0x8] sm:$0xff] %vm2986_vm5, %v2971_v57  ;;  %v2972_v43 = vadd.f32 %v2927_v36, %v2763_v4  ;;  %3572 = vperm.xlu0 %4940, %v7718_v3   ;;  %v8652_v4 = vsub.f32 %v8650_v52, %v8651_v6  ;;  %v2677_v6 = vld [vmem:[#allocation4 + $0x60] sm:$0xff] }
 0x802   : > { %v2929_v62 = vpop.permute.xlu0 %2928 }
 0x803   : > { %2989 = vst.msk [vmem:[#allocation4 + $0x10] sm:$0xff] %vm2986_vm5, %v2972_v43  ;;  %v2973_v30 = vadd.f32 %v2929_v62, %v2764_v22  ;;  %3547 = vperm.xlu1 %4939, %v7726_v55   ;;  %v3269_v57 = vmul.f32 1.442695, %v8652_v4  ;;  %v2769_v22 = vmul.f32 %v7653_v34, %v2673_v19  ;;  %v8654_v62 = vld [vmem:[#allocation21_spill] sm:$0xff]  ;;  %v7764_v34 = vpop.eup %5195 }
 0x804   : > { %v2931_v13 = vpop.permute.xlu1 %2930  ;;  %v8655_v23 = vsub.f32 %v8653_v50, %v8654_v62  ;;  %v2679_v19 = vld [vmem:[#allocation4 + $0x70] sm:$0xff] }
 0x805   : > { %2990 = vst.msk [vmem:[#allocation4 + $0x18] sm:$0xff] %vm2986_vm5, %v2973_v30  ;;  %v2974_v38 = vadd.f32 %v2931_v13, %v2765_v5  ;;  %3582 = vperm.xlu0 %4940, %v7731_v21   ;;  %5199 = vpow2.f32 %v3269_v57  ;;  %v2674_v30 = vld [vmem:[#allocation4 + $0x48] sm:$0xff]  ;;  %v2771_v13 = vmul.f32 %v7664_v42, %v2675_v24  ;;  %v2773_v57 = vmul.f32 %v7679_v56, %v2677_v6 }
 0x806   : > { %v2933_v1 = vpop.permute.xlu0 %2932  ;;  %v3273_v5 = vmul.f32 1.442695, %v8655_v23  ;;  %v2770_v53 = vmul.f32 %v7659_v15, %v2674_v30  ;;  %v8656_v15 = vld [vmem:[#allocation58_spill] sm:$0xff]  ;;  %v3412_v24 = vld [vmem:[#allocation3 + $0x28] sm:$0xff] }
 0x807   : > { %2991 = vst.msk [vmem:[#allocation4 + $0x20] sm:$0xff] %vm2986_vm5, %v2974_v38  ;;  %v2975_v10 = vadd.f32 %v2933_v1, %v2766_v0  ;;  %3552 = vperm.xlu1 %4939, %v7739_v40   ;;  %v8657_v38 = vld [vmem:[#allocation59_spill] sm:$0xff]  ;;  %v3416_v6 = vld [vmem:[#allocation3 + $0x48] sm:$0xff] }
 0x808   : > { %v2935_v41 = vpop.permute.xlu1 %2934  ;;  %5201 = vpow2.f32 %v3273_v5  ;;  %v8658_v28 = vsub.f32 %v8656_v15, %v8657_v38  ;;  %v3410_v5 = vld [vmem:[#allocation3 + $0x18] sm:$0xff] }
 0x809   : > { %2992 = vst.msk [vmem:[#allocation4 + $0x28] sm:$0xff] %vm2986_vm5, %v2975_v10  ;;  %v2976_v44 = vadd.f32 %v2935_v41, %v2767_v31  ;;  %3592 = vperm.xlu0 %4940, %v7744_v20   ;;  %v2676_v31 = vld [vmem:[#allocation4 + $0x58] sm:$0xff]  ;;  %v7776_v42 = vpop.eup %5197  ;;  %v2678_v41 = vld [vmem:[#allocation4 + $0x68] sm:$0xff] }
 0x80a   : > { %v2937_v36 = vpop.permute.xlu0 %2936  ;;  %v3277_v1 = vmul.f32 1.442695, %v8658_v28  ;;  %v3414_v28 = vld [vmem:[#allocation3 + $0x38] sm:$0xff] }
 0x80b   : > { %2993 = vst.msk [vmem:[#allocation4 + $0x30] sm:$0xff] %vm2986_vm5, %v2976_v44  ;;  %v2977_v43 = vadd.f32 %v2937_v36, %v2768_v51  ;;  %3557 = vperm.xlu1 %4939, %v7752_v16   ;;  %v2774_v51 = vmul.f32 %v7685_v2, %v2678_v41  ;;  %v2775_v36 = vmul.f32 %v7696_v18, %v2679_v19 }
 0x80c   : > { %v2939_v63 = vpop.permute.xlu1 %2938  ;;  %5203 = vpow2.f32 %v3277_v1 }
 0x80d   : > { %2994 = vst.msk [vmem:[#allocation4 + $0x38] sm:$0xff] %vm2986_vm5, %v2977_v43  ;;  %v2978_v47 = vadd.f32 %v2939_v63, %v2769_v22  ;;  %3761 = vrot.lane.b32.xlu0 %v7591_v35, %s5448_s7  ;;  %v2772_v35 = vmul.f32 %v7669_v46, %v2676_v31  ;;  %v2680_v43 = vld [vmem:[#allocation4 + $0x78] sm:$0xff]  ;;  %v3426_v63 = vmul.f32 %v7698_v45, %v3410_v5 }
 0x80e   : > { %v2941_v11 = vpop.permute.xlu0 %2940  ;;  %v2776_v2 = vmul.f32 %v7703_v26, %v2680_v43  ;;  %v3420_v43 = vld [vmem:[#allocation3 + $0x68] sm:$0xff] }
 0x80f   : > { %2995 = vst.msk [vmem:[#allocation4 + $0x40] sm:$0xff] %vm2986_vm5, %v2978_v47  ;;  %v2979_v0 = vadd.f32 %v2941_v11, %v2770_v53  ;;  %3562 = vperm.xlu1 %4939, %v7764_v34  }
 0x810   : > { %v2943_v10 = vpop.permute.xlu1 %2942 }
 0x811   : > { %2996 = vst.msk [vmem:[#allocation4 + $0x48] sm:$0xff] %vm2986_vm5, %v2979_v0  ;;  %v2980_v52 = vadd.f32 %v2943_v10, %v2771_v13  ;;  %3765 = vrot.lane.b32.xlu0 %v7589_v27, %s5448_s7  ;;  %v7785_v27 = vpop.eup %5199  ;;  %v3428_v0 = vmul.f32 %v7726_v55, %v3412_v24  ;;  %v3430_v10 = vmul.f32 %v7752_v16, %v3414_v28  ;;  %v3508_v24 = vld [vmem:[#allocation4 + $0x20] sm:$0xff] }
 0x812   : > { %v2945_v4 = vpop.permute.xlu0 %2944 }
 0x813   : > { %2997 = vst.msk [vmem:[#allocation4 + $0x50] sm:$0xff] %vm2986_vm5, %v2980_v52  ;;  %v2981_v29 = vadd.f32 %v2945_v4, %v2772_v35  ;;  %3567 = vperm.xlu1 %4939, %v7776_v42  }
 0x814   : > { %v2947_v46 = vpop.permute.xlu1 %2946 }
 0x815   : > { %2998 = vst.msk [vmem:[#allocation4 + $0x58] sm:$0xff] %vm2986_vm5, %v2981_v29  ;;  %v2982_v44 = vadd.f32 %v2947_v46, %v2773_v57  ;;  %3769 = vrot.lane.b32.xlu0 %v7599_v9, %s5448_s7  ;;  %v7794_v9 = vpop.eup %5201  ;;  %v3432_v29 = vmul.f32 %v7776_v42, %v3416_v6 }
 0x816   : > { %v2949_v56 = vpop.permute.xlu0 %2948  ;;  %v7801_v26 = vpop.eup %5203 }
 0x817   : > { %2999 = vst.msk [vmem:[#allocation4 + $0x60] sm:$0xff] %vm2986_vm5, %v2982_v44  ;;  %v2983_v22 = vadd.f32 %v2949_v56, %v2774_v51  ;;  %3577 = vperm.xlu1 %4939, %v7785_v27   ;;  %v3418_v51 = vld [vmem:[#allocation3 + $0x58] sm:$0xff] }
 0x818   : > { %v2951_v50 = vpop.permute.xlu1 %2950  ;;  %v3434_v56 = vmul.f32 %v7785_v27, %v3418_v51 }
 0x819   : > { %3000 = vst.msk [vmem:[#allocation4 + $0x68] sm:$0xff] %vm2986_vm5, %v2983_v22  ;;  %v2984_v62 = vadd.f32 %v2951_v50, %v2775_v36  ;;  %3773 = vrot.lane.b32.xlu0 %v7597_v17, %s5448_s7 }
 0x81a   : > { %v2953_v23 = vpop.permute.xlu0 %2952 }
 0x81b   : > { %3001 = vst.msk [vmem:[#allocation4 + $0x70] sm:$0xff] %vm2986_vm5, %v2984_v62  ;;  %v2985_v18 = vadd.f32 %v2953_v23, %v2776_v2  ;;  %3587 = vperm.xlu1 %4939, %v7794_v9   ;;  %v3436_v62 = vmul.f32 %v7794_v9, %v3420_v43 }
 0x81d   : > { %3002 = vst.msk [vmem:[#allocation4 + $0x78] sm:$0xff] %vm2986_vm5, %v2985_v18  ;;  %3777 = vrot.lane.b32.xlu0 %v7609_v61, %s5448_s7  ;;  %v3407_v61 = vld [vmem:[#allocation3] sm:$0xff]  ;;  %v3422_v18 = vld [vmem:[#allocation3 + $0x78] sm:$0xff] }
 0x81f   : > { %3597 = vperm.xlu1 %4939, %v7801_v26  }
 0x821   : > { %3781 = vrot.lane.b32.xlu0 %v7607_v37, %s5448_s7 }
 0x823   : > { %3763 = vrot.lane.b32.xlu1 %v7595_v14, %s5448_s7 }
 0x825   : > { %3785 = vrot.lane.b32.xlu0 %v7620_v39, %s5448_s7 }
 0x827   : > { %3767 = vrot.lane.b32.xlu1 %v7593_v32, %s5448_s7  ;;  %v3408_v32 = vld [vmem:[#allocation3 + $0x8] sm:$0xff] }
 0x828   : > { %v3424_v14 = vmul.f32 %v7706_v48, %v3408_v32 }
 0x829   : > { %3789 = vrot.lane.b32.xlu0 %v7617_v58, %s5448_s7  ;;  %v3411_v58 = vld [vmem:[#allocation3 + $0x20] sm:$0xff] }
 0x82b   : > { %3771 = vrot.lane.b32.xlu1 %v7603_v7, %s5448_s7  ;;  %v3409_v7 = vld [vmem:[#allocation3 + $0x10] sm:$0xff] }
 0x82f   : > { %3775 = vrot.lane.b32.xlu1 %v7601_v33, %s5448_s7  ;;  %v3423_v33 = vmul.f32 %v7674_v59, %v3407_v61  ;;  %v3413_v59 = vld [vmem:[#allocation3 + $0x30] sm:$0xff] }
 0x833   : > { %3779 = vrot.lane.b32.xlu1 %v7613_v49, %s5448_s7 }
 0x837   : > { %3783 = vrot.lane.b32.xlu1 %v7611_v8, %s5448_s7  ;;  %v3425_v8 = vmul.f32 %v7687_v60, %v3409_v7  ;;  %v3429_v60 = vmul.f32 %v7739_v40, %v3413_v59  ;;  %v3417_v40 = vld [vmem:[#allocation3 + $0x50] sm:$0xff] }
 0x838   : > { %v3433_v55 = vmul.f32 %v7718_v3, %v3417_v40  ;;  %v3421_v3 = vld [vmem:[#allocation3 + $0x70] sm:$0xff] }
 0x839   : > { %v3437_v42 = vmul.f32 %v7744_v20, %v3421_v3 }
 0x83b   : > { %3787 = vrot.lane.b32.xlu1 %v7626_v12, %s5448_s7 }
 0x83f   : > { %3791 = vrot.lane.b32.xlu1 %v7624_v25, %s5448_s7  ;;  %v3427_v25 = vmul.f32 %v7713_v54, %v3411_v58  ;;  %v3415_v54 = vld [vmem:[#allocation3 + $0x40] sm:$0xff] }
 0x840   : > { %v3431_v45 = vmul.f32 %v7764_v34, %v3415_v54  ;;  %v3419_v34 = vld [vmem:[#allocation3 + $0x60] sm:$0xff]  ;;  %v3510_v54 = vld [vmem:[#allocation4 + $0x30] sm:$0xff] }
 0x841   : > { %v3435_v16 = vmul.f32 %v7731_v21, %v3419_v34 }
 0x854   : > { %v3442_v17 = vpop.xlane.xlu0 %3441 }
 0x855   : > { %v3472_v37 = vadd.f32 %v3442_v17, %v3424_v14  ;;  %v3438_v14 = vmul.f32 %v7801_v26, %v3422_v18  ;;  %v3506_v26 = vld [vmem:[#allocation4 + $0x10] sm:$0xff] }
 0x857   : > { %3489 = vst.msk [vmem:[#allocation3 + $0x8] sm:$0xff] %vm3487_vm10, %v3472_v37  ;;  %v3440_v49 = vpop.xlane.xlu1 %3439 }
 0x858   : > { %v3471_v39 = vadd.f32 %v3440_v49, %v3423_v33  ;;  %v3444_v12 = vpop.xlane.xlu0 %3443 }
 0x859   : > { %v3473_v30 = vadd.f32 %v3444_v12, %v3425_v8  ;;  %v3504_v12 = vld [vmem:[#allocation4] sm:$0xff] }
 0x85a   : > { %3488 = vst.msk [vmem:[#allocation3] sm:$0xff] %vm3487_vm10, %v3471_v39 }
 0x85b   : > { %3490 = vst.msk [vmem:[#allocation3 + $0x10] sm:$0xff] %vm3487_vm10, %v3473_v30  ;;  %v3448_v48 = vpop.xlane.xlu1 %3447 }
 0x85c   : > { %v3475_v53 = vadd.f32 %v3448_v48, %v3427_v25  ;;  %v3446_v47 = vpop.xlane.xlu0 %3445 }
 0x85d   : > { %v3474_v11 = vadd.f32 %v3446_v47, %v3426_v63 }
 0x85e   : > { %3492 = vst.msk [vmem:[#allocation3 + $0x20] sm:$0xff] %vm3487_vm10, %v3475_v53 }
 0x85f   : > { %3491 = vst.msk [vmem:[#allocation3 + $0x18] sm:$0xff] %vm3487_vm10, %v3474_v11  ;;  %v3452_v13 = vpop.xlane.xlu1 %3451 }
 0x860   : > { %v3477_v15 = vadd.f32 %v3452_v13, %v3429_v60  ;;  %v3450_v38 = vpop.xlane.xlu0 %3449 }
 0x861   : > { %v3476_v1 = vadd.f32 %v3450_v38, %v3428_v0 }
 0x862   : > { %3494 = vst.msk [vmem:[#allocation3 + $0x30] sm:$0xff] %vm3487_vm10, %v3477_v15 }
 0x863   : > { %3493 = vst.msk [vmem:[#allocation3 + $0x28] sm:$0xff] %vm3487_vm10, %v3476_v1  ;;  %v3456_v31 = vpop.xlane.xlu1 %3455 }
 0x864   : > { %v3479_v35 = vadd.f32 %v3456_v31, %v3431_v45  ;;  %v3454_v52 = vpop.xlane.xlu0 %3453  ;;  %v3512_v45 = vld [vmem:[#allocation4 + $0x40] sm:$0xff] }
 0x865   : > { %v3478_v4 = vadd.f32 %v3454_v52, %v3430_v10  ;;  %v3514_v52 = vld [vmem:[#allocation4 + $0x50] sm:$0xff] }
 0x866   : > { %3496 = vst.msk [vmem:[#allocation3 + $0x40] sm:$0xff] %vm3487_vm10, %v3479_v35 }
 0x867   : > { %3495 = vst.msk [vmem:[#allocation3 + $0x38] sm:$0xff] %vm3487_vm10, %v3478_v4  ;;  %v3460_v57 = vpop.xlane.xlu1 %3459 }
 0x868   : > { %v3481_v41 = vadd.f32 %v3460_v57, %v3433_v55  ;;  %v3458_v46 = vpop.xlane.xlu0 %3457  ;;  %v3505_v57 = vld [vmem:[#allocation4 + $0x8] sm:$0xff] }
 0x869   : > { %v3480_v44 = vadd.f32 %v3458_v46, %v3432_v29 }
 0x86a   : > { %3498 = vst.msk [vmem:[#allocation3 + $0x50] sm:$0xff] %vm3487_vm10, %v3481_v41  ;;  %v3516_v41 = vld [vmem:[#allocation4 + $0x60] sm:$0xff] }
 0x86b   : > { %3497 = vst.msk [vmem:[#allocation3 + $0x48] sm:$0xff] %vm3487_vm10, %v3480_v44  ;;  %v3464_v19 = vpop.xlane.xlu1 %3463 }
 0x86c   : > { %v3483_v36 = vadd.f32 %v3464_v19, %v3435_v16  ;;  %v3462_v22 = vpop.xlane.xlu0 %3461  ;;  %v3507_v19 = vld [vmem:[#allocation4 + $0x18] sm:$0xff] }
 0x86d   : > { %v3482_v50 = vadd.f32 %v3462_v22, %v3434_v56 }
 0x86e   : > { %3500 = vst.msk [vmem:[#allocation3 + $0x60] sm:$0xff] %vm3487_vm10, %v3483_v36  ;;  %v3518_v36 = vld [vmem:[#allocation4 + $0x70] sm:$0xff] }
 0x86f   : > { %3499 = vst.msk [vmem:[#allocation3 + $0x58] sm:$0xff] %vm3487_vm10, %v3482_v50  ;;  %v3468_v2 = vpop.xlane.xlu1 %3467 }
 0x870   : > { %v3485_v21 = vadd.f32 %v3468_v2, %v3437_v42  ;;  %v3466_v23 = vpop.xlane.xlu0 %3465  ;;  %v3509_v2 = vld [vmem:[#allocation4 + $0x28] sm:$0xff] }
 0x871   : > { %v3484_v32 = vadd.f32 %v3466_v23, %v3436_v62 }
 0x872   : > { %3502 = vst.msk [vmem:[#allocation3 + $0x70] sm:$0xff] %vm3487_vm10, %v3485_v21 }
 0x873   : > { %3501 = vst.msk [vmem:[#allocation3 + $0x68] sm:$0xff] %vm3487_vm10, %v3484_v32  ;;  %v3523_v27 = vpop.permute.xlu1 %3522  ;;  %v3511_v32 = vld [vmem:[#allocation4 + $0x38] sm:$0xff] }
 0x874   : > { %v3470_v17 = vpop.xlane.xlu0 %3469  ;;  %v3600_v5 = vmul.f32 %v3523_v27, %v3504_v12 }
 0x875   : > { %v3486_v7 = vadd.f32 %v3470_v17, %v3438_v14 }
 0x877   : > { %3503 = vst.msk [vmem:[#allocation3 + $0x78] sm:$0xff] %vm3487_vm10, %v3486_v7  ;;  %v3533_v20 = vpop.permute.xlu1 %3532  ;;  %v3513_v7 = vld [vmem:[#allocation4 + $0x48] sm:$0xff] }
 0x878   : > { %v3602_v63 = vmul.f32 %v3533_v20, %v3506_v26 }
 0x87b   : > { %v3538_v37 = vpop.permute.xlu1 %3537 }
 0x87c   : > { %v3528_v61 = vpop.permute.xlu0 %3527  ;;  %v3603_v3 = vmul.f32 %v3538_v37, %v3507_v19 }
 0x87d   : > { %v3601_v34 = vmul.f32 %v3528_v61, %v3505_v57 }
 0x87f   : > { %v3543_v33 = vpop.permute.xlu1 %3542 }
 0x880   : > { %v3573_v9 = vpop.permute.xlu0 %3572  ;;  %v3604_v11 = vmul.f32 %v3543_v33, %v3508_v24  ;;  %v3515_v33 = vld [vmem:[#allocation4 + $0x58] sm:$0xff]  ;;  %v7883_v24 = vld [vmem:[#allocation3 + $0x8] sm:$0xff] (!%p4586_p0) }
 0x881   : > { %v3610_v6 = vmul.f32 %v3573_v9, %v3514_v52  ;;  %v5452_v52 = vmov (!%p4586_p0), 3  }
 0x883   : > { %v3548_v49 = vpop.permute.xlu1 %3547 }
 0x884   : > { %v3583_v8 = vpop.permute.xlu0 %3582  ;;  %v3605_v21 = vmul.f32 %v3548_v49, %v3509_v2 }
 0x885   : > { %v3612_v46 = vmul.f32 %v3583_v8, %v3516_v41 }
 0x887   : > { %v3553_v58 = vpop.permute.xlu1 %3552 }
 0x888   : > { %v3593_v39 = vpop.permute.xlu0 %3592  ;;  %v3606_v15 = vmul.f32 %v3553_v58, %v3510_v54  ;;  %v3517_v58 = vld [vmem:[#allocation4 + $0x68] sm:$0xff] }
 0x889   : > { %v3614_v22 = vmul.f32 %v3593_v39, %v3518_v36  ;;  %v7899_v54 = vld [vmem:[#allocation3 + $0x48] sm:$0xff] (!%p4586_p0) }
 0x88b   : > { %v3558_v30 = vpop.permute.xlu1 %3557 }
 0x88c   : > { %v3762_v25 = vpop.permute.xlu0 %3761  ;;  %v3607_v27 = vmul.f32 %v3558_v30, %v3511_v32  ;;  %v3519_v30 = vld [vmem:[#allocation4 + $0x78] sm:$0xff] }
 0x88d   : > { %v3809_v48 = vadd.f32 %v3762_v25, %v3600_v5 }
 0x88f   : > { %3826 = vst.msk [vmem:[#allocation4] sm:$0xff] %vm3825_vm11, %v3809_v48  ;;  %v3563_v59 = vpop.permute.xlu1 %3562 }
 0x890   : > { %v3766_v53 = vpop.permute.xlu0 %3765  ;;  %v3608_v31 = vmul.f32 %v3563_v59, %v3512_v45  ;;  %v7877_v59 = vld [vmem:[#allocation3] sm:$0xff] (!%p4586_p0) }
 0x891   : > { %v3811_v47 = vadd.f32 %v3766_v53, %v3602_v63  ;;  %v7875_v63 = vld [vmem:[#allocation3 + $0x10] sm:$0xff] (!%p4586_p0)  ;;  %v5449_v53 = vmov (!%p4586_p0), 0   ;;  %v3890_v45 = vld [vmem:[#allocation3 + $0x60] sm:$0xff] (!%p4586_p0) }
 0x892   : > { %5246 = vset.pattern.permute.xlu1 (!%p4586_p0), %v5449_v53  ;;  %5245 = vset.pattern.permute.xlu0 (!%p4586_p0), %v5449_v53 }
 0x893   : > { %3828 = vst.msk [vmem:[#allocation4 + $0x10] sm:$0xff] %vm3825_vm11, %v3811_v47  ;;  %v3568_v60 = vpop.permute.xlu1 %3567  ;;  %3906 = vperm.xlu1 (!%p4586_p0), %5246, %v7875_v63   ;;  %3896 = vperm.xlu0 (!%p4586_p0), %5245, %v7877_v59   ;;  %v7881_v47 = vld [vmem:[#allocation3 + $0x18] sm:$0xff] (!%p4586_p0) }
 0x894   : > { %v3770_v13 = vpop.permute.xlu0 %3769  ;;  %v3609_v20 = vmul.f32 %v3568_v60, %v3513_v7  ;;  %v7889_v60 = vld [vmem:[#allocation3 + $0x20] sm:$0xff] (!%p4586_p0) }
 0x895   : > { %v3813_v0 = vadd.f32 %v3770_v13, %v3604_v11  ;;  %v7887_v11 = vld [vmem:[#allocation3 + $0x28] sm:$0xff] (!%p4586_p0)  ;;  %v7893_v13 = vld [vmem:[#allocation3 + $0x38] sm:$0xff] (!%p4586_p0) }
 0x897   : > { %3830 = vst.msk [vmem:[#allocation4 + $0x20] sm:$0xff] %vm3825_vm11, %v3813_v0  ;;  %v3578_v38 = vpop.permute.xlu1 %3577  ;;  %3911 = vperm.xlu1 (!%p4586_p0), %5246, %v7881_v47   ;;  %3901 = vperm.xlu0 (!%p4586_p0), %5245, %v7883_v24   ;;  %v7895_v0 = vld [vmem:[#allocation3 + $0x30] sm:$0xff] (!%p4586_p0) }
 0x898   : > { %v3774_v28 = vpop.permute.xlu0 %3773  ;;  %v3611_v9 = vmul.f32 %v3578_v38, %v3515_v33  ;;  %v3889_v38 = vld [vmem:[#allocation3 + $0x58] sm:$0xff] (!%p4586_p0) }
 0x899   : > { %v3815_v1 = vadd.f32 %v3774_v28, %v3606_v15  ;;  %v7901_v15 = vld [vmem:[#allocation3 + $0x40] sm:$0xff] (!%p4586_p0)  ;;  %v7905_v28 = vld [vmem:[#allocation3 + $0x50] sm:$0xff] (!%p4586_p0) }
 0x89b   : > { %3832 = vst.msk [vmem:[#allocation4 + $0x30] sm:$0xff] %vm3825_vm11, %v3815_v1  ;;  %v3588_v10 = vpop.permute.xlu1 %3587  ;;  %3921 = vperm.xlu1 (!%p4586_p0), %5246, %v7887_v11   ;;  %3916 = vperm.xlu0 (!%p4586_p0), %5245, %v7889_v60   ;;  %v3891_v1 = vld [vmem:[#allocation3 + $0x68] sm:$0xff] (!%p4586_p0) }
 0x89c   : > { %v3778_v40 = vpop.permute.xlu0 %3777  ;;  %v3613_v39 = vmul.f32 %v3588_v10, %v3517_v58  ;;  %v3892_v10 = vld [vmem:[#allocation3 + $0x70] sm:$0xff] (!%p4586_p0) }
 0x89d   : > { %v3817_v35 = vadd.f32 %v3778_v40, %v3608_v31  ;;  %v3893_v31 = vld [vmem:[#allocation3 + $0x78] sm:$0xff] (!%p4586_p0)  ;;  %v5450_v40 = vmov (!%p4586_p0), 1  }
 0x89f   : > { %3834 = vst.msk [vmem:[#allocation4 + $0x40] sm:$0xff] %vm3825_vm11, %v3817_v35  ;;  %v3598_v4 = vpop.permute.xlu1 %3597  ;;  %3931 = vperm.xlu1 (!%p4586_p0), %5246, %v7893_v13   ;;  %3926 = vperm.xlu0 (!%p4586_p0), %5245, %v7895_v0   ;;  %v5451_v35 = vmov (!%p4586_p0), 2  }
 0x8a0   : > { %v3782_v55 = vpop.permute.xlu0 %3781  ;;  %v3615_v25 = vmul.f32 %v3598_v4, %v3519_v30 }
 0x8a1   : > { %v3819_v29 = vadd.f32 %v3782_v55, %v3610_v6 }
 0x8a2   : > { %v7987_v53 = vld [vmem:[#allocation4 + $0x30] sm:$0xff] (!%p4586_p0) }
 0x8a3   : > { %3836 = vst.msk [vmem:[#allocation4 + $0x50] sm:$0xff] %vm3825_vm11, %v3819_v29  ;;  %v3764_v51 = vpop.permute.xlu1 %3763  ;;  %3941 = vperm.xlu1 (!%p4586_p0), %5246, %v7899_v54   ;;  %3936 = vperm.xlu0 (!%p4586_p0), %5245, %v7901_v15  }
 0x8a4   : > { %v3810_v44 = vadd.f32 %v3764_v51, %v3601_v34  ;;  %v3786_v16 = vpop.permute.xlu0 %3785 }
 0x8a5   : > { %v3821_v56 = vadd.f32 %v3786_v16, %v3612_v46 }
 0x8a6   : > { %3827 = vst.msk [vmem:[#allocation4 + $0x8] sm:$0xff] %vm3825_vm11, %v3810_v44 }
 0x8a7   : > { %3838 = vst.msk [vmem:[#allocation4 + $0x60] sm:$0xff] %vm3825_vm11, %v3821_v56  ;;  %v3768_v43 = vpop.permute.xlu1 %3767  ;;  %3951 = vperm.xlu1 (!%p4586_p0), %5246, %v3889_v38   ;;  %3946 = vperm.xlu0 (!%p4586_p0), %5245, %v7905_v28  }
 0x8a8   : > { %v3812_v50 = vadd.f32 %v3768_v43, %v3603_v3  ;;  %v3790_v42 = vpop.permute.xlu0 %3789 }
 0x8a9   : > { %v3823_v62 = vadd.f32 %v3790_v42, %v3614_v22 }
 0x8aa   : > { %3829 = vst.msk [vmem:[#allocation4 + $0x18] sm:$0xff] %vm3825_vm11, %v3812_v50 }
 0x8ab   : > { %3840 = vst.msk [vmem:[#allocation4 + $0x70] sm:$0xff] %vm3825_vm11, %v3823_v62  ;;  %v3772_v23 = vpop.permute.xlu1 %3771  ;;  %3961 = vperm.xlu1 (!%p4586_p0), %5246, %v3891_v1   ;;  %3956 = vperm.xlu0 (!%p4586_p0), %5245, %v3890_v45  }
 0x8ac   : > { %v3814_v18 = vadd.f32 %v3772_v23, %v3605_v21 }
 0x8ae   : > { %3831 = vst.msk [vmem:[#allocation4 + $0x28] sm:$0xff] %vm3825_vm11, %v3814_v18  ;;  %v7963_v18 = vld [vmem:[#allocation4 + $0x8] sm:$0xff] (!%p4586_p0) }
 0x8af   : > { %v3776_v14 = vpop.permute.xlu1 %3775  ;;  %3971 = vperm.xlu1 (!%p4586_p0), %5246, %v3893_v31   ;;  %3966 = vperm.xlu0 (!%p4586_p0), %5245, %v3892_v10  }
 0x8b0   : > { %v3816_v17 = vadd.f32 %v3776_v14, %v3607_v27 }
 0x8b2   : > { %3833 = vst.msk [vmem:[#allocation4 + $0x38] sm:$0xff] %vm3825_vm11, %v3816_v17 }
 0x8b3   : > { %v3780_v37 = vpop.permute.xlu1 %3779  ;;  %5248 = vset.pattern.permute.xlu1 (!%p4586_p0), %v5450_v40  ;;  %5247 = vset.pattern.permute.xlu0 (!%p4586_p0), %v5450_v40 }
 0x8b4   : > { %v3818_v61 = vadd.f32 %v3780_v37, %v3609_v20  ;;  %4011 = vperm.xlu1 (!%p4586_p0), %5248, %v7883_v24   ;;  %4007 = vperm.xlu0 (!%p4586_p0), %5247, %v7877_v59   ;;  %v7969_v37 = vld [vmem:[#allocation4 + $0x10] sm:$0xff] (!%p4586_p0) }
 0x8b6   : > { %3835 = vst.msk [vmem:[#allocation4 + $0x48] sm:$0xff] %vm3825_vm11, %v3818_v61 }
 0x8b7   : > { %v3784_v49 = vpop.permute.xlu1 %3783 }
 0x8b8   : > { %v3820_v8 = vadd.f32 %v3784_v49, %v3611_v9  ;;  %4015 = vperm.xlu1 (!%p4586_p0), %5248, %v7875_v63   ;;  %4019 = vperm.xlu0 (!%p4586_p0), %5247, %v7881_v47  }
 0x8ba   : > { %3837 = vst.msk [vmem:[#allocation4 + $0x58] sm:$0xff] %vm3825_vm11, %v3820_v8 }
 0x8bb   : > { %v3788_v12 = vpop.permute.xlu1 %3787 }
 0x8bc   : > { %v3822_v5 = vadd.f32 %v3788_v12, %v3613_v39  ;;  %3861 = sbr.rel (%p4586_p0) target bundleno = 2473 (0x9a9), region = 89  ;;  %4023 = vperm.xlu1 (!%p4586_p0), %5248, %v7889_v60   ;;  %4027 = vperm.xlu0 (!%p4586_p0), %5247, %v7887_v11   ;;  %v7978_v12 = vld [vmem:[#allocation4 + $0x20] sm:$0xff] (!%p4586_p0) }
 0x8be   : > { %3839 = vst.msk [vmem:[#allocation4 + $0x68] sm:$0xff] %vm3825_vm11, %v3822_v5 }
 0x8bf   : > { %v3792_v48 = vpop.permute.xlu1 %3791 }
 0x8c0   : > { %v3824_v26 = vadd.f32 %v3792_v48, %v3615_v25  ;;  %4031 = vperm.xlu1 (!%p4586_p0), %5248, %v7895_v0   ;;  %4035 = vperm.xlu0 (!%p4586_p0), %5247, %v7893_v13  }
 0x8c2   : > { %3841 = vst.msk [vmem:[#allocation4 + $0x78] sm:$0xff] %vm3825_vm11, %v3824_v26 }
 0x8c4   : > { %4039 = vperm.xlu1 %5248, %v7901_v15   ;;  %4043 = vperm.xlu0 %5247, %v7899_v54  }
 0x8c8   : > { %4047 = vperm.xlu1 %5248, %v7905_v28   ;;  %4051 = vperm.xlu0 %5247, %v3889_v38  }
 0x8cc   : > { %4055 = vperm.xlu1 %5248, %v3890_v45   ;;  %4059 = vperm.xlu0 %5247, %v3891_v1  }
 0x8d0   : > { %4063 = vperm.xlu1 %5248, %v3892_v10   ;;  %4067 = vperm.xlu0 %5247, %v3893_v31  }
 0x8d4   : > { %5249 = vset.pattern.permute.xlu1 %v5451_v35  ;;  %5250 = vset.pattern.permute.xlu0 %v5451_v35  ;;  %v8005_v35 = vld [vmem:[#allocation4 + $0x50] sm:$0xff] }
 0x8d5   : > { %4103 = vperm.xlu1 %5249, %v7877_v59   ;;  %4107 = vperm.xlu0 %5250, %v7883_v24  }
 0x8d9   : > { %4111 = vperm.xlu1 %5249, %v7875_v63   ;;  %4119 = vperm.xlu0 %5250, %v7889_v60  }
 0x8dd   : > { %4115 = vperm.xlu1 %5249, %v7881_v47   ;;  %4127 = vperm.xlu0 %5250, %v7895_v0  }
 0x8e1   : > { %4123 = vperm.xlu1 %5249, %v7887_v11   ;;  %4135 = vperm.xlu0 %5250, %v7901_v15  }
 0x8e5   : > { %4131 = vperm.xlu1 %5249, %v7893_v13   ;;  %4143 = vperm.xlu0 %5250, %v7905_v28  }
 0x8e9   : > { %4139 = vperm.xlu1 %5249, %v7899_v54   ;;  %4151 = vperm.xlu0 %5250, %v3890_v45  }
 0x8ed   : > { %4147 = vperm.xlu1 %5249, %v3889_v38   ;;  %4159 = vperm.xlu0 %5250, %v3892_v10  }
 0x8f1   : > { %4155 = vperm.xlu1 %5249, %v3891_v1   ;;  %5251 = vset.pattern.permute.xlu0 %v5452_v52 }
 0x8f2   : > { %4199 = vperm.xlu0 %5251, %v7877_v59  }
 0x8f5   : > { %4163 = vperm.xlu1 %5249, %v3893_v31  }
 0x8f6   : > { %4211 = vperm.xlu0 %5251, %v7881_v47  }
 0x8f9   : > { %5252 = vset.pattern.permute.xlu1 %v5452_v52 }
 0x8fa   : > { %4203 = vperm.xlu1 %5252, %v7883_v24   ;;  %4219 = vperm.xlu0 %5251, %v7887_v11  }
 0x8fe   : > { %4207 = vperm.xlu1 %5252, %v7875_v63   ;;  %4227 = vperm.xlu0 %5251, %v7893_v13  }
 0x902   : > { %4215 = vperm.xlu1 %5252, %v7889_v60   ;;  %4235 = vperm.xlu0 %5251, %v7899_v54  }
 0x906   : > { %4223 = vperm.xlu1 %5252, %v7895_v0   ;;  %4243 = vperm.xlu0 %5251, %v3889_v38  }
 0x90a   : > { %4231 = vperm.xlu1 %5252, %v7901_v15   ;;  %4251 = vperm.xlu0 %5251, %v3891_v1   ;;  %v7996_v15 = vld [vmem:[#allocation4 + $0x40] sm:$0xff] }
 0x90e   : > { %4239 = vperm.xlu1 %5252, %v7905_v28   ;;  %4259 = vperm.xlu0 %5251, %v3893_v31  }
 0x912   : > { %v3907_v6 = vpop.permute.xlu1 %3906  ;;  %4247 = vperm.xlu1 %5252, %v3890_v45   ;;  %v7941_v4 = vpop.permute.xlu0 %3896 }
 0x916   : > { %v7943_v55 = vpop.permute.xlu1 %3911  ;;  %4255 = vperm.xlu1 %5252, %v3892_v10   ;;  %v3902_v57 = vpop.permute.xlu0 %3901 }
 0x917   : > { %5253 = vrcp.f32 %v3902_v57 }
 0x91a   : > { %v7945_v29 = vpop.permute.xlu1 %3921  ;;  %v3917_v34 = vpop.permute.xlu0 %3916 }
 0x91e   : > { %v7947_v41 = vpop.permute.xlu1 %3931  ;;  %v3927_v46 = vpop.permute.xlu0 %3926 }
 0x921   : > { %v5254_v23 = vpop.eup %5253 }
 0x922   : > { %v7949_v51 = vpop.permute.xlu1 %3941  ;;  %v3937_v44 = vpop.permute.xlu0 %3936  ;;  %v3977_v27 = vmul.f32 %v5254_v23, %v7963_v18 }
 0x926   : > { %v7951_v16 = vpop.permute.xlu1 %3951  ;;  %v3947_v19 = vpop.permute.xlu0 %3946 }
 0x92a   : > { %v7953_v56 = vpop.permute.xlu1 %3961  ;;  %v3957_v3 = vpop.permute.xlu0 %3956 }
 0x92e   : > { %v7955_v36 = vpop.permute.xlu1 %3971  ;;  %v3967_v22 = vpop.permute.xlu0 %3966 }
 0x933   : > { %v4012_v43 = vpop.permute.xlu1 %4011  ;;  %v7957_v50 = vpop.permute.xlu0 %4007 }
 0x934   : > { %5255 = vrcp.f32 %v4012_v43 }
 0x935   : > { %5257 = vrcp.f32 %v3907_v6 }
 0x937   : > { %v4016_v42 = vpop.permute.xlu1 %4015  ;;  %v7959_v2 = vpop.permute.xlu0 %4019 }
 0x938   : > { %5259 = vrcp.f32 %v4016_v42 }
 0x939   : > { %5261 = vrcp.f32 %v3917_v34 }
 0x93b   : > { %v4024_v62 = vpop.permute.xlu1 %4023  ;;  %v7961_v21 = vpop.permute.xlu0 %4027 }
 0x93c   : > { %5263 = vrcp.f32 %v4024_v62 }
 0x93d   : > { %5265 = vrcp.f32 %v3927_v46 }
 0x93e   : > { %v5256_v32 = vpop.eup %5255 }
 0x93f   : > { %v4073_v14 = vmul.f32 %v5256_v32, %v7963_v18  ;;  %v4032_v17 = vpop.permute.xlu1 %4031  ;;  %v7967_v7 = vpop.permute.xlu0 %4035  ;;  %v8019_v32 = vld [vmem:[#allocation4 + $0x70] sm:$0xff] }
 0x940   : > { %v5258_v20 = vpop.eup %5257  ;;  %5267 = vrcp.f32 %v4032_v17 }
 0x941   : > { %v7972_v61 = vsel %vm1308_vm4, %v3977_v27, %v4073_v14  ;;  %5269 = vrcp.f32 %v3937_v44  ;;  %v3979_v9 = vmul.f32 %v5258_v20, %v7969_v37  ;;  %v8012_v44 = vld [vmem:[#allocation4 + $0x60] sm:$0xff] }
 0x942   : > { %v5260_v33 = vpop.eup %5259 }
 0x943   : > { %v4075_v49 = vmul.f32 %v5260_v33, %v7969_v37  ;;  %v4040_v8 = vpop.permute.xlu1 %4039  ;;  %v7976_v58 = vpop.permute.xlu0 %4043 }
 0x944   : > { %v5262_v39 = vpop.eup %5261  ;;  %5271 = vrcp.f32 %v4040_v8 }
 0x945   : > { %v7981_v5 = vsel %vm1308_vm4, %v3979_v9, %v4075_v49  ;;  %5273 = vrcp.f32 %v3947_v19  ;;  %v3983_v25 = vmul.f32 %v5262_v39, %v7978_v12 }
 0x946   : > { %v5264_v30 = vpop.eup %5263 }
 0x947   : > { %v4079_v48 = vmul.f32 %v5264_v30, %v7978_v12  ;;  %v4048_v26 = vpop.permute.xlu1 %4047  ;;  %v7985_v63 = vpop.permute.xlu0 %4051 }
 0x948   : > { %v5266_v59 = vpop.eup %5265  ;;  %5275 = vrcp.f32 %v4048_v26 }
 0x949   : > { %v7990_v47 = vsel %vm1308_vm4, %v3983_v25, %v4079_v48  ;;  %5277 = vrcp.f32 %v3957_v3  ;;  %v3987_v11 = vmul.f32 %v5266_v59, %v7987_v53 }
 0x94a   : > { %v5268_v24 = vpop.eup %5267 }
 0x94b   : > { %v4083_v60 = vmul.f32 %v5268_v24, %v7987_v53  ;;  %v4056_v13 = vpop.permute.xlu1 %4055  ;;  %v7994_v0 = vpop.permute.xlu0 %4059 }
 0x94c   : > { %v5270_v54 = vpop.eup %5269  ;;  %5279 = vrcp.f32 %v4056_v13 }
 0x94d   : > { %v7999_v38 = vsel %vm1308_vm4, %v3987_v11, %v4083_v60  ;;  %5281 = vrcp.f32 %v3967_v22  ;;  %v3991_v1 = vmul.f32 %v5270_v54, %v7996_v15 }
 0x94e   : > { %v5272_v28 = vpop.eup %5271 }
 0x94f   : > { %v4087_v45 = vmul.f32 %v5272_v28, %v7996_v15  ;;  %v4064_v31 = vpop.permute.xlu1 %4063  ;;  %v8003_v10 = vpop.permute.xlu0 %4067 }
 0x950   : > { %v5274_v40 = vpop.eup %5273  ;;  %5283 = vrcp.f32 %v4064_v31  ;;  %v3865_v31 = vld [vmem:[#allocation4 + $0x18] sm:$0xff] }
 0x951   : > { %v8008_v52 = vsel %vm1308_vm4, %v3991_v1, %v4087_v45  ;;  %v3995_v57 = vmul.f32 %v5274_v40, %v8005_v35  ;;  %5285 = vrcp.f32 %v7941_v4  ;;  %v3862_v1 = vld [vmem:[#allocation4] sm:$0xff]  ;;  %v8066_v40 = vld [vmem:[#allocation4 + $0x28] sm:$0xff] }
 0x952   : > { %v5276_v6 = vpop.eup %5275  ;;  %5287 = vrcp.f32 %v7943_v55 }
 0x953   : > { %v4091_v34 = vmul.f32 %v5276_v6, %v8005_v35  ;;  %v5278_v46 = vpop.eup %5277  ;;  %5289 = vrcp.f32 %v7945_v29 }
 0x954   : > { %v4104_v19 = vpop.permute.xlu1 %4103  ;;  %v4108_v3 = vpop.permute.xlu0 %4107  ;;  %v3999_v42 = vmul.f32 %v5278_v46, %v8012_v44  ;;  %5291 = vrcp.f32 %v7947_v41 }
 0x955   : > { %v8015_v22 = vsel %vm1308_vm4, %v3995_v57, %v4091_v34  ;;  %5293 = vrcp.f32 %v7949_v51 }
 0x956   : > { %v5280_v43 = vpop.eup %5279  ;;  %5295 = vrcp.f32 %v7951_v16 }
 0x957   : > { %v4095_v62 = vmul.f32 %v5280_v43, %v8012_v44  ;;  %v5282_v23 = vpop.eup %5281  ;;  %5297 = vrcp.f32 %v7953_v56  ;;  %v8070_v43 = vld [vmem:[#allocation4 + $0x38] sm:$0xff] }
 0x958   : > { %v4112_v27 = vpop.permute.xlu1 %4111  ;;  %v4120_v14 = vpop.permute.xlu0 %4119  ;;  %v4003_v33 = vmul.f32 %v5282_v23, %v8019_v32  ;;  %5299 = vrcp.f32 %v7955_v36 }
 0x959   : > { %v8022_v17 = vsel %vm1308_vm4, %v3999_v42, %v4095_v62  ;;  %5301 = vrcp.f32 %v7957_v50 }
 0x95a   : > { %v5284_v20 = vpop.eup %5283  ;;  %5303 = vrcp.f32 %v7959_v2 }
 0x95b   : > { %v4099_v9 = vmul.f32 %v5284_v20, %v8019_v32  ;;  %v5286_v4 = vpop.eup %5285  ;;  %5305 = vrcp.f32 %v7961_v21 }
 0x95c   : > { %v4116_v49 = vpop.permute.xlu1 %4115  ;;  %v8026_v8 = vpop.permute.xlu0 %4127  ;;  %5307 = vrcp.f32 %v4104_v19 }
 0x95d   : > { %v8029_v39 = vsel %vm1308_vm4, %v4003_v33, %v4099_v9  ;;  %v5288_v41 = vpop.eup %5287  ;;  %5309 = vrcp.f32 %v7967_v7 }
 0x95e   : > { %v5290_v51 = vpop.eup %5289  ;;  %5311 = vrcp.f32 %v7976_v58  ;;  %v3981_v62 = vmul.f32 %v5288_v41, %v3865_v31 }
 0x95f   : > { %v5292_v16 = vpop.eup %5291  ;;  %5313 = vrcp.f32 %v7985_v63  ;;  %v3985_v23 = vmul.f32 %v5290_v51, %v8066_v40 }
 0x960   : > { %v4124_v30 = vpop.permute.xlu1 %4123  ;;  %v8031_v25 = vpop.permute.xlu0 %4135  ;;  %5315 = vrcp.f32 %v4116_v49  ;;  %v8085_v49 = vld [vmem:[%s8265_s4] ss:$0 sm:$0xff]  ;;  %v3989_v51 = vmul.f32 %v5292_v16, %v8070_v43 }
 0x961   : > { %v5294_v56 = vpop.eup %5293 }
 0x962   : > { %v5296_v50 = vpop.eup %5295 }
 0x963   : > { %v8059_v21 = vpop.eup %5297 }
 0x964   : > { %v4132_v48 = vpop.permute.xlu1 %4131  ;;  %v8036_v26 = vpop.permute.xlu0 %4143 }
 0x965   : > { %v8061_v11 = vpop.eup %5299 }
 0x966   : > { %v5302_v60 = vpop.eup %5301 }
 0x967   : > { %v5304_v58 = vpop.eup %5303  ;;  %v4071_v6 = vmul.f32 %v5302_v60, %v3862_v1 }
 0x968   : > { %v8042_v59 = vpop.permute.xlu1 %4139  ;;  %v8044_v24 = vpop.permute.xlu0 %4151  ;;  %v4077_v9 = vmul.f32 %v5304_v58, %v3865_v31 }
 0x969   : > { %v5306_v63 = vpop.eup %5305 }
 0x96a   : > { %v5308_v54 = vpop.eup %5307 }
 0x96b   : > { %v5310_v28 = vpop.eup %5309  ;;  %v4167_v46 = vmul.f32 %v5308_v54, %v3862_v1 }
 0x96c   : > { %v8050_v55 = vpop.permute.xlu1 %4147  ;;  %v8052_v29 = vpop.permute.xlu0 %4159  ;;  %v4085_v16 = vmul.f32 %v5310_v28, %v8070_v43 }
 0x96d   : > { %v5312_v45 = vpop.eup %5311 }
 0x96e   : > { %v8068_v34 = vpop.eup %5313 }
 0x96f   : > { %v5316_v19 = vpop.eup %5315 }
 0x970   : > { %v8057_v36 = vpop.permute.xlu1 %4155 }
 0x971   : > { %v4200_v2 = vpop.permute.xlu0 %4199 }
 0x972   : > { %5317 = vrcp.f32 %v4200_v2  ;;  %v4173_v2 = vmul.f32 %v5316_v19, %v3865_v31 }
 0x973   : > { %5319 = vrcp.f32 %v7994_v0 }
 0x974   : > { %5321 = vrcp.f32 %v4108_v3  ;;  %v8064_v7 = vpop.permute.xlu1 %4163  ;;  %v3975_v3 = vmul.f32 %v5286_v4, %v3862_v1 }
 0x975   : > { %5323 = vrcp.f32 %v4124_v30  ;;  %v4212_v13 = vpop.permute.xlu0 %4211 }
 0x976   : > { %5325 = vrcp.f32 %v4212_v13  ;;  %v4294_v33 = vsel %vm1308_vm4, %v3975_v3, %v4071_v6  ;;  %v4081_v6 = vmul.f32 %v5306_v63, %v8066_v40 }
 0x977   : > { %5327 = vrcp.f32 %v4112_v27  ;;  %v8073_v27 = vld [vmem:[#allocation4 + $0x48] sm:$0xff] }
 0x978   : > { %5329 = vrcp.f32 %v4120_v14  ;;  %v8075_v14 = vld [vmem:[#allocation4 + $0x58] sm:$0xff]  ;;  %v3993_v58 = vmul.f32 %v5294_v56, %v8073_v27  ;;  %v4297_v56 = vsel %vm1308_vm4, %v3981_v62, %v4077_v9  ;;  %v4299_v62 = vsel %vm1308_vm4, %v3985_v23, %v4081_v6 }
 0x979   : > { %5331 = vrcp.f32 %v4132_v48  ;;  %v4204_v0 = vpop.permute.xlu1 %4203  ;;  %v4220_v57 = vpop.permute.xlu0 %4219  ;;  %v4314_v28 = vsel %vm4310_vm12, %v4297_v56, %v4173_v2  ;;  %v4301_v9 = vsel %vm1308_vm4, %v3989_v51, %v4085_v16 }
 0x97a   : > { %5333 = vrcp.f32 %v4204_v0 }
 0x97b   : > { %5335 = vrcp.f32 %v4220_v57 }
 0x97c   : > { %v5318_v42 = vpop.eup %5317  ;;  %5337 = vrcp.f32 %v8003_v10  ;;  %v4311_v10 = vsel %vm4310_vm12, %v4294_v33, %v4167_v46 }
 0x97d   : > { %v8078_v20 = vpop.eup %5319  ;;  %5339 = vrcp.f32 %v8042_v59  ;;  %v4263_v30 = vmul.f32 %v5318_v42, %v3862_v1  ;;  %v4208_v48 = vpop.permute.xlu1 %4207  ;;  %v8091_v59 = vmul.f32 %v5296_v50, %v8075_v14  ;;  %v8094_v1 = vld [vmem:[#allocation4 + $0x68] sm:$0xff]  ;;  %v4089_v50 = vmul.f32 %v5312_v45, %v8073_v27 }
 0x97e   : > { %v4228_v4 = vpop.permute.xlu0 %4227  ;;  %v5322_v41 = vpop.eup %5321  ;;  %5341 = vrcp.f32 %v4208_v48 }
 0x97f   : > { %v5324_v60 = vpop.eup %5323  ;;  %v4328_v13 = vsel %vm4327_vm13, %v4311_v10, %v4263_v30  ;;  %5343 = vrcp.f32 %v4228_v4  ;;  %v4169_v63 = vmul.f32 %v5322_v41, %v7963_v18  ;;  %v8107_v30 = vmul.f32 %v8059_v21, %v8094_v1 }
 0x980   : > { %v5326_v54 = vpop.eup %5325  ;;  %5345 = vrcp.f32 %v8026_v8  ;;  %v4351_v0 = vadd.f32 %v8085_v49, %v4328_v13  ;;  %v4177_v45 = vmul.f32 %v5324_v60, %v8066_v40  ;;  %v4303_v21 = vsel %vm1308_vm4, %v3993_v58, %v4089_v50 }
 0x981   : > { %v5328_v57 = vpop.eup %5327  ;;  %5347 = vrcp.f32 %v8050_v55  ;;  %v4269_v46 = vmul.f32 %v5326_v54, %v3865_v31  ;;  %v4216_v19 = vpop.permute.xlu1 %4215 }
 0x982   : > { %v4236_v3 = vpop.permute.xlu0 %4235  ;;  %v5330_v42 = vpop.eup %5329  ;;  %v4607_v33 = vpack.c.bf16 %v4351_v0, %v4351_v0  ;;  %5349 = vrcp.f32 %v4216_v19  ;;  %v4171_v41 = vmul.f32 %v5328_v57, %v7969_v37  ;;  %v4316_v58 = vsel %vm4310_vm12, %v4299_v62, %v4177_v45 }
 0x983   : > { %v5332_v8 = vpop.eup %5331  ;;  %v4331_v55 = vsel %vm4327_vm13, %v4314_v28, %v4269_v46  ;;  %5351 = vrcp.f32 %v4236_v3  ;;  %v4175_v16 = vmul.f32 %v5330_v42, %v7978_v12 }
 0x984   : > { %v5334_v31 = vpop.eup %5333  ;;  %5353 = vrcp.f32 %v8031_v25  ;;  %4432 = vst.msk [vmem:[%s5581_s15] sm:$0xf] %vm4431_vm14, %v4607_v33  ;;  %v4354_v48 = vadd.f32 %v8085_v49, %v4331_v55  ;;  %v4312_v25 = vsel %vm4310_vm12, %v7972_v61, %v4169_v63  ;;  %v4181_v6 = vmul.f32 %v5332_v8, %v8070_v43 }
 0x985   : > { %v5336_v4 = vpop.eup %5335  ;;  %5355 = vrcp.f32 %v8057_v36  ;;  %v4265_v10 = vmul.f32 %v5334_v31, %v7963_v18  ;;  %v4224_v2 = vpop.permute.xlu1 %4223  ;;  %v4313_v57 = vsel %vm4310_vm12, %v7981_v5, %v4171_v41  ;;  %v4315_v45 = vsel %vm4310_vm12, %v7990_v47, %v4175_v16 }
 0x986   : > { %v4244_v23 = vpop.permute.xlu0 %4243  ;;  %v8121_v60 = vpop.eup %5337  ;;  %v4610_v51 = vpack.c.bf16 %v4354_v48, %v4354_v48  ;;  %v4273_v13 = vmul.f32 %v5336_v4, %v8066_v40  ;;  %5357 = vrcp.f32 %v4224_v2  ;;  %v4318_v5 = vsel %vm4310_vm12, %v4301_v9, %v4181_v6  ;;  %v3877_v6 = vld [vmem:[#allocation4 + $0x78] sm:$0xff] }
 0x987   : > { %v5340_v54 = vpop.eup %5339  ;;  %v4329_v36 = vsel %vm4327_vm13, %v4312_v25, %v4265_v10  ;;  %5359 = vrcp.f32 %v4244_v23 }
 0x988   : > { %v5342_v18 = vpop.eup %5341  ;;  %5361 = vrcp.f32 %v8036_v26  ;;  %4435 = vst.msk [vmem:[%s5581_s15 + $0xc] sm:$0xf] %vm4431_vm14, %v4610_v51  ;;  %v4352_v61 = vadd.f32 %v8085_v49, %v4329_v36  ;;  %v4333_v40 = vsel %vm4327_vm13, %v4316_v58, %v4273_v13  ;;  %v4185_v3 = vmul.f32 %v5340_v54, %v8073_v27 }
 0x989   : > { %v5344_v0 = vpop.eup %5343  ;;  %5363 = vrcp.f32 %v8064_v7  ;;  %v4356_v56 = vadd.f32 %v8085_v49, %v4333_v40  ;;  %v4267_v50 = vmul.f32 %v5342_v18, %v7969_v37  ;;  %v4232_v46 = vpop.permute.xlu1 %4231  ;;  %v4093_v37 = vmul.f32 %v8068_v34, %v8075_v14 }
 0x98a   : > { %v4252_v19 = vpop.permute.xlu0 %4251  ;;  %v5346_v26 = vpop.eup %5345  ;;  %v4608_v42 = vpack.c.bf16 %v4352_v61, %v4352_v61  ;;  %v4277_v63 = vmul.f32 %v5344_v0, %v8070_v43  ;;  %5365 = vrcp.f32 %v4232_v46  ;;  %v4320_v41 = vsel %vm4310_vm12, %v4303_v21, %v4185_v3 }
 0x98b   : > { %v5348_v28 = vpop.eup %5347  ;;  %v4612_v33 = vpack.c.bf16 %v4356_v56, %v4356_v56  ;;  %v4330_v7 = vsel %vm4327_vm13, %v4313_v57, %v4267_v50  ;;  %5367 = vrcp.f32 %v4252_v19  ;;  %v4179_v62 = vmul.f32 %v5346_v26, %v7987_v53 }
 0x98c   : > { %v5350_v8 = vpop.eup %5349  ;;  %4433 = vst.msk [vmem:[%s5581_s15 + $0x4] sm:$0xf] %vm4431_vm14, %v4608_v42  ;;  %v4353_v43 = vadd.f32 %v8085_v49, %v4330_v7  ;;  %v4335_v55 = vsel %vm4327_vm13, %v4318_v5, %v4277_v63  ;;  %5369 = vrcp.f32 %v8044_v24  ;;  %v4189_v24 = vmul.f32 %v5348_v28, %v8075_v14 }
 0x98d   : > { %v5352_v31 = vpop.eup %5351  ;;  %4437 = vst.msk [vmem:[%s5581_s15 + $0x14] sm:$0xf] %vm4431_vm14, %v4612_v33  ;;  %v4358_v9 = vadd.f32 %v8085_v49, %v4335_v55  ;;  %v4271_v34 = vmul.f32 %v5350_v8, %v7978_v12  ;;  %v4240_v48 = vpop.permute.xlu1 %4239  ;;  %v4305_v12 = vsel %vm1308_vm4, %v8091_v59, %v4093_v37  ;;  %v4097_v54 = vmul.f32 %v8078_v20, %v8094_v1 }
 0x98e   : > { %v4260_v47 = vpop.permute.xlu0 %4259  ;;  %v5354_v4 = vpop.eup %5353  ;;  %v4609_v10 = vpack.c.bf16 %v4353_v43, %v4353_v43  ;;  %v4281_v2 = vmul.f32 %v5352_v31, %v8073_v27  ;;  %5371 = vrcp.f32 %v4240_v48  ;;  %v4317_v61 = vsel %vm4310_vm12, %v7999_v38, %v4179_v62 }
 0x98f   : > { %v5356_v23 = vpop.eup %5355  ;;  %v4614_v25 = vpack.c.bf16 %v4358_v9, %v4358_v9  ;;  %v4332_v51 = vsel %vm4327_vm13, %v4315_v45, %v4271_v34  ;;  %5373 = vrcp.f32 %v4260_v47  ;;  %v4183_v36 = vmul.f32 %v5354_v4, %v7996_v15 }
 0x990   : > { %v5358_v13 = vpop.eup %5357  ;;  %4434 = vst.msk [vmem:[%s5581_s15 + $0x8] sm:$0xf] %vm4431_vm14, %v4609_v10  ;;  %v4355_v27 = vadd.f32 %v8085_v49, %v4332_v51  ;;  %v4337_v21 = vsel %vm4327_vm13, %v4320_v41, %v4281_v2  ;;  %5375 = vrcp.f32 %v8052_v29  ;;  %v4322_v29 = vsel %vm4310_vm12, %v4305_v12, %v4189_v24 }
 0x991   : > { %v5360_v58 = vpop.eup %5359  ;;  %4439 = vst.msk [vmem:[%s5581_s15 + $0x1c] sm:$0xf] %vm4431_vm14, %v4614_v25  ;;  %v4360_v18 = vadd.f32 %v8085_v49, %v4337_v21  ;;  %v4275_v59 = vmul.f32 %v5358_v13, %v7987_v53  ;;  %v4248_v20 = vpop.permute.xlu1 %4247  ;;  %v4193_v56 = vmul.f32 %v5356_v23, %v8094_v1  ;;  %v4005_v53 = vmul.f32 %v8061_v11, %v3877_v6 }
 0x992   : > { %v5362_v16 = vpop.eup %5361  ;;  %v4611_v40 = vpack.c.bf16 %v4355_v27, %v4355_v27  ;;  %v4285_v0 = vmul.f32 %v5360_v58, %v8075_v14  ;;  %5377 = vrcp.f32 %v4248_v20  ;;  %v4307_v26 = vsel %vm1308_vm4, %v8107_v30, %v4097_v54 }
 0x993   : > { %v5364_v57 = vpop.eup %5363  ;;  %v4616_v50 = vpack.c.bf16 %v4360_v18, %v4360_v18  ;;  %v4334_v46 = vsel %vm4327_vm13, %v4317_v61, %v4275_v59  ;;  %v4101_v42 = vmul.f32 %v8121_v60, %v3877_v6  ;;  %v4319_v63 = vsel %vm4310_vm12, %v8008_v52, %v4183_v36 }
 0x994   : > { %v5366_v19 = vpop.eup %5365  ;;  %4436 = vst.msk [vmem:[%s5581_s15 + $0x10] sm:$0xf] %vm4431_vm14, %v4611_v40  ;;  %v4357_v38 = vadd.f32 %v8085_v49, %v4334_v46  ;;  %v4339_v14 = vsel %vm4327_vm13, %v4322_v29, %v4285_v0  ;;  %v4187_v5 = vmul.f32 %v5362_v16, %v8005_v35  ;;  %v4324_v60 = vsel %vm4310_vm12, %v4307_v26, %v4193_v56 }
 0x995   : > { %v5368_v3 = vpop.eup %5367  ;;  %4441 = vst.msk [vmem:[%s5581_s15 + $0x24] sm:$0xf] %vm4431_vm14, %v4616_v50  ;;  %v4362_v11 = vadd.f32 %v8085_v49, %v4339_v14  ;;  %v4279_v28 = vmul.f32 %v5366_v19, %v7996_v15  ;;  %v4256_v30 = vpop.permute.xlu1 %4255  ;;  %v4197_v37 = vmul.f32 %v5364_v57, %v3877_v6  ;;  %v4309_v62 = vsel %vm1308_vm4, %v4005_v53, %v4101_v42 }
 0x996   : > { %v4613_v33 = vpack.c.bf16 %v4357_v38, %v4357_v38  ;;  %v4289_v7 = vmul.f32 %v5368_v3, %v8094_v1  ;;  %5379 = vrcp.f32 %v4256_v30  ;;  %v5370_v8 = vpop.eup %5369  ;;  %v4321_v34 = vsel %vm4310_vm12, %v8015_v22, %v4187_v5 }
 0x997   : > { %v4618_v45 = vpack.c.bf16 %v4362_v11, %v4362_v11  ;;  %v4336_v52 = vsel %vm4327_vm13, %v4319_v63, %v4279_v28  ;;  %v4191_v48 = vmul.f32 %v5370_v8, %v8012_v44  ;;  %v4326_v10 = vsel %vm4310_vm12, %v4309_v62, %v4197_v37 }
 0x998   : > { %v5372_v43 = vpop.eup %5371  ;;  %4438 = vst.msk [vmem:[%s5581_s15 + $0x18] sm:$0xf] %vm4431_vm14, %v4613_v33  ;;  %v4359_v15 = vadd.f32 %v8085_v49, %v4336_v52  ;;  %v4341_v55 = vsel %vm4327_vm13, %v4324_v60, %v4289_v7 }
 0x999   : > { %v5374_v31 = vpop.eup %5373  ;;  %4443 = vst.msk [vmem:[%s5581_s15 + $0x2c] sm:$0xf] %vm4431_vm14, %v4618_v45  ;;  %v4364_v1 = vadd.f32 %v8085_v49, %v4341_v55  ;;  %v4283_v9 = vmul.f32 %v5372_v43, %v8005_v35  ;;  %v4323_v13 = vsel %vm4310_vm12, %v8022_v17, %v4191_v48 }
 0x99a   : > { %v4615_v47 = vpack.c.bf16 %v4359_v15, %v4359_v15  ;;  %v4293_v4 = vmul.f32 %v5374_v31, %v3877_v6  ;;  %v5376_v41 = vpop.eup %5375 }
 0x99b   : > { %v4620_v2 = vpack.c.bf16 %v4364_v1, %v4364_v1  ;;  %v4338_v23 = vsel %vm4327_vm13, %v4321_v34, %v4283_v9  ;;  %v4195_v12 = vmul.f32 %v5376_v41, %v8019_v32 }
 0x99c   : > { %v5378_v24 = vpop.eup %5377  ;;  %4440 = vst.msk [vmem:[%s5581_s15 + $0x20] sm:$0xf] %vm4431_vm14, %v4615_v47  ;;  %v4361_v35 = vadd.f32 %v8085_v49, %v4338_v23  ;;  %v4343_v25 = vsel %vm4327_vm13, %v4326_v10, %v4293_v4 }
 0x99d   : > { %4445 = vst.msk [vmem:[%s5581_s15 + $0x34] sm:$0xf] %vm4431_vm14, %v4620_v2  ;;  %v4366_v22 = vadd.f32 %v8085_v49, %v4343_v25  ;;  %v4287_v51 = vmul.f32 %v5378_v24, %v8012_v44  ;;  %v4325_v44 = vsel %vm4310_vm12, %v8029_v39, %v4195_v12 }
 0x99e   : > { %v4617_v54 = vpack.c.bf16 %v4361_v35, %v4361_v35 }
 0x99f   : > { %v4622_v27 = vpack.c.bf16 %v4366_v22, %v4366_v22  ;;  %v4340_v21 = vsel %vm4327_vm13, %v4323_v13, %v4287_v51 }
 0x9a0   : > { %v5380_v58 = vpop.eup %5379  ;;  %4442 = vst.msk [vmem:[%s5581_s15 + $0x28] sm:$0xf] %vm4431_vm14, %v4617_v54  ;;  %v4363_v6 = vadd.f32 %v8085_v49, %v4340_v21 }
 0x9a1   : > { %4447 = vst.msk [vmem:[%s5581_s15 + $0x3c] sm:$0xf] %vm4431_vm14, %v4622_v27  ;;  %v4291_v36 = vmul.f32 %v5380_v58, %v8019_v32 }
 0x9a2   : > { %v4619_v17 = vpack.c.bf16 %v4363_v6, %v4363_v6 }
 0x9a3   : > { %v4342_v18 = vsel %vm4327_vm13, %v4325_v44, %v4291_v36 }
 0x9a4   : > { %4444 = vst.msk [vmem:[%s5581_s15 + $0x30] sm:$0xf] %vm4431_vm14, %v4619_v17  ;;  %v4365_v59 = vadd.f32 %v8085_v49, %v4342_v18 }
 0x9a6   : > { %v4621_v20 = vpack.c.bf16 %v4365_v59, %v4365_v59 }
 0x9a8   : > { %4446 = vst.msk [vmem:[%s5581_s15 + $0x38] sm:$0xf] %vm4431_vm14, %v4621_v20 }
 0x9a9 PF: > { %s15_s24 = sadd.s32 1, %s5435_s24   ;;  %s8659_s9 = sld [smem:[#allocation6_spill]] }
 0x9aa   : > { %p12_p1 = scmp.ge.s32.totalorder %s15_s24, 6   ;;  %s8660_s18 = smov %s5415_s19 }
 0x9ab   : > { %s8661_s19 = smov %s5534_s6  ;;  %s8662_s20 = smov %s5427_s22 }
 0x9ac   : > { %s8663_s21 = smov %s5431_s23  ;;  %s8664_s22 = smov %s8667_s25 }
 0x9ad   :  { %14 = sbr.rel (!%p12_p1) target bundleno = 6 (0x6), region = 133 }
 0x9af   : > { %s8665_s23 = smov %s8659_s9 }

</bundles_post_ra>
